<compile_context>
chip_gen: v7x
topology: tpu7x:2x2x1
jax: 0.10.0
libtpu: 0.0.40
codegen_flags: <defaults>
</compile_context>

<pallas_src>
import functools

import jax
import jax.numpy as jnp
import numpy as np
from jax import lax
from jax.experimental import pallas as pl
from jax.experimental.pallas import tpu as pltpu


# ----------------------------------------------------------------------------
# Fused kernel: stem matmul -> plain -> plain -> avg pool -> fc1 (per batch n)
# ----------------------------------------------------------------------------
def _content_stream_kernel(patches_ref, w0_ref, b0_ref, w1_ref, b1_ref,
                           w2_ref, b2_ref, fcw_ref, fcb_ref, o_ref, xpad_ref,
                           *, H, W, C, pad_l):
    HW = H * W
    PH = H + 2

    # Zero the halo buffer once per batch element (borders / left-pad stay
    # zero; the interior is overwritten by each layer's aligned store below).
    xpad_ref[...] = jnp.zeros_like(xpad_ref)

    # ---- Pre2 stem: im2col patches @ W0 + b0, ReLU -> (H*W, C) f32 ----------
    y = jnp.dot(patches_ref[0], w0_ref[...], preferred_element_type=jnp.float32)
    y = jnp.maximum(y + b0_ref[...], 0.0)

    # ---- 2x plain(256,256): 3x3 conv + ReLU, activations stay in VMEM -------
    for w_ref, b_ref in ((w1_ref, b1_ref), (w2_ref, b2_ref)):
        # Aligned interior store: outer offset 1, sublane offset pad_l (=8).
        xpad_ref[pl.ds(1, H), pl.ds(pad_l, W), :] = (
            y.astype(xpad_ref.dtype).reshape(H, W, C))

        acc = None
        for kw in range(3):                       # width shift hoisted: 1 slab per kw
            slab = xpad_ref[:, pl.ds(pad_l - 1 + kw, W), :].reshape(PH * W, C)
            for kh in range(3):                   # contiguous aligned row slice per tap
                xs = slab[kh * W:kh * W + HW, :]
                d = jnp.dot(xs, w_ref[kh * 3 + kw],
                            preferred_element_type=jnp.float32)
                acc = d if acc is None else acc + d
        y = jnp.maximum(acc + b_ref[...], 0.0)    # (H*W, C) f32, bias+ReLU once

    # ---- adaptive_avg_pool2d((1,1)) + fc1 (lane-dense padded output) --------
    pooled = jnp.sum(y, axis=0, keepdims=True) * (1.0 / HW)       # (1, C) f32
    pooled8 = jnp.broadcast_to(pooled, (8, C))                    # sublane-dense
    logits = jnp.dot(pooled8, fcw_ref[...],
                     preferred_element_type=jnp.float32) + fcb_ref[...]   # (8,128)
    o_ref[...] = logits[None].astype(o_ref.dtype)                 # (1, 8, 128)


# ----------------------------------------------------------------------------
# Wrappers (layout/padding glue only; all compute is in the fused kernel)
# ----------------------------------------------------------------------------
def _im2col_3x3(x_nhwc, k_pad):
    """SAME 3x3 patches: (N,H,W,Cin) -> (N, H*W, k_pad), K = 9*Cin <= k_pad."""
    N, H, W, Cin = x_nhwc.shape
    xp = jnp.pad(x_nhwc, ((0, 0), (1, 1), (1, 1), (0, 0)))
    cols = [xp[:, kh:kh + H, kw:kw + W, :] for kh in range(3) for kw in range(3)]
    patches = jnp.concatenate(cols, axis=-1).reshape(N, H * W, 9 * Cin)
    return jnp.pad(patches, ((0, 0), (0, 0), (0, k_pad - 9 * Cin)))


@jax.jit
def content_stream_forward(x_nchw, params):
    x = jnp.transpose(x_nchw, (0, 2, 3, 1)).astype(jnp.bfloat16)   # NCHW -> NHWC
    N, H, W, Cin = x.shape
    C = params["p1_w"].shape[-1]                                   # 256
    n_cls = params["fc_w"].shape[1]                                # 2
    K = 9 * Cin
    Kp = ((K + 7) // 8) * 8                                        # 27 -> 32
    pad_l = 8                                                      # aligned interior

    patches = _im2col_3x3(x, Kp).astype(jnp.bfloat16)              # (N, H*W, Kp)
    w0 = jnp.pad(params["pre_w"].reshape(K, C),
                 ((0, Kp - K), (0, 0))).astype(jnp.bfloat16)
    b0 = params["pre_b"].reshape(1, C).astype(jnp.float32)
    w1 = params["p1_w"].reshape(9, C, C).astype(jnp.bfloat16)
    b1 = params["p1_b"].reshape(1, C).astype(jnp.float32)
    w2 = params["p2_w"].reshape(9, C, C).astype(jnp.bfloat16)
    b2 = params["p2_b"].reshape(1, C).astype(jnp.float32)
    # Lane-dense FC: pad (256, 2) -> (256, 128); real columns sliced below.
    fcw = jnp.pad(params["fc_w"].astype(jnp.float32), ((0, 0), (0, 128 - n_cls)))
    fcb = jnp.pad(params["fc_b"].astype(jnp.float32), (0, 128 - n_cls)).reshape(1, 128)

    kernel = functools.partial(_content_stream_kernel, H=H, W=W, C=C, pad_l=pad_l)
    res2 = lambda n: (0, 0)            # resident (constant) index maps
    res3 = lambda n: (0, 0, 0)
    out = pl.pallas_call(
        kernel,
        out_shape=jax.ShapeDtypeStruct((N, 8, 128), jnp.float32),
        grid_spec=pltpu.PrefetchScalarGridSpec(
            num_scalar_prefetch=0,
            grid=(N,),
            in_specs=[pl.BlockSpec((1, H * W, Kp), lambda n: (n, 0, 0)),  # per-batch
                      pl.BlockSpec((Kp, C), res2),      # stem weight   (resident)
                      pl.BlockSpec((1, C), res2),       # stem bias     (resident)
                      pl.BlockSpec((9, C, C), res3),    # plain1 weight (resident)
                      pl.BlockSpec((1, C), res2),       # plain1 bias   (resident)
                      pl.BlockSpec((9, C, C), res3),    # plain2 weight (resident)
                      pl.BlockSpec((1, C), res2),       # plain2 bias   (resident)
                      pl.BlockSpec((C, 128), res2),     # fc1 weight    (resident)
                      pl.BlockSpec((1, 128), res2)],    # fc1 bias      (resident)
            out_specs=pl.BlockSpec((1, 8, 128), lambda n: (n, 0, 0)),
            scratch_shapes=[
                # zero-bordered halo buffer: rows [1,H], cols [pad_l, pad_l+W)
                pltpu.VMEM((H + 2, pad_l + W + 1, C), jnp.bfloat16)]),
        compiler_params=pltpu.CompilerParams(
            dimension_semantics=("parallel",),
            vmem_limit_bytes=32 * 1024 * 1024),
    )(patches, w0, b0, w1, b1, w2, b2, fcw, fcb)
    return out[:, 0, :n_cls]


# ----------------------------------------------------------------------------
# Deterministic parameter init (PyTorch-style uniform bounds)
# ----------------------------------------------------------------------------
def _init_conv(key, cin, cout):
    kw, kb = jax.random.split(key)
    bound = 1.0 / np.sqrt(cin * 3 * 3)
    w = jax.random.uniform(kw, (3, 3, cin, cout), jnp.float32, -bound, bound)
    b = jax.random.uniform(kb, (cout,), jnp.float32, -bound, bound)
    return w, b


def init_params(key):
    k0, k1, k2, k3 = jax.random.split(key, 4)
    pre_w, pre_b = _init_conv(k0, 3, 256)
    p1_w, p1_b = _init_conv(k1, 256, 256)
    p2_w, p2_b = _init_conv(k2, 256, 256)
    kw, kb = jax.random.split(k3)
    fb = 1.0 / np.sqrt(256)
    fc_w = jax.random.uniform(kw, (256, 2), jnp.float32, -fb, fb)
    fc_b = jax.random.uniform(kb, (2,), jnp.float32, -fb, fb)
    return dict(pre_w=pre_w, pre_b=pre_b, p1_w=p1_w, p1_b=p1_b,
                p2_w=p2_w, p2_b=p2_b, fc_w=fc_w, fc_b=fc_b)


# ----------------------------------------------------------------------------
# Pure-JAX reference (same bf16-in / f32-accum precision policy as the kernel)
# ----------------------------------------------------------------------------
def _ref_forward(x_nchw, p):
    x = jnp.transpose(x_nchw, (0, 2, 3, 1)).astype(jnp.bfloat16)
    dn = ("NHWC", "HWIO", "NHWC")
    layers = (("pre_w", "pre_b"), ("p1_w", "p1_b"), ("p2_w", "p2_b"))
    for li, (wk, bk) in enumerate(layers):
        y = lax.conv_general_dilated(
            x, p[wk].astype(jnp.bfloat16), (1, 1), "SAME",
            dimension_numbers=dn, preferred_element_type=jnp.float32)
        y = jnp.maximum(y + p[bk], 0.0)
        x = y if li == 2 else y.astype(jnp.bfloat16)   # last layer pooled in f32
    pooled = jnp.mean(x, axis=(1, 2))
    return pooled @ p["fc_w"] + p["fc_b"]


# ----------------------------------------------------------------------------
if __name__ == "__main__":
    key = jax.random.PRNGKey(0)
    kx, kp = jax.random.split(key)
    x = jax.random.normal(kx, (2, 3, 16, 16), jnp.float32)   # NCHW like PyTorch
    params = init_params(kp)

    out = jax.block_until_ready(content_stream_forward(x, params))
    assert out.shape == (2, 2), out.shape

    ref = jax.block_until_ready(_ref_forward(x, params))
    np.testing.assert_allclose(np.asarray(out, dtype=np.float32),
                               np.asarray(ref, dtype=np.float32),
                               rtol=2e-2, atol=2e-3)
    print("KERNEL_OK")
</pallas_src>

<mosaic_0001>
module attributes {stable_mosaic.version = 11 : i64} {
  func.func @_content_stream_kernel(%arg0: i32, %arg1: memref<1x256x32xbf16, #tpu.memory_space<vmem>>, %arg2: memref<32x256xbf16, #tpu.memory_space<vmem>>, %arg3: memref<1x256xf32, #tpu.memory_space<vmem>>, %arg4: memref<9x256x256xbf16, #tpu.memory_space<vmem>>, %arg5: memref<1x256xf32, #tpu.memory_space<vmem>>, %arg6: memref<9x256x256xbf16, #tpu.memory_space<vmem>>, %arg7: memref<1x256xf32, #tpu.memory_space<vmem>>, %arg8: memref<256x128xf32, #tpu.memory_space<vmem>>, %arg9: memref<1x128xf32, #tpu.memory_space<vmem>>, %arg10: memref<1x8x128xf32, #tpu.memory_space<vmem>>, %arg11: memref<18x25x256xbf16, #tpu.memory_space<vmem>>) attributes {dimension_semantics = [#tpu.dimension_semantics<parallel>], iteration_bounds = array<i64: 2>, scalar_prefetch = 0 : i64, scratch_operands = 1 : i64, tpu.core_type = #tpu.core_type<tc>, window_params = [{transform_indices = @transform_0, window_bounds = array<i64: 1, 256, 32>}, {pipeline_mode = #tpu.pipeline_mode<synchronous>, transform_indices = @transform_1, window_bounds = array<i64: 32, 256>}, {pipeline_mode = #tpu.pipeline_mode<synchronous>, transform_indices = @transform_2, window_bounds = array<i64: 1, 256>}, {pipeline_mode = #tpu.pipeline_mode<synchronous>, transform_indices = @transform_3, window_bounds = array<i64: 9, 256, 256>}, {pipeline_mode = #tpu.pipeline_mode<synchronous>, transform_indices = @transform_4, window_bounds = array<i64: 1, 256>}, {pipeline_mode = #tpu.pipeline_mode<synchronous>, transform_indices = @transform_5, window_bounds = array<i64: 9, 256, 256>}, {pipeline_mode = #tpu.pipeline_mode<synchronous>, transform_indices = @transform_6, window_bounds = array<i64: 1, 256>}, {pipeline_mode = #tpu.pipeline_mode<synchronous>, transform_indices = @transform_7, window_bounds = array<i64: 256, 128>}, {pipeline_mode = #tpu.pipeline_mode<synchronous>, transform_indices = @transform_8, window_bounds = array<i64: 1, 128>}, {transform_indices = @transform_9, window_bounds = array<i64: 1, 8, 128>}]} {
    %cst = arith.constant 0.000000e+00 : bf16
    %0 = vector.broadcast %cst : bf16 to vector<18x25x256xbf16>
    %c0 = arith.constant 0 : index
    %c0_0 = arith.constant 0 : index
    %c0_1 = arith.constant 0 : index
    %1 = vector.load %arg11[%c0, %c0_0, %c0_1] : memref<18x25x256xbf16, #tpu.memory_space<vmem>>, vector<18x25x256xbf16>
    tpu.vector_store %arg11[%c0, %c0_0, %c0_1], %0 {strides = array<i32>} : memref<18x25x256xbf16, #tpu.memory_space<vmem>>, vector<18x25x256xbf16>,
    %c0_2 = arith.constant 0 : index
    %c0_3 = arith.constant 0 : index
    %c0_4 = arith.constant 0 : index
    %2 = vector.load %arg1[%c0_2, %c0_3, %c0_4] : memref<1x256x32xbf16, #tpu.memory_space<vmem>>, vector<1x256x32xbf16>
    %3 = vector.shape_cast %2 : vector<1x256x32xbf16> to vector<256x32xbf16>
    %c0_5 = arith.constant 0 : index
    %c0_6 = arith.constant 0 : index
    %4 = vector.load %arg2[%c0_5, %c0_6] : memref<32x256xbf16, #tpu.memory_space<vmem>>, vector<32x256xbf16>
    %cst_7 = arith.constant dense<0.000000e+00> : vector<256x256xf32>
    %5 = tpu.matmul %3, %4, %cst_7 {dimension_numbers = #tpu.dot_dimension_numbers<[1], [0], [0], [1], [0, 0, 1, 1], [], []>} : vector<256x32xbf16>, vector<32x256xbf16>, vector<256x256xf32> -> vector<256x256xf32>
    %c0_8 = arith.constant 0 : index
    %c0_9 = arith.constant 0 : index
    %6 = vector.load %arg3[%c0_8, %c0_9] : memref<1x256xf32, #tpu.memory_space<vmem>>, vector<1x256xf32>
    %7 = vector.broadcast %6 : vector<1x256xf32> to vector<256x256xf32>
    %8 = arith.addf %5, %7 : vector<256x256xf32>
    %cst_10 = arith.constant 0.000000e+00 : f32
    %9 = vector.broadcast %cst_10 : f32 to vector<256x256xf32>
    %10 = arith.maximumf %8, %9 : vector<256x256xf32>
    %11 = arith.truncf %10 : vector<256x256xf32> to vector<256x256xbf16>
    %12 = vector.shape_cast %11 : vector<256x256xbf16> to vector<16x16x256xbf16>
    %c1 = arith.constant 1 : index
    %c8 = arith.constant 8 : index
    %c0_11 = arith.constant 0 : index
    %13 = vector.load %arg11[%c1, %c8, %c0_11] : memref<18x25x256xbf16, #tpu.memory_space<vmem>>, vector<16x16x256xbf16>
    tpu.vector_store %arg11[%c1, %c8, %c0_11], %12 {strides = array<i32>} : memref<18x25x256xbf16, #tpu.memory_space<vmem>>, vector<16x16x256xbf16>,
    %c0_12 = arith.constant 0 : index
    %c7 = arith.constant 7 : index
    %c0_13 = arith.constant 0 : index
    %14 = vector.load %arg11[%c0_12, %c7, %c0_13] : memref<18x25x256xbf16, #tpu.memory_space<vmem>>, vector<18x16x256xbf16>
    %15 = vector.shape_cast %14 : vector<18x16x256xbf16> to vector<288x256xbf16>
    %16 = vector.extract_strided_slice %15 {offsets = [0, 0], sizes = [256, 256], strides = [1, 1]} : vector<288x256xbf16> to vector<256x256xbf16>
    %c0_14 = arith.constant 0 : index
    %c0_15 = arith.constant 0 : index
    %c0_16 = arith.constant 0 : index
    %17 = vector.load %arg4[%c0_14, %c0_15, %c0_16] : memref<9x256x256xbf16, #tpu.memory_space<vmem>>, vector<1x256x256xbf16>
    %18 = vector.shape_cast %17 : vector<1x256x256xbf16> to vector<256x256xbf16>
    %cst_17 = arith.constant dense<0.000000e+00> : vector<256x256xf32>
    %19 = tpu.matmul %16, %18, %cst_17 {dimension_numbers = #tpu.dot_dimension_numbers<[1], [0], [0], [1], [0, 0, 1, 1], [], []>} : vector<256x256xbf16>, vector<256x256xbf16>, vector<256x256xf32> -> vector<256x256xf32>
    %20 = vector.extract_strided_slice %15 {offsets = [16, 0], sizes = [256, 256], strides = [1, 1]} : vector<288x256xbf16> to vector<256x256xbf16>
    %c3 = arith.constant 3 : index
    %c0_18 = arith.constant 0 : index
    %c0_19 = arith.constant 0 : index
    %21 = vector.load %arg4[%c3, %c0_18, %c0_19] : memref<9x256x256xbf16, #tpu.memory_space<vmem>>, vector<1x256x256xbf16>
    %22 = vector.shape_cast %21 : vector<1x256x256xbf16> to vector<256x256xbf16>
    %cst_20 = arith.constant dense<0.000000e+00> : vector<256x256xf32>
    %23 = tpu.matmul %20, %22, %cst_20 {dimension_numbers = #tpu.dot_dimension_numbers<[1], [0], [0], [1], [0, 0, 1, 1], [], []>} : vector<256x256xbf16>, vector<256x256xbf16>, vector<256x256xf32> -> vector<256x256xf32>
    %24 = arith.addf %19, %23 : vector<256x256xf32>
    %25 = vector.extract_strided_slice %15 {offsets = [32, 0], sizes = [256, 256], strides = [1, 1]} : vector<288x256xbf16> to vector<256x256xbf16>
    %c6 = arith.constant 6 : index
    %c0_21 = arith.constant 0 : index
    %c0_22 = arith.constant 0 : index
    %26 = vector.load %arg4[%c6, %c0_21, %c0_22] : memref<9x256x256xbf16, #tpu.memory_space<vmem>>, vector<1x256x256xbf16>
    %27 = vector.shape_cast %26 : vector<1x256x256xbf16> to vector<256x256xbf16>
    %cst_23 = arith.constant dense<0.000000e+00> : vector<256x256xf32>
    %28 = tpu.matmul %25, %27, %cst_23 {dimension_numbers = #tpu.dot_dimension_numbers<[1], [0], [0], [1], [0, 0, 1, 1], [], []>} : vector<256x256xbf16>, vector<256x256xbf16>, vector<256x256xf32> -> vector<256x256xf32>
    %29 = arith.addf %24, %28 : vector<256x256xf32>
    %c0_24 = arith.constant 0 : index
    %c8_25 = arith.constant 8 : index
    %c0_26 = arith.constant 0 : index
    %30 = vector.load %arg11[%c0_24, %c8_25, %c0_26] : memref<18x25x256xbf16, #tpu.memory_space<vmem>>, vector<18x16x256xbf16>
    %31 = vector.shape_cast %30 : vector<18x16x256xbf16> to vector<288x256xbf16>
    %32 = vector.extract_strided_slice %31 {offsets = [0, 0], sizes = [256, 256], strides = [1, 1]} : vector<288x256xbf16> to vector<256x256xbf16>
    %c1_27 = arith.constant 1 : index
    %c0_28 = arith.constant 0 : index
    %c0_29 = arith.constant 0 : index
    %33 = vector.load %arg4[%c1_27, %c0_28, %c0_29] : memref<9x256x256xbf16, #tpu.memory_space<vmem>>, vector<1x256x256xbf16>
    %34 = vector.shape_cast %33 : vector<1x256x256xbf16> to vector<256x256xbf16>
    %cst_30 = arith.constant dense<0.000000e+00> : vector<256x256xf32>
    %35 = tpu.matmul %32, %34, %cst_30 {dimension_numbers = #tpu.dot_dimension_numbers<[1], [0], [0], [1], [0, 0, 1, 1], [], []>} : vector<256x256xbf16>, vector<256x256xbf16>, vector<256x256xf32> -> vector<256x256xf32>
    %36 = arith.addf %29, %35 : vector<256x256xf32>
    %37 = vector.extract_strided_slice %31 {offsets = [16, 0], sizes = [256, 256], strides = [1, 1]} : vector<288x256xbf16> to vector<256x256xbf16>
    %c4 = arith.constant 4 : index
    %c0_31 = arith.constant 0 : index
    %c0_32 = arith.constant 0 : index
    %38 = vector.load %arg4[%c4, %c0_31, %c0_32] : memref<9x256x256xbf16, #tpu.memory_space<vmem>>, vector<1x256x256xbf16>
    %39 = vector.shape_cast %38 : vector<1x256x256xbf16> to vector<256x256xbf16>
    %cst_33 = arith.constant dense<0.000000e+00> : vector<256x256xf32>
    %40 = tpu.matmul %37, %39, %cst_33 {dimension_numbers = #tpu.dot_dimension_numbers<[1], [0], [0], [1], [0, 0, 1, 1], [], []>} : vector<256x256xbf16>, vector<256x256xbf16>, vector<256x256xf32> -> vector<256x256xf32>
    %41 = arith.addf %36, %40 : vector<256x256xf32>
    %42 = vector.extract_strided_slice %31 {offsets = [32, 0], sizes = [256, 256], strides = [1, 1]} : vector<288x256xbf16> to vector<256x256xbf16>
    %c7_34 = arith.constant 7 : index
    %c0_35 = arith.constant 0 : index
    %c0_36 = arith.constant 0 : index
    %43 = vector.load %arg4[%c7_34, %c0_35, %c0_36] : memref<9x256x256xbf16, #tpu.memory_space<vmem>>, vector<1x256x256xbf16>
    %44 = vector.shape_cast %43 : vector<1x256x256xbf16> to vector<256x256xbf16>
    %cst_37 = arith.constant dense<0.000000e+00> : vector<256x256xf32>
    %45 = tpu.matmul %42, %44, %cst_37 {dimension_numbers = #tpu.dot_dimension_numbers<[1], [0], [0], [1], [0, 0, 1, 1], [], []>} : vector<256x256xbf16>, vector<256x256xbf16>, vector<256x256xf32> -> vector<256x256xf32>
    %46 = arith.addf %41, %45 : vector<256x256xf32>
    %c0_38 = arith.constant 0 : index
    %c9 = arith.constant 9 : index
    %c0_39 = arith.constant 0 : index
    %47 = vector.load %arg11[%c0_38, %c9, %c0_39] : memref<18x25x256xbf16, #tpu.memory_space<vmem>>, vector<18x16x256xbf16>
    %48 = vector.shape_cast %47 : vector<18x16x256xbf16> to vector<288x256xbf16>
    %49 = vector.extract_strided_slice %48 {offsets = [0, 0], sizes = [256, 256], strides = [1, 1]} : vector<288x256xbf16> to vector<256x256xbf16>
    %c2 = arith.constant 2 : index
    %c0_40 = arith.constant 0 : index
    %c0_41 = arith.constant 0 : index
    %50 = vector.load %arg4[%c2, %c0_40, %c0_41] : memref<9x256x256xbf16, #tpu.memory_space<vmem>>, vector<1x256x256xbf16>
    %51 = vector.shape_cast %50 : vector<1x256x256xbf16> to vector<256x256xbf16>
    %cst_42 = arith.constant dense<0.000000e+00> : vector<256x256xf32>
    %52 = tpu.matmul %49, %51, %cst_42 {dimension_numbers = #tpu.dot_dimension_numbers<[1], [0], [0], [1], [0, 0, 1, 1], [], []>} : vector<256x256xbf16>, vector<256x256xbf16>, vector<256x256xf32> -> vector<256x256xf32>
    %53 = arith.addf %46, %52 : vector<256x256xf32>
    %54 = vector.extract_strided_slice %48 {offsets = [16, 0], sizes = [256, 256], strides = [1, 1]} : vector<288x256xbf16> to vector<256x256xbf16>
    %c5 = arith.constant 5 : index
    %c0_43 = arith.constant 0 : index
    %c0_44 = arith.constant 0 : index
    %55 = vector.load %arg4[%c5, %c0_43, %c0_44] : memref<9x256x256xbf16, #tpu.memory_space<vmem>>, vector<1x256x256xbf16>
    %56 = vector.shape_cast %55 : vector<1x256x256xbf16> to vector<256x256xbf16>
    %cst_45 = arith.constant dense<0.000000e+00> : vector<256x256xf32>
    %57 = tpu.matmul %54, %56, %cst_45 {dimension_numbers = #tpu.dot_dimension_numbers<[1], [0], [0], [1], [0, 0, 1, 1], [], []>} : vector<256x256xbf16>, vector<256x256xbf16>, vector<256x256xf32> -> vector<256x256xf32>
    %58 = arith.addf %53, %57 : vector<256x256xf32>
    %59 = vector.extract_strided_slice %48 {offsets = [32, 0], sizes = [256, 256], strides = [1, 1]} : vector<288x256xbf16> to vector<256x256xbf16>
    %c8_46 = arith.constant 8 : index
    %c0_47 = arith.constant 0 : index
    %c0_48 = arith.constant 0 : index
    %60 = vector.load %arg4[%c8_46, %c0_47, %c0_48] : memref<9x256x256xbf16, #tpu.memory_space<vmem>>, vector<1x256x256xbf16>
    %61 = vector.shape_cast %60 : vector<1x256x256xbf16> to vector<256x256xbf16>
    %cst_49 = arith.constant dense<0.000000e+00> : vector<256x256xf32>
    %62 = tpu.matmul %59, %61, %cst_49 {dimension_numbers = #tpu.dot_dimension_numbers<[1], [0], [0], [1], [0, 0, 1, 1], [], []>} : vector<256x256xbf16>, vector<256x256xbf16>, vector<256x256xf32> -> vector<256x256xf32>
    %63 = arith.addf %58, %62 : vector<256x256xf32>
    %c0_50 = arith.constant 0 : index
    %c0_51 = arith.constant 0 : index
    %64 = vector.load %arg5[%c0_50, %c0_51] : memref<1x256xf32, #tpu.memory_space<vmem>>, vector<1x256xf32>
    %65 = vector.broadcast %64 : vector<1x256xf32> to vector<256x256xf32>
    %66 = arith.addf %63, %65 : vector<256x256xf32>
    %cst_52 = arith.constant 0.000000e+00 : f32
    %67 = vector.broadcast %cst_52 : f32 to vector<256x256xf32>
    %68 = arith.maximumf %66, %67 : vector<256x256xf32>
    %69 = arith.truncf %68 : vector<256x256xf32> to vector<256x256xbf16>
    %70 = vector.shape_cast %69 : vector<256x256xbf16> to vector<16x16x256xbf16>
    %c1_53 = arith.constant 1 : index
    %c8_54 = arith.constant 8 : index
    %c0_55 = arith.constant 0 : index
    %71 = vector.load %arg11[%c1_53, %c8_54, %c0_55] : memref<18x25x256xbf16, #tpu.memory_space<vmem>>, vector<16x16x256xbf16>
    tpu.vector_store %arg11[%c1_53, %c8_54, %c0_55], %70 {strides = array<i32>} : memref<18x25x256xbf16, #tpu.memory_space<vmem>>, vector<16x16x256xbf16>,
    %c0_56 = arith.constant 0 : index
    %c7_57 = arith.constant 7 : index
    %c0_58 = arith.constant 0 : index
    %72 = vector.load %arg11[%c0_56, %c7_57, %c0_58] : memref<18x25x256xbf16, #tpu.memory_space<vmem>>, vector<18x16x256xbf16>
    %73 = vector.shape_cast %72 : vector<18x16x256xbf16> to vector<288x256xbf16>
    %74 = vector.extract_strided_slice %73 {offsets = [0, 0], sizes = [256, 256], strides = [1, 1]} : vector<288x256xbf16> to vector<256x256xbf16>
    %c0_59 = arith.constant 0 : index
    %c0_60 = arith.constant 0 : index
    %c0_61 = arith.constant 0 : index
    %75 = vector.load %arg6[%c0_59, %c0_60, %c0_61] : memref<9x256x256xbf16, #tpu.memory_space<vmem>>, vector<1x256x256xbf16>
    %76 = vector.shape_cast %75 : vector<1x256x256xbf16> to vector<256x256xbf16>
    %cst_62 = arith.constant dense<0.000000e+00> : vector<256x256xf32>
    %77 = tpu.matmul %74, %76, %cst_62 {dimension_numbers = #tpu.dot_dimension_numbers<[1], [0], [0], [1], [0, 0, 1, 1], [], []>} : vector<256x256xbf16>, vector<256x256xbf16>, vector<256x256xf32> -> vector<256x256xf32>
    %78 = vector.extract_strided_slice %73 {offsets = [16, 0], sizes = [256, 256], strides = [1, 1]} : vector<288x256xbf16> to vector<256x256xbf16>
    %c3_63 = arith.constant 3 : index
    %c0_64 = arith.constant 0 : index
    %c0_65 = arith.constant 0 : index
    %79 = vector.load %arg6[%c3_63, %c0_64, %c0_65] : memref<9x256x256xbf16, #tpu.memory_space<vmem>>, vector<1x256x256xbf16>
    %80 = vector.shape_cast %79 : vector<1x256x256xbf16> to vector<256x256xbf16>
    %cst_66 = arith.constant dense<0.000000e+00> : vector<256x256xf32>
    %81 = tpu.matmul %78, %80, %cst_66 {dimension_numbers = #tpu.dot_dimension_numbers<[1], [0], [0], [1], [0, 0, 1, 1], [], []>} : vector<256x256xbf16>, vector<256x256xbf16>, vector<256x256xf32> -> vector<256x256xf32>
    %82 = arith.addf %77, %81 : vector<256x256xf32>
    %83 = vector.extract_strided_slice %73 {offsets = [32, 0], sizes = [256, 256], strides = [1, 1]} : vector<288x256xbf16> to vector<256x256xbf16>
    %c6_67 = arith.constant 6 : index
    %c0_68 = arith.constant 0 : index
    %c0_69 = arith.constant 0 : index
    %84 = vector.load %arg6[%c6_67, %c0_68, %c0_69] : memref<9x256x256xbf16, #tpu.memory_space<vmem>>, vector<1x256x256xbf16>
    %85 = vector.shape_cast %84 : vector<1x256x256xbf16> to vector<256x256xbf16>
    %cst_70 = arith.constant dense<0.000000e+00> : vector<256x256xf32>
    %86 = tpu.matmul %83, %85, %cst_70 {dimension_numbers = #tpu.dot_dimension_numbers<[1], [0], [0], [1], [0, 0, 1, 1], [], []>} : vector<256x256xbf16>, vector<256x256xbf16>, vector<256x256xf32> -> vector<256x256xf32>
    %87 = arith.addf %82, %86 : vector<256x256xf32>
    %c0_71 = arith.constant 0 : index
    %c8_72 = arith.constant 8 : index
    %c0_73 = arith.constant 0 : index
    %88 = vector.load %arg11[%c0_71, %c8_72, %c0_73] : memref<18x25x256xbf16, #tpu.memory_space<vmem>>, vector<18x16x256xbf16>
    %89 = vector.shape_cast %88 : vector<18x16x256xbf16> to vector<288x256xbf16>
    %90 = vector.extract_strided_slice %89 {offsets = [0, 0], sizes = [256, 256], strides = [1, 1]} : vector<288x256xbf16> to vector<256x256xbf16>
    %c1_74 = arith.constant 1 : index
    %c0_75 = arith.constant 0 : index
    %c0_76 = arith.constant 0 : index
    %91 = vector.load %arg6[%c1_74, %c0_75, %c0_76] : memref<9x256x256xbf16, #tpu.memory_space<vmem>>, vector<1x256x256xbf16>
    %92 = vector.shape_cast %91 : vector<1x256x256xbf16> to vector<256x256xbf16>
    %cst_77 = arith.constant dense<0.000000e+00> : vector<256x256xf32>
    %93 = tpu.matmul %90, %92, %cst_77 {dimension_numbers = #tpu.dot_dimension_numbers<[1], [0], [0], [1], [0, 0, 1, 1], [], []>} : vector<256x256xbf16>, vector<256x256xbf16>, vector<256x256xf32> -> vector<256x256xf32>
    %94 = arith.addf %87, %93 : vector<256x256xf32>
    %95 = vector.extract_strided_slice %89 {offsets = [16, 0], sizes = [256, 256], strides = [1, 1]} : vector<288x256xbf16> to vector<256x256xbf16>
    %c4_78 = arith.constant 4 : index
    %c0_79 = arith.constant 0 : index
    %c0_80 = arith.constant 0 : index
    %96 = vector.load %arg6[%c4_78, %c0_79, %c0_80] : memref<9x256x256xbf16, #tpu.memory_space<vmem>>, vector<1x256x256xbf16>
    %97 = vector.shape_cast %96 : vector<1x256x256xbf16> to vector<256x256xbf16>
    %cst_81 = arith.constant dense<0.000000e+00> : vector<256x256xf32>
    %98 = tpu.matmul %95, %97, %cst_81 {dimension_numbers = #tpu.dot_dimension_numbers<[1], [0], [0], [1], [0, 0, 1, 1], [], []>} : vector<256x256xbf16>, vector<256x256xbf16>, vector<256x256xf32> -> vector<256x256xf32>
    %99 = arith.addf %94, %98 : vector<256x256xf32>
    %100 = vector.extract_strided_slice %89 {offsets = [32, 0], sizes = [256, 256], strides = [1, 1]} : vector<288x256xbf16> to vector<256x256xbf16>
    %c7_82 = arith.constant 7 : index
    %c0_83 = arith.constant 0 : index
    %c0_84 = arith.constant 0 : index
    %101 = vector.load %arg6[%c7_82, %c0_83, %c0_84] : memref<9x256x256xbf16, #tpu.memory_space<vmem>>, vector<1x256x256xbf16>
    %102 = vector.shape_cast %101 : vector<1x256x256xbf16> to vector<256x256xbf16>
    %cst_85 = arith.constant dense<0.000000e+00> : vector<256x256xf32>
    %103 = tpu.matmul %100, %102, %cst_85 {dimension_numbers = #tpu.dot_dimension_numbers<[1], [0], [0], [1], [0, 0, 1, 1], [], []>} : vector<256x256xbf16>, vector<256x256xbf16>, vector<256x256xf32> -> vector<256x256xf32>
    %104 = arith.addf %99, %103 : vector<256x256xf32>
    %c0_86 = arith.constant 0 : index
    %c9_87 = arith.constant 9 : index
    %c0_88 = arith.constant 0 : index
    %105 = vector.load %arg11[%c0_86, %c9_87, %c0_88] : memref<18x25x256xbf16, #tpu.memory_space<vmem>>, vector<18x16x256xbf16>
    %106 = vector.shape_cast %105 : vector<18x16x256xbf16> to vector<288x256xbf16>
    %107 = vector.extract_strided_slice %106 {offsets = [0, 0], sizes = [256, 256], strides = [1, 1]} : vector<288x256xbf16> to vector<256x256xbf16>
    %c2_89 = arith.constant 2 : index
    %c0_90 = arith.constant 0 : index
    %c0_91 = arith.constant 0 : index
    %108 = vector.load %arg6[%c2_89, %c0_90, %c0_91] : memref<9x256x256xbf16, #tpu.memory_space<vmem>>, vector<1x256x256xbf16>
    %109 = vector.shape_cast %108 : vector<1x256x256xbf16> to vector<256x256xbf16>
    %cst_92 = arith.constant dense<0.000000e+00> : vector<256x256xf32>
    %110 = tpu.matmul %107, %109, %cst_92 {dimension_numbers = #tpu.dot_dimension_numbers<[1], [0], [0], [1], [0, 0, 1, 1], [], []>} : vector<256x256xbf16>, vector<256x256xbf16>, vector<256x256xf32> -> vector<256x256xf32>
    %111 = arith.addf %104, %110 : vector<256x256xf32>
    %112 = vector.extract_strided_slice %106 {offsets = [16, 0], sizes = [256, 256], strides = [1, 1]} : vector<288x256xbf16> to vector<256x256xbf16>
    %c5_93 = arith.constant 5 : index
    %c0_94 = arith.constant 0 : index
    %c0_95 = arith.constant 0 : index
    %113 = vector.load %arg6[%c5_93, %c0_94, %c0_95] : memref<9x256x256xbf16, #tpu.memory_space<vmem>>, vector<1x256x256xbf16>
    %114 = vector.shape_cast %113 : vector<1x256x256xbf16> to vector<256x256xbf16>
    %cst_96 = arith.constant dense<0.000000e+00> : vector<256x256xf32>
    %115 = tpu.matmul %112, %114, %cst_96 {dimension_numbers = #tpu.dot_dimension_numbers<[1], [0], [0], [1], [0, 0, 1, 1], [], []>} : vector<256x256xbf16>, vector<256x256xbf16>, vector<256x256xf32> -> vector<256x256xf32>
    %116 = arith.addf %111, %115 : vector<256x256xf32>
    %117 = vector.extract_strided_slice %106 {offsets = [32, 0], sizes = [256, 256], strides = [1, 1]} : vector<288x256xbf16> to vector<256x256xbf16>
    %c8_97 = arith.constant 8 : index
    %c0_98 = arith.constant 0 : index
    %c0_99 = arith.constant 0 : index
    %118 = vector.load %arg6[%c8_97, %c0_98, %c0_99] : memref<9x256x256xbf16, #tpu.memory_space<vmem>>, vector<1x256x256xbf16>
    %119 = vector.shape_cast %118 : vector<1x256x256xbf16> to vector<256x256xbf16>
    %cst_100 = arith.constant dense<0.000000e+00> : vector<256x256xf32>
    %120 = tpu.matmul %117, %119, %cst_100 {dimension_numbers = #tpu.dot_dimension_numbers<[1], [0], [0], [1], [0, 0, 1, 1], [], []>} : vector<256x256xbf16>, vector<256x256xbf16>, vector<256x256xf32> -> vector<256x256xf32>
    %121 = arith.addf %116, %120 : vector<256x256xf32>
    %c0_101 = arith.constant 0 : index
    %c0_102 = arith.constant 0 : index
    %122 = vector.load %arg7[%c0_101, %c0_102] : memref<1x256xf32, #tpu.memory_space<vmem>>, vector<1x256xf32>
    %123 = vector.broadcast %122 : vector<1x256xf32> to vector<256x256xf32>
    %124 = arith.addf %121, %123 : vector<256x256xf32>
    %cst_103 = arith.constant 0.000000e+00 : f32
    %125 = vector.broadcast %cst_103 : f32 to vector<256x256xf32>
    %126 = arith.maximumf %124, %125 : vector<256x256xf32>
    %cst_104 = arith.constant dense<0.000000e+00> : vector<256xf32>
    %127 = vector.multi_reduction <add>, %126, %cst_104 [0] : vector<256x256xf32> to vector<256xf32>
    %128 = vector.shape_cast %127 : vector<256xf32> to vector<1x256xf32>
    %cst_105 = arith.constant 3.906250e-03 : f32
    %129 = vector.broadcast %cst_105 : f32 to vector<1x256xf32>
    %130 = arith.mulf %128, %129 : vector<1x256xf32>
    %131 = vector.shape_cast %130 : vector<1x256xf32> to vector<1x256xf32>
    %132 = vector.broadcast %131 : vector<1x256xf32> to vector<8x256xf32>
    %c0_106 = arith.constant 0 : index
    %c0_107 = arith.constant 0 : index
    %133 = vector.load %arg8[%c0_106, %c0_107] : memref<256x128xf32, #tpu.memory_space<vmem>>, vector<256x128xf32>
    %cst_108 = arith.constant dense<0.000000e+00> : vector<8x128xf32>
    %134 = tpu.matmul %132, %133, %cst_108 {dimension_numbers = #tpu.dot_dimension_numbers<[1], [0], [0], [1], [0, 0, 1, 1], [], []>} : vector<8x256xf32>, vector<256x128xf32>, vector<8x128xf32> -> vector<8x128xf32>
    %c0_109 = arith.constant 0 : index
    %c0_110 = arith.constant 0 : index
    %135 = vector.load %arg9[%c0_109, %c0_110] : memref<1x128xf32, #tpu.memory_space<vmem>>, vector<1x128xf32>
    %136 = vector.broadcast %135 : vector<1x128xf32> to vector<8x128xf32>
    %137 = arith.addf %134, %136 : vector<8x128xf32>
    %138 = vector.shape_cast %137 : vector<8x128xf32> to vector<1x8x128xf32>
    %c0_111 = arith.constant 0 : index
    %c0_112 = arith.constant 0 : index
    %c0_113 = arith.constant 0 : index
    %139 = vector.load %arg10[%c0_111, %c0_112, %c0_113] : memref<1x8x128xf32, #tpu.memory_space<vmem>>, vector<1x8x128xf32>
    tpu.vector_store %arg10[%c0_111, %c0_112, %c0_113], %138 {strides = array<i32>} : memref<1x8x128xf32, #tpu.memory_space<vmem>>, vector<1x8x128xf32>,
    return
  }
  func.func @transform_0(%arg0: i32) -> (i32, i32, i32) {
    %c0_i32 = arith.constant 0 : i32
    %c0_i32_0 = arith.constant 0 : i32
    %c0_i32_1 = arith.constant 0 : i32
    return %arg0, %c0_i32, %c0_i32_0 : i32, i32, i32
  }
  func.func @transform_1(%arg0: i32) -> (i32, i32) {
    %c0_i32 = arith.constant 0 : i32
    %c0_i32_0 = arith.constant 0 : i32
    %c0_i32_1 = arith.constant 0 : i32
    return %c0_i32, %c0_i32_0 : i32, i32
  }
  func.func @transform_2(%arg0: i32) -> (i32, i32) {
    %c0_i32 = arith.constant 0 : i32
    %c0_i32_0 = arith.constant 0 : i32
    %c0_i32_1 = arith.constant 0 : i32
    return %c0_i32, %c0_i32_0 : i32, i32
  }
  func.func @transform_3(%arg0: i32) -> (i32, i32, i32) {
    %c0_i32 = arith.constant 0 : i32
    %c0_i32_0 = arith.constant 0 : i32
    %c0_i32_1 = arith.constant 0 : i32
    %c0_i32_2 = arith.constant 0 : i32
    return %c0_i32, %c0_i32_0, %c0_i32_1 : i32, i32, i32
  }
  func.func @transform_4(%arg0: i32) -> (i32, i32) {
    %c0_i32 = arith.constant 0 : i32
    %c0_i32_0 = arith.constant 0 : i32
    %c0_i32_1 = arith.constant 0 : i32
    return %c0_i32, %c0_i32_0 : i32, i32
  }
  func.func @transform_5(%arg0: i32) -> (i32, i32, i32) {
    %c0_i32 = arith.constant 0 : i32
    %c0_i32_0 = arith.constant 0 : i32
    %c0_i32_1 = arith.constant 0 : i32
    %c0_i32_2 = arith.constant 0 : i32
    return %c0_i32, %c0_i32_0, %c0_i32_1 : i32, i32, i32
  }
  func.func @transform_6(%arg0: i32) -> (i32, i32) {
    %c0_i32 = arith.constant 0 : i32
    %c0_i32_0 = arith.constant 0 : i32
    %c0_i32_1 = arith.constant 0 : i32
    return %c0_i32, %c0_i32_0 : i32, i32
  }
  func.func @transform_7(%arg0: i32) -> (i32, i32) {
    %c0_i32 = arith.constant 0 : i32
    %c0_i32_0 = arith.constant 0 : i32
    %c0_i32_1 = arith.constant 0 : i32
    return %c0_i32, %c0_i32_0 : i32, i32
  }
  func.func @transform_8(%arg0: i32) -> (i32, i32) {
    %c0_i32 = arith.constant 0 : i32
    %c0_i32_0 = arith.constant 0 : i32
    %c0_i32_1 = arith.constant 0 : i32
    return %c0_i32, %c0_i32_0 : i32, i32
  }
  func.func @transform_9(%arg0: i32) -> (i32, i32, i32) {
    %c0_i32 = arith.constant 0 : i32
    %c0_i32_0 = arith.constant 0 : i32
    %c0_i32_1 = arith.constant 0 : i32
    return %arg0, %c0_i32, %c0_i32_0 : i32, i32, i32
  }
}

</mosaic_0001>

<bundles_post_ra>
// kernel: content_stream_forward.1
= control target key start
LH: loop header
LB: loop body
LE: loop exit
PB: predicated region body
PF: predicated region fallthrough
CT: control target
= control target key end

     0   :  { %s16159_s30 = smov 0   ;;  %s20147_s0 = inlined_call_operand.vmem [shape: bf16[2,256,32], index: 0, kind: input, shape index: {}]   ;;  %s20148_s1 = inlined_call_operand.vmem [shape: bf16[32,256], index: 1, kind: input, shape index: {}]   ;;  %s20149_s2 = inlined_call_operand.vmem [shape: f32[1,256], index: 2, kind: input, shape index: {}]   ;;  %s20150_s3 = inlined_call_operand.vmem [shape: bf16[9,256,256], index: 3, kind: input, shape index: {}]   ;;  %s20151_s4 = inlined_call_operand.vmem [shape: f32[1,256], index: 4, kind: input, shape index: {}]   ;;  %s20152_s5 = inlined_call_operand.vmem [shape: bf16[9,256,256], index: 5, kind: input, shape index: {}]   ;;  %s20153_s6 = inlined_call_operand.vmem [shape: f32[1,256], index: 6, kind: input, shape index: {}]   ;;  %s20154_s7 = inlined_call_operand.vmem [shape: f32[256,128], index: 7, kind: input, shape index: {}]   ;;  %s20155_s8 = inlined_call_operand.vmem [shape: f32[1,128], index: 8, kind: input, shape index: {}]   ;;  %s20156_s9 = inlined_call_operand.vmem [shape: f32[2,8,128], index: 9, kind: output, shape index: {}]  }
   0x1 LB: > { %s12524_s10 = sadd.s32 4294967295, %s16106_s30   ;;  %p12528_p0 = scmp.ge.s32.totalorder %s16106_s30, 1  ;;  %s16106_s30 = sphi %s16159_s30, %s19_s30  }
   0x2   : > { %p287_p1 = scmp.lt.s32.totalorder %s16106_s30, 3 }
   0x4   : > { %p288_p2 = pnand %p12528_p0, %p287_p1 }
   0x6   : > { %291 = sbr.rel (%p288_p2) target bundleno = 3108 (0xc24), region = 56 }
   0xd   : > { %v15144_v0 = vld [vmem:[%s20148_s1 + $0x4] ss:$8 sps:$4 sm:$0xff]   ;;  %p16172_p3 = scmp.lt.s32.totalorder %s12524_s10, 1  ;;  %v15146_v1 = vld [vmem:[%s20148_s1] ss:$8 sps:$4 sm:$0xff]   ;;  %v16108_v2 = vmov 0   ;;  %v485_v57 = vlaneseq }
   0xe   : > { %676 = vmatprep.mubr.bf16.mxu0 %v16108_v2  ;;  %332 = vst [vmem:[#allocation2] sm:$0xff] %v16108_v2  ;;  %345 = vst [vmem:[#allocation2 + $0x20] sm:$0xff] %v16108_v2  ;;  %756 = vmatprep.mubr.bf16.mxu1 %v16108_v2  ;;  %v15147_v3 = vld [vmem:[%s20148_s1 + $0x14] ss:$8 sps:$4 sm:$0xff]   ;;  %v15149_v4 = vld [vmem:[%s20148_s1 + $0x10] ss:$8 sps:$4 sm:$0xff]  }
   0xf   : > { %351 = vst [vmem:[#allocation2 + $0x40] sm:$0xff] %v16108_v2  ;;  %357 = vst [vmem:[#allocation2 + $0x60] sm:$0xff] %v16108_v2  ;;  %644 = vmatprep.subr.bf16.mxu0 %v15144_v0  ;;  %s20415_s10 = smov (!%p16172_p3, %s12524_s10), 1  ;;  %14107 = vmatprep.subr.bf16.mxu1 %v15144_v0  ;;  %v15168_v5 = vld [vmem:[%s20150_s3 + $0x304] ss:$8 sps:$4 sm:$0xff]   ;;  %vm595_vm0 = vcmask 261120  }
  0x10   : > { %363 = vst [vmem:[#allocation2 + $0x80] sm:$0xff] %v16108_v2  ;;  %369 = vst [vmem:[#allocation2 + $0xa0] sm:$0xff] %v16108_v2  ;;  %645 = vmatpush1.bf16.msra.mxu0 %v15146_v1  ;;  %14109 = vmatpush1.bf16.msra.mxu1 %v15146_v1  ;;  %s13975_s20 = sshll.u32 %s20415_s10, 7  ;;  %v15166_v7 = vld [vmem:[%s20150_s3 + $0x300] ss:$8 sps:$4 sm:$0xff]   ;;  %vm335_vm2 = vcmask 1040384  }
  0x11   : > { %375 = vst [vmem:[#allocation2 + $0xc0] sm:$0xff] %v16108_v2  ;;  %381 = vst [vmem:[#allocation2 + $0xe0] sm:$0xff] %v16108_v2  ;;  %646 = vmatprep.subr.bf16.mxu0 %v15147_v3  ;;  %14108 = vmatprep.subr.bf16.mxu1 %v15147_v3  ;;  %s16218_s25 = scalar_lea.vmem %s20147_s0, %s13975_s20  ;;  %v15171_v8 = vld [vmem:[%s20150_s3 + $0x314] ss:$8 sps:$4 sm:$0xff]   ;;  %v15169_v11 = vld [vmem:[%s20150_s3 + $0x310] ss:$8 sps:$4 sm:$0xff]  }
  0x12   : > { %387 = vst [vmem:[#allocation2 + $0x100] sm:$0xff] %v16108_v2  ;;  %393 = vst [vmem:[#allocation2 + $0x120] sm:$0xff] %v16108_v2  ;;  %v15150_v6 = vld [vmem:[%s16218_s25] sm:$0xff]   ;;  %v15151_v9 = vld [vmem:[%s16218_s25 + $0x8] sm:$0xff]   ;;  %vm336_vm1 = vsmask.f32 256 }
  0x13   : > { %399 = vst [vmem:[#allocation2 + $0x140] sm:$0xff] %v16108_v2  ;;  %405 = vst [vmem:[#allocation2 + $0x160] sm:$0xff] %v16108_v2  ;;  %v15158_v10 = vld [vmem:[%s16218_s25 + $0x40] sm:$0xff]   ;;  %v15159_v12 = vld [vmem:[%s16218_s25 + $0x48] sm:$0xff]   ;;  %vm338_vm3 = vcmask 1044484   ;;  %v20248_v55 = vmov 0 }
  0x14   : > { %411 = vst [vmem:[#allocation2 + $0x180] sm:$0xff] %v16108_v2  ;;  %417 = vst [vmem:[#allocation2 + $0x1a0] sm:$0xff] %v16108_v2  ;;  %647 = vmatpush1.bf16.msra.mxu0 %v15149_v4  ;;  %14110 = vmatpush1.bf16.msra.mxu1 %v15149_v4  ;;  %v15152_v13 = vld [vmem:[%s16218_s25 + $0x10] sm:$0xff]   ;;  %v15172_v14 = vld [vmem:[%s20150_s3 + $0x320] ss:$8 sps:$4 sm:$0xff]   ;;  %v486_v60 = vshrl.u32 %v485_v57, 7 }
  0x15   : > { %423 = vst [vmem:[#allocation2 + $0x1c0] sm:$0xff] %v16108_v2  ;;  %429 = vst [vmem:[#allocation2 + $0x1e0] sm:$0xff] %v16108_v2  ;;  %1931 = vmatprep.subr.bf16.mxu1 %v15168_v5  ;;  %v15174_v15 = vld [vmem:[%s20150_s3 + $0x324] ss:$8 sps:$4 sm:$0xff]   ;;  %v15177_v16 = vld [vmem:[%s20150_s3 + $0x334] ss:$8 sps:$4 sm:$0xff]  }
  0x16   : > { %435 = vst [vmem:[#allocation2 + $0x200] sm:$0xff] %v16108_v2  ;;  %441 = vst [vmem:[#allocation2 + $0x220] sm:$0xff] %v16108_v2  ;;  %v15175_v17 = vld [vmem:[%s20150_s3 + $0x330] ss:$8 sps:$4 sm:$0xff]   ;;  %v15180_v18 = vld [vmem:[%s20150_s3 + $0x344] ss:$8 sps:$4 sm:$0xff]  }
  0x17   : > { %12552 = vmatmul.mubr.msk.bf16.vlgmr.msra.gmra.mrb[0].mxu0 %vm595_vm0, %v15150_v6  ;;  %12560 = vmatmul.mubr.msk.bf16.vlgmr.msra.gmra.mrb[0].mxu1 %vm595_vm0, %v15158_v10  ;;  %v15160_v19 = vld [vmem:[%s16218_s25 + $0x50] sm:$0xff]   ;;  %v15178_v20 = vld [vmem:[%s20150_s3 + $0x340] ss:$8 sps:$4 sm:$0xff]   ;;  %v15153_v21 = vld [vmem:[%s16218_s25 + $0x18] sm:$0xff]   ;;  %vm339_vm4 = vsmask.f32 4352 }
  0x18   : > { %686 = vmatprep.mubr.bf16.mxu0 %v16108_v2  ;;  %766 = vmatprep.mubr.bf16.mxu1 %v16108_v2  ;;  %v15183_v22 = vld [vmem:[%s20150_s3 + $0x354] ss:$8 sps:$4 sm:$0xff]   ;;  %v15181_v23 = vld [vmem:[%s20150_s3 + $0x350] ss:$8 sps:$4 sm:$0xff]   ;;  %v15186_v24 = vld [vmem:[%s20150_s3 + $0x364] ss:$8 sps:$4 sm:$0xff]  }
  0x19   : > { %1932 = vmatpush1.bf16.msra.mxu1 %v15166_v7  ;;  %v15161_v25 = vld [vmem:[%s16218_s25 + $0x58] sm:$0xff]   ;;  %v15184_v26 = vld [vmem:[%s20150_s3 + $0x360] ss:$8 sps:$4 sm:$0xff]   ;;  %v15192_v30 = vld [vmem:[%s20150_s3 + $0x384] ss:$8 sps:$4 sm:$0xff]   ;;  %s12531_s13 = sshll.u32 %s20415_s10, 3 }
  0x1a   : > { %1933 = vmatprep.subr.bf16.mxu1 %v15171_v8  ;;  %v15154_v27 = vld [vmem:[%s16218_s25 + $0x20] sm:$0xff]   ;;  %v15189_v28 = vld [vmem:[%s20150_s3 + $0x374] ss:$8 sps:$4 sm:$0xff]   ;;  %v15187_v29 = vld [vmem:[%s20150_s3 + $0x370] ss:$8 sps:$4 sm:$0xff]   ;;  %s330_s17 = scalar_lea.vmem %s20156_s9, %s12531_s13 }
  0x1b   : > { %v15162_v31 = vld [vmem:[%s16218_s25 + $0x60] sm:$0xff]   ;;  %v15155_v33 = vld [vmem:[%s16218_s25 + $0x28] sm:$0xff]   ;;  %v15195_v34 = vld [vmem:[%s20150_s3 + $0x394] ss:$8 sps:$4 sm:$0xff]   ;;  %vm1180_vm8 = vsmask.f32 4368 }
  0x1c   : > { %v15190_v32 = vld [vmem:[%s20150_s3 + $0x380] ss:$8 sps:$4 sm:$0xff]   ;;  %v15193_v35 = vld [vmem:[%s20150_s3 + $0x390] ss:$8 sps:$4 sm:$0xff]   ;;  %v15198_v41 = vld [vmem:[%s20150_s3 + $0x3a4] ss:$8 sps:$4 sm:$0xff]  }
  0x1d   : > { %1934 = vmatpush1.bf16.msra.mxu1 %v15169_v11  ;;  %v15163_v36 = vld [vmem:[%s16218_s25 + $0x68] sm:$0xff]   ;;  %v15156_v37 = vld [vmem:[%s16218_s25 + $0x30] sm:$0xff]   ;;  %v15157_v39 = vld [vmem:[%s16218_s25 + $0x38] sm:$0xff]   ;;  %vm4527_vm10 = vsmask.f32 3328 }
  0x1e   : > { %1935 = vmatprep.subr.bf16.mxu1 %v15174_v15  ;;  %v15164_v38 = vld [vmem:[%s16218_s25 + $0x70] sm:$0xff]   ;;  %v15165_v40 = vld [vmem:[%s16218_s25 + $0x78] sm:$0xff]   ;;  %v15196_v42 = vld [vmem:[%s20150_s3 + $0x3a0] ss:$8 sps:$4 sm:$0xff]   ;;  %vm4528_vm11 = vsmask.f32 7440 }
  0x1f   : > { %12553 = vmatmul.mubr.msk.bf16.gmra.mrb[4].mxu0 %vm595_vm0, %v15151_v9  ;;  %12561 = vmatmul.mubr.msk.bf16.gmra.mrb[4].mxu1 %vm595_vm0, %v15159_v12  ;;  %v15201_v43 = vld [vmem:[%s20150_s3 + $0x3b4] ss:$8 sps:$4 sm:$0xff]   ;;  %v15199_v44 = vld [vmem:[%s20150_s3 + $0x3b0] ss:$8 sps:$4 sm:$0xff]   ;;  %v15204_v45 = vld [vmem:[%s20150_s3 + $0x3c4] ss:$8 sps:$4 sm:$0xff]  }
  0x20   : > { %696 = vmatprep.mubr.bf16.mxu0 %v16108_v2  ;;  %776 = vmatprep.mubr.bf16.mxu1 %v16108_v2  ;;  %v15202_v46 = vld [vmem:[%s20150_s3 + $0x3c0] ss:$8 sps:$4 sm:$0xff]   ;;  %v15207_v47 = vld [vmem:[%s20150_s3 + $0x3d4] ss:$8 sps:$4 sm:$0xff]   ;;  %v15205_v48 = vld [vmem:[%s20150_s3 + $0x3d0] ss:$8 sps:$4 sm:$0xff]  }
  0x21   : > { %1936 = vmatpush1.bf16.msra.mxu1 %v15172_v14  ;;  %v15210_v49 = vld [vmem:[%s20150_s3 + $0x3e4] ss:$8 sps:$4 sm:$0xff]   ;;  %v15208_v50 = vld [vmem:[%s20150_s3 + $0x3e0] ss:$8 sps:$4 sm:$0xff]   ;;  %v15213_v51 = vld [vmem:[%s20150_s3 + $0x3f4] ss:$8 sps:$4 sm:$0xff]  }
  0x22   : > { %1937 = vmatprep.subr.bf16.mxu1 %v15177_v16  ;;  %v15211_v52 = vld [vmem:[%s20150_s3 + $0x3f0] ss:$8 sps:$4 sm:$0xff]   ;;  %v15216_v53 = vld [vmem:[%s20150_s3 + $0x4] ss:$8 sps:$4 sm:$0xff]   ;;  %vm337_vm5 = vmand %vm335_vm2, %vm336_vm1  ;;  %v16378_v12 = vsub.s32 1, %v486_v60 }
  0x23   : > { %vm340_vm6 = vmand %vm338_vm3, %vm339_vm4  ;;  %v348_v54 = vld [vmem:[#allocation2 + $0x38] sm:$0x11]  ;;  %v1129_v61 = vld [vmem:[#allocation2 + $0x20] sm:$0x88] }
  0x24   : > { %vm16363_vm7 = vmor %vm340_vm6, %vm337_vm5  ;;  %v354_v58 = vld [vmem:[#allocation2 + $0x58] sm:$0x11]  ;;  %v1132_v62 = vld [vmem:[#allocation2 + $0x40] sm:$0x88]  ;;  %v1205_v5 = vshrl.u32 %v1129_v61, 16  ;;  %20252 = vst [vmem:[#allocation5_spill] sm:$0xff] %v16378_v12 }
  0x25   : > { %1938 = vmatpush1.bf16.msra.mxu1 %v15175_v17  ;;  %v20249_v55 = vsel %vm16363_vm7, 4294967295, %v20248_v55  ;;  %v349_v56 = vsel %vm16363_vm7, 0, %v348_v54  ;;  %v355_v59 = vsel %vm16363_vm7, 0, %v354_v58  ;;  %v1135_v63 = vld [vmem:[#allocation2 + $0x60] sm:$0x88]  ;;  %v1227_v6 = vshrl.u32 %v1132_v62, 16  ;;  %vm16431_vm9 = vmor %vm336_vm1, %vm1180_vm8 }
  0x26   : > { %1939 = vmatprep.subr.bf16.mxu1 %v15180_v18  ;;  %20250 = vst [vmem:[#allocation3_spill] sm:$0xff] %v20249_v55  ;;  %350 = vst [vmem:[#allocation2 + $0x38] sm:$0x11] %v349_v56  ;;  %v1138_v0 = vld [vmem:[#allocation2 + $0x80] sm:$0x88]  ;;  %v1249_v8 = vshrl.u32 %v1135_v63, 16 }
  0x27   : > { %12554 = vmatmul.mubr.msk.bf16.gmra.mrb[8].mxu0 %vm595_vm0, %v15152_v13  ;;  %12562 = vmatmul.mubr.msk.bf16.gmra.mrb[8].mxu1 %vm595_vm0, %v15160_v19  ;;  %356 = vst [vmem:[#allocation2 + $0x58] sm:$0x11] %v355_v59  ;;  %v1141_v1 = vld [vmem:[#allocation2 + $0xa0] sm:$0x88]  ;;  %v483_v4 = vld [vmem:[%s20149_s2] sm:$0x3]  ;;  %vm17918_vm12 = vmor %vm4527_vm10, %vm4528_vm11 }
  0x28   : > { %706 = vmatprep.mubr.bf16.mxu0 %v16108_v2  ;;  %786 = vmatprep.mubr.bf16.mxu1 %v16108_v2  ;;  %v1144_v3 = vld [vmem:[#allocation2 + $0xc0] sm:$0x88]  ;;  %v360_v7 = vld [vmem:[#allocation2 + $0x78] sm:$0x11]  ;;  %v1271_v9 = vshrl.u32 %v1138_v0, 16  ;;  %v1293_v10 = vshrl.u32 %v1141_v1, 16 }
  0x29   : > { %1940 = vmatpush1.bf16.msra.mxu1 %v15178_v20  ;;  %v361_v11 = vsel %vm16363_vm7, 0, %v360_v7  ;;  %v1315_v13 = vshrl.u32 %v1144_v3, 16  ;;  %v1147_v14 = vld [vmem:[#allocation2 + $0xe0] sm:$0x88]  ;;  %v16380_v17 = vrot.slane %v1205_v5, 11  ;;  %v16382_v18 = vrot.slane %v1227_v6, 11 }
  0x2a   : > { %1941 = vmatprep.subr.bf16.mxu1 %v15183_v22  ;;  %v1150_v15 = vld [vmem:[#allocation2 + $0x100] sm:$0x88]  ;;  %362 = vst [vmem:[#allocation2 + $0x78] sm:$0x11] %v361_v11  ;;  %v16387_v22 = vrot.slane %v1249_v8, 11 }
  0x2b   : > { %v1153_v16 = vld [vmem:[#allocation2 + $0x120] sm:$0x88] }
  0x2c   : > { %v1156_v19 = vld [vmem:[#allocation2 + $0x140] sm:$0x88] }
  0x2d   : > { %1942 = vmatpush1.bf16.msra.mxu1 %v15181_v23  ;;  %v1159_v20 = vld [vmem:[#allocation2 + $0x160] sm:$0x88]  ;;  %v16389_v23 = vrot.slane %v1271_v9, 11  ;;  %v372_v9 = vld [vmem:[#allocation2 + $0xb8] sm:$0x11] }
  0x2e   : > { %1943 = vmatprep.subr.bf16.mxu1 %v15186_v24  ;;  %v16391_v24 = vrot.slane %v1293_v10, 11 }
  0x2f   : > { %12555 = vmatmul.mubr.msk.bf16.gmra.mrb[12].mxu0 %vm595_vm0, %v15153_v21  ;;  %12563 = vmatmul.mubr.msk.bf16.gmra.mrb[12].mxu1 %vm595_vm0, %v15161_v25  ;;  %v16394_v25 = vrot.slane %v483_v4, %v16378_v12 }
  0x30   : > { %716 = vmatprep.mubr.bf16.mxu0 %v16108_v2  ;;  %796 = vmatprep.mubr.bf16.mxu1 %v16108_v2 }
  0x31   : > { %1944 = vmatpush1.bf16.msra.mxu1 %v15184_v26  ;;  %v16396_v26 = vrot.slane %v1315_v13, 11 }
  0x32   : > { %1945 = vmatprep.subr.bf16.mxu1 %v15189_v28  ;;  %v1165_v28 = vld [vmem:[#allocation2 + $0x1a0] sm:$0x88] }
  0x35   : > { %1946 = vmatpush1.bf16.msra.mxu1 %v15187_v29  ;;  %v1337_v29 = vshrl.u32 %v1147_v14, 16 }
  0x36   : > { %1947 = vmatprep.subr.bf16.mxu1 %v15192_v30  ;;  %v1359_v30 = vshrl.u32 %v1150_v15, 16 }
  0x37   : > { %12556 = vmatmul.mubr.msk.bf16.gmra.mrb[16].mxu0 %vm595_vm0, %v15154_v27  ;;  %12564 = vmatmul.mubr.msk.bf16.gmra.mrb[16].mxu1 %vm595_vm0, %v15162_v31  ;;  %v1162_v27 = vld [vmem:[#allocation2 + $0x180] sm:$0x88] }
  0x38   : > { %726 = vmatprep.mubr.bf16.mxu0 %v16108_v2  ;;  %806 = vmatprep.mubr.bf16.mxu1 %v16108_v2  ;;  %v1168_v31 = vld [vmem:[#allocation2 + $0x1c0] sm:$0x88] }
  0x39   : > { %1948 = vmatpush1.bf16.msra.mxu1 %v15190_v32 }
  0x3a   : > { %1949 = vmatprep.subr.bf16.mxu1 %v15195_v34  ;;  %v366_v34 = vld [vmem:[#allocation2 + $0x98] sm:$0x11] }
  0x3d   : > { %1950 = vmatpush1.bf16.msra.mxu1 %v15193_v35 }
  0x3e   : > { %1951 = vmatprep.subr.bf16.mxu1 %v15198_v41 }
  0x3f   : > { %12557 = vmatmul.mubr.msk.bf16.gmra.mrb[20].mxu0 %vm595_vm0, %v15155_v33  ;;  %12565 = vmatmul.mubr.msk.bf16.gmra.mrb[20].mxu1 %vm595_vm0, %v15163_v36  ;;  %v1381_v33 = vshrl.u32 %v1153_v16, 16  ;;  %v373_v16 = vsel %vm16363_vm7, 0, %v372_v9  ;;  %v15219_v9 = vld [vmem:[%s20150_s3 + $0x14] ss:$8 sps:$4 sm:$0xff]  }
  0x40   : > { %736 = vmatprep.mubr.bf16.mxu0 %v16108_v2  ;;  %816 = vmatprep.mubr.bf16.mxu1 %v16108_v2  ;;  %374 = vst [vmem:[#allocation2 + $0xb8] sm:$0x11] %v373_v16 }
  0x41   : > { %1952 = vmatpush1.bf16.msra.mxu1 %v15196_v42  ;;  %v1447_v42 = vshrl.u32 %v1162_v27, 16  ;;  %v16408_v54 = vrot.slane %v1381_v33, 11 }
  0x42   : > { %1953 = vmatprep.subr.bf16.mxu1 %v15201_v43  ;;  %v1469_v43 = vshrl.u32 %v1165_v28, 16 }
  0x43   : > { %v16414_v61 = vrot.slane %v1447_v42, 11 }
  0x44   : > { %v16417_v0 = vrot.slane %v1469_v43, 11 }
  0x45   : > { %1954 = vmatpush1.bf16.msra.mxu1 %v15199_v44 }
  0x46   : > { %1955 = vmatprep.subr.bf16.mxu1 %v15204_v45 }
  0x47   : > { %12558 = vmatmul.mubr.msk.bf16.gmra.mrb[24].mxu0 %vm595_vm0, %v15156_v37  ;;  %12566 = vmatmul.mubr.msk.bf16.gmra.mrb[24].mxu1 %vm595_vm0, %v15164_v38  ;;  %v1403_v37 = vshrl.u32 %v1156_v19, 16  ;;  %v1425_v38 = vshrl.u32 %v1159_v20, 16 }
  0x48   : > { %746 = vmatprep.mubr.bf16.mxu0 %v16108_v2  ;;  %826 = vmatprep.mubr.bf16.mxu1 %v16108_v2  ;;  %v16371_v2 = vsub.s32 0, %v486_v60 }
  0x49   : > { %1956 = vmatpush1.bf16.msra.mxu1 %v15202_v46  ;;  %v16410_v56 = vrot.slane %v1403_v37, 11  ;;  %v16412_v60 = vrot.slane %v1425_v38, 11  ;;  %v15790_v37 = vld [vmem:[%s20152_s5 + $0x400] ss:$8 sps:$4 sm:$0xff]  }
  0x4a   : > { %1957 = vmatprep.subr.bf16.mxu1 %v15207_v47  ;;  %20251 = vst [vmem:[#allocation4_spill] sm:$0xff] %v16371_v2  ;;  %v16385_v21 = vrot.slane %v483_v4, %v16371_v2  ;;  %v1491_v47 = vshrl.u32 %v1168_v31, 16 }
  0x4c   : > { %v16419_v1 = vrot.slane %v1491_v47, 11 }
  0x4d   : > { %1958 = vmatpush1.bf16.msra.mxu1 %v15205_v48  ;;  %v1171_v48 = vld [vmem:[#allocation2 + $0x1e0] sm:$0x88] }
  0x4e   : > { %1959 = vmatprep.subr.bf16.mxu1 %v15210_v49  ;;  %v1513_v8 = vshrl.u32 %v1171_v48, 16 }
  0x4f   : > { %12559 = vmatmul.mubr.msk.bf16.gmra.mrb[28].mxu0 %vm595_vm0, %v15157_v39  ;;  %12567 = vmatmul.mubr.msk.bf16.gmra.mrb[28].mxu1 %vm595_vm0, %v15165_v40  ;;  %v367_v39 = vsel %vm16363_vm7, 0, %v366_v34 }
  0x50   : > { %368 = vst [vmem:[#allocation2 + $0x98] sm:$0x11] %v367_v39  ;;  %v16438_v48 = vrot.slane %v1513_v8, 11  ;;  %v15214_v8 = vld [vmem:[%s20150_s3] ss:$8 sps:$4 sm:$0xff]  }
  0x51   : > { %1960 = vmatpush1.bf16.msra.mxu1 %v15208_v50 }
  0x52   : > { %1961 = vmatprep.subr.bf16.mxu1 %v15213_v51  ;;  %v16404_v51 = vrot.slane %v1337_v29, 11 }
  0x55   : > { %1962 = vmatpush1.bf16.msra.mxu1 %v15211_v52  ;;  %v16406_v52 = vrot.slane %v1359_v30, 11 }
  0x56   : > { %2292 = vmatprep.subr.bf16.mxu1 %v15216_v53 }
  0xea   : > { %v678_v32 = vpop.f32.mrb[0].mxu0  ;;  %v758_v59 = vpop.f32.mrb[0].mxu1 }
  0xeb   : > { %v679_v35 = vadd.f32 %v678_v32, %v16385_v21  ;;  %v680_v36 = vpop.f32.mrb[1].mxu0  ;;  %v759_v62 = vadd.f32 %v758_v59, %v16385_v21  ;;  %v760_v63 = vpop.f32.mrb[1].mxu1 }
  0xec   : > { %v681_v40 = vadd.f32 %v680_v36, %v16394_v25  ;;  %v682_v41 = vpop.f32.mrb[2].mxu0  ;;  %v761_v6 = vadd.f32 %v760_v63, %v16394_v25  ;;  %v762_v7 = vpop.f32.mrb[2].mxu1 }
  0xed   : > { %v837_v44 = vmax.f32 %v679_v35, 0.0  ;;  %v683_v45 = vadd.f32 %v682_v41, %v16385_v21  ;;  %v684_v46 = vpop.f32.mrb[3].mxu0  ;;  %v869_v13 = vmax.f32 %v759_v62, 0.0  ;;  %v763_v14 = vadd.f32 %v762_v7, %v16385_v21  ;;  %v764_v15 = vpop.f32.mrb[3].mxu1 }
  0xee   : > { %v838_v49 = vmax.f32 %v681_v40, 0.0  ;;  %v685_v50 = vadd.f32 %v684_v46, %v16394_v25  ;;  %v870_v34 = vmax.f32 %v761_v6, 0.0  ;;  %v765_v43 = vadd.f32 %v764_v15, %v16394_v25 }
  0xef   : > { %v839_v53 = vmax.f32 %v683_v45, 0.0  ;;  %v871_v39 = vmax.f32 %v763_v14, 0.0 }
  0xf0   : > { %v13976_v57 = vpack.c.bf16 %v838_v49, %v837_v44  ;;  %v840_v58 = vmax.f32 %v685_v50, 0.0  ;;  %v16435_v42 = vpack.c.bf16 %v870_v34, %v869_v13 }
  0xf2   : > { %1094 = vst [vmem:[#allocation2 + $0x28] sm:$0xff] %v13976_v57  ;;  %v13977_v3 = vpack.c.bf16 %v840_v58, %v839_v53  ;;  %v688_v4 = vpop.f32.mrb[4].mxu0  ;;  %v1210_v5 = vshrl.u32 %v13976_v57, 16  ;;  %v1213_v28 = vshll.u32 %v13976_v57, 16  ;;  %v768_v47 = vpop.f32.mrb[4].mxu1  ;;  %1110 = vst [vmem:[#allocation2 + $0x128] sm:$0xff] %v16435_v42 }
  0xf3   : > { %v689_v10 = vadd.f32 %v688_v4, %v16385_v21  ;;  %v690_v11 = vpop.f32.mrb[5].mxu0  ;;  %v872_v53 = vmax.f32 %v765_v43, 0.0  ;;  %v769_v57 = vadd.f32 %v768_v47, %v16385_v21  ;;  %v770_v58 = vpop.f32.mrb[5].mxu1 }
  0xf4   : > { %1095 = vst [vmem:[#allocation2 + $0x30] sm:$0xff] %v13977_v3  ;;  %v691_v19 = vadd.f32 %v690_v11, %v16394_v25  ;;  %v692_v20 = vpop.f32.mrb[6].mxu0  ;;  %v1212_v27 = vrot.slane %v1210_v5, 7  ;;  %v1219_v29 = vshrl.u32 %v13977_v3, 16  ;;  %v1222_v33 = vshll.u32 %v13977_v3, 16  ;;  %v772_v4 = vpop.f32.mrb[6].mxu1 }
  0xf5   : > { %v841_v30 = vmax.f32 %v689_v10, 0.0  ;;  %v693_v31 = vadd.f32 %v692_v20, %v16385_v21  ;;  %v694_v32 = vpop.f32.mrb[7].mxu0  ;;  %v1386_v5 = vshrl.u32 %v16435_v42, 16  ;;  %v16455_v10 = vpack.c.bf16 %v872_v53, %v871_v39  ;;  %v774_v13 = vpop.f32.mrb[7].mxu1  ;;  %v15222_v53 = vld [vmem:[%s20150_s3 + $0x24] ss:$8 sps:$4 sm:$0xff]  }
  0xf6   : > { %v842_v35 = vmax.f32 %v691_v19, 0.0  ;;  %v695_v36 = vadd.f32 %v694_v32, %v16394_v25  ;;  %v1215_v38 = vor.u32 %v1213_v28, %v1212_v27  ;;  %v1221_v41 = vrot.slane %v1219_v29, 7 }
  0xf7   : > { %v843_v40 = vmax.f32 %v693_v31, 0.0  ;;  %v1217_v46 = vrot.slane %v1212_v27, 4  ;;  %v771_v11 = vadd.f32 %v770_v58, %v16394_v25  ;;  %1111 = vst [vmem:[#allocation2 + $0x130] sm:$0xff] %v16455_v10  ;;  %v873_v31 = vmax.f32 %v769_v57, 0.0 }
  0xf8   : > { %v13978_v44 = vpack.c.bf16 %v842_v35, %v841_v30  ;;  %v844_v45 = vmax.f32 %v695_v36, 0.0  ;;  %v1216_v49 = vsel %vm16431_vm9, %v16380_v17, %v1215_v38  ;;  %v1224_v50 = vor.u32 %v1222_v33, %v1221_v41 }
  0xf9   : > { %v874_v39 = vmax.f32 %v771_v11, 0.0  ;;  %v15225_v11 = vld [vmem:[%s20150_s3 + $0x34] ss:$8 sps:$4 sm:$0xff]  }
  0xfa   : > { %1096 = vst [vmem:[#allocation2 + $0x48] sm:$0xff] %v13978_v44  ;;  %v13979_v59 = vpack.c.bf16 %v844_v45, %v843_v40  ;;  %v698_v62 = vpop.f32.mrb[8].mxu0  ;;  %v1232_v63 = vshrl.u32 %v13978_v44, 16  ;;  %v1235_v3 = vshll.u32 %v13978_v44, 16  ;;  %v1225_v17 = vsel %vm16431_vm9, %v1217_v46, %v1224_v50  ;;  %v15217_v45 = vld [vmem:[%s20150_s3 + $0x10] ss:$8 sps:$4 sm:$0xff]  }
  0xfb   : > { %v699_v6 = vadd.f32 %v698_v62, %v16385_v21  ;;  %v700_v7 = vpop.f32.mrb[9].mxu0  ;;  %v16459_v16 = vcombine.low %v1216_v49, %v1225_v17  ;;  %v16461_v19 = vcombine.high %v1216_v49, %v1225_v17  ;;  %v773_v40 = vadd.f32 %v772_v4, %v16385_v21  ;;  %v778_v47 = vpop.f32.mrb[8].mxu1 }
  0xfc   : > { %1097 = vst [vmem:[#allocation2 + $0x50] sm:$0xff] %v13979_v59  ;;  %v701_v14 = vadd.f32 %v700_v7, %v16394_v25  ;;  %v702_v15 = vpop.f32.mrb[10].mxu0  ;;  %v1234_v20 = vrot.slane %v1232_v63, 7  ;;  %v1241_v30 = vshrl.u32 %v13979_v59, 16  ;;  %v1244_v35 = vshll.u32 %v13979_v59, 16  ;;  %v780_v59 = vpop.f32.mrb[9].mxu1 }
  0xfd   : > { %20255 = vst [vmem:[#allocation6_spill] sm:$0xff] %v16459_v16  ;;  %20256 = vst [vmem:[#allocation7_spill] sm:$0xff] %v16461_v19  ;;  %v845_v27 = vmax.f32 %v699_v6, 0.0  ;;  %v703_v28 = vadd.f32 %v702_v15, %v16385_v21  ;;  %v704_v29 = vpop.f32.mrb[11].mxu0  ;;  %1963 = vmatprep.mubr.bf16.mxu1 %v16461_v19  ;;  %v775_v46 = vadd.f32 %v774_v13, %v16394_v25  ;;  %v875_v6 = vmax.f32 %v773_v40, 0.0  ;;  %v782_v7 = vpop.f32.mrb[10].mxu1 }
  0xfe   : > { %v846_v32 = vmax.f32 %v701_v14, 0.0  ;;  %v705_v33 = vadd.f32 %v704_v29, %v16394_v25  ;;  %v1237_v34 = vor.u32 %v1235_v3, %v1234_v20  ;;  %1964 = vmatmul.mubr.bf16.vlgmr.msra.gmra.mrb[32].mxu1 %v16459_v16  ;;  %v1243_v38 = vrot.slane %v1241_v30, 7  ;;  %v784_v15 = vpop.f32.mrb[11].mxu1 }
  0xff   : > { %v847_v36 = vmax.f32 %v703_v28, 0.0  ;;  %2293 = vmatpush1.bf16.msra.mxu1 %v15214_v8  ;;  %v1239_v44 = vrot.slane %v1234_v20, 4  ;;  %v16479_v57 = vpack.c.bf16 %v874_v39, %v873_v31  ;;  %v779_v58 = vadd.f32 %v778_v47, %v16385_v21 }
 0x100   : > { %v13980_v41 = vpack.c.bf16 %v846_v32, %v845_v27  ;;  %v848_v43 = vmax.f32 %v705_v33, 0.0  ;;  %v1238_v49 = vsel %vm16431_vm9, %v16382_v18, %v1237_v34  ;;  %v1246_v50 = vor.u32 %v1244_v35, %v1243_v38  ;;  %2294 = vmatprep.subr.bf16.mxu1 %v15219_v9  ;;  %v15220_v18 = vld [vmem:[%s20150_s3 + $0x20] ss:$8 sps:$4 sm:$0xff]  }
 0x101   : > { %1112 = vst [vmem:[#allocation2 + $0x148] sm:$0xff] %v16479_v57  ;;  %v876_v13 = vmax.f32 %v775_v46, 0.0  ;;  %v781_v14 = vadd.f32 %v780_v59, %v16394_v25  ;;  %v877_v35 = vmax.f32 %v779_v58, 0.0 }
 0x102   : > { %1098 = vst [vmem:[#allocation2 + $0x68] sm:$0xff] %v13980_v41  ;;  %v13981_v62 = vpack.c.bf16 %v848_v43, %v847_v36  ;;  %v708_v63 = vpop.f32.mrb[12].mxu0  ;;  %v1254_v3 = vshrl.u32 %v13980_v41, 16  ;;  %v1257_v4 = vshll.u32 %v13980_v41, 16  ;;  %v1247_v9 = vsel %vm16431_vm9, %v1239_v44, %v1246_v50  ;;  %v15223_v50 = vld [vmem:[%s20150_s3 + $0x30] ss:$8 sps:$4 sm:$0xff]  }
 0x103   : > { %v709_v17 = vadd.f32 %v708_v63, %v16385_v21  ;;  %v710_v8 = vpop.f32.mrb[13].mxu0  ;;  %v16494_v28 = vcombine.high %v1238_v49, %v1247_v9  ;;  %v16496_v29 = vcombine.low %v1238_v49, %v1247_v9  ;;  %2295 = vmatpush1.bf16.msra.mxu1 %v15217_v45  ;;  %v16502_v44 = vpack.c.bf16 %v876_v13, %v875_v6  ;;  %v788_v58 = vpop.f32.mrb[12].mxu1 }
 0x104   : > { %1099 = vst [vmem:[#allocation2 + $0x70] sm:$0xff] %v13981_v62  ;;  %v711_v20 = vadd.f32 %v710_v8, %v16394_v25  ;;  %v712_v27 = vpop.f32.mrb[14].mxu0  ;;  %v1256_v30 = vrot.slane %v1254_v3, 7  ;;  %v1263_v34 = vshrl.u32 %v13981_v62, 16  ;;  %2296 = vmatprep.subr.bf16.mxu1 %v15222_v53  ;;  %v1266_v40 = vshll.u32 %v13981_v62, 16 }
 0x105   : > { %20257 = vst [vmem:[#allocation8_spill] sm:$0xff] %v16494_v28  ;;  %20258 = vst [vmem:[#allocation9_spill] sm:$0xff] %v16496_v29  ;;  %v849_v31 = vmax.f32 %v709_v17, 0.0  ;;  %v713_v32 = vadd.f32 %v712_v27, %v16385_v21  ;;  %v714_v33 = vpop.f32.mrb[15].mxu0  ;;  %1973 = vmatprep.mubr.bf16.mxu1 %v16494_v28  ;;  %v878_v45 = vmax.f32 %v781_v14, 0.0  ;;  %v783_v53 = vadd.f32 %v782_v7, %v16385_v21 }
 0x106   : > { %v850_v36 = vmax.f32 %v711_v20, 0.0  ;;  %v715_v38 = vadd.f32 %v714_v33, %v16394_v25  ;;  %v1259_v39 = vor.u32 %v1257_v4, %v1256_v30  ;;  %1974 = vmatmul.mubr.bf16.gmra.mrb[36].mxu1 %v16496_v29  ;;  %v1265_v43 = vrot.slane %v1263_v34, 7  ;;  %v15228_v62 = vld [vmem:[%s20150_s3 + $0x44] ss:$8 sps:$4 sm:$0xff]   ;;  %1113 = vst [vmem:[#allocation2 + $0x150] sm:$0xff] %v16502_v44 }
 0x107   : > { %v851_v41 = vmax.f32 %v713_v32, 0.0  ;;  %v1261_v49 = vrot.slane %v1256_v30, 4  ;;  %2297 = vmatpush1.bf16.msra.mxu1 %v15220_v18  ;;  %v16512_v63 = vpack.c.bf16 %v878_v45, %v877_v35  ;;  %v785_v3 = vadd.f32 %v784_v15, %v16394_v25  ;;  %v790_v18 = vpop.f32.mrb[13].mxu1  ;;  %v15226_v35 = vld [vmem:[%s20150_s3 + $0x40] ss:$8 sps:$4 sm:$0xff]  }
 0x108   : > { %v13982_v46 = vpack.c.bf16 %v850_v36, %v849_v31  ;;  %v852_v47 = vmax.f32 %v715_v38, 0.0  ;;  %v1268_v59 = vor.u32 %v1266_v40, %v1265_v43  ;;  %2298 = vmatprep.subr.bf16.mxu1 %v15225_v11  ;;  %v16516_v4 = vadd.f32 %v788_v58, %v16385_v21  ;;  %v792_v11 = vpop.f32.mrb[14].mxu1  ;;  %v15231_v36 = vld [vmem:[%s20150_s3 + $0x54] ss:$8 sps:$4 sm:$0xff]  }
 0x109   : > { %v1260_v17 = vsel %vm16431_vm9, %v16387_v22, %v1259_v39  ;;  %1114 = vst [vmem:[#allocation2 + $0x168] sm:$0xff] %v16512_v63  ;;  %v879_v20 = vmax.f32 %v783_v53, 0.0  ;;  %v880_v27 = vmax.f32 %v785_v3, 0.0  ;;  %v794_v30 = vpop.f32.mrb[15].mxu1 }
 0x10a   : > { %20259 = vst [vmem:[#allocation10_spill] sm:$0xff] %v16516_v4  ;;  %1100 = vst [vmem:[#allocation2 + $0x88] sm:$0xff] %v13982_v46  ;;  %v13983_v6 = vpack.c.bf16 %v852_v47, %v851_v41  ;;  %v718_v7 = vpop.f32.mrb[16].mxu0  ;;  %v1276_v8 = vshrl.u32 %v13982_v46, 16  ;;  %v1279_v9 = vshll.u32 %v13982_v46, 16  ;;  %v1269_v15 = vsel %vm16431_vm9, %v1261_v49, %v1268_v59 }
 0x10b   : > { %v16522_v13 = vadd.f32 %v718_v7, %v16385_v21  ;;  %v720_v14 = vpop.f32.mrb[17].mxu0  ;;  %v16530_v32 = vcombine.high %v1260_v17, %v1269_v15  ;;  %v16532_v33 = vcombine.low %v1260_v17, %v1269_v15  ;;  %2299 = vmatpush1.bf16.msra.mxu1 %v15223_v50  ;;  %v20159_v43 = vmax.f32 %v16516_v4, 0.0 }
 0x10c   : > { %1101 = vst [vmem:[#allocation2 + $0x90] sm:$0xff] %v13983_v6  ;;  %v16528_v31 = vadd.f32 %v720_v14, %v16394_v25  ;;  %v722_v22 = vpop.f32.mrb[18].mxu0  ;;  %v1278_v34 = vrot.slane %v1276_v8, 7  ;;  %v1285_v41 = vshrl.u32 %v13983_v6, 16  ;;  %2300 = vmatprep.subr.bf16.mxu1 %v15228_v62  ;;  %v1288_v49 = vshll.u32 %v13983_v6, 16  ;;  %v16568_v8 = vpop.f32.mrb[16].mxu1 }
 0x10d   : > { %20260 = vst [vmem:[#allocation11_spill] sm:$0xff] %v16530_v32  ;;  %20261 = vst [vmem:[#allocation12_spill] sm:$0xff] %v16532_v33  ;;  %v20158_v38 = vmax.f32 %v16522_v13, 0.0  ;;  %v16542_v39 = vadd.f32 %v722_v22, %v16385_v21  ;;  %v724_v40 = vpop.f32.mrb[19].mxu0  ;;  %1983 = vmatprep.mubr.bf16.mxu1 %v16530_v32  ;;  %v16552_v58 = vpack.c.bf16 %v880_v27, %v879_v20  ;;  %v15229_v6 = vld [vmem:[%s20150_s3 + $0x50] ss:$8 sps:$4 sm:$0xff]  }
 0x10e   : > { %v20162_v45 = vmax.f32 %v16528_v31, 0.0  ;;  %v16547_v46 = vadd.f32 %v724_v40, %v16394_v25  ;;  %v1281_v47 = vor.u32 %v1279_v9, %v1278_v34  ;;  %1984 = vmatmul.mubr.bf16.gmra.mrb[40].mxu1 %v16532_v33  ;;  %v1287_v53 = vrot.slane %v1285_v41, 7  ;;  %v15234_v14 = vld [vmem:[%s20150_s3 + $0x64] ss:$8 sps:$4 sm:$0xff]  }
 0x10f   : > { %v20157_v50 = vmax.f32 %v16542_v39, 0.0  ;;  %v16555_v59 = vadd.f32 %v790_v18, %v16394_v25  ;;  %v1283_v7 = vrot.slane %v1278_v34, 4  ;;  %2301 = vmatpush1.bf16.msra.mxu1 %v15226_v35  ;;  %v16566_v17 = vadd.f32 %v792_v11, %v16385_v21  ;;  %1115 = vst [vmem:[#allocation2 + $0x170] sm:$0xff] %v16552_v58  ;;  %v16581_v11 = vpop.f32.mrb[17].mxu1 }
 0x110   : > { %v13984_v62 = vpack.c.bf16 %v20162_v45, %v20158_v38  ;;  %v20161_v3 = vmax.f32 %v16547_v46, 0.0  ;;  %v1282_v18 = vsel %vm16431_vm9, %v16389_v23, %v1281_v47  ;;  %v1290_v9 = vor.u32 %v1288_v49, %v1287_v53  ;;  %2302 = vmatprep.subr.bf16.mxu1 %v15231_v36  ;;  %v16588_v36 = vpop.f32.mrb[18].mxu1 }
 0x111   : > { %20262 = vst [vmem:[#allocation13_spill] sm:$0xff] %v16555_v59  ;;  %20263 = vst [vmem:[#allocation14_spill] sm:$0xff] %v16566_v17  ;;  %v20160_v15 = vmax.f32 %v16555_v59, 0.0  ;;  %v16579_v20 = vadd.f32 %v794_v30, %v16394_v25  ;;  %v20169_v35 = vmax.f32 %v16566_v17, 0.0  ;;  %v16602_v53 = vpop.f32.mrb[19].mxu1  ;;  %v16719_v4 = vadd.f32 %v16581_v11, %v16394_v25 }
 0x112   : > { %1102 = vst [vmem:[#allocation2 + $0xa8] sm:$0xff] %v13984_v62  ;;  %v13985_v23 = vpack.c.bf16 %v20161_v3, %v20157_v50  ;;  %v728_v27 = vpop.f32.mrb[20].mxu0  ;;  %v1298_v22 = vshrl.u32 %v13984_v62, 16  ;;  %v1301_v34 = vshll.u32 %v13984_v62, 16  ;;  %v1291_v41 = vsel %vm16431_vm9, %v1283_v7, %v1290_v9  ;;  %v15232_v9 = vld [vmem:[%s20150_s3 + $0x60] ss:$8 sps:$4 sm:$0xff]  }
 0x113   : > { %20264 = vst [vmem:[#allocation15_spill] sm:$0xff] %v16579_v20  ;;  %v16591_v40 = vadd.f32 %v728_v27, %v16385_v21  ;;  %v730_v30 = vpop.f32.mrb[21].mxu0  ;;  %v16599_v47 = vpack.c.bf16 %v20160_v15, %v20159_v43  ;;  %v16607_v50 = vcombine.high %v1282_v18, %v1291_v41  ;;  %v16609_v38 = vcombine.low %v1282_v18, %v1291_v41  ;;  %v15237_v43 = vld [vmem:[%s20150_s3 + $0x74] ss:$8 sps:$4 sm:$0xff]   ;;  %v16626_v18 = vld [vmem:[#allocation2 + $0x200] sm:$0x88] }
 0x114   : > { %1103 = vst [vmem:[#allocation2 + $0xb0] sm:$0xff] %v13985_v23  ;;  %v16605_v62 = vadd.f32 %v730_v30, %v16394_v25  ;;  %v732_v27 = vpop.f32.mrb[22].mxu0  ;;  %v1300_v7 = vrot.slane %v1298_v22, 7  ;;  %2303 = vmatpush1.bf16.msra.mxu1 %v15229_v6  ;;  %v1307_v45 = vshrl.u32 %v13985_v23, 16  ;;  %v16624_v6 = vrot.slane %v1386_v5, 7  ;;  %v16650_v49 = vpop.f32.mrb[20].mxu1 }
 0x115   : > { %20265 = vst [vmem:[#allocation16_spill] sm:$0xff] %v16607_v50  ;;  %20266 = vst [vmem:[#allocation17_spill] sm:$0xff] %v16609_v38  ;;  %v16619_v30 = vadd.f32 %v732_v27, %v16385_v21  ;;  %v734_v3 = vpop.f32.mrb[23].mxu0  ;;  %2304 = vmatprep.subr.bf16.mxu1 %v15234_v14  ;;  %1993 = vmatprep.mubr.bf16.mxu1 %v16607_v50  ;;  %v1310_v15 = vshll.u32 %v13985_v23, 16  ;;  %v20267_v5 = vmax.f32 %v16579_v20, 0.0  ;;  %v1389_v22 = vshll.u32 %v16435_v42, 16 }
 0x116   : > { %1116 = vst [vmem:[#allocation2 + $0x188] sm:$0xff] %v16599_v47  ;;  %v16630_v41 = vadd.f32 %v734_v3, %v16394_v25  ;;  %v1303_v27 = vor.u32 %v1301_v34, %v1300_v7  ;;  %1994 = vmatmul.mubr.bf16.gmra.mrb[44].mxu1 %v16609_v38  ;;  %v1309_v14 = vrot.slane %v1307_v45, 7  ;;  %v20268_v3 = vmax.f32 %v16591_v40, 0.0  ;;  %v15235_v45 = vld [vmem:[%s20150_s3 + $0x70] ss:$8 sps:$4 sm:$0xff]   ;;  %20278 = vst [vmem:[#allocation23_spill] sm:$0xff] %v16719_v4 }
 0x117   : > { %v16639_v12 = vpack.c.bf16 %v20267_v5, %v20169_v35  ;;  %v20269_v2 = vmax.f32 %v16605_v62, 0.0  ;;  %v1305_v34 = vrot.slane %v1300_v7, 4  ;;  %v1395_v7 = vshrl.u32 %v16455_v10, 16 }
 0x118   : > { %v20182_v23 = vmax.f32 %v16630_v41, 0.0  ;;  %2305 = vmatpush1.bf16.msra.mxu1 %v15232_v9  ;;  %v1304_v42 = vsel %vm16431_vm9, %v16391_v24, %v1303_v27  ;;  %v1312_v35 = vor.u32 %v1310_v15, %v1309_v14  ;;  %v15240_v9 = vld [vmem:[%s20150_s3 + $0x84] ss:$8 sps:$4 sm:$0xff]   ;;  %v20270_v5 = vmax.f32 %v16619_v30, 0.0 }
 0x119   : > { %v13986_v50 = vpack.c.bf16 %v20269_v2, %v20268_v3  ;;  %2306 = vmatprep.subr.bf16.mxu1 %v15237_v43  ;;  %1117 = vst [vmem:[#allocation2 + $0x190] sm:$0xff] %v16639_v12  ;;  %v1393_v2 = vrot.slane %v16624_v6, 4  ;;  %v16662_v3 = vpop.f32.mrb[21].mxu1  ;;  %v1391_v27 = vor.u32 %v1389_v22, %v16624_v6  ;;  %v1398_v14 = vshll.u32 %v16455_v10, 16 }
 0x11a   : > { %v13987_v24 = vpack.c.bf16 %v20182_v23, %v20270_v5  ;;  %v738_v15 = vpop.f32.mrb[24].mxu0  ;;  %v16670_v38 = vpop.f32.mrb[22].mxu1  ;;  %v1313_v29 = vsel %vm16431_vm9, %v1305_v34, %v1312_v35  ;;  %v1397_v16 = vrot.slane %v1395_v7, 7 }
 0x11b   : > { %1104 = vst [vmem:[#allocation2 + $0xc8] sm:$0xff] %v13986_v50  ;;  %v1320_v43 = vshrl.u32 %v13986_v50, 16  ;;  %v16673_v33 = vadd.f32 %v738_v15, %v16385_v21  ;;  %v740_v32 = vpop.f32.mrb[25].mxu0  ;;  %v1323_v28 = vshll.u32 %v13986_v50, 16  ;;  %v16677_v19 = vpop.f32.mrb[23].mxu1  ;;  %v16682_v22 = vcombine.high %v1304_v42, %v1313_v29 }
 0x11c   : > { %1105 = vst [vmem:[#allocation2 + $0xd0] sm:$0xff] %v13987_v24  ;;  %v16680_v5 = vadd.f32 %v740_v32, %v16394_v25  ;;  %v742_v6 = vpop.f32.mrb[26].mxu0  ;;  %v16684_v10 = vcombine.low %v1304_v42, %v1313_v29  ;;  %2307 = vmatpush1.bf16.msra.mxu1 %v15235_v45  ;;  %v15238_v15 = vld [vmem:[%s20150_s3 + $0x80] ss:$8 sps:$4 sm:$0xff]   ;;  %v1329_v7 = vshrl.u32 %v13987_v24, 16  ;;  %v16695_v32 = vadd.f32 %v16568_v8, %v16385_v21 }
 0x11d   : > { %20271 = vst [vmem:[#allocation18_spill] sm:$0xff] %v16673_v33  ;;  %20272 = vst [vmem:[#allocation19_spill] sm:$0xff] %v16682_v22  ;;  %v1322_v23 = vrot.slane %v1320_v43, 7  ;;  %v16691_v35 = vadd.f32 %v742_v6, %v16385_v21  ;;  %v744_v34 = vpop.f32.mrb[27].mxu0  ;;  %2308 = vmatprep.subr.bf16.mxu1 %v15240_v9  ;;  %v15243_v29 = vld [vmem:[%s20150_s3 + $0x94] ss:$8 sps:$4 sm:$0xff]   ;;  %2003 = vmatprep.mubr.bf16.mxu1 %v16682_v22  ;;  %v16708_v6 = vsel %vm16431_vm9, %v16408_v54, %v1391_v27 }
 0x11e   : > { %20273 = vst [vmem:[#allocation20_spill] sm:$0xff] %v16684_v10  ;;  %20275 = vst [vmem:[#allocation22_spill] sm:$0xff] %v16695_v32  ;;  %v16702_v42 = vadd.f32 %v744_v34, %v16394_v25  ;;  %2004 = vmatmul.mubr.bf16.gmra.mrb[48].mxu1 %v16684_v10  ;;  %v1331_v9 = vrot.slane %v1329_v7, 7  ;;  %v1332_v50 = vshll.u32 %v13987_v24, 16  ;;  %v1400_v55 = vor.u32 %v1398_v14, %v1397_v16  ;;  %v15241_v54 = vld [vmem:[%s20150_s3 + $0x90] ss:$8 sps:$4 sm:$0xff]  }
 0x11f   : > { %20274 = vst [vmem:[#allocation21_spill] sm:$0xff] %v16691_v35  ;;  %v1325_v43 = vor.u32 %v1323_v28, %v1322_v23  ;;  %v20189_v8 = vmax.f32 %v16691_v35, 0.0  ;;  %v20276_v45 = vmax.f32 %v16673_v33, 0.0  ;;  %v20277_v34 = vmax.f32 %v16680_v5, 0.0  ;;  %v16724_v27 = vpop.f32.mrb[24].mxu1 }
 0x120   : > { %v20190_v22 = vmax.f32 %v16702_v42, 0.0  ;;  %v1327_v28 = vrot.slane %v1322_v23, 4  ;;  %2309 = vmatpush1.bf16.msra.mxu1 %v15238_v15  ;;  %v1334_v24 = vor.u32 %v1332_v50, %v1331_v9  ;;  %v16732_v23 = vadd.f32 %v16588_v36, %v16385_v21  ;;  %v16734_v11 = vpop.f32.mrb[25].mxu1  ;;  %v15246_v15 = vld [vmem:[%s20150_s3 + $0xa4] ss:$8 sps:$4 sm:$0xff]  }
 0x121   : > { %v13988_v17 = vpack.c.bf16 %v20277_v34, %v20276_v45  ;;  %v1326_v16 = vsel %vm16431_vm9, %v16396_v26, %v1325_v43  ;;  %2310 = vmatprep.subr.bf16.mxu1 %v15243_v29  ;;  %v16745_v45 = vsel %vm16431_vm9, %v1393_v2, %v1400_v55  ;;  %v16749_v36 = vadd.f32 %v16602_v53, %v16394_v25  ;;  %v16751_v29 = vpop.f32.mrb[26].mxu1 }
 0x122   : > { %20279 = vst [vmem:[#allocation24_spill] sm:$0xff] %v16732_v23  ;;  %v13989_v26 = vpack.c.bf16 %v20190_v22, %v20189_v8  ;;  %v748_v50 = vpop.f32.mrb[28].mxu0  ;;  %v1335_v34 = vsel %vm16431_vm9, %v1327_v28, %v1334_v24  ;;  %v16759_v14 = vpop.f32.mrb[27].mxu1  ;;  %v15244_v28 = vld [vmem:[%s20150_s3 + $0xa0] ss:$8 sps:$4 sm:$0xff]  }
 0x123   : > { %1106 = vst [vmem:[#allocation2 + $0xe8] sm:$0xff] %v13988_v17  ;;  %v1342_v7 = vshrl.u32 %v13988_v17, 16  ;;  %20280 = vst [vmem:[#allocation25_spill] sm:$0xff] %v16749_v36  ;;  %v16754_v43 = vadd.f32 %v748_v50, %v16385_v21  ;;  %v750_v9 = vpop.f32.mrb[29].mxu0  ;;  %v1345_v8 = vshll.u32 %v13988_v17, 16  ;;  %v16764_v2 = vcombine.high %v1326_v16, %v1335_v34 }
 0x124   : > { %1107 = vst [vmem:[#allocation2 + $0xf0] sm:$0xff] %v13989_v26  ;;  %v16762_v55 = vadd.f32 %v750_v9, %v16394_v25  ;;  %v752_v53 = vpop.f32.mrb[30].mxu0  ;;  %v16766_v10 = vcombine.low %v1326_v16, %v1335_v34  ;;  %2311 = vmatpush1.bf16.msra.mxu1 %v15241_v54  ;;  %v1351_v20 = vshrl.u32 %v13989_v26, 16  ;;  %v15249_v16 = vld [vmem:[%s20150_s3 + $0xb4] ss:$8 sps:$4 sm:$0xff]   ;;  %v1354_v17 = vshll.u32 %v13989_v26, 16 }
 0x125   : > { %20281 = vst [vmem:[#allocation26_spill] sm:$0xff] %v16754_v43  ;;  %20283 = vst [vmem:[#allocation28_spill] sm:$0xff] %v16764_v2  ;;  %v1344_v50 = vrot.slane %v1342_v7, 7  ;;  %v16773_v24 = vadd.f32 %v752_v53, %v16385_v21  ;;  %v754_v22 = vpop.f32.mrb[31].mxu0  ;;  %2312 = vmatprep.subr.bf16.mxu1 %v15246_v15  ;;  %2013 = vmatprep.mubr.bf16.mxu1 %v16764_v2  ;;  %v20287_v15 = vmax.f32 %v16695_v32, 0.0  ;;  %v20288_v9 = vmax.f32 %v16719_v4, 0.0 }
 0x126   : > { %20282 = vst [vmem:[#allocation27_spill] sm:$0xff] %v16762_v55  ;;  %20284 = vst [vmem:[#allocation29_spill] sm:$0xff] %v16766_v10  ;;  %v16781_v7 = vadd.f32 %v754_v22, %v16394_v25  ;;  %2014 = vmatmul.mubr.bf16.gmra.mrb[52].mxu1 %v16766_v10  ;;  %v1353_v59 = vrot.slane %v1351_v20, 7  ;;  %v20289_v22 = vmax.f32 %v16754_v43, 0.0  ;;  %v20290_v33 = vmax.f32 %v16762_v55, 0.0  ;;  %v16801_v53 = vpop.f32.mrb[28].mxu1 }
 0x127   : > { %20285 = vst [vmem:[#allocation30_spill] sm:$0xff] %v16773_v24  ;;  %v1347_v34 = vor.u32 %v1345_v8, %v1344_v50  ;;  %v16790_v35 = vpack.c.bf16 %v20288_v9, %v20287_v15  ;;  %v1349_v20 = vrot.slane %v1344_v50, 4  ;;  %v15247_v9 = vld [vmem:[%s20150_s3 + $0xb0] ss:$8 sps:$4 sm:$0xff]   ;;  %v20291_v54 = vmax.f32 %v16732_v23, 0.0  ;;  %v16815_v50 = vpop.f32.mrb[29].mxu1 }
 0x128   : > { %20286 = vst [vmem:[#allocation31_spill] sm:$0xff] %v16781_v7  ;;  %v13990_v2 = vpack.c.bf16 %v20290_v33, %v20289_v22  ;;  %2313 = vmatpush1.bf16.msra.mxu1 %v15244_v28  ;;  %v1356_v15 = vor.u32 %v1354_v17, %v1353_v59  ;;  %v20292_v33 = vmax.f32 %v16749_v36, 0.0  ;;  %v1408_v8 = vshrl.u32 %v16479_v57, 16  ;;  %v15252_v28 = vld [vmem:[%s20150_s3 + $0xc4] ss:$8 sps:$4 sm:$0xff]   ;;  %v16825_v23 = vpop.f32.mrb[30].mxu1 }
 0x129   : > { %v1348_v26 = vsel %vm16431_vm9, %v16404_v51, %v1347_v34  ;;  %1118 = vst [vmem:[#allocation2 + $0x1a8] sm:$0xff] %v16790_v35  ;;  %v1411_v51 = vshll.u32 %v16479_v57, 16  ;;  %2314 = vmatprep.subr.bf16.mxu1 %v15249_v16  ;;  %v20293_v59 = vmax.f32 %v16773_v24, 0.0  ;;  %v20294_v17 = vmax.f32 %v16781_v7, 0.0  ;;  %v16835_v4 = vpop.f32.mrb[31].mxu1 }
 0x12a   : > { %v16811_v22 = vpack.c.bf16 %v20292_v33, %v20291_v54  ;;  %1108 = vst [vmem:[#allocation2 + $0x108] sm:$0xff] %v13990_v2  ;;  %v1364_v10 = vshrl.u32 %v13990_v2, 16  ;;  %v1367_v54 = vshll.u32 %v13990_v2, 16  ;;  %v1417_v33 = vshrl.u32 %v16502_v44, 16 }
 0x12b   : > { %v13991_v34 = vpack.c.bf16 %v20294_v17, %v20293_v59  ;;  %v1357_v57 = vsel %vm16431_vm9, %v1349_v20, %v1356_v15  ;;  %v1410_v16 = vrot.slane %v1408_v8, 7  ;;  %v1420_v32 = vshll.u32 %v16502_v44, 16  ;;  %v15250_v8 = vld [vmem:[%s20150_s3 + $0xc0] ss:$8 sps:$4 sm:$0xff]  }
 0x12c   : > { %1119 = vst [vmem:[#allocation2 + $0x1b0] sm:$0xff] %v16811_v22  ;;  %v16833_v36 = vadd.f32 %v16650_v49, %v16385_v21  ;;  %v16837_v2 = vcombine.high %v1348_v26, %v1357_v57  ;;  %v16839_v59 = vcombine.low %v1348_v26, %v1357_v57  ;;  %v1366_v17 = vrot.slane %v1364_v10, 7  ;;  %2315 = vmatpush1.bf16.msra.mxu1 %v15247_v9  ;;  %v15255_v10 = vld [vmem:[%s20150_s3 + $0xd4] ss:$8 sps:$4 sm:$0xff]  }
 0x12d   : > { %1109 = vst [vmem:[#allocation2 + $0x110] sm:$0xff] %v13991_v34  ;;  %v1373_v24 = vshrl.u32 %v13991_v34, 16  ;;  %v16846_v44 = vcombine.high %v16708_v6, %v16745_v45  ;;  %v16850_v49 = vcombine.low %v16708_v6, %v16745_v45  ;;  %v1413_v20 = vor.u32 %v1411_v51, %v1410_v16  ;;  %2316 = vmatprep.subr.bf16.mxu1 %v15252_v28 }
 0x12e   : > { %v1419_v15 = vrot.slane %v1417_v33, 7  ;;  %2023 = vmatprep.mubr.bf16.mxu1 %v16837_v2  ;;  %v1369_v26 = vor.u32 %v1367_v54, %v1366_v17  ;;  %v1376_v57 = vshll.u32 %v13991_v34, 16  ;;  %v1415_v43 = vrot.slane %v1410_v16, 4 }
 0x12f   : > { %v1375_v9 = vrot.slane %v1373_v24, 7  ;;  %2024 = vmatmul.mubr.bf16.gmra.mrb[56].mxu1 %v16839_v59  ;;  %v20212_v55 = vmax.f32 %v16833_v36, 0.0  ;;  %v16860_v6 = vadd.f32 %v16662_v3, %v16394_v25  ;;  %v16864_v45 = vadd.f32 %v16670_v38, %v16385_v21 }
 0x130   : > { %v1422_v7 = vor.u32 %v1420_v32, %v1419_v15  ;;  %v1371_v51 = vrot.slane %v1366_v17, 4  ;;  %v16868_v24 = vadd.f32 %v16677_v19, %v16394_v25  ;;  %v1430_v34 = vshrl.u32 %v16512_v63, 16  ;;  %2317 = vmatpush1.bf16.msra.mxu1 %v15250_v8  ;;  %v15253_v32 = vld [vmem:[%s20150_s3 + $0xd0] ss:$8 sps:$4 sm:$0xff]   ;;  %v15258_v19 = vld [vmem:[%s20150_s3 + $0xe4] ss:$8 sps:$4 sm:$0xff]  }
 0x131   : > { %v1378_v28 = vor.u32 %v1376_v57, %v1375_v9  ;;  %v16877_v3 = vsel %vm16431_vm9, %v16410_v56, %v1413_v20  ;;  %v20218_v38 = vmax.f32 %v16860_v6, 0.0  ;;  %v20209_v54 = vmax.f32 %v16864_v45, 0.0  ;;  %2318 = vmatprep.subr.bf16.mxu1 %v15255_v10  ;;  %v15256_v9 = vld [vmem:[%s20150_s3 + $0xe0] ss:$8 sps:$4 sm:$0xff]  }
 0x132   : > { %v1433_v33 = vshll.u32 %v16512_v63, 16  ;;  %v1370_v16 = vsel %vm16431_vm9, %v16406_v52, %v1369_v26  ;;  %v16892_v56 = vsel %vm16431_vm9, %v1415_v43, %v1422_v7  ;;  %v20215_v8 = vmax.f32 %v16868_v24, 0.0 }
 0x133   : > { %v1379_v17 = vsel %vm16431_vm9, %v1371_v51, %v1378_v28  ;;  %v16903_v15 = vpack.c.bf16 %v20218_v38, %v20212_v55  ;;  %v1432_v52 = vrot.slane %v1430_v34, 7  ;;  %v1439_v43 = vshrl.u32 %v16552_v58, 16 }
 0x134   : > { %v16895_v20 = vcombine.high %v1370_v16, %v1379_v17  ;;  %v16897_v63 = vcombine.low %v1370_v16, %v1379_v17  ;;  %v16909_v10 = vpack.c.bf16 %v20215_v8, %v20209_v54  ;;  %v1442_v7 = vshll.u32 %v16552_v58, 16  ;;  %2319 = vmatpush1.bf16.msra.mxu1 %v15253_v32 }
 0x135   : > { %v16915_v26 = vadd.f32 %v16724_v27, %v16385_v21  ;;  %1120 = vst [vmem:[#allocation2 + $0x1c8] sm:$0xff] %v16903_v15  ;;  %v1435_v57 = vor.u32 %v1433_v33, %v1432_v52  ;;  %v1437_v51 = vrot.slane %v1432_v52, 4  ;;  %v16924_v28 = vadd.f32 %v16734_v11, %v16394_v25  ;;  %2320 = vmatprep.subr.bf16.mxu1 %v15258_v19  ;;  %v15261_v27 = vld [vmem:[%s20150_s3 + $0xf4] ss:$8 sps:$4 sm:$0xff]  }
 0x136   : > { %2033 = vmatprep.mubr.bf16.mxu1 %v16895_v20  ;;  %v16928_v58 = vadd.f32 %v16751_v29, %v16385_v21  ;;  %1121 = vst [vmem:[#allocation2 + $0x1d0] sm:$0xff] %v16909_v10  ;;  %v1441_v34 = vrot.slane %v1439_v43, 7  ;;  %v16937_v33 = vadd.f32 %v16759_v14, %v16394_v25  ;;  %v1452_v11 = vshrl.u32 %v16599_v47, 16 }
 0x137   : > { %v20210_v32 = vmax.f32 %v16915_v26, 0.0  ;;  %2034 = vmatmul.mubr.bf16.gmra.mrb[60].mxu1 %v16897_v63  ;;  %v16944_v29 = vsel %vm16431_vm9, %v16412_v60, %v1435_v57  ;;  %v20211_v19 = vmax.f32 %v16924_v28, 0.0  ;;  %v1455_v17 = vshll.u32 %v16599_v47, 16  ;;  %v15259_v60 = vld [vmem:[%s20150_s3 + $0xf0] ss:$8 sps:$4 sm:$0xff]  }
 0x138   : > { %v20213_v16 = vmax.f32 %v16928_v58, 0.0  ;;  %2043 = vmatprep.mubr.bf16.mxu1 %v16846_v44  ;;  %v1444_v52 = vor.u32 %v1442_v7, %v1441_v34  ;;  %v20214_v14 = vmax.f32 %v16937_v33, 0.0  ;;  %v1454_v43 = vrot.slane %v1452_v11, 7  ;;  %2321 = vmatpush1.bf16.msra.mxu1 %v15256_v9  ;;  %v15264_v9 = vld [vmem:[%s20150_s3 + $0x604] ss:$8 sps:$4 sm:$0xff]  }
 0x139   : > { %v1461_v54 = vshrl.u32 %v16639_v12, 16  ;;  %v16959_v57 = vpack.c.bf16 %v20211_v19, %v20210_v32  ;;  %v1464_v47 = vshll.u32 %v16639_v12, 16  ;;  %v16964_v7 = vadd.f32 %v16801_v53, %v16385_v21  ;;  %2322 = vmatprep.subr.bf16.mxu1 %v15261_v27 }
 0x13a   : > { %v16968_v34 = vadd.f32 %v16815_v50, %v16394_v25  ;;  %v16975_v11 = vcombine.high %v16877_v3, %v16892_v56  ;;  %v16979_v12 = vsel %vm16431_vm9, %v1437_v51, %v1444_v52  ;;  %v16985_v53 = vpack.c.bf16 %v20214_v14, %v20213_v16 }
 0x13b   : > { %v1457_v50 = vor.u32 %v1455_v17, %v1454_v43  ;;  %v16989_v27 = vcombine.high %v16944_v29, %v16979_v12  ;;  %1122 = vst [vmem:[#allocation2 + $0x1e8] sm:$0xff] %v16959_v57  ;;  %v1459_v32 = vrot.slane %v1454_v43, 4  ;;  %v1463_v19 = vrot.slane %v1461_v54, 7 }
 0x13c   : > { %20295 = vst [vmem:[#allocation32_spill] sm:$0xff] %v16975_v11  ;;  %v20216_v55 = vmax.f32 %v16964_v7, 0.0  ;;  %1123 = vst [vmem:[#allocation2 + $0x1f0] sm:$0xff] %v16985_v53  ;;  %v20217_v52 = vmax.f32 %v16968_v34, 0.0  ;;  %v17000_v17 = vadd.f32 %v16825_v23, %v16385_v21  ;;  %v17004_v16 = vadd.f32 %v16835_v4, %v16394_v25  ;;  %2323 = vmatpush1.bf16.msra.mxu1 %v15259_v60 }
 0x13d   : > { %v1458_v51 = vsel %vm16431_vm9, %v16414_v61, %v1457_v50  ;;  %v1466_v54 = vor.u32 %v1464_v47, %v1463_v19  ;;  %v1474_v43 = vshrl.u32 %v16790_v35, 16  ;;  %v1477_v14 = vshll.u32 %v16790_v35, 16  ;;  %2686 = vmatprep.subr.bf16.mxu1 %v15264_v9 }
 0x13e   : > { %v1483_v8 = vshrl.u32 %v16811_v22, 16  ;;  %v14006_v61 = vpack.c.bf16 %v20217_v52, %v20216_v55  ;;  %v20221_v21 = vmax.f32 %v17000_v17, 0.0  ;;  %v900_v23 = vmax.f32 %v17004_v16, 0.0  ;;  %v378_v16 = vld [vmem:[#allocation2 + $0xd8] sm:$0x11] }
 0x13f   : > { %v1486_v25 = vshll.u32 %v16811_v22, 16  ;;  %2044 = vmatmul.mubr.bf16.gmra.mrb[64].mxu1 %v16850_v49  ;;  %v1467_v4 = vsel %vm16431_vm9, %v1459_v32, %v1466_v54  ;;  %v1476_v35 = vrot.slane %v1474_v43, 7  ;;  %v1496_v60 = vshrl.u32 %v16903_v15, 16 }
 0x140   : > { %v1485_v19 = vrot.slane %v1483_v8, 7  ;;  %2053 = vmatprep.mubr.bf16.mxu1 %v16975_v11  ;;  %v17021_v47 = vcombine.high %v1458_v51, %v1467_v4  ;;  %1124 = vst [vmem:[#allocation2 + $0x208] sm:$0xff] %v14006_v61  ;;  %v14007_v9 = vpack.c.bf16 %v900_v23, %v20221_v21  ;;  %v17027_v22 = vcombine.low %v1458_v51, %v1467_v4 }
 0x141   : > { %v1499_v50 = vshll.u32 %v16903_v15, 16  ;;  %v1479_v55 = vor.u32 %v1477_v14, %v1476_v35  ;;  %v1481_v32 = vrot.slane %v1476_v35, 4  ;;  %v1498_v8 = vrot.slane %v1496_v60, 7 }
 0x142   : > { %v1488_v54 = vor.u32 %v1486_v25, %v1485_v19  ;;  %1125 = vst [vmem:[#allocation2 + $0x210] sm:$0xff] %v14007_v9  ;;  %v1505_v43 = vshrl.u32 %v16909_v10, 16  ;;  %v1508_v52 = vshll.u32 %v16909_v10, 16  ;;  %v1518_v38 = vshrl.u32 %v16959_v57, 16 }
 0x143   : > { %v1521_v11 = vshll.u32 %v16959_v57, 16  ;;  %v1480_v51 = vsel %vm16431_vm9, %v16417_v0, %v1479_v55  ;;  %v1501_v14 = vor.u32 %v1499_v50, %v1498_v8  ;;  %v1503_v4 = vrot.slane %v1498_v8, 4 }
 0x144   : > { %v1489_v15 = vsel %vm16431_vm9, %v1481_v32, %v1488_v54  ;;  %v1507_v19 = vrot.slane %v1505_v43, 7  ;;  %v1520_v60 = vrot.slane %v1518_v38, 7  ;;  %v17045_v10 = vcombine.low %v16877_v3, %v16892_v56 }
 0x145   : > { %v17039_v25 = vcombine.high %v1480_v51, %v1489_v15  ;;  %v17041_v35 = vcombine.low %v1480_v51, %v1489_v15  ;;  %v1527_v57 = vshrl.u32 %v16985_v53, 16  ;;  %v1530_v21 = vshll.u32 %v16985_v53, 16 }
 0x146   : > { %v1540_v0 = vshrl.u32 %v14006_v61, 16  ;;  %v1502_v55 = vsel %vm16431_vm9, %v16419_v1, %v1501_v14  ;;  %v1510_v50 = vor.u32 %v1508_v52, %v1507_v19  ;;  %v1523_v32 = vor.u32 %v1521_v11, %v1520_v60 }
 0x147   : > { %v1543_v54 = vshll.u32 %v14006_v61, 16  ;;  %2054 = vmatmul.mubr.bf16.gmra.mrb[68].mxu1 %v17045_v10  ;;  %v1525_v8 = vrot.slane %v1520_v60, 4  ;;  %v1529_v38 = vrot.slane %v1527_v57, 7  ;;  %v1549_v51 = vshrl.u32 %v14007_v9, 16 }
 0x148   : > { %v1542_v43 = vrot.slane %v1540_v0, 7  ;;  %2063 = vmatprep.mubr.bf16.mxu1 %v16989_v27  ;;  %v1511_v3 = vsel %vm16431_vm9, %v1503_v4, %v1510_v50  ;;  %v1524_v56 = vsel %vm16431_vm9, %v16438_v48, %v1523_v32  ;;  %v20296_v1 = vshrl.u32 %v16626_v18, 16 }
 0x149   : > { %v1552_v11 = vshll.u32 %v14007_v9, 16  ;;  %v17061_v52 = vcombine.high %v1502_v55, %v1511_v3  ;;  %v17063_v61 = vcombine.low %v1502_v55, %v1511_v3  ;;  %v1532_v15 = vor.u32 %v1530_v21, %v1529_v38 }
 0x14a   : > { %v12616_v53 = vrot.slane %v20296_v1, 11  ;;  %v1545_v14 = vor.u32 %v1543_v54, %v1542_v43  ;;  %v1547_v19 = vrot.slane %v1542_v43, 4  ;;  %v1551_v60 = vrot.slane %v1549_v51, 7 }
 0x14b   : > { %v1533_v57 = vsel %vm16431_vm9, %v1525_v8, %v1532_v15  ;;  %v17075_v9 = vcombine.low %v16944_v29, %v16979_v12  ;;  %v20297_v32 = vmax.f32 %v16528_v31, 0.0  ;;  %v20298_v54 = vmax.f32 %v16547_v46, 0.0  ;;  %v20309_v15 = vld [vmem:[#allocation21_spill] sm:$0xff] }
 0x14c   : > { %v17067_v4 = vcombine.high %v1524_v56, %v1533_v57  ;;  %v17069_v0 = vcombine.low %v1524_v56, %v1533_v57  ;;  %v1546_v48 = vsel %vm16431_vm9, %v12616_v53, %v1545_v14  ;;  %v1554_v18 = vor.u32 %v1552_v11, %v1551_v60  ;;  %v20313_v60 = vld [vmem:[#allocation31_spill] sm:$0xff] }
 0x14d   : > { %v17089_v8 = vpack.c.bf16 %v20298_v54, %v20297_v32  ;;  %v20299_v29 = vmax.f32 %v16522_v13, 0.0  ;;  %v20300_v12 = vmax.f32 %v16542_v39, 0.0  ;;  %v20301_v43 = vmax.f32 %v16605_v62, 0.0  ;;  %v20307_v39 = vld [vmem:[#allocation18_spill] sm:$0xff]  ;;  %v20321_v54 = vld [vmem:[#allocation15_spill] sm:$0xff] }
 0x14e   : > { %v1555_v21 = vsel %vm16431_vm9, %v1547_v19, %v1554_v18  ;;  %v20302_v51 = vmax.f32 %v16630_v41, 0.0  ;;  %v20303_v56 = vmax.f32 %v16591_v40, 0.0  ;;  %v20304_v31 = vmax.f32 %v16619_v30, 0.0  ;;  %v20311_v41 = vld [vmem:[#allocation27_spill] sm:$0xff]  ;;  %v20315_v30 = vld [vmem:[#allocation26_spill] sm:$0xff] }
 0x14f   : > { %2064 = vmatmul.mubr.bf16.gmra.mrb[72].mxu1 %v17075_v9  ;;  %v17080_v55 = vcombine.high %v1546_v48, %v1555_v21  ;;  %v17082_v50 = vcombine.low %v1546_v48, %v1555_v21  ;;  %v17095_v38 = vpack.c.bf16 %v20300_v12, %v20299_v29  ;;  %v20305_v46 = vmax.f32 %v16680_v5, 0.0  ;;  %v20317_v18 = vld [vmem:[#allocation30_spill] sm:$0xff] }
 0x150   : > { %2073 = vmatprep.mubr.bf16.mxu1 %v17021_v47  ;;  %v17101_v3 = vpack.c.bf16 %v20302_v51, %v20301_v43  ;;  %v17107_v1 = vpack.c.bf16 %v20304_v31, %v20303_v56  ;;  %v20306_v13 = vmax.f32 %v16702_v42, 0.0  ;;  %v20308_v11 = vmax.f32 %v20307_v39, 0.0  ;;  %v20319_v42 = vld [vmem:[#allocation13_spill] sm:$0xff]  ;;  %v20323_v43 = vld [vmem:[#allocation10_spill] sm:$0xff] }
 0x151   : > { %v20310_v62 = vmax.f32 %v20309_v15, 0.0  ;;  %v20312_v19 = vmax.f32 %v20311_v41, 0.0  ;;  %v20314_v40 = vmax.f32 %v20313_v60, 0.0  ;;  %v20316_v48 = vmax.f32 %v20315_v30, 0.0  ;;  %v20325_v56 = vld [vmem:[#allocation14_spill] sm:$0xff]  ;;  %v20333_v60 = vld [vmem:[#allocation24_spill] sm:$0xff] }
 0x152   : > { %v17113_v53 = vpack.c.bf16 %v20306_v13, %v20305_v46  ;;  %v20318_v5 = vmax.f32 %v20317_v18, 0.0  ;;  %v20320_v32 = vmax.f32 %v20319_v42, 0.0  ;;  %v20322_v29 = vmax.f32 %v20321_v54, 0.0  ;;  %v20327_v13 = vld [vmem:[#allocation23_spill] sm:$0xff]  ;;  %v20331_v41 = vld [vmem:[#allocation22_spill] sm:$0xff] }
 0x153   : > { %v17119_v14 = vpack.c.bf16 %v20310_v62, %v20308_v11  ;;  %v17125_v57 = vpack.c.bf16 %v20314_v40, %v20312_v19  ;;  %v20324_v51 = vmax.f32 %v20323_v43, 0.0  ;;  %v20326_v31 = vmax.f32 %v20325_v56, 0.0  ;;  %v20329_v11 = vld [vmem:[#allocation25_spill] sm:$0xff] }
 0x154   : > { %v17131_v21 = vpack.c.bf16 %v20318_v5, %v20316_v48  ;;  %v17137_v12 = vpack.c.bf16 %v20322_v29, %v20320_v32  ;;  %v20328_v39 = vmax.f32 %v20327_v13, 0.0  ;;  %v20330_v15 = vmax.f32 %v20329_v11, 0.0  ;;  %v384_v11 = vld [vmem:[#allocation2 + $0xf8] sm:$0x11] }
 0x155   : > { %v17143_v46 = vpack.c.bf16 %v20326_v31, %v20324_v51  ;;  %v20332_v19 = vmax.f32 %v20331_v41, 0.0  ;;  %v20334_v40 = vmax.f32 %v20333_v60, 0.0  ;;  %v20335_v48 = vmax.f32 %v16860_v6, 0.0 }
 0x156   : > { %v17149_v62 = vpack.c.bf16 %v20330_v15, %v20328_v39  ;;  %v20336_v18 = vmax.f32 %v16868_v24, 0.0  ;;  %v20337_v42 = vmax.f32 %v16833_v36, 0.0  ;;  %v20338_v32 = vmax.f32 %v16864_v45, 0.0 }
 0x157   : > { %v17155_v30 = vpack.c.bf16 %v20334_v40, %v20332_v19  ;;  %v20339_v29 = vmax.f32 %v16924_v28, 0.0  ;;  %v20340_v43 = vmax.f32 %v16937_v33, 0.0  ;;  %v20341_v56 = vmax.f32 %v16915_v26, 0.0  ;;  %2074 = vmatmul.mubr.bf16.gmra.mrb[76].mxu1 %v17027_v22  ;;  %v17197_v26 = vld [vmem:[#allocation2] sm:$0xff]  ;;  %v390_v40 = vld [vmem:[#allocation2 + $0x118] sm:$0x11] }
 0x158   : > { %v17161_v5 = vpack.c.bf16 %v20336_v18, %v20335_v48  ;;  %v17167_v54 = vpack.c.bf16 %v20338_v32, %v20337_v42  ;;  %v20342_v6 = vmax.f32 %v16928_v58, 0.0  ;;  %v20343_v24 = vmax.f32 %v16968_v34, 0.0  ;;  %2083 = vmatprep.mubr.bf16.mxu1 %v17039_v25  ;;  %v1126_v33 = vld [vmem:[#allocation2] sm:$0x88]  ;;  %v396_v32 = vld [vmem:[#allocation2 + $0x138] sm:$0x11] }
 0x159   : > { %v17173_v51 = vpack.c.bf16 %v20340_v43, %v20339_v29  ;;  %v20344_v45 = vmax.f32 %v16964_v7, 0.0  ;;  %v20345_v28 = vmax.f32 %v17000_v17, 0.0  ;;  %v1188_v58 = vshrl.u32 %v17197_v26, 16 }
 0x15a   : > { %v17179_v31 = vpack.c.bf16 %v20342_v6, %v20341_v56  ;;  %v17185_v36 = vpack.c.bf16 %v900_v23, %v20343_v24  ;;  %v1183_v7 = vshrl.u32 %v1126_v33, 16  ;;  %v1191_v17 = vshll.u32 %v17197_v26, 16  ;;  %v402_v56 = vld [vmem:[#allocation2 + $0x158] sm:$0x11]  ;;  %v20347_v33 = vld [vmem:[#allocation7_spill] sm:$0xff] }
 0x15b   : > { %v17191_v13 = vpack.c.bf16 %v20345_v28, %v20344_v45  ;;  %v1190_v34 = vrot.slane %v1188_v58, 7  ;;  %v379_v39 = vsel %vm16363_vm7, 0, %v378_v16  ;;  %v385_v60 = vsel %vm16363_vm7, 0, %v384_v11  ;;  %v15262_v45 = vld [vmem:[%s20150_s3 + $0x600] ss:$8 sps:$4 sm:$0xff]  }
 0x15c   : > { %380 = vst [vmem:[#allocation2 + $0xd8] sm:$0x11] %v379_v39  ;;  %v12600_v15 = vrot.slane %v1183_v7, 11  ;;  %386 = vst [vmem:[#allocation2 + $0xf8] sm:$0x11] %v385_v60  ;;  %v391_v42 = vsel %vm16363_vm7, 0, %v390_v40 }
 0x15d   : > { %v17205_v41 = vor.u32 %v1191_v17, %v1190_v34  ;;  %v1195_v19 = vrot.slane %v1190_v34, 4  ;;  %392 = vst [vmem:[#allocation2 + $0x118] sm:$0x11] %v391_v42  ;;  %v397_v43 = vsel %vm16363_vm7, 0, %v396_v32  ;;  %v403_v6 = vsel %vm16363_vm7, 0, %v402_v56  ;;  %v20349_v40 = vld [vmem:[#allocation8_spill] sm:$0xff] }
 0x15e   : > { %398 = vst [vmem:[#allocation2 + $0x138] sm:$0x11] %v397_v43  ;;  %404 = vst [vmem:[#allocation2 + $0x158] sm:$0x11] %v403_v6  ;;  %v15267_v28 = vld [vmem:[%s20150_s3 + $0x614] ss:$8 sps:$4 sm:$0xff]  }
 0x15f   : > { %2084 = vmatmul.mubr.bf16.gmra.mrb[80].mxu1 %v17041_v35  ;;  %v1194_v48 = vsel %vm16431_vm9, %v12600_v15, %v17205_v41  ;;  %v17217_v18 = vsel %vm16431_vm9, %v1195_v19, %v17205_v41  ;;  %v408_v58 = vld [vmem:[#allocation2 + $0x178] sm:$0x11]  ;;  %v15270_v7 = vld [vmem:[%s20150_s3 + $0x624] ss:$8 sps:$4 sm:$0xff]   ;;  %v15268_v39 = vld [vmem:[%s20150_s3 + $0x620] ss:$8 sps:$4 sm:$0xff]  }
 0x160   : > { %2093 = vmatprep.mubr.bf16.mxu1 %v17061_v52  ;;  %v12715_v29 = vcombine.high %v1194_v48, %v17217_v18  ;;  %v12714_v24 = vcombine.low %v1194_v48, %v17217_v18  ;;  %v15265_v16 = vld [vmem:[%s20150_s3 + $0x610] ss:$8 sps:$4 sm:$0xff]   ;;  %v409_v34 = vsel %vm16363_vm7, 0, %v408_v58  ;;  %v15273_v11 = vld [vmem:[%s20150_s3 + $0x634] ss:$8 sps:$4 sm:$0xff]  }
 0x161   : > { %410 = vst [vmem:[#allocation2 + $0x178] sm:$0x11] %v409_v34  ;;  %v414_v17 = vld [vmem:[#allocation2 + $0x198] sm:$0x11]  ;;  %v15276_v42 = vld [vmem:[%s20150_s3 + $0x644] ss:$8 sps:$4 sm:$0xff]  }
 0x162   : > { %v415_v15 = vsel %vm16363_vm7, 0, %v414_v17  ;;  %v20348_v19 = vld [vmem:[#allocation6_spill] sm:$0xff]  ;;  %v15274_v43 = vld [vmem:[%s20150_s3 + $0x640] ss:$8 sps:$4 sm:$0xff]  }
 0x163   : > { %416 = vst [vmem:[#allocation2 + $0x198] sm:$0x11] %v415_v15  ;;  %v420_v60 = vld [vmem:[#allocation2 + $0x1b8] sm:$0x11] }
 0x164   : > { %v15271_v48 = vld [vmem:[%s20150_s3 + $0x630] ss:$8 sps:$4 sm:$0xff]   ;;  %v421_v32 = vsel %vm16363_vm7, 0, %v420_v60  ;;  %v15279_v56 = vld [vmem:[%s20150_s3 + $0x654] ss:$8 sps:$4 sm:$0xff]  }
 0x165   : > { %422 = vst [vmem:[#allocation2 + $0x1b8] sm:$0x11] %v421_v32  ;;  %v15277_v58 = vld [vmem:[%s20150_s3 + $0x650] ss:$8 sps:$4 sm:$0xff]   ;;  %v15285_v34 = vld [vmem:[%s20150_s3 + $0x674] ss:$8 sps:$4 sm:$0xff]  }
 0x166   : > { %v438_v17 = vld [vmem:[#allocation2 + $0x218] sm:$0x11]  ;;  %v20354_v32 = vld [vmem:[#allocation17_spill] sm:$0xff] }
 0x167   : > { %2094 = vmatmul.mubr.bf16.gmra.mrb[84].mxu1 %v17063_v61  ;;  %v15283_v15 = vld [vmem:[%s20150_s3 + $0x670] ss:$8 sps:$4 sm:$0xff]   ;;  %v439_v60 = vsel %vm16363_vm7, 0, %v438_v17  ;;  %v15303_v17 = vld [vmem:[%s20150_s3 + $0x6d4] ss:$8 sps:$4 sm:$0xff]  }
 0x168   : > { %2103 = vmatprep.mubr.bf16.mxu1 %v17067_v4  ;;  %440 = vst [vmem:[#allocation2 + $0x218] sm:$0x11] %v439_v60  ;;  %v15306_v60 = vld [vmem:[%s20150_s3 + $0x6e4] ss:$8 sps:$4 sm:$0xff]   ;;  %v15603_v23 = vld [vmem:[%s20152_s5 + $0x314] ss:$8 sps:$4 sm:$0xff]  }
 0x16f   : > { %2104 = vmatmul.mubr.bf16.gmra.mrb[88].mxu1 %v17069_v0 }
 0x170   : > { %2113 = vmatprep.mubr.bf16.mxu1 %v17080_v55 }
 0x177   : > { %2114 = vmatmul.mubr.bf16.gmra.mrb[92].mxu1 %v17082_v50 }
 0x178   : > { %2324 = vmatprep.mubr.bf16.mxu1 %v12715_v29  ;;  %v426_v29 = vld [vmem:[#allocation2 + $0x1d8] sm:$0x11] }
 0x179   : > { %v427_v6 = vsel %vm16363_vm7, 0, %v426_v29  ;;  %v20355_v29 = vld [vmem:[#allocation19_spill] sm:$0xff] }
 0x17a   : > { %428 = vst [vmem:[#allocation2 + $0x1d8] sm:$0x11] %v427_v6  ;;  %v15292_v6 = vld [vmem:[%s20150_s3 + $0x6a0] ss:$8 sps:$4 sm:$0xff]  }
 0x17f   : > { %2325 = vmatmul.mubr.bf16.vlgmr.msra.gmra.mrb[32].mxu1 %v12714_v24  ;;  %v432_v24 = vld [vmem:[#allocation2 + $0x1f8] sm:$0x11] }
 0x180   : > { %2687 = vmatpush1.bf16.msra.mxu1 %v15262_v45  ;;  %2334 = vmatprep.mubr.bf16.mxu1 %v20347_v33  ;;  %v20350_v45 = vld [vmem:[#allocation9_spill] sm:$0xff]  ;;  %v15282_v33 = vld [vmem:[%s20150_s3 + $0x664] ss:$8 sps:$4 sm:$0xff]  }
 0x181   : > { %2688 = vmatprep.subr.bf16.mxu1 %v15267_v28  ;;  %v20351_v28 = vld [vmem:[#allocation11_spill] sm:$0xff] }
 0x184   : > { %2689 = vmatpush1.bf16.msra.mxu1 %v15265_v16  ;;  %v433_v16 = vsel %vm16363_vm7, 0, %v432_v24  ;;  %v15297_v24 = vld [vmem:[%s20150_s3 + $0x6b4] ss:$8 sps:$4 sm:$0xff]  }
 0x185   : > { %2690 = vmatprep.subr.bf16.mxu1 %v15270_v7  ;;  %434 = vst [vmem:[#allocation2 + $0x1f8] sm:$0x11] %v433_v16  ;;  %v15280_v7 = vld [vmem:[%s20150_s3 + $0x660] ss:$8 sps:$4 sm:$0xff]   ;;  %v15295_v16 = vld [vmem:[%s20150_s3 + $0x6b0] ss:$8 sps:$4 sm:$0xff]  }
 0x187   : > { %2335 = vmatmul.mubr.bf16.gmra.mrb[36].mxu1 %v20348_v19  ;;  %v15288_v19 = vld [vmem:[%s20150_s3 + $0x684] ss:$8 sps:$4 sm:$0xff]  }
 0x188   : > { %2344 = vmatprep.mubr.bf16.mxu1 %v20349_v40  ;;  %2691 = vmatpush1.bf16.msra.mxu1 %v15268_v39  ;;  %v20352_v39 = vld [vmem:[#allocation12_spill] sm:$0xff] }
 0x189   : > { %2692 = vmatprep.subr.bf16.mxu1 %v15273_v11  ;;  %v20353_v11 = vld [vmem:[#allocation16_spill] sm:$0xff] }
 0x18c   : > { %2693 = vmatpush1.bf16.msra.mxu1 %v15271_v48  ;;  %v15286_v48 = vld [vmem:[%s20150_s3 + $0x680] ss:$8 sps:$4 sm:$0xff]  }
 0x18d   : > { %2694 = vmatprep.subr.bf16.mxu1 %v15276_v42  ;;  %v15291_v42 = vld [vmem:[%s20150_s3 + $0x694] ss:$8 sps:$4 sm:$0xff]  }
 0x18f   : > { %2345 = vmatmul.mubr.bf16.gmra.mrb[40].mxu1 %v20350_v45 }
 0x190   : > { %2354 = vmatprep.mubr.bf16.mxu1 %v20351_v28  ;;  %2695 = vmatpush1.bf16.msra.mxu1 %v15274_v43  ;;  %v15289_v43 = vld [vmem:[%s20150_s3 + $0x690] ss:$8 sps:$4 sm:$0xff]  }
 0x191   : > { %2696 = vmatprep.subr.bf16.mxu1 %v15279_v56  ;;  %v15294_v56 = vld [vmem:[%s20150_s3 + $0x6a4] ss:$8 sps:$4 sm:$0xff]  }
 0x194   : > { %2697 = vmatpush1.bf16.msra.mxu1 %v15277_v58  ;;  %v20356_v58 = vld [vmem:[#allocation20_spill] sm:$0xff] }
 0x195   : > { %2698 = vmatprep.subr.bf16.mxu1 %v15282_v33  ;;  %v20357_v33 = vld [vmem:[#allocation28_spill] sm:$0xff] }
 0x197   : > { %2355 = vmatmul.mubr.bf16.gmra.mrb[44].mxu1 %v20352_v39 }
 0x198   : > { %2364 = vmatprep.mubr.bf16.mxu1 %v20353_v11  ;;  %2699 = vmatpush1.bf16.msra.mxu1 %v15280_v7  ;;  %v15300_v7 = vld [vmem:[%s20150_s3 + $0x6c4] ss:$8 sps:$4 sm:$0xff]  }
 0x199   : > { %2700 = vmatprep.subr.bf16.mxu1 %v15285_v34  ;;  %v15298_v34 = vld [vmem:[%s20150_s3 + $0x6c0] ss:$8 sps:$4 sm:$0xff]  }
 0x19c   : > { %2701 = vmatpush1.bf16.msra.mxu1 %v15283_v15  ;;  %v20358_v15 = vld [vmem:[#allocation29_spill] sm:$0xff] }
 0x19d   : > { %2702 = vmatprep.subr.bf16.mxu1 %v15288_v19  ;;  %v15301_v19 = vld [vmem:[%s20150_s3 + $0x6d0] ss:$8 sps:$4 sm:$0xff]  }
 0x19f   : > { %2365 = vmatmul.mubr.bf16.gmra.mrb[48].mxu1 %v20354_v32 }
 0x1a0   : > { %2374 = vmatprep.mubr.bf16.mxu1 %v20355_v29  ;;  %2703 = vmatpush1.bf16.msra.mxu1 %v15286_v48  ;;  %v15304_v48 = vld [vmem:[%s20150_s3 + $0x6e0] ss:$8 sps:$4 sm:$0xff]  }
 0x1a1   : > { %2704 = vmatprep.subr.bf16.mxu1 %v15291_v42  ;;  %v15309_v42 = vld [vmem:[%s20150_s3 + $0x6f4] ss:$8 sps:$4 sm:$0xff]  }
 0x1a4   : > { %2705 = vmatpush1.bf16.msra.mxu1 %v15289_v43  ;;  %v15307_v43 = vld [vmem:[%s20150_s3 + $0x6f0] ss:$8 sps:$4 sm:$0xff]  }
 0x1a5   : > { %2706 = vmatprep.subr.bf16.mxu1 %v15294_v56  ;;  %v15312_v56 = vld [vmem:[%s20150_s3 + $0x104] ss:$8 sps:$4 sm:$0xff]  }
 0x1a7   : > { %2375 = vmatmul.mubr.bf16.gmra.mrb[52].mxu1 %v20356_v58 }
 0x1a8   : > { %2384 = vmatprep.mubr.bf16.mxu1 %v20357_v33  ;;  %2707 = vmatpush1.bf16.msra.mxu1 %v15292_v6  ;;  %v20359_v6 = vld [vmem:[#allocation32_spill] sm:$0xff] }
 0x1a9   : > { %2708 = vmatprep.subr.bf16.mxu1 %v15297_v24  ;;  %v15310_v24 = vld [vmem:[%s20150_s3 + $0x100] ss:$8 sps:$4 sm:$0xff]  }
 0x1ac   : > { %2709 = vmatpush1.bf16.msra.mxu1 %v15295_v16  ;;  %v15315_v16 = vld [vmem:[%s20150_s3 + $0x114] ss:$8 sps:$4 sm:$0xff]  }
 0x1ad   : > { %2710 = vmatprep.subr.bf16.mxu1 %v15300_v7  ;;  %v15313_v7 = vld [vmem:[%s20150_s3 + $0x110] ss:$8 sps:$4 sm:$0xff]  }
 0x1af   : > { %2385 = vmatmul.mubr.bf16.gmra.mrb[56].mxu1 %v20358_v15 }
 0x1b0   : > { %2394 = vmatprep.mubr.bf16.mxu1 %v16837_v2  ;;  %2711 = vmatpush1.bf16.msra.mxu1 %v15298_v34  ;;  %v15316_v34 = vld [vmem:[%s20150_s3 + $0x120] ss:$8 sps:$4 sm:$0xff]  }
 0x1b1   : > { %2712 = vmatprep.subr.bf16.mxu1 %v15303_v17  ;;  %v15324_v17 = vld [vmem:[%s20150_s3 + $0x144] ss:$8 sps:$4 sm:$0xff]  }
 0x1b4   : > { %2713 = vmatpush1.bf16.msra.mxu1 %v15301_v19  ;;  %v15322_v19 = vld [vmem:[%s20150_s3 + $0x140] ss:$8 sps:$4 sm:$0xff]  }
 0x1b5   : > { %2714 = vmatprep.subr.bf16.mxu1 %v15306_v60  ;;  %v15330_v60 = vld [vmem:[%s20150_s3 + $0x164] ss:$8 sps:$4 sm:$0xff]  }
 0x1b7   : > { %2395 = vmatmul.mubr.bf16.gmra.mrb[60].mxu1 %v16839_v59 }
 0x1b8   : > { %2404 = vmatprep.mubr.bf16.mxu1 %v16895_v20  ;;  %2715 = vmatpush1.bf16.msra.mxu1 %v15304_v48  ;;  %v15328_v48 = vld [vmem:[%s20150_s3 + $0x160] ss:$8 sps:$4 sm:$0xff]  }
 0x1b9   : > { %2716 = vmatprep.subr.bf16.mxu1 %v15309_v42  ;;  %v15336_v42 = vld [vmem:[%s20150_s3 + $0x184] ss:$8 sps:$4 sm:$0xff]  }
 0x1bc   : > { %2717 = vmatpush1.bf16.msra.mxu1 %v15307_v43  ;;  %v15334_v43 = vld [vmem:[%s20150_s3 + $0x180] ss:$8 sps:$4 sm:$0xff]  }
 0x1bd   : > { %3296 = vmatprep.subr.bf16.mxu1 %v15312_v56  ;;  %v15342_v56 = vld [vmem:[%s20150_s3 + $0x1a4] ss:$8 sps:$4 sm:$0xff]  }
 0x1bf   : > { %2405 = vmatmul.mubr.bf16.gmra.mrb[64].mxu1 %v16897_v63 }
 0x1c0   : > { %2414 = vmatprep.mubr.bf16.mxu1 %v16846_v44 }
 0x1c7   : > { %2415 = vmatmul.mubr.bf16.gmra.mrb[68].mxu1 %v16850_v49 }
 0x1c8   : > { %2424 = vmatprep.mubr.bf16.mxu1 %v20359_v6 }
 0x1cf   : > { %2425 = vmatmul.mubr.bf16.gmra.mrb[72].mxu1 %v17045_v10 }
 0x1d0   : > { %2434 = vmatprep.mubr.bf16.mxu1 %v16989_v27 }
 0x1d7   : > { %2435 = vmatmul.mubr.bf16.gmra.mrb[76].mxu1 %v17075_v9 }
 0x1d8   : > { %2444 = vmatprep.mubr.bf16.mxu1 %v17021_v47 }
 0x1df   : > { %2445 = vmatmul.mubr.bf16.gmra.mrb[80].mxu1 %v17027_v22 }
 0x1e0   : > { %2454 = vmatprep.mubr.bf16.mxu1 %v17039_v25 }
 0x1e7   : > { %2455 = vmatmul.mubr.bf16.gmra.mrb[84].mxu1 %v17041_v35 }
 0x1e8   : > { %2464 = vmatprep.mubr.bf16.mxu1 %v17061_v52 }
 0x1ef   : > { %2465 = vmatmul.mubr.bf16.gmra.mrb[88].mxu1 %v17063_v61 }
 0x1f0   : > { %2474 = vmatprep.mubr.bf16.mxu1 %v17067_v4 }
 0x1f7   : > { %2475 = vmatmul.mubr.bf16.gmra.mrb[92].mxu1 %v17069_v0 }
 0x1f8   : > { %2718 = vmatprep.mubr.bf16.mxu1 %v20349_v40  ;;  %v15318_v40 = vld [vmem:[%s20150_s3 + $0x124] ss:$8 sps:$4 sm:$0xff]  }
 0x1ff   : > { %2719 = vmatmul.mubr.bf16.vlgmr.msra.gmra.mrb[32].mxu1 %v20350_v45  ;;  %v15321_v45 = vld [vmem:[%s20150_s3 + $0x134] ss:$8 sps:$4 sm:$0xff]  }
 0x200   : > { %3297 = vmatpush1.bf16.msra.mxu1 %v15310_v24  ;;  %2728 = vmatprep.mubr.bf16.mxu1 %v20351_v28  ;;  %v15319_v28 = vld [vmem:[%s20150_s3 + $0x130] ss:$8 sps:$4 sm:$0xff]   ;;  %v15340_v24 = vld [vmem:[%s20150_s3 + $0x1a0] ss:$8 sps:$4 sm:$0xff]  }
 0x201   : > { %3298 = vmatprep.subr.bf16.mxu1 %v15315_v16  ;;  %v15348_v16 = vld [vmem:[%s20150_s3 + $0x1c4] ss:$8 sps:$4 sm:$0xff]  }
 0x204   : > { %3299 = vmatpush1.bf16.msra.mxu1 %v15313_v7  ;;  %v15346_v7 = vld [vmem:[%s20150_s3 + $0x1c0] ss:$8 sps:$4 sm:$0xff]  }
 0x205   : > { %3300 = vmatprep.subr.bf16.mxu1 %v15318_v40  ;;  %v15354_v40 = vld [vmem:[%s20150_s3 + $0x1e4] ss:$8 sps:$4 sm:$0xff]  }
 0x207   : > { %2729 = vmatmul.mubr.bf16.gmra.mrb[36].mxu1 %v20352_v39  ;;  %v15327_v39 = vld [vmem:[%s20150_s3 + $0x154] ss:$8 sps:$4 sm:$0xff]  }
 0x208   : > { %2738 = vmatprep.mubr.bf16.mxu1 %v20353_v11  ;;  %3301 = vmatpush1.bf16.msra.mxu1 %v15316_v34  ;;  %v15325_v11 = vld [vmem:[%s20150_s3 + $0x150] ss:$8 sps:$4 sm:$0xff]   ;;  %v15352_v34 = vld [vmem:[%s20150_s3 + $0x1e0] ss:$8 sps:$4 sm:$0xff]  }
 0x209   : > { %3302 = vmatprep.subr.bf16.mxu1 %v15321_v45  ;;  %v15360_v45 = vld [vmem:[%s20150_s3 + $0x404] ss:$8 sps:$4 sm:$0xff]  }
 0x20c   : > { %3303 = vmatpush1.bf16.msra.mxu1 %v15319_v28  ;;  %v16033_v28 = vld [vmem:[#allocation2 + $0x48] sm:$0xff] }
 0x20d   : > { %3304 = vmatprep.subr.bf16.mxu1 %v15324_v17  ;;  %v16034_v17 = vld [vmem:[#allocation2 + $0x50] sm:$0xff] }
 0x20f   : > { %2739 = vmatmul.mubr.bf16.gmra.mrb[40].mxu1 %v20354_v32  ;;  %v15333_v32 = vld [vmem:[%s20150_s3 + $0x174] ss:$8 sps:$4 sm:$0xff]  }
 0x210   : > { %2748 = vmatprep.mubr.bf16.mxu1 %v20355_v29  ;;  %3305 = vmatpush1.bf16.msra.mxu1 %v15322_v19  ;;  %v15331_v29 = vld [vmem:[%s20150_s3 + $0x170] ss:$8 sps:$4 sm:$0xff]   ;;  %v17530_v19 = vcombine.high %v16033_v28, %v16034_v17 }
 0x211   : > { %3306 = vmatprep.subr.bf16.mxu1 %v15327_v39  ;;  %v15367_v39 = vld [vmem:[%s20150_s3 + $0x430] ss:$8 sps:$4 sm:$0xff]  }
 0x214   : > { %3307 = vmatpush1.bf16.msra.mxu1 %v15325_v11  ;;  %v15372_v11 = vld [vmem:[%s20150_s3 + $0x444] ss:$8 sps:$4 sm:$0xff]  }
 0x215   : > { %3308 = vmatprep.subr.bf16.mxu1 %v15330_v60  ;;  %v15370_v60 = vld [vmem:[%s20150_s3 + $0x440] ss:$8 sps:$4 sm:$0xff]  }
 0x217   : > { %2749 = vmatmul.mubr.bf16.gmra.mrb[44].mxu1 %v20356_v58  ;;  %v15339_v58 = vld [vmem:[%s20150_s3 + $0x194] ss:$8 sps:$4 sm:$0xff]  }
 0x218   : > { %2758 = vmatprep.mubr.bf16.mxu1 %v20357_v33  ;;  %3309 = vmatpush1.bf16.msra.mxu1 %v15328_v48  ;;  %v15337_v33 = vld [vmem:[%s20150_s3 + $0x190] ss:$8 sps:$4 sm:$0xff]   ;;  %v17543_v48 = vcombine.low %v16033_v28, %v16034_v17 }
 0x219   : > { %3310 = vmatprep.subr.bf16.mxu1 %v15333_v32  ;;  %v15375_v32 = vld [vmem:[%s20150_s3 + $0x454] ss:$8 sps:$4 sm:$0xff]  }
 0x21c   : > { %3311 = vmatpush1.bf16.msra.mxu1 %v15331_v29  ;;  %v16035_v29 = vld [vmem:[#allocation2 + $0x68] sm:$0xff] }
 0x21d   : > { %3312 = vmatprep.subr.bf16.mxu1 %v15336_v42  ;;  %v16036_v42 = vld [vmem:[#allocation2 + $0x70] sm:$0xff] }
 0x21f   : > { %2759 = vmatmul.mubr.bf16.gmra.mrb[48].mxu1 %v20358_v15  ;;  %v15343_v15 = vld [vmem:[%s20150_s3 + $0x1b0] ss:$8 sps:$4 sm:$0xff]  }
 0x220   : > { %2768 = vmatprep.mubr.bf16.mxu1 %v16837_v2  ;;  %3313 = vmatpush1.bf16.msra.mxu1 %v15334_v43  ;;  %v15345_v2 = vld [vmem:[%s20150_s3 + $0x1b4] ss:$8 sps:$4 sm:$0xff]   ;;  %v17548_v43 = vcombine.high %v16035_v29, %v16036_v42 }
 0x221   : > { %3314 = vmatprep.subr.bf16.mxu1 %v15339_v58  ;;  %v15373_v58 = vld [vmem:[%s20150_s3 + $0x450] ss:$8 sps:$4 sm:$0xff]  }
 0x224   : > { %3315 = vmatpush1.bf16.msra.mxu1 %v15337_v33  ;;  %v15378_v33 = vld [vmem:[%s20150_s3 + $0x464] ss:$8 sps:$4 sm:$0xff]  }
 0x225   : > { %3316 = vmatprep.subr.bf16.mxu1 %v15342_v56  ;;  %v15376_v56 = vld [vmem:[%s20150_s3 + $0x460] ss:$8 sps:$4 sm:$0xff]  }
 0x227   : > { %2769 = vmatmul.mubr.bf16.gmra.mrb[52].mxu1 %v16839_v59  ;;  %v15351_v59 = vld [vmem:[%s20150_s3 + $0x1d4] ss:$8 sps:$4 sm:$0xff]  }
 0x228   : > { %2778 = vmatprep.mubr.bf16.mxu1 %v16895_v20  ;;  %3317 = vmatpush1.bf16.msra.mxu1 %v15340_v24  ;;  %v15349_v20 = vld [vmem:[%s20150_s3 + $0x1d0] ss:$8 sps:$4 sm:$0xff]   ;;  %v17561_v24 = vcombine.low %v16035_v29, %v16036_v42  ;;  %v16043_v29 = vld [vmem:[#allocation2 + $0x168] sm:$0xff] }
 0x229   : > { %3318 = vmatprep.subr.bf16.mxu1 %v15345_v2  ;;  %v15381_v2 = vld [vmem:[%s20150_s3 + $0x474] ss:$8 sps:$4 sm:$0xff]  }
 0x22a   : > { %v16044_v42 = vld [vmem:[#allocation2 + $0x170] sm:$0xff] }
 0x22c   : > { %3319 = vmatpush1.bf16.msra.mxu1 %v15343_v15  ;;  %v16037_v15 = vld [vmem:[#allocation2 + $0x88] sm:$0xff] }
 0x22d   : > { %3320 = vmatprep.subr.bf16.mxu1 %v15348_v16  ;;  %v16038_v16 = vld [vmem:[#allocation2 + $0x90] sm:$0xff] }
 0x22f   : > { %2779 = vmatmul.mubr.bf16.gmra.mrb[56].mxu1 %v16897_v63  ;;  %v15355_v63 = vld [vmem:[%s20150_s3 + $0x1f0] ss:$8 sps:$4 sm:$0xff]  }
 0x230   : > { %2788 = vmatprep.mubr.bf16.mxu1 %v16846_v44  ;;  %3321 = vmatpush1.bf16.msra.mxu1 %v15346_v7  ;;  %v15357_v44 = vld [vmem:[%s20150_s3 + $0x1f4] ss:$8 sps:$4 sm:$0xff]   ;;  %v17566_v7 = vcombine.high %v16037_v15, %v16038_v16 }
 0x231   : > { %3322 = vmatprep.subr.bf16.mxu1 %v15351_v59  ;;  %v15379_v59 = vld [vmem:[%s20150_s3 + $0x470] ss:$8 sps:$4 sm:$0xff]  }
 0x234   : > { %3323 = vmatpush1.bf16.msra.mxu1 %v15349_v20  ;;  %v15384_v20 = vld [vmem:[%s20150_s3 + $0x484] ss:$8 sps:$4 sm:$0xff]  }
 0x235   : > { %3324 = vmatprep.subr.bf16.mxu1 %v15354_v40  ;;  %v15382_v40 = vld [vmem:[%s20150_s3 + $0x480] ss:$8 sps:$4 sm:$0xff]  }
 0x237   : > { %2789 = vmatmul.mubr.bf16.gmra.mrb[60].mxu1 %v16850_v49  ;;  %v1177_v49 = vld [vmem:[#allocation2 + $0x220] sm:$0x88] }
 0x238   : > { %2798 = vmatprep.mubr.bf16.mxu1 %v20359_v6  ;;  %3325 = vmatpush1.bf16.msra.mxu1 %v15352_v34  ;;  %v17579_v34 = vcombine.low %v16037_v15, %v16038_v16  ;;  %v15409_v15 = vld [vmem:[%s20150_s3 + $0x710] ss:$8 sps:$4 sm:$0xff]   ;;  %v15412_v16 = vld [vmem:[%s20150_s3 + $0x720] ss:$8 sps:$4 sm:$0xff]  }
 0x239   : > { %3326 = vmatprep.subr.bf16.mxu1 %v15357_v44  ;;  %v15387_v44 = vld [vmem:[%s20150_s3 + $0x494] ss:$8 sps:$4 sm:$0xff]  }
 0x23c   : > { %3327 = vmatpush1.bf16.msra.mxu1 %v15355_v63  ;;  %v15385_v63 = vld [vmem:[%s20150_s3 + $0x490] ss:$8 sps:$4 sm:$0xff]  }
 0x23d   : > { %3756 = vmatprep.subr.bf16.mxu1 %v15360_v45  ;;  %v15390_v45 = vld [vmem:[%s20150_s3 + $0x4a4] ss:$8 sps:$4 sm:$0xff]  }
 0x23f   : > { %2799 = vmatmul.mubr.bf16.gmra.mrb[64].mxu1 %v17045_v10  ;;  %v1557_v10 = vshrl.u32 %v1177_v49, 16  ;;  %v15388_v49 = vld [vmem:[%s20150_s3 + $0x4a0] ss:$8 sps:$4 sm:$0xff]  }
 0x240   : > { %2808 = vmatprep.mubr.bf16.mxu1 %v16989_v27 }
 0x241   : > { %v12617_v6 = vrot.slane %v1557_v10, 11  ;;  %v15393_v10 = vld [vmem:[%s20150_s3 + $0x4b4] ss:$8 sps:$4 sm:$0xff]  }
 0x243   : > { %v1568_v27 = vsel %vm16431_vm9, %v12617_v6, %v17205_v41  ;;  %v15391_v6 = vld [vmem:[%s20150_s3 + $0x4b0] ss:$8 sps:$4 sm:$0xff]  }
 0x247   : > { %2809 = vmatmul.mubr.bf16.gmra.mrb[68].mxu1 %v17075_v9 }
 0x248   : > { %2818 = vmatprep.mubr.bf16.mxu1 %v17021_v47  ;;  %v12781_v47 = vcombine.high %v1568_v27, %v17217_v18 }
 0x24f   : > { %2819 = vmatmul.mubr.bf16.gmra.mrb[72].mxu1 %v17027_v22  ;;  %v12780_v22 = vcombine.low %v1568_v27, %v17217_v18  ;;  %v15369_v18 = vld [vmem:[%s20150_s3 + $0x434] ss:$8 sps:$4 sm:$0xff]   ;;  %v15396_v27 = vld [vmem:[%s20150_s3 + $0x4c4] ss:$8 sps:$4 sm:$0xff]  }
 0x250   : > { %2828 = vmatprep.mubr.bf16.mxu1 %v17039_v25  ;;  %v17499_v25 = vcombine.high %v17197_v26, %v17197_v26 }
 0x257   : > { %2829 = vmatmul.mubr.bf16.gmra.mrb[76].mxu1 %v17041_v35  ;;  %v17504_v35 = vcombine.low %v17197_v26, %v17197_v26  ;;  %v15364_v26 = vld [vmem:[%s20150_s3 + $0x420] ss:$8 sps:$4 sm:$0xff]  }
 0x258   : > { %2838 = vmatprep.mubr.bf16.mxu1 %v17061_v52  ;;  %v15358_v52 = vld [vmem:[%s20150_s3 + $0x400] ss:$8 sps:$4 sm:$0xff]  }
 0x25f   : > { %2839 = vmatmul.mubr.bf16.gmra.mrb[80].mxu1 %v17063_v61  ;;  %v15363_v61 = vld [vmem:[%s20150_s3 + $0x414] ss:$8 sps:$4 sm:$0xff]  }
 0x260   : > { %2848 = vmatprep.mubr.bf16.mxu1 %v17067_v4  ;;  %v16031_v4 = vld [vmem:[#allocation2 + $0x28] sm:$0xff] }
 0x267   : > { %2849 = vmatmul.mubr.bf16.gmra.mrb[84].mxu1 %v17069_v0  ;;  %v16032_v0 = vld [vmem:[#allocation2 + $0x30] sm:$0xff] }
 0x268   : > { %2858 = vmatprep.mubr.bf16.mxu1 %v17080_v55  ;;  %v17512_v9 = vcombine.high %v16031_v4, %v16032_v0  ;;  %v15361_v55 = vld [vmem:[%s20150_s3 + $0x410] ss:$8 sps:$4 sm:$0xff]   ;;  %v17525_v41 = vcombine.low %v16031_v4, %v16032_v0  ;;  %v15400_v4 = vld [vmem:[%s20150_s3 + $0x4e0] ss:$8 sps:$4 sm:$0xff]   ;;  %v15405_v0 = vld [vmem:[%s20150_s3 + $0x4f4] ss:$8 sps:$4 sm:$0xff]  }
 0x26f   : > { %2859 = vmatmul.mubr.bf16.gmra.mrb[88].mxu1 %v17082_v50  ;;  %v15366_v50 = vld [vmem:[%s20150_s3 + $0x424] ss:$8 sps:$4 sm:$0xff]  }
 0x270   : > { %2868 = vmatprep.mubr.bf16.mxu1 %v12781_v47  ;;  %v15394_v47 = vld [vmem:[%s20150_s3 + $0x4c0] ss:$8 sps:$4 sm:$0xff]  }
 0x277   : > { %2869 = vmatmul.mubr.bf16.gmra.mrb[92].mxu1 %v12780_v22  ;;  %v15399_v22 = vld [vmem:[%s20150_s3 + $0x4d4] ss:$8 sps:$4 sm:$0xff]  }
 0x278   : > { %3328 = vmatprep.mubr.bf16.mxu1 %v17499_v25 }
 0x27f   : > { %3329 = vmatmul.mubr.bf16.vlgmr.msra.gmra.mrb[32].mxu1 %v17504_v35 }
 0x280   : > { %3757 = vmatpush1.bf16.msra.mxu1 %v15358_v52  ;;  %3338 = vmatprep.mubr.bf16.mxu1 %v17512_v9  ;;  %v15397_v52 = vld [vmem:[%s20150_s3 + $0x4d0] ss:$8 sps:$4 sm:$0xff]  }
 0x281   : > { %3758 = vmatprep.subr.bf16.mxu1 %v15363_v61  ;;  %v15402_v61 = vld [vmem:[%s20150_s3 + $0x4e4] ss:$8 sps:$4 sm:$0xff]  }
 0x284   : > { %3759 = vmatpush1.bf16.msra.mxu1 %v15361_v55  ;;  %v15403_v55 = vld [vmem:[%s20150_s3 + $0x4f0] ss:$8 sps:$4 sm:$0xff]  }
 0x285   : > { %3760 = vmatprep.subr.bf16.mxu1 %v15366_v50  ;;  %v15408_v50 = vld [vmem:[%s20150_s3 + $0x704] ss:$8 sps:$4 sm:$0xff]  }
 0x287   : > { %3339 = vmatmul.mubr.bf16.gmra.mrb[36].mxu1 %v17525_v41 }
 0x288   : > { %3348 = vmatprep.mubr.bf16.mxu1 %v17530_v19  ;;  %3761 = vmatpush1.bf16.msra.mxu1 %v15364_v26  ;;  %v16039_v26 = vld [vmem:[#allocation2 + $0x128] sm:$0xff] }
 0x289   : > { %3762 = vmatprep.subr.bf16.mxu1 %v15369_v18  ;;  %v16040_v18 = vld [vmem:[#allocation2 + $0x130] sm:$0xff] }
 0x28a   : > { %v17634_v28 = vcombine.high %v16039_v26, %v16040_v18  ;;  %v17638_v17 = vcombine.low %v16039_v26, %v16040_v18  ;;  %v15442_v26 = vld [vmem:[%s20150_s3 + $0x7c0] ss:$8 sps:$4 sm:$0xff]   ;;  %v15447_v18 = vld [vmem:[%s20150_s3 + $0x7d4] ss:$8 sps:$4 sm:$0xff]  }
 0x28c   : > { %3763 = vmatpush1.bf16.msra.mxu1 %v15367_v39  ;;  %v16041_v39 = vld [vmem:[#allocation2 + $0x148] sm:$0xff] }
 0x28d   : > { %3764 = vmatprep.subr.bf16.mxu1 %v15372_v11  ;;  %v16042_v11 = vld [vmem:[#allocation2 + $0x150] sm:$0xff] }
 0x28f   : > { %3349 = vmatmul.mubr.bf16.gmra.mrb[40].mxu1 %v17543_v48 }
 0x290   : > { %3358 = vmatprep.mubr.bf16.mxu1 %v17548_v43  ;;  %3765 = vmatpush1.bf16.msra.mxu1 %v15370_v60  ;;  %v17640_v60 = vcombine.high %v16041_v39, %v16042_v11 }
 0x291   : > { %3766 = vmatprep.subr.bf16.mxu1 %v15375_v32  ;;  %v17644_v32 = vcombine.low %v16041_v39, %v16042_v11  ;;  %v15445_v39 = vld [vmem:[%s20150_s3 + $0x7d0] ss:$8 sps:$4 sm:$0xff]   ;;  %v15450_v11 = vld [vmem:[%s20150_s3 + $0x7e4] ss:$8 sps:$4 sm:$0xff]  }
 0x294   : > { %3767 = vmatpush1.bf16.msra.mxu1 %v15373_v58  ;;  %v17646_v58 = vcombine.high %v16043_v29, %v16044_v42 }
 0x295   : > { %3768 = vmatprep.subr.bf16.mxu1 %v15378_v33  ;;  %v17650_v33 = vcombine.low %v16043_v29, %v16044_v42  ;;  %v15448_v29 = vld [vmem:[%s20150_s3 + $0x7e0] ss:$8 sps:$4 sm:$0xff]   ;;  %v15453_v42 = vld [vmem:[%s20150_s3 + $0x7f4] ss:$8 sps:$4 sm:$0xff]  }
 0x297   : > { %3359 = vmatmul.mubr.bf16.gmra.mrb[44].mxu1 %v17561_v24 }
 0x298   : > { %3368 = vmatprep.mubr.bf16.mxu1 %v17566_v7  ;;  %3769 = vmatpush1.bf16.msra.mxu1 %v15376_v56  ;;  %v15406_v56 = vld [vmem:[%s20150_s3 + $0x700] ss:$8 sps:$4 sm:$0xff]  }
 0x299   : > { %3770 = vmatprep.subr.bf16.mxu1 %v15381_v2  ;;  %v15411_v2 = vld [vmem:[%s20150_s3 + $0x714] ss:$8 sps:$4 sm:$0xff]  }
 0x29c   : > { %3771 = vmatpush1.bf16.msra.mxu1 %v15379_v59  ;;  %v15415_v59 = vld [vmem:[%s20150_s3 + $0x730] ss:$8 sps:$4 sm:$0xff]  }
 0x29d   : > { %3772 = vmatprep.subr.bf16.mxu1 %v15384_v20  ;;  %v15420_v20 = vld [vmem:[%s20150_s3 + $0x744] ss:$8 sps:$4 sm:$0xff]  }
 0x29f   : > { %3369 = vmatmul.mubr.bf16.gmra.mrb[48].mxu1 %v17579_v34 }
 0x2a0   : > { %3378 = vmatprep.mubr.bf16.mxu1 %v17089_v8  ;;  %3773 = vmatpush1.bf16.msra.mxu1 %v15382_v40  ;;  %v15418_v40 = vld [vmem:[%s20150_s3 + $0x740] ss:$8 sps:$4 sm:$0xff]  }
 0x2a1   : > { %3774 = vmatprep.subr.bf16.mxu1 %v15387_v44  ;;  %v15423_v44 = vld [vmem:[%s20150_s3 + $0x754] ss:$8 sps:$4 sm:$0xff]  }
 0x2a4   : > { %3775 = vmatpush1.bf16.msra.mxu1 %v15385_v63  ;;  %v15421_v63 = vld [vmem:[%s20150_s3 + $0x750] ss:$8 sps:$4 sm:$0xff]  }
 0x2a5   : > { %3776 = vmatprep.subr.bf16.mxu1 %v15390_v45  ;;  %v15426_v45 = vld [vmem:[%s20150_s3 + $0x764] ss:$8 sps:$4 sm:$0xff]  }
 0x2a7   : > { %3379 = vmatmul.mubr.bf16.gmra.mrb[52].mxu1 %v17095_v38 }
 0x2a8   : > { %3388 = vmatprep.mubr.bf16.mxu1 %v17101_v3  ;;  %3777 = vmatpush1.bf16.msra.mxu1 %v15388_v49  ;;  %v15424_v49 = vld [vmem:[%s20150_s3 + $0x760] ss:$8 sps:$4 sm:$0xff]  }
 0x2a9   : > { %3778 = vmatprep.subr.bf16.mxu1 %v15393_v10  ;;  %v15429_v10 = vld [vmem:[%s20150_s3 + $0x774] ss:$8 sps:$4 sm:$0xff]  }
 0x2ac   : > { %3779 = vmatpush1.bf16.msra.mxu1 %v15391_v6  ;;  %v15427_v6 = vld [vmem:[%s20150_s3 + $0x770] ss:$8 sps:$4 sm:$0xff]  }
 0x2ad   : > { %3780 = vmatprep.subr.bf16.mxu1 %v15396_v27  ;;  %v15432_v27 = vld [vmem:[%s20150_s3 + $0x784] ss:$8 sps:$4 sm:$0xff]  }
 0x2af   : > { %3389 = vmatmul.mubr.bf16.gmra.mrb[56].mxu1 %v17107_v1 }
 0x2b0   : > { %3398 = vmatprep.mubr.bf16.mxu1 %v17113_v53  ;;  %3781 = vmatpush1.bf16.msra.mxu1 %v15394_v47  ;;  %v15430_v47 = vld [vmem:[%s20150_s3 + $0x780] ss:$8 sps:$4 sm:$0xff]  }
 0x2b1   : > { %3782 = vmatprep.subr.bf16.mxu1 %v15399_v22  ;;  %v15435_v22 = vld [vmem:[%s20150_s3 + $0x794] ss:$8 sps:$4 sm:$0xff]  }
 0x2b4   : > { %3783 = vmatpush1.bf16.msra.mxu1 %v15397_v52  ;;  %v15433_v52 = vld [vmem:[%s20150_s3 + $0x790] ss:$8 sps:$4 sm:$0xff]  }
 0x2b5   : > { %3784 = vmatprep.subr.bf16.mxu1 %v15402_v61  ;;  %v15438_v61 = vld [vmem:[%s20150_s3 + $0x7a4] ss:$8 sps:$4 sm:$0xff]  }
 0x2b7   : > { %3399 = vmatmul.mubr.bf16.gmra.mrb[60].mxu1 %v17119_v14 }
 0x2b8   : > { %3408 = vmatprep.mubr.bf16.mxu1 %v17125_v57  ;;  %3785 = vmatpush1.bf16.msra.mxu1 %v15400_v4  ;;  %v15436_v4 = vld [vmem:[%s20150_s3 + $0x7a0] ss:$8 sps:$4 sm:$0xff]  }
 0x2b9   : > { %3786 = vmatprep.subr.bf16.mxu1 %v15405_v0  ;;  %v15441_v0 = vld [vmem:[%s20150_s3 + $0x7b4] ss:$8 sps:$4 sm:$0xff]  }
 0x2bc   : > { %3787 = vmatpush1.bf16.msra.mxu1 %v15403_v55  ;;  %v15439_v55 = vld [vmem:[%s20150_s3 + $0x7b0] ss:$8 sps:$4 sm:$0xff]  }
 0x2bd   : > { %4216 = vmatprep.subr.bf16.mxu1 %v15408_v50  ;;  %v15444_v50 = vld [vmem:[%s20150_s3 + $0x7c4] ss:$8 sps:$4 sm:$0xff]  }
 0x2bf   : > { %3409 = vmatmul.mubr.bf16.gmra.mrb[64].mxu1 %v17131_v21 }
 0x2c0   : > { %3418 = vmatprep.mubr.bf16.mxu1 %v17634_v28 }
 0x2c7   : > { %3419 = vmatmul.mubr.bf16.gmra.mrb[68].mxu1 %v17638_v17 }
 0x2c8   : > { %3428 = vmatprep.mubr.bf16.mxu1 %v17640_v60 }
 0x2cf   : > { %3429 = vmatmul.mubr.bf16.gmra.mrb[72].mxu1 %v17644_v32 }
 0x2d0   : > { %3438 = vmatprep.mubr.bf16.mxu1 %v17646_v58 }
 0x2d7   : > { %3439 = vmatmul.mubr.bf16.gmra.mrb[76].mxu1 %v17650_v33 }
 0x2d8   : > { %3448 = vmatprep.mubr.bf16.mxu1 %v17137_v12 }
 0x2df   : > { %3449 = vmatmul.mubr.bf16.gmra.mrb[80].mxu1 %v17143_v46 }
 0x2e0   : > { %3458 = vmatprep.mubr.bf16.mxu1 %v17149_v62 }
 0x2e7   : > { %3459 = vmatmul.mubr.bf16.gmra.mrb[84].mxu1 %v17155_v30 }
 0x2e8   : > { %3468 = vmatprep.mubr.bf16.mxu1 %v17161_v5 }
 0x2ef   : > { %3469 = vmatmul.mubr.bf16.gmra.mrb[88].mxu1 %v17167_v54 }
 0x2f0   : > { %3478 = vmatprep.mubr.bf16.mxu1 %v17173_v51 }
 0x2f7   : > { %3479 = vmatmul.mubr.bf16.gmra.mrb[92].mxu1 %v17179_v31 }
 0x2f8   : > { %3788 = vmatprep.mubr.bf16.mxu1 %v17512_v9  ;;  %v15414_v9 = vld [vmem:[%s20150_s3 + $0x724] ss:$8 sps:$4 sm:$0xff]  }
 0x2ff   : > { %3789 = vmatmul.mubr.bf16.vlgmr.msra.gmra.mrb[32].mxu1 %v17525_v41  ;;  %v15417_v41 = vld [vmem:[%s20150_s3 + $0x734] ss:$8 sps:$4 sm:$0xff]  }
 0x300   : > { %4217 = vmatpush1.bf16.msra.mxu1 %v15406_v56  ;;  %3798 = vmatprep.mubr.bf16.mxu1 %v17530_v19  ;;  %v15451_v56 = vld [vmem:[%s20150_s3 + $0x7f0] ss:$8 sps:$4 sm:$0xff]  }
 0x301   : > { %4218 = vmatprep.subr.bf16.mxu1 %v15411_v2  ;;  %v15456_v2 = vld [vmem:[%s20150_s3 + $0x204] ss:$8 sps:$4 sm:$0xff]  }
 0x304   : > { %4219 = vmatpush1.bf16.msra.mxu1 %v15409_v15  ;;  %v342_v15 = vld [vmem:[#allocation2 + $0x18] sm:$0x11] }
 0x305   : > { %4220 = vmatprep.subr.bf16.mxu1 %v15414_v9  ;;  %v343_v9 = vsel %vm16363_vm7, 0, %v342_v15 }
 0x306   : > { %344 = vst [vmem:[#allocation2 + $0x18] sm:$0x11] %v343_v9 }
 0x307   : > { %3799 = vmatmul.mubr.bf16.gmra.mrb[36].mxu1 %v17543_v48 }
 0x308   : > { %3808 = vmatprep.mubr.bf16.mxu1 %v17548_v43  ;;  %4221 = vmatpush1.bf16.msra.mxu1 %v15412_v16  ;;  %v15454_v16 = vld [vmem:[%s20150_s3 + $0x200] ss:$8 sps:$4 sm:$0xff]  }
 0x309   : > { %4222 = vmatprep.subr.bf16.mxu1 %v15417_v41  ;;  %v15459_v41 = vld [vmem:[%s20150_s3 + $0x214] ss:$8 sps:$4 sm:$0xff]  }
 0x30c   : > { %4223 = vmatpush1.bf16.msra.mxu1 %v15415_v59  ;;  %v15462_v59 = vld [vmem:[%s20150_s3 + $0x224] ss:$8 sps:$4 sm:$0xff]  }
 0x30d   : > { %4224 = vmatprep.subr.bf16.mxu1 %v15420_v20  ;;  %v15460_v20 = vld [vmem:[%s20150_s3 + $0x220] ss:$8 sps:$4 sm:$0xff]  }
 0x30f   : > { %3809 = vmatmul.mubr.bf16.gmra.mrb[40].mxu1 %v17561_v24 }
 0x310   : > { %3818 = vmatprep.mubr.bf16.mxu1 %v17566_v7  ;;  %4225 = vmatpush1.bf16.msra.mxu1 %v15418_v40  ;;  %v15468_v40 = vld [vmem:[%s20150_s3 + $0x244] ss:$8 sps:$4 sm:$0xff]  }
 0x311   : > { %4226 = vmatprep.subr.bf16.mxu1 %v15423_v44  ;;  %v15466_v44 = vld [vmem:[%s20150_s3 + $0x240] ss:$8 sps:$4 sm:$0xff]  }
 0x314   : > { %4227 = vmatpush1.bf16.msra.mxu1 %v15421_v63  ;;  %v15474_v63 = vld [vmem:[%s20150_s3 + $0x264] ss:$8 sps:$4 sm:$0xff]  }
 0x315   : > { %4228 = vmatprep.subr.bf16.mxu1 %v15426_v45  ;;  %v15472_v45 = vld [vmem:[%s20150_s3 + $0x260] ss:$8 sps:$4 sm:$0xff]  }
 0x317   : > { %3819 = vmatmul.mubr.bf16.gmra.mrb[44].mxu1 %v17579_v34 }
 0x318   : > { %3828 = vmatprep.mubr.bf16.mxu1 %v17089_v8  ;;  %4229 = vmatpush1.bf16.msra.mxu1 %v15424_v49  ;;  %v15480_v49 = vld [vmem:[%s20150_s3 + $0x284] ss:$8 sps:$4 sm:$0xff]  }
 0x319   : > { %4230 = vmatprep.subr.bf16.mxu1 %v15429_v10  ;;  %v15478_v10 = vld [vmem:[%s20150_s3 + $0x280] ss:$8 sps:$4 sm:$0xff]  }
 0x31c   : > { %4231 = vmatpush1.bf16.msra.mxu1 %v15427_v6  ;;  %v15486_v6 = vld [vmem:[%s20150_s3 + $0x2a4] ss:$8 sps:$4 sm:$0xff]  }
 0x31d   : > { %4232 = vmatprep.subr.bf16.mxu1 %v15432_v27  ;;  %v15484_v27 = vld [vmem:[%s20150_s3 + $0x2a0] ss:$8 sps:$4 sm:$0xff]  }
 0x31f   : > { %3829 = vmatmul.mubr.bf16.gmra.mrb[48].mxu1 %v17095_v38 }
 0x320   : > { %3838 = vmatprep.mubr.bf16.mxu1 %v17101_v3  ;;  %4233 = vmatpush1.bf16.msra.mxu1 %v15430_v47  ;;  %v15492_v47 = vld [vmem:[%s20150_s3 + $0x2c4] ss:$8 sps:$4 sm:$0xff]  }
 0x321   : > { %4234 = vmatprep.subr.bf16.mxu1 %v15435_v22  ;;  %v15490_v22 = vld [vmem:[%s20150_s3 + $0x2c0] ss:$8 sps:$4 sm:$0xff]  }
 0x324   : > { %4235 = vmatpush1.bf16.msra.mxu1 %v15433_v52  ;;  %v15498_v52 = vld [vmem:[%s20150_s3 + $0x2e4] ss:$8 sps:$4 sm:$0xff]  }
 0x325   : > { %4236 = vmatprep.subr.bf16.mxu1 %v15438_v61  ;;  %v15496_v61 = vld [vmem:[%s20150_s3 + $0x2e0] ss:$8 sps:$4 sm:$0xff]  }
 0x327   : > { %3839 = vmatmul.mubr.bf16.gmra.mrb[52].mxu1 %v17107_v1 }
 0x328   : > { %3848 = vmatprep.mubr.bf16.mxu1 %v17113_v53  ;;  %4237 = vmatpush1.bf16.msra.mxu1 %v15436_v4  ;;  %v15504_v4 = vld [vmem:[%s20150_s3 + $0x504] ss:$8 sps:$4 sm:$0xff]  }
 0x329   : > { %4238 = vmatprep.subr.bf16.mxu1 %v15441_v0 }
 0x32c   : > { %4239 = vmatpush1.bf16.msra.mxu1 %v15439_v55 }
 0x32d   : > { %4240 = vmatprep.subr.bf16.mxu1 %v15444_v50 }
 0x32f   : > { %3849 = vmatmul.mubr.bf16.gmra.mrb[56].mxu1 %v17119_v14 }
 0x330   : > { %3858 = vmatprep.mubr.bf16.mxu1 %v17125_v57  ;;  %4241 = vmatpush1.bf16.msra.mxu1 %v15442_v26 }
 0x331   : > { %4242 = vmatprep.subr.bf16.mxu1 %v15447_v18  ;;  %v4478_v18 = vld [vmem:[#allocation2 + $0x38] sm:$0x11] }
 0x332   : > { %v4574_v15 = vshll.u32 %v4478_v18, 16 }
 0x334   : > { %4243 = vmatpush1.bf16.msra.mxu1 %v15445_v39 }
 0x335   : > { %4244 = vmatprep.subr.bf16.mxu1 %v15450_v11 }
 0x337   : > { %3859 = vmatmul.mubr.bf16.gmra.mrb[60].mxu1 %v17131_v21 }
 0x338   : > { %3868 = vmatprep.mubr.bf16.mxu1 %v17634_v28  ;;  %4245 = vmatpush1.bf16.msra.mxu1 %v15448_v29 }
 0x339   : > { %4246 = vmatprep.subr.bf16.mxu1 %v15453_v42 }
 0x33c   : > { %4247 = vmatpush1.bf16.msra.mxu1 %v15451_v56 }
 0x33d   : > { %5283 = vmatprep.subr.bf16.mxu1 %v15456_v2 }
 0x33f   : > { %3869 = vmatmul.mubr.bf16.gmra.mrb[64].mxu1 %v17638_v17 }
 0x340   : > { %3878 = vmatprep.mubr.bf16.mxu1 %v17640_v60 }
 0x347   : > { %3879 = vmatmul.mubr.bf16.gmra.mrb[68].mxu1 %v17644_v32 }
 0x348   : > { %3888 = vmatprep.mubr.bf16.mxu1 %v17646_v58 }
 0x34f   : > { %3889 = vmatmul.mubr.bf16.gmra.mrb[72].mxu1 %v17650_v33 }
 0x350   : > { %3898 = vmatprep.mubr.bf16.mxu1 %v17137_v12 }
 0x357   : > { %3899 = vmatmul.mubr.bf16.gmra.mrb[76].mxu1 %v17143_v46 }
 0x358   : > { %3908 = vmatprep.mubr.bf16.mxu1 %v17149_v62 }
 0x35f   : > { %3909 = vmatmul.mubr.bf16.gmra.mrb[80].mxu1 %v17155_v30 }
 0x360   : > { %3918 = vmatprep.mubr.bf16.mxu1 %v17161_v5 }
 0x367   : > { %3919 = vmatmul.mubr.bf16.gmra.mrb[84].mxu1 %v17167_v54 }
 0x368   : > { %3928 = vmatprep.mubr.bf16.mxu1 %v17173_v51 }
 0x36f   : > { %3929 = vmatmul.mubr.bf16.gmra.mrb[88].mxu1 %v17179_v31 }
 0x370   : > { %3938 = vmatprep.mubr.bf16.mxu1 %v17185_v36 }
 0x377   : > { %3939 = vmatmul.mubr.bf16.gmra.mrb[92].mxu1 %v17191_v13 }
 0x378   : > { %4248 = vmatprep.mubr.bf16.mxu1 %v17530_v19  ;;  %v15457_v19 = vld [vmem:[%s20150_s3 + $0x210] ss:$8 sps:$4 sm:$0xff]  }
 0x37f   : > { %4249 = vmatmul.mubr.bf16.vlgmr.msra.gmra.mrb[32].mxu1 %v17543_v48  ;;  %v15465_v48 = vld [vmem:[%s20150_s3 + $0x234] ss:$8 sps:$4 sm:$0xff]  }
 0x380   : > { %5284 = vmatpush1.bf16.msra.mxu1 %v15454_v16  ;;  %4258 = vmatprep.mubr.bf16.mxu1 %v17548_v43  ;;  %v15463_v43 = vld [vmem:[%s20150_s3 + $0x230] ss:$8 sps:$4 sm:$0xff]  }
 0x381   : > { %5285 = vmatprep.subr.bf16.mxu1 %v15459_v41 }
 0x384   : > { %5286 = vmatpush1.bf16.msra.mxu1 %v15457_v19 }
 0x385   : > { %5287 = vmatprep.subr.bf16.mxu1 %v15462_v59 }
 0x387   : > { %4259 = vmatmul.mubr.bf16.gmra.mrb[36].mxu1 %v17561_v24  ;;  %v15471_v24 = vld [vmem:[%s20150_s3 + $0x254] ss:$8 sps:$4 sm:$0xff]  }
 0x388   : > { %4268 = vmatprep.mubr.bf16.mxu1 %v17566_v7  ;;  %5288 = vmatpush1.bf16.msra.mxu1 %v15460_v20  ;;  %v15469_v7 = vld [vmem:[%s20150_s3 + $0x250] ss:$8 sps:$4 sm:$0xff]  }
 0x389   : > { %5289 = vmatprep.subr.bf16.mxu1 %v15465_v48  ;;  %v4576_v48 = vrot.slane %v4574_v15, 5 }
 0x38c   : > { %5290 = vmatpush1.bf16.msra.mxu1 %v15463_v43 }
 0x38d   : > { %5291 = vmatprep.subr.bf16.mxu1 %v15468_v40  ;;  %v4481_v40 = vld [vmem:[#allocation2 + $0x58] sm:$0x11] }
 0x38f   : > { %4269 = vmatmul.mubr.bf16.gmra.mrb[40].mxu1 %v17579_v34  ;;  %v15475_v34 = vld [vmem:[%s20150_s3 + $0x270] ss:$8 sps:$4 sm:$0xff]  }
 0x390   : > { %4278 = vmatprep.mubr.bf16.mxu1 %v17089_v8  ;;  %5292 = vmatpush1.bf16.msra.mxu1 %v15466_v44  ;;  %v15477_v8 = vld [vmem:[%s20150_s3 + $0x274] ss:$8 sps:$4 sm:$0xff]  }
 0x391   : > { %5293 = vmatprep.subr.bf16.mxu1 %v15471_v24 }
 0x394   : > { %5294 = vmatpush1.bf16.msra.mxu1 %v15469_v7  ;;  %v4483_v7 = vld [vmem:[#allocation2 + $0x70] sm:$0xff] }
 0x395   : > { %5295 = vmatprep.subr.bf16.mxu1 %v15474_v63 }
 0x397   : > { %4279 = vmatmul.mubr.bf16.gmra.mrb[44].mxu1 %v17095_v38  ;;  %v15483_v38 = vld [vmem:[%s20150_s3 + $0x294] ss:$8 sps:$4 sm:$0xff]  }
 0x398   : > { %4288 = vmatprep.mubr.bf16.mxu1 %v17101_v3  ;;  %5296 = vmatpush1.bf16.msra.mxu1 %v15472_v45  ;;  %v15481_v3 = vld [vmem:[%s20150_s3 + $0x290] ss:$8 sps:$4 sm:$0xff]  }
 0x399   : > { %5297 = vmatprep.subr.bf16.mxu1 %v15477_v8 }
 0x39c   : > { %5298 = vmatpush1.bf16.msra.mxu1 %v15475_v34  ;;  %v4598_v34 = vshll.u32 %v4481_v40, 16 }
 0x39d   : > { %5299 = vmatprep.subr.bf16.mxu1 %v15480_v49  ;;  %v4482_v49 = vld [vmem:[#allocation2 + $0x68] sm:$0xff] }
 0x39f   : > { %4289 = vmatmul.mubr.bf16.gmra.mrb[48].mxu1 %v17107_v1  ;;  %v15489_v1 = vld [vmem:[%s20150_s3 + $0x2b4] ss:$8 sps:$4 sm:$0xff]  }
 0x3a0   : > { %4298 = vmatprep.mubr.bf16.mxu1 %v17113_v53  ;;  %5300 = vmatpush1.bf16.msra.mxu1 %v15478_v10  ;;  %v15487_v53 = vld [vmem:[%s20150_s3 + $0x2b0] ss:$8 sps:$4 sm:$0xff]   ;;  %v4612_v10 = vshll.u32 %v4483_v7, 16 }
 0x3a1   : > { %5301 = vmatprep.subr.bf16.mxu1 %v15483_v38 }
 0x3a4   : > { %5302 = vmatpush1.bf16.msra.mxu1 %v15481_v3 }
 0x3a5   : > { %5303 = vmatprep.subr.bf16.mxu1 %v15486_v6 }
 0x3a7   : > { %4299 = vmatmul.mubr.bf16.gmra.mrb[52].mxu1 %v17119_v14  ;;  %v15495_v14 = vld [vmem:[%s20150_s3 + $0x2d4] ss:$8 sps:$4 sm:$0xff]  }
 0x3a8   : > { %4308 = vmatprep.mubr.bf16.mxu1 %v17125_v57  ;;  %5304 = vmatpush1.bf16.msra.mxu1 %v15484_v27  ;;  %v15493_v57 = vld [vmem:[%s20150_s3 + $0x2d0] ss:$8 sps:$4 sm:$0xff]   ;;  %v4616_v27 = vshrl.u32 %v4483_v7, 16  ;;  %v15514_v7 = vld [vmem:[%s20150_s3 + $0x540] ss:$8 sps:$4 sm:$0xff]  }
 0x3a9   : > { %5305 = vmatprep.subr.bf16.mxu1 %v15489_v1 }
 0x3ac   : > { %5306 = vmatpush1.bf16.msra.mxu1 %v15487_v53  ;;  %v15507_v53 = vld [vmem:[%s20150_s3 + $0x514] ss:$8 sps:$4 sm:$0xff]  }
 0x3ad   : > { %5307 = vmatprep.subr.bf16.mxu1 %v15492_v47 }
 0x3af   : > { %4309 = vmatmul.mubr.bf16.gmra.mrb[56].mxu1 %v17131_v21  ;;  %v15501_v21 = vld [vmem:[%s20150_s3 + $0x2f4] ss:$8 sps:$4 sm:$0xff]  }
 0x3b0   : > { %4318 = vmatprep.mubr.bf16.mxu1 %v17634_v28  ;;  %5308 = vmatpush1.bf16.msra.mxu1 %v15490_v22  ;;  %v15499_v28 = vld [vmem:[%s20150_s3 + $0x2f0] ss:$8 sps:$4 sm:$0xff]   ;;  %v4603_v22 = vshrl.u32 %v4482_v49, 16 }
 0x3b1   : > { %5309 = vmatprep.subr.bf16.mxu1 %v15495_v14  ;;  %v4606_v14 = vshll.u32 %v4482_v49, 16  ;;  %v15519_v49 = vld [vmem:[%s20150_s3 + $0x554] ss:$8 sps:$4 sm:$0xff]  }
 0x3b4   : > { %5310 = vmatpush1.bf16.msra.mxu1 %v15493_v57 }
 0x3b5   : > { %5311 = vmatprep.subr.bf16.mxu1 %v15498_v52 }
 0x3b7   : > { %4319 = vmatmul.mubr.bf16.gmra.mrb[60].mxu1 %v17638_v17  ;;  %v16045_v17 = vld [vmem:[#allocation2] sm:$0xff] }
 0x3b8   : > { %4328 = vmatprep.mubr.bf16.mxu1 %v17640_v60  ;;  %5312 = vmatpush1.bf16.msra.mxu1 %v15496_v61  ;;  %v4531_v60 = vshrl.u32 %v16045_v17, 16  ;;  %v4600_v61 = vrot.slane %v4598_v34, 5 }
 0x3b9   : > { %5313 = vmatprep.subr.bf16.mxu1 %v15501_v21  ;;  %v4484_v21 = vld [vmem:[#allocation2 + $0x78] sm:$0x11] }
 0x3bc   : > { %5314 = vmatpush1.bf16.msra.mxu1 %v15499_v28  ;;  %v4614_v28 = vrot.slane %v4612_v10, 5 }
 0x3bd   : > { %5741 = vmatprep.subr.bf16.mxu1 %v15504_v4  ;;  %v4618_v4 = vrot.slane %v4616_v27, 4 }
 0x3bf   : > { %4329 = vmatmul.mubr.bf16.gmra.mrb[64].mxu1 %v17644_v32  ;;  %v4534_v32 = vshll.u32 %v16045_v17, 16  ;;  %v15505_v17 = vld [vmem:[%s20150_s3 + $0x510] ss:$8 sps:$4 sm:$0xff]  }
 0x3c0   : > { %4338 = vmatprep.mubr.bf16.mxu1 %v17646_v58  ;;  %v4533_v58 = vrot.slane %v4531_v60, 4  ;;  %v4486_v60 = vld [vmem:[#allocation2 + $0x90] sm:$0xff] }
 0x3c1   : > { %v4536_v0 = vrot.slane %v4534_v32, 5 }
 0x3c7   : > { %4339 = vmatmul.mubr.bf16.gmra.mrb[68].mxu1 %v17650_v33  ;;  %v4475_v33 = vld [vmem:[#allocation2 + $0x18] sm:$0x11] }
 0x3c8   : > { %4348 = vmatprep.mubr.bf16.mxu1 %v17137_v12  ;;  %v4477_v12 = vld [vmem:[#allocation2 + $0x30] sm:$0xff] }
 0x3c9   : > { %v4564_v55 = vshll.u32 %v4477_v12, 16 }
 0x3cb   : > { %v4566_v39 = vrot.slane %v4564_v55, 5  ;;  %v4636_v55 = vshll.u32 %v4486_v60, 16 }
 0x3cf   : > { %4349 = vmatmul.mubr.bf16.gmra.mrb[72].mxu1 %v17143_v46  ;;  %v4537_v46 = vor.u32 %v4536_v0, %v4533_v58  ;;  %v15510_v58 = vld [vmem:[%s20150_s3 + $0x524] ss:$8 sps:$4 sm:$0xff]  }
 0x3d0   : > { %4358 = vmatprep.mubr.bf16.mxu1 %v17149_v62  ;;  %v4550_v62 = vshll.u32 %v4475_v33, 16  ;;  %v4608_v33 = vrot.slane %v4606_v14, 5 }
 0x3d2   : > { %v4552_v50 = vrot.slane %v4550_v62, 5 }
 0x3d7   : > { %4359 = vmatmul.mubr.bf16.gmra.mrb[76].mxu1 %v17155_v30  ;;  %v4476_v30 = vld [vmem:[#allocation2 + $0x28] sm:$0xff] }
 0x3d8   : > { %4368 = vmatprep.mubr.bf16.mxu1 %v17161_v5  ;;  %v4568_v5 = vshrl.u32 %v4477_v12, 16  ;;  %v4558_v26 = vshll.u32 %v4476_v30, 16  ;;  %v4485_v12 = vld [vmem:[#allocation2 + $0x88] sm:$0xff] }
 0x3da   : > { %v4570_v11 = vrot.slane %v4568_v5, 4  ;;  %v4560_v2 = vrot.slane %v4558_v26, 5  ;;  %v4640_v5 = vshrl.u32 %v4486_v60, 16 }
 0x3dc   : > { %v4571_v9 = vor.u32 %v4570_v11, %v4566_v39  ;;  %v4630_v11 = vshll.u32 %v4485_v12, 16  ;;  %v4642_v15 = vrot.slane %v4640_v5, 4 }
 0x3de   : > { %v4572_v43 = vrot.slane %v4571_v9, 4  ;;  %v4489_v9 = vld [vmem:[#allocation2 + $0xb0] sm:$0xff] }
 0x3df   : > { %4369 = vmatmul.mubr.bf16.gmra.mrb[80].mxu1 %v17167_v54  ;;  %v4555_v54 = vshrl.u32 %v4476_v30, 16  ;;  %v4619_v30 = vor.u32 %v4618_v4, %v4614_v28  ;;  %v4660_v40 = vshll.u32 %v4489_v9, 16 }
 0x3e0   : > { %4378 = vmatprep.mubr.bf16.mxu1 %v17173_v51  ;;  %v4538_v51 = vrot.slane %v4537_v46, 4  ;;  %v4577_v3 = vsel %vm17918_vm12, %v4572_v43, %v4576_v48  ;;  %v4622_v46 = vshll.u32 %v4484_v21, 16  ;;  %v4491_v21 = vld [vmem:[#allocation2 + $0xc8] sm:$0xff] }
 0x3e1   : > { %v4557_v56 = vrot.slane %v4555_v54, 4  ;;  %v15508_v54 = vld [vmem:[%s20150_s3 + $0x520] ss:$8 sps:$4 sm:$0xff]   ;;  %v4662_v27 = vrot.slane %v4660_v40, 5  ;;  %v15531_v40 = vld [vmem:[%s20150_s3 + $0x594] ss:$8 sps:$4 sm:$0xff]  }
 0x3e2   : > { %v4543_v29 = vsel %vm17918_vm12, %v4538_v51, %v4536_v0  ;;  %v4553_v42 = vsel %vm17918_vm12, %v4538_v51, %v4552_v50  ;;  %v4605_v0 = vrot.slane %v4603_v22, 4  ;;  %v4627_v51 = vshrl.u32 %v4485_v12, 16 }
 0x3e3   : > { %v13075_v19 = vcombine.high %v4543_v29, %v4553_v42  ;;  %v13074_v38 = vcombine.low %v4543_v29, %v4553_v42  ;;  %v4620_v29 = vrot.slane %v4619_v30, 4  ;;  %v4624_v42 = vrot.slane %v4622_v46, 5 }
 0x3e4   : > { %v4609_v18 = vor.u32 %v4608_v33, %v4605_v0  ;;  %v4675_v12 = vshrl.u32 %v4491_v21, 16  ;;  %v4678_v46 = vshll.u32 %v4491_v21, 16 }
 0x3e5   : > { %v4625_v48 = vsel %vm17918_vm12, %v4620_v29, %v4624_v42 }
 0x3e6   : > { %v4677_v29 = vrot.slane %v4675_v12, 4  ;;  %v4680_v42 = vrot.slane %v4678_v46, 5  ;;  %v4500_v12 = vld [vmem:[#allocation2 + $0x128] sm:$0xff]  ;;  %v4501_v46 = vld [vmem:[#allocation2 + $0x130] sm:$0xff] }
 0x3e7   : > { %4379 = vmatmul.mubr.bf16.gmra.mrb[84].mxu1 %v17179_v31  ;;  %v20360_v31 = vmov 0 }
 0x3e8   : > { %4388 = vmatprep.mubr.bf16.mxu1 %v17185_v36  ;;  %v20361_v31 = vsel %vm17918_vm12, 4294967295, %v20360_v31  ;;  %v4480_v36 = vld [vmem:[#allocation2 + $0x50] sm:$0xff] }
 0x3e9   : > { %20362 = vst [vmem:[#allocation18_spill] sm:$0xff] %v20361_v31  ;;  %v4588_v16 = vshll.u32 %v4480_v36, 16  ;;  %v4592_v41 = vshrl.u32 %v4480_v36, 16 }
 0x3eb   : > { %v4590_v44 = vrot.slane %v4588_v16, 5  ;;  %v4594_v24 = vrot.slane %v4592_v41, 4  ;;  %v4610_v16 = vrot.slane %v4609_v18, 4  ;;  %v4629_v41 = vrot.slane %v4627_v51, 4  ;;  %v4493_v18 = vld [vmem:[#allocation2 + $0xd8] sm:$0x11] }
 0x3ed   : > { %v4595_v6 = vor.u32 %v4594_v24, %v4590_v44 }
 0x3ef   : > { %4389 = vmatmul.mubr.bf16.gmra.mrb[88].mxu1 %v17191_v13  ;;  %v4479_v13 = vld [vmem:[#allocation2 + $0x48] sm:$0xff]  ;;  %v4596_v52 = vrot.slane %v4595_v6, 4  ;;  %v4490_v6 = vld [vmem:[#allocation2 + $0xb8] sm:$0x11] }
 0x3f0   : > { %4398 = vmatprep.mubr.bf16.mxu1 %v17499_v25  ;;  %v4561_v25 = vor.u32 %v4560_v2, %v4557_v56  ;;  %v4579_v59 = vshrl.u32 %v4479_v13, 16  ;;  %v4582_v20 = vshll.u32 %v4479_v13, 16  ;;  %v4487_v56 = vld [vmem:[#allocation2 + $0x98] sm:$0x11]  ;;  %v4638_v2 = vrot.slane %v4636_v55, 5 }
 0x3f1   : > { %v4601_v62 = vsel %vm17918_vm12, %v4596_v52, %v4600_v61  ;;  %v15511_v13 = vld [vmem:[%s20150_s3 + $0x530] ss:$8 sps:$4 sm:$0xff]   ;;  %v15522_v52 = vld [vmem:[%s20150_s3 + $0x564] ss:$8 sps:$4 sm:$0xff]   ;;  %v4670_v61 = vshll.u32 %v4490_v6, 16 }
 0x3f2   : > { %v4562_v63 = vrot.slane %v4561_v25, 4  ;;  %v4581_v45 = vrot.slane %v4579_v59, 4  ;;  %v4584_v8 = vrot.slane %v4582_v20, 5  ;;  %v15516_v25 = vld [vmem:[%s20150_s3 + $0x544] ss:$8 sps:$4 sm:$0xff]   ;;  %v4646_v59 = vshll.u32 %v4487_v56, 16 }
 0x3f3   : > { %v4488_v20 = vld [vmem:[#allocation2 + $0xa8] sm:$0xff]  ;;  %v4643_v43 = vor.u32 %v4642_v15, %v4638_v2  ;;  %v4672_v5 = vrot.slane %v4670_v61, 5 }
 0x3f4   : > { %v4567_v1 = vsel %vm17918_vm12, %v4562_v63, %v4566_v39  ;;  %v4585_v47 = vor.u32 %v4584_v8, %v4581_v45  ;;  %v15513_v39 = vld [vmem:[%s20150_s3 + $0x534] ss:$8 sps:$4 sm:$0xff]   ;;  %v4615_v63 = vsel %vm17918_vm12, %v4610_v16, %v4614_v28  ;;  %v4651_v8 = vshrl.u32 %v4488_v20, 16  ;;  %v4494_v56 = vld [vmem:[#allocation2 + $0xe8] sm:$0xff] }
 0x3f5   : > { %v17937_v57 = vcombine.high %v4567_v1, %v4577_v3  ;;  %v17951_v50 = vcombine.low %v4567_v1, %v4577_v3  ;;  %v4654_v34 = vshll.u32 %v4488_v20, 16  ;;  %v17980_v10 = vcombine.high %v4615_v63, %v4625_v48  ;;  %v15517_v1 = vld [vmem:[%s20150_s3 + $0x550] ss:$8 sps:$4 sm:$0xff]  }
 0x3f6   : > { %v4586_v32 = vrot.slane %v4585_v47, 4  ;;  %v4648_v3 = vrot.slane %v4646_v59, 5  ;;  %v4653_v22 = vrot.slane %v4651_v8, 4  ;;  %v15526_v59 = vld [vmem:[%s20150_s3 + $0x580] ss:$8 sps:$4 sm:$0xff]  }
 0x3f7   : > { %4399 = vmatmul.mubr.bf16.gmra.mrb[92].mxu1 %v17504_v35  ;;  %v15502_v35 = vld [vmem:[%s20150_s3 + $0x500] ss:$8 sps:$4 sm:$0xff]   ;;  %v4656_v14 = vrot.slane %v4654_v34, 5 }
 0x3f8   : > { %5315 = vmatprep.mubr.bf16.mxu1 %v13075_v19  ;;  %v4591_v26 = vsel %vm17918_vm12, %v4586_v32, %v4590_v44  ;;  %v4632_v19 = vrot.slane %v4630_v11, 5  ;;  %v4664_v44 = vshrl.u32 %v4489_v9, 16  ;;  %v17992_v32 = vcombine.low %v4615_v63, %v4625_v48  ;;  %v4497_v34 = vld [vmem:[#allocation2 + $0x108] sm:$0xff] }
 0x3f9   : > { %v17958_v36 = vcombine.high %v4591_v26, %v4601_v62  ;;  %v17970_v24 = vcombine.low %v4591_v26, %v4601_v62  ;;  %v4657_v33 = vor.u32 %v4656_v14, %v4653_v22  ;;  %v15525_v62 = vld [vmem:[%s20150_s3 + $0x574] ss:$8 sps:$4 sm:$0xff]  }
 0x3fa   : > { %v4633_v45 = vor.u32 %v4632_v19, %v4629_v41  ;;  %v4495_v26 = vld [vmem:[#allocation2 + $0xf0] sm:$0xff]  ;;  %v4694_v41 = vshll.u32 %v4493_v18, 16  ;;  %v4699_v19 = vshrl.u32 %v4494_v56, 16 }
 0x3fb   : > { %v4658_v11 = vrot.slane %v4657_v33, 4  ;;  %v4708_v15 = vshll.u32 %v4495_v26, 16 }
 0x3fc   : > { %v4634_v47 = vrot.slane %v4633_v45, 4  ;;  %v4696_v8 = vrot.slane %v4694_v41, 5 }
 0x3fd   : > { %v4663_v48 = vsel %vm17918_vm12, %v4658_v11, %v4662_v27  ;;  %v4747_v11 = vshrl.u32 %v4500_v12, 16 }
 0x3fe   : > { %v4639_v0 = vsel %vm17918_vm12, %v4634_v47, %v4638_v2  ;;  %v15528_v2 = vld [vmem:[%s20150_s3 + $0x584] ss:$8 sps:$4 sm:$0xff]   ;;  %v4723_v47 = vshrl.u32 %v4497_v34, 16 }
 0x3ff   : > { %5316 = vmatmul.mubr.bf16.vlgmr.msra.gmra.mrb[32].mxu1 %v13074_v38  ;;  %v4644_v38 = vrot.slane %v4643_v43, 4  ;;  %v4681_v43 = vor.u32 %v4680_v42, %v4677_v29  ;;  %v4750_v29 = vshll.u32 %v4500_v12, 16  ;;  %v4756_v42 = vshll.u32 %v4501_v46, 16 }
 0x400   : > { %5742 = vmatpush1.bf16.msra.mxu1 %v15502_v35  ;;  %5325 = vmatprep.mubr.bf16.mxu1 %v17937_v57  ;;  %v4666_v35 = vrot.slane %v4664_v44, 4  ;;  %v4725_v33 = vrot.slane %v4723_v47, 4 }
 0x401   : > { %5743 = vmatprep.subr.bf16.mxu1 %v15507_v53  ;;  %v4492_v53 = vld [vmem:[#allocation2 + $0xd0] sm:$0xff]  ;;  %v4649_v28 = vsel %vm17918_vm12, %v4644_v38, %v4648_v3  ;;  %v4496_v38 = vld [vmem:[#allocation2 + $0xf8] sm:$0x11]  ;;  %v4701_v3 = vrot.slane %v4699_v19, 4 }
 0x402   : > { %v4667_v4 = vor.u32 %v4666_v35, %v4662_v27  ;;  %v4688_v60 = vshrl.u32 %v4492_v53, 16  ;;  %v18002_v30 = vcombine.high %v4639_v0, %v4649_v28  ;;  %v18017_v20 = vcombine.low %v4639_v0, %v4649_v28  ;;  %v15529_v27 = vld [vmem:[%s20150_s3 + $0x590] ss:$8 sps:$4 sm:$0xff]  }
 0x403   : > { %v4682_v35 = vrot.slane %v4681_v43, 4  ;;  %v4718_v14 = vshll.u32 %v4496_v38, 16  ;;  %v4726_v28 = vshll.u32 %v4497_v34, 16  ;;  %v4752_v43 = vrot.slane %v4750_v29, 5  ;;  %v4502_v34 = vld [vmem:[#allocation2 + $0x138] sm:$0x11] }
 0x404   : > { %5744 = vmatpush1.bf16.msra.mxu1 %v15505_v17  ;;  %v4684_v17 = vshll.u32 %v4492_v53, 16  ;;  %v4668_v55 = vrot.slane %v4667_v4, 4  ;;  %v4690_v51 = vrot.slane %v4688_v60, 4  ;;  %v15532_v4 = vld [vmem:[%s20150_s3 + $0x5a0] ss:$8 sps:$4 sm:$0xff]   ;;  %v4504_v38 = vld [vmem:[#allocation2 + $0x150] sm:$0xff] }
 0x405   : > { %5745 = vmatprep.subr.bf16.mxu1 %v15510_v58  ;;  %v15520_v58 = vld [vmem:[%s20150_s3 + $0x560] ss:$8 sps:$4 sm:$0xff]   ;;  %v4728_v18 = vrot.slane %v4726_v28, 5 }
 0x406   : > { %v4673_v9 = vsel %vm17918_vm12, %v4668_v55, %v4672_v5  ;;  %v4720_v55 = vrot.slane %v4718_v14, 5  ;;  %v4780_v14 = vshll.u32 %v4504_v38, 16 }
 0x407   : > { %5326 = vmatmul.mubr.bf16.gmra.mrb[36].mxu1 %v17951_v50  ;;  %v18024_v44 = vcombine.high %v4663_v48, %v4673_v9  ;;  %v4729_v19 = vor.u32 %v4728_v18, %v4725_v33  ;;  %v4507_v18 = vld [vmem:[#allocation2 + $0x170] sm:$0xff] }
 0x408   : > { %5335 = vmatprep.mubr.bf16.mxu1 %v17958_v36  ;;  %5746 = vmatpush1.bf16.msra.mxu1 %v15508_v54  ;;  %v4686_v54 = vrot.slane %v4684_v17, 5  ;;  %v18039_v17 = vcombine.low %v4663_v48, %v4673_v9  ;;  %v4749_v48 = vrot.slane %v4747_v11, 4 }
 0x409   : > { %5747 = vmatprep.subr.bf16.mxu1 %v15513_v39  ;;  %v15523_v39 = vld [vmem:[%s20150_s3 + $0x570] ss:$8 sps:$4 sm:$0xff]  }
 0x40a   : > { %v4691_v16 = vor.u32 %v4690_v51, %v4686_v54  ;;  %v4687_v60 = vsel %vm17918_vm12, %v4682_v35, %v4686_v54  ;;  %v4499_v54 = vld [vmem:[#allocation2 + $0x118] sm:$0x11]  ;;  %v4753_v35 = vor.u32 %v4752_v43, %v4749_v48 }
 0x40b   : > { %v4742_v9 = vshll.u32 %v4499_v54, 16  ;;  %v4506_v54 = vld [vmem:[#allocation2 + $0x168] sm:$0xff] }
 0x40c   : > { %5748 = vmatpush1.bf16.msra.mxu1 %v15511_v13  ;;  %v4712_v13 = vshrl.u32 %v4495_v26, 16  ;;  %v4692_v45 = vrot.slane %v4691_v16, 4 }
 0x40d   : > { %5749 = vmatprep.subr.bf16.mxu1 %v15516_v25  ;;  %v4702_v25 = vshll.u32 %v4494_v56, 16  ;;  %v4760_v56 = vshrl.u32 %v4501_v46, 16 }
 0x40e   : > { %v4714_v63 = vrot.slane %v4712_v13, 4  ;;  %v4697_v22 = vsel %vm17918_vm12, %v4692_v45, %v4696_v8  ;;  %v15543_v45 = vld [vmem:[%s20150_s3 + $0x5d4] ss:$8 sps:$4 sm:$0xff]  }
 0x40f   : > { %5336 = vmatmul.mubr.bf16.gmra.mrb[40].mxu1 %v17970_v24  ;;  %v4704_v6 = vrot.slane %v4702_v25, 5  ;;  %v18046_v0 = vcombine.high %v4687_v60, %v4697_v22  ;;  %v18058_v16 = vcombine.low %v4687_v60, %v4697_v22  ;;  %v4503_v25 = vld [vmem:[#allocation2 + $0x148] sm:$0xff] }
 0x410   : > { %5345 = vmatprep.mubr.bf16.mxu1 %v17980_v10  ;;  %5750 = vmatpush1.bf16.msra.mxu1 %v15514_v7  ;;  %v4710_v7 = vrot.slane %v4708_v15, 5  ;;  %v4774_v47 = vshll.u32 %v4503_v25, 16  ;;  %v15546_v22 = vld [vmem:[%s20150_s3 + $0x5e4] ss:$8 sps:$4 sm:$0xff]   ;;  %v15544_v60 = vld [vmem:[%s20150_s3 + $0x5e0] ss:$8 sps:$4 sm:$0xff]  }
 0x411   : > { %5751 = vmatprep.subr.bf16.mxu1 %v15519_v49  ;;  %v4498_v49 = vld [vmem:[#allocation2 + $0x110] sm:$0xff]  ;;  %v4705_v21 = vor.u32 %v4704_v6, %v4701_v3  ;;  %v4730_v3 = vrot.slane %v4729_v19, 4  ;;  %v4771_v6 = vshrl.u32 %v4503_v25, 16  ;;  %v4808_v19 = vshrl.u32 %v4507_v18, 16 }
 0x412   : > { %v4715_v53 = vor.u32 %v4714_v63, %v4710_v7  ;;  %v4736_v61 = vshrl.u32 %v4498_v49, 16  ;;  %v4762_v63 = vrot.slane %v4760_v56, 4  ;;  %v4776_v46 = vrot.slane %v4774_v47, 5  ;;  %v15552_v56 = vld [vmem:[%s20150_s3 + $0x804] ss:$8 sps:$4 sm:$0xff]  }
 0x413   : > { %v4706_v26 = vrot.slane %v4705_v21, 4 }
 0x414   : > { %5752 = vmatpush1.bf16.msra.mxu1 %v15517_v1  ;;  %v15534_v1 = vld [vmem:[%s20150_s3 + $0x5a4] ss:$8 sps:$4 sm:$0xff]   ;;  %v4738_v51 = vrot.slane %v4736_v61, 4 }
 0x415   : > { %5753 = vmatprep.subr.bf16.mxu1 %v15522_v52  ;;  %v4732_v52 = vshll.u32 %v4498_v49, 16  ;;  %v4711_v41 = vsel %vm17918_vm12, %v4706_v26, %v4710_v7  ;;  %v4744_v49 = vrot.slane %v4742_v9, 5  ;;  %v4798_v9 = vshll.u32 %v4506_v54, 16 }
 0x417   : > { %5346 = vmatmul.mubr.bf16.gmra.mrb[44].mxu1 %v17992_v32  ;;  %v4734_v5 = vrot.slane %v4732_v52, 5  ;;  %v4784_v52 = vshrl.u32 %v4504_v38, 16  ;;  %v4508_v38 = vld [vmem:[#allocation2 + $0x178] sm:$0x11] }
 0x418   : > { %5355 = vmatprep.mubr.bf16.mxu1 %v18002_v30  ;;  %5754 = vmatpush1.bf16.msra.mxu1 %v15520_v58  ;;  %v15537_v58 = vld [vmem:[%s20150_s3 + $0x5b4] ss:$8 sps:$4 sm:$0xff]  }
 0x419   : > { %5755 = vmatprep.subr.bf16.mxu1 %v15525_v62  ;;  %v4716_v62 = vrot.slane %v4715_v53, 4  ;;  %v4739_v13 = vor.u32 %v4738_v51, %v4734_v5  ;;  %v4766_v53 = vshll.u32 %v4502_v34, 16  ;;  %v4735_v28 = vsel %vm17918_vm12, %v4730_v3, %v4734_v5  ;;  %v4505_v5 = vld [vmem:[#allocation2 + $0x158] sm:$0x11]  ;;  %v4510_v3 = vld [vmem:[#allocation2 + $0x190] sm:$0xff] }
 0x41a   : > { %v4782_v51 = vrot.slane %v4780_v14, 5  ;;  %v4786_v26 = vrot.slane %v4784_v52, 4  ;;  %v4828_v14 = vshll.u32 %v4510_v3, 16  ;;  %v4832_v52 = vshrl.u32 %v4510_v3, 16 }
 0x41b   : > { %v4721_v15 = vsel %vm17918_vm12, %v4716_v62, %v4720_v55  ;;  %v4740_v7 = vrot.slane %v4739_v13, 4  ;;  %v4768_v12 = vrot.slane %v4766_v53, 5  ;;  %v15549_v62 = vld [vmem:[%s20150_s3 + $0x5f4] ss:$8 sps:$4 sm:$0xff]   ;;  %v4795_v13 = vshrl.u32 %v4506_v54, 16 }
 0x41c   : > { %5756 = vmatpush1.bf16.msra.mxu1 %v15523_v39  ;;  %v15535_v39 = vld [vmem:[%s20150_s3 + $0x5b0] ss:$8 sps:$4 sm:$0xff]   ;;  %v18068_v8 = vcombine.high %v4711_v41, %v4721_v15  ;;  %v18080_v21 = vcombine.low %v4711_v41, %v4721_v15  ;;  %v4790_v15 = vshll.u32 %v4505_v5, 16  ;;  %v4804_v41 = vshll.u32 %v4507_v18, 16 }
 0x41d   : > { %5757 = vmatprep.subr.bf16.mxu1 %v15528_v2  ;;  %v15540_v2 = vld [vmem:[%s20150_s3 + $0x5c4] ss:$8 sps:$4 sm:$0xff]   ;;  %v4745_v61 = vsel %vm17918_vm12, %v4740_v7, %v4744_v49  ;;  %v4810_v7 = vrot.slane %v4808_v19, 4  ;;  %v4511_v5 = vld [vmem:[#allocation2 + $0x198] sm:$0x11] }
 0x41e   : > { %v18090_v55 = vcombine.high %v4735_v28, %v4745_v61  ;;  %v18104_v25 = vcombine.low %v4735_v28, %v4745_v61  ;;  %v4806_v34 = vrot.slane %v4804_v41, 5  ;;  %v4509_v49 = vld [vmem:[#allocation2 + $0x188] sm:$0xff] }
 0x41f   : > { %5356 = vmatmul.mubr.bf16.gmra.mrb[48].mxu1 %v18017_v20  ;;  %v4822_v53 = vshll.u32 %v4509_v49, 16 }
 0x420   : > { %5365 = vmatprep.mubr.bf16.mxu1 %v18024_v44  ;;  %5758 = vmatpush1.bf16.msra.mxu1 %v15526_v59  ;;  %v15538_v59 = vld [vmem:[%s20150_s3 + $0x5c0] ss:$8 sps:$4 sm:$0xff]   ;;  %v4811_v47 = vor.u32 %v4810_v7, %v4806_v34 }
 0x421   : > { %5759 = vmatprep.subr.bf16.mxu1 %v15531_v40  ;;  %v4758_v40 = vrot.slane %v4756_v42, 5  ;;  %v4515_v7 = vld [vmem:[#allocation2 + $0x1c8] sm:$0xff] }
 0x424   : > { %5760 = vmatpush1.bf16.msra.mxu1 %v15529_v27  ;;  %v15541_v27 = vld [vmem:[%s20150_s3 + $0x5d0] ss:$8 sps:$4 sm:$0xff]  }
 0x425   : > { %5761 = vmatprep.subr.bf16.mxu1 %v15534_v1  ;;  %v4763_v1 = vor.u32 %v4762_v63, %v4758_v40  ;;  %v4797_v63 = vrot.slane %v4795_v13, 4 }
 0x427   : > { %5366 = vmatmul.mubr.bf16.gmra.mrb[52].mxu1 %v18039_v17  ;;  %v4764_v33 = vrot.slane %v4763_v1, 4  ;;  %v4819_v1 = vshrl.u32 %v4509_v49, 16  ;;  %v4516_v49 = vld [vmem:[#allocation2 + $0x1d0] sm:$0xff] }
 0x428   : > { %5375 = vmatprep.mubr.bf16.mxu1 %v18046_v0  ;;  %5762 = vmatpush1.bf16.msra.mxu1 %v15532_v4  ;;  %v4773_v4 = vrot.slane %v4771_v6, 4 }
 0x429   : > { %5763 = vmatprep.subr.bf16.mxu1 %v15537_v58  ;;  %v4754_v58 = vrot.slane %v4753_v35, 4  ;;  %v4769_v29 = vsel %vm17918_vm12, %v4764_v33, %v4768_v12  ;;  %v4512_v33 = vld [vmem:[#allocation2 + $0x1a8] sm:$0xff]  ;;  %v4812_v12 = vrot.slane %v4811_v47, 4  ;;  %v4876_v47 = vshll.u32 %v4516_v49, 16 }
 0x42a   : > { %v4777_v42 = vor.u32 %v4776_v46, %v4773_v4  ;;  %v4843_v54 = vshrl.u32 %v4512_v33, 16  ;;  %v4846_v18 = vshll.u32 %v4512_v33, 16 }
 0x42b   : > { %v4759_v11 = vsel %vm17918_vm12, %v4754_v58, %v4758_v40  ;;  %v4792_v40 = vrot.slane %v4790_v15, 5  ;;  %v4824_v58 = vrot.slane %v4822_v53, 5  ;;  %v4838_v15 = vshll.u32 %v4511_v5, 16  ;;  %v4517_v5 = vld [vmem:[#allocation2 + $0x1d8] sm:$0x11] }
 0x42c   : > { %5764 = vmatpush1.bf16.msra.mxu1 %v15535_v39  ;;  %v15547_v39 = vld [vmem:[%s20150_s3 + $0x5f0] ss:$8 sps:$4 sm:$0xff]   ;;  %v4778_v48 = vrot.slane %v4777_v42, 4  ;;  %v18114_v61 = vcombine.low %v4759_v11, %v4769_v29  ;;  %v4848_v41 = vrot.slane %v4846_v18, 5 }
 0x42d   : > { %5765 = vmatprep.subr.bf16.mxu1 %v15540_v2  ;;  %v4787_v2 = vor.u32 %v4786_v26, %v4782_v51  ;;  %v4513_v26 = vld [vmem:[#allocation2 + $0x1b0] sm:$0xff] }
 0x42e   : > { %v4783_v6 = vsel %vm17918_vm12, %v4778_v48, %v4782_v51  ;;  %v4834_v51 = vrot.slane %v4832_v52, 4 }
 0x42f   : > { %5376 = vmatmul.mubr.bf16.gmra.mrb[56].mxu1 %v18058_v16  ;;  %v4788_v43 = vrot.slane %v4787_v2, 4 }
 0x430   : > { %5385 = vmatprep.mubr.bf16.mxu1 %v18068_v8  ;;  %5766 = vmatpush1.bf16.msra.mxu1 %v15538_v59  ;;  %v18106_v59 = vcombine.high %v4759_v11, %v4769_v29  ;;  %v4852_v11 = vshll.u32 %v4513_v26, 16  ;;  %v4856_v29 = vshrl.u32 %v4513_v26, 16  ;;  %v4519_v26 = vld [vmem:[#allocation2 + $0x1f0] sm:$0xff] }
 0x431   : > { %5767 = vmatprep.subr.bf16.mxu1 %v15543_v45  ;;  %v4800_v45 = vrot.slane %v4798_v9, 5  ;;  %v4845_v9 = vrot.slane %v4843_v54, 4 }
 0x433   : > { %v4801_v35 = vor.u32 %v4800_v45, %v4797_v63  ;;  %v4840_v45 = vrot.slane %v4838_v15, 5  ;;  %v4904_v15 = vshrl.u32 %v4519_v26, 16 }
 0x434   : > { %5768 = vmatpush1.bf16.msra.mxu1 %v15541_v27  ;;  %v4793_v27 = vsel %vm17918_vm12, %v4788_v43, %v4792_v40  ;;  %v4854_v43 = vrot.slane %v4852_v11, 5  ;;  %v4858_v40 = vrot.slane %v4856_v29, 4  ;;  %v4900_v29 = vshll.u32 %v4519_v26, 16  ;;  %v15553_v26 = vld [vmem:[%s20150_s3 + $0x810] ss:$8 sps:$4 sm:$0xff]  }
 0x435   : > { %5769 = vmatprep.subr.bf16.mxu1 %v15546_v22  ;;  %v4814_v22 = vshll.u32 %v4508_v38, 16  ;;  %v18116_v28 = vcombine.high %v4783_v6, %v4793_v27  ;;  %v4802_v4 = vrot.slane %v4801_v35, 4  ;;  %v18124_v13 = vcombine.low %v4783_v6, %v4793_v27 }
 0x436   : > { %v4849_v38 = vor.u32 %v4848_v41, %v4845_v9  ;;  %v4859_v6 = vor.u32 %v4858_v40, %v4854_v43  ;;  %v4867_v27 = vshrl.u32 %v4515_v7, 16  ;;  %v4870_v35 = vshll.u32 %v4515_v7, 16 }
 0x437   : > { %5386 = vmatmul.mubr.bf16.gmra.mrb[60].mxu1 %v18080_v21  ;;  %v4816_v46 = vrot.slane %v4814_v22, 5  ;;  %v4807_v42 = vsel %vm17918_vm12, %v4802_v4, %v4806_v34  ;;  %v4514_v34 = vld [vmem:[#allocation2 + $0x1b8] sm:$0x11]  ;;  %v4880_v22 = vshrl.u32 %v4516_v49, 16  ;;  %v4902_v7 = vrot.slane %v4900_v29, 5 }
 0x438   : > { %5395 = vmatprep.mubr.bf16.mxu1 %v18090_v55  ;;  %5770 = vmatpush1.bf16.msra.mxu1 %v15544_v60  ;;  %v4821_v60 = vrot.slane %v4819_v1, 4  ;;  %v4862_v53 = vshll.u32 %v4514_v34, 16  ;;  %v4850_v52 = vrot.slane %v4849_v38, 4  ;;  %v4860_v33 = vrot.slane %v4859_v6, 4  ;;  %v4520_v49 = vld [vmem:[#allocation2 + $0x1f8] sm:$0x11] }
 0x439   : > { %5771 = vmatprep.subr.bf16.mxu1 %v15549_v62  ;;  %v4830_v62 = vrot.slane %v4828_v14, 5  ;;  %v4906_v34 = vrot.slane %v4904_v15, 4  ;;  %v15565_v29 = vld [vmem:[%s20150_s3 + $0x850] ss:$8 sps:$4 sm:$0xff]  }
 0x43a   : > { %v4855_v54 = vsel %vm17918_vm12, %v4850_v52, %v4854_v43  ;;  %v15571_v15 = vld [vmem:[%s20150_s3 + $0x870] ss:$8 sps:$4 sm:$0xff]  }
 0x43b   : > { %v4835_v2 = vor.u32 %v4834_v51, %v4830_v62  ;;  %v4518_v51 = vld [vmem:[#allocation2 + $0x1e8] sm:$0xff] }
 0x43c   : > { %5772 = vmatpush1.bf16.msra.mxu1 %v15547_v39  ;;  %v4825_v39 = vor.u32 %v4824_v58, %v4821_v60  ;;  %v4869_v60 = vrot.slane %v4867_v27, 4  ;;  %v4872_v58 = vrot.slane %v4870_v35, 5  ;;  %v4894_v11 = vshll.u32 %v4518_v51, 16 }
 0x43d   : > { %6199 = vmatprep.subr.bf16.mxu1 %v15552_v56  ;;  %v4817_v56 = vsel %vm17918_vm12, %v4812_v12, %v4816_v46  ;;  %v4836_v63 = vrot.slane %v4835_v2, 4  ;;  %v4864_v12 = vrot.slane %v4862_v53, 5  ;;  %v4878_v46 = vrot.slane %v4876_v47, 5 }
 0x43e   : > { %v18126_v19 = vcombine.high %v4807_v42, %v4817_v56  ;;  %v4826_v48 = vrot.slane %v4825_v39, 4  ;;  %v18134_v14 = vcombine.low %v4807_v42, %v4817_v56  ;;  %v4873_v18 = vor.u32 %v4872_v58, %v4869_v60 }
 0x43f   : > { %5396 = vmatmul.mubr.bf16.gmra.mrb[64].mxu1 %v18104_v25  ;;  %v4841_v1 = vsel %vm17918_vm12, %v4836_v63, %v4840_v45  ;;  %v4891_v39 = vshrl.u32 %v4518_v51, 16  ;;  %v4865_v42 = vsel %vm17918_vm12, %v4860_v33, %v4864_v12  ;;  %v4886_v2 = vshll.u32 %v4517_v5, 16  ;;  %v15555_v51 = vld [vmem:[%s20150_s3 + $0x814] ss:$8 sps:$4 sm:$0xff]   ;;  %v15556_v5 = vld [vmem:[%s20150_s3 + $0x820] ss:$8 sps:$4 sm:$0xff]  }
 0x440   : > { %5405 = vmatprep.mubr.bf16.mxu1 %v18106_v59  ;;  %v4831_v3 = vsel %vm17918_vm12, %v4826_v48, %v4830_v62  ;;  %v4882_v62 = vrot.slane %v4880_v22, 4  ;;  %v18146_v41 = vcombine.high %v4855_v54, %v4865_v42  ;;  %v4874_v48 = vrot.slane %v4873_v18, 4  ;;  %v15564_v18 = vld [vmem:[%s20150_s3 + $0x844] ss:$8 sps:$4 sm:$0xff]  }
 0x441   : > { %v18136_v4 = vcombine.high %v4831_v3, %v4841_v1  ;;  %v18144_v9 = vcombine.low %v4831_v3, %v4841_v1  ;;  %v4893_v40 = vrot.slane %v4891_v39, 4  ;;  %v4896_v63 = vrot.slane %v4894_v11, 5  ;;  %v15562_v39 = vld [vmem:[%s20150_s3 + $0x840] ss:$8 sps:$4 sm:$0xff]   ;;  %v15567_v11 = vld [vmem:[%s20150_s3 + $0x854] ss:$8 sps:$4 sm:$0xff]  }
 0x442   : > { %v4883_v56 = vor.u32 %v4882_v62, %v4878_v46  ;;  %v4888_v45 = vrot.slane %v4886_v2, 5  ;;  %v4879_v38 = vsel %vm17918_vm12, %v4874_v48, %v4878_v46  ;;  %v4907_v27 = vor.u32 %v4906_v34, %v4902_v7  ;;  %v15550_v62 = vld [vmem:[%s20150_s3 + $0x800] ss:$8 sps:$4 sm:$0xff]   ;;  %v15573_v2 = vld [vmem:[%s20150_s3 + $0x874] ss:$8 sps:$4 sm:$0xff]  }
 0x443   : > { %v4897_v6 = vor.u32 %v4896_v63, %v4893_v40  ;;  %v4910_v35 = vshll.u32 %v4520_v49, 16  ;;  %v18154_v1 = vcombine.low %v4855_v54, %v4865_v42  ;;  %v15559_v54 = vld [vmem:[%s20150_s3 + $0x830] ss:$8 sps:$4 sm:$0xff]   ;;  %v15570_v42 = vld [vmem:[%s20150_s3 + $0x864] ss:$8 sps:$4 sm:$0xff]  }
 0x444   : > { %v4884_v43 = vrot.slane %v4883_v56, 4  ;;  %v4908_v22 = vrot.slane %v4907_v27, 4  ;;  %v15568_v56 = vld [vmem:[%s20150_s3 + $0x860] ss:$8 sps:$4 sm:$0xff]   ;;  %v15576_v48 = vld [vmem:[%s20150_s3 + $0x884] ss:$8 sps:$4 sm:$0xff]  }
 0x445   : > { %v4898_v47 = vrot.slane %v4897_v6, 4  ;;  %v4912_v52 = vrot.slane %v4910_v35, 5  ;;  %v15574_v40 = vld [vmem:[%s20150_s3 + $0x880] ss:$8 sps:$4 sm:$0xff]   ;;  %v15579_v63 = vld [vmem:[%s20150_s3 + $0x894] ss:$8 sps:$4 sm:$0xff]  }
 0x446   : > { %v4889_v3 = vsel %vm17918_vm12, %v4884_v43, %v4888_v45  ;;  %v15577_v43 = vld [vmem:[%s20150_s3 + $0x890] ss:$8 sps:$4 sm:$0xff]   ;;  %v15582_v45 = vld [vmem:[%s20150_s3 + $0x8a4] ss:$8 sps:$4 sm:$0xff]   ;;  %v15585_v34 = vld [vmem:[%s20150_s3 + $0x8b4] ss:$8 sps:$4 sm:$0xff]  }
 0x447   : > { %5406 = vmatmul.mubr.bf16.gmra.mrb[68].mxu1 %v18114_v61  ;;  %v18156_v53 = vcombine.high %v4879_v38, %v4889_v3  ;;  %v4903_v60 = vsel %vm17918_vm12, %v4898_v47, %v4902_v7  ;;  %v4913_v58 = vsel %vm17918_vm12, %v4908_v22, %v4912_v52  ;;  %v18164_v33 = vcombine.low %v4879_v38, %v4889_v3  ;;  %v15580_v7 = vld [vmem:[%s20150_s3 + $0x8a0] ss:$8 sps:$4 sm:$0xff]   ;;  %v15583_v49 = vld [vmem:[%s20150_s3 + $0x8b0] ss:$8 sps:$4 sm:$0xff]   ;;  %v15588_v38 = vld [vmem:[%s20150_s3 + $0x8c4] ss:$8 sps:$4 sm:$0xff]  }
 0x448   : > { %5415 = vmatprep.mubr.bf16.mxu1 %v18116_v28  ;;  %v18166_v12 = vcombine.high %v4903_v60, %v4913_v58  ;;  %v18170_v46 = vcombine.low %v4903_v60, %v4913_v58  ;;  %v15586_v3 = vld [vmem:[%s20150_s3 + $0x8c0] ss:$8 sps:$4 sm:$0xff]   ;;  %v15591_v6 = vld [vmem:[%s20150_s3 + $0x8d4] ss:$8 sps:$4 sm:$0xff]   ;;  %v15589_v27 = vld [vmem:[%s20150_s3 + $0x8d0] ss:$8 sps:$4 sm:$0xff]  }
 0x449   : > { %v15594_v35 = vld [vmem:[%s20150_s3 + $0x8e4] ss:$8 sps:$4 sm:$0xff]   ;;  %v15592_v47 = vld [vmem:[%s20150_s3 + $0x8e0] ss:$8 sps:$4 sm:$0xff]   ;;  %v15597_v22 = vld [vmem:[%s20150_s3 + $0x8f4] ss:$8 sps:$4 sm:$0xff]  }
 0x44a   : > { %v15595_v52 = vld [vmem:[%s20150_s3 + $0x8f0] ss:$8 sps:$4 sm:$0xff]   ;;  %v4521_v60 = vld [vmem:[#allocation2 + $0x208] sm:$0xff] }
 0x44b   : > { %v4522_v58 = vld [vmem:[#allocation2 + $0x210] sm:$0xff] }
 0x44f   : > { %5416 = vmatmul.mubr.bf16.gmra.mrb[72].mxu1 %v18124_v13 }
 0x450   : > { %5425 = vmatprep.mubr.bf16.mxu1 %v18126_v19 }
 0x457   : > { %5426 = vmatmul.mubr.bf16.gmra.mrb[76].mxu1 %v18134_v14 }
 0x458   : > { %5435 = vmatprep.mubr.bf16.mxu1 %v18136_v4 }
 0x45f   : > { %5436 = vmatmul.mubr.bf16.gmra.mrb[80].mxu1 %v18144_v9 }
 0x460   : > { %5445 = vmatprep.mubr.bf16.mxu1 %v18146_v41 }
 0x467   : > { %5446 = vmatmul.mubr.bf16.gmra.mrb[84].mxu1 %v18154_v1 }
 0x468   : > { %5455 = vmatprep.mubr.bf16.mxu1 %v18156_v53 }
 0x46f   : > { %5456 = vmatmul.mubr.bf16.gmra.mrb[88].mxu1 %v18164_v33 }
 0x470   : > { %5465 = vmatprep.mubr.bf16.mxu1 %v18166_v12 }
 0x477   : > { %5466 = vmatmul.mubr.bf16.gmra.mrb[92].mxu1 %v18170_v46 }
 0x478   : > { %5773 = vmatprep.mubr.bf16.mxu1 %v17937_v57  ;;  %v15558_v57 = vld [vmem:[%s20150_s3 + $0x824] ss:$8 sps:$4 sm:$0xff]  }
 0x47f   : > { %5774 = vmatmul.mubr.bf16.vlgmr.msra.gmra.mrb[32].mxu1 %v17951_v50  ;;  %v15561_v50 = vld [vmem:[%s20150_s3 + $0x834] ss:$8 sps:$4 sm:$0xff]  }
 0x480   : > { %6200 = vmatpush1.bf16.msra.mxu1 %v15550_v62  ;;  %5783 = vmatprep.mubr.bf16.mxu1 %v17958_v36  ;;  %v4915_v62 = vshrl.u32 %v4521_v60, 16 }
 0x481   : > { %6201 = vmatprep.subr.bf16.mxu1 %v15555_v51  ;;  %v4918_v51 = vshll.u32 %v4521_v60, 16  ;;  %v15624_v60 = vld [vmem:[%s20152_s5 + $0x384] ss:$8 sps:$4 sm:$0xff]  }
 0x484   : > { %6202 = vmatpush1.bf16.msra.mxu1 %v15553_v26  ;;  %v4924_v26 = vshll.u32 %v4522_v58, 16 }
 0x485   : > { %6203 = vmatprep.subr.bf16.mxu1 %v15558_v57  ;;  %v4928_v57 = vshrl.u32 %v4522_v58, 16  ;;  %v15625_v58 = vld [vmem:[%s20152_s5 + $0x390] ss:$8 sps:$4 sm:$0xff]  }
 0x487   : > { %5784 = vmatmul.mubr.bf16.gmra.mrb[36].mxu1 %v17970_v24 }
 0x488   : > { %5793 = vmatprep.mubr.bf16.mxu1 %v17980_v10  ;;  %6204 = vmatpush1.bf16.msra.mxu1 %v15556_v5  ;;  %v4917_v5 = vrot.slane %v4915_v62, 4 }
 0x489   : > { %6205 = vmatprep.subr.bf16.mxu1 %v15561_v50  ;;  %v4920_v50 = vrot.slane %v4918_v51, 5  ;;  %v15642_v51 = vld [vmem:[%s20152_s5 + $0x3e4] ss:$8 sps:$4 sm:$0xff]  }
 0x48c   : > { %6206 = vmatpush1.bf16.msra.mxu1 %v15559_v54  ;;  %v4926_v54 = vrot.slane %v4924_v26, 5  ;;  %v15645_v26 = vld [vmem:[%s20152_s5 + $0x3f4] ss:$8 sps:$4 sm:$0xff]  }
 0x48d   : > { %6207 = vmatprep.subr.bf16.mxu1 %v15564_v18  ;;  %v4930_v18 = vrot.slane %v4928_v57, 4  ;;  %v15643_v57 = vld [vmem:[%s20152_s5 + $0x3f0] ss:$8 sps:$4 sm:$0xff]  }
 0x48f   : > { %5794 = vmatmul.mubr.bf16.gmra.mrb[40].mxu1 %v17992_v32 }
 0x490   : > { %5803 = vmatprep.mubr.bf16.mxu1 %v18002_v30  ;;  %6208 = vmatpush1.bf16.msra.mxu1 %v15562_v39  ;;  %v4523_v39 = vld [vmem:[#allocation2 + $0x218] sm:$0x11] }
 0x491   : > { %6209 = vmatprep.subr.bf16.mxu1 %v15567_v11  ;;  %v4921_v11 = vor.u32 %v4920_v50, %v4917_v5  ;;  %v15648_v50 = vld [vmem:[%s20152_s5 + $0x4] ss:$8 sps:$4 sm:$0xff]  }
 0x494   : > { %6210 = vmatpush1.bf16.msra.mxu1 %v15565_v29  ;;  %v4931_v29 = vor.u32 %v4930_v18, %v4926_v54  ;;  %v20363_v18 = vld [vmem:[#allocation4_spill] sm:$0xff] }
 0x495   : > { %6211 = vmatprep.subr.bf16.mxu1 %v15570_v42  ;;  %v4934_v42 = vshll.u32 %v4523_v39, 16 }
 0x497   : > { %5804 = vmatmul.mubr.bf16.gmra.mrb[44].mxu1 %v18017_v20 }
 0x498   : > { %5813 = vmatprep.mubr.bf16.mxu1 %v18024_v44  ;;  %6212 = vmatpush1.bf16.msra.mxu1 %v15568_v56  ;;  %v4922_v56 = vrot.slane %v4921_v11, 4  ;;  %v20364_v11 = vld [vmem:[#allocation5_spill] sm:$0xff] }
 0x499   : > { %6213 = vmatprep.subr.bf16.mxu1 %v15573_v2  ;;  %v4932_v2 = vrot.slane %v4931_v29, 4 }
 0x49c   : > { %6214 = vmatpush1.bf16.msra.mxu1 %v15571_v15  ;;  %v4936_v15 = vrot.slane %v4934_v42, 5 }
 0x49d   : > { %6215 = vmatprep.subr.bf16.mxu1 %v15576_v48  ;;  %v4927_v48 = vsel %vm17918_vm12, %v4922_v56, %v4926_v54  ;;  %v6456_v54 = vld [vmem:[%s20151_s4] sm:$0x3] }
 0x49e   : > { %v18445_v39 = vrot.slane %v6456_v54, %v20363_v18  ;;  %v18448_v29 = vrot.slane %v6456_v54, %v20364_v11 }
 0x49f   : > { %5814 = vmatmul.mubr.bf16.gmra.mrb[48].mxu1 %v18039_v17 }
 0x4a0   : > { %5823 = vmatprep.mubr.bf16.mxu1 %v18046_v0  ;;  %6216 = vmatpush1.bf16.msra.mxu1 %v15574_v40  ;;  %v4937_v40 = vsel %vm17918_vm12, %v4932_v2, %v4936_v15 }
 0x4a1   : > { %6217 = vmatprep.subr.bf16.mxu1 %v15579_v63  ;;  %v18299_v63 = vcombine.high %v4927_v48, %v4937_v40 }
 0x4a4   : > { %6218 = vmatpush1.bf16.msra.mxu1 %v15577_v43  ;;  %v444_v43 = vld [vmem:[#allocation2 + $0x238] sm:$0x11] }
 0x4a5   : > { %6219 = vmatprep.subr.bf16.mxu1 %v15582_v45  ;;  %v445_v45 = vsel %vm16363_vm7, 0, %v444_v43 }
 0x4a6   : > { %446 = vst [vmem:[#allocation2 + $0x238] sm:$0x11] %v445_v45 }
 0x4a7   : > { %5824 = vmatmul.mubr.bf16.gmra.mrb[52].mxu1 %v18058_v16 }
 0x4a8   : > { %5833 = vmatprep.mubr.bf16.mxu1 %v18068_v8  ;;  %6220 = vmatpush1.bf16.msra.mxu1 %v15580_v7  ;;  %v18305_v7 = vcombine.low %v4927_v48, %v4937_v40 }
 0x4a9   : > { %6221 = vmatprep.subr.bf16.mxu1 %v15585_v34  ;;  %v15598_v34 = vld [vmem:[%s20152_s5 + $0x300] ss:$8 sps:$4 sm:$0xff]  }
 0x4ac   : > { %6222 = vmatpush1.bf16.msra.mxu1 %v15583_v49  ;;  %v15600_v49 = vld [vmem:[%s20152_s5 + $0x304] ss:$8 sps:$4 sm:$0xff]  }
 0x4ad   : > { %6223 = vmatprep.subr.bf16.mxu1 %v15588_v38  ;;  %7623 = vmatprep.subr.bf16.mxu0 %v15600_v49  ;;  %v15601_v38 = vld [vmem:[%s20152_s5 + $0x310] ss:$8 sps:$4 sm:$0xff]   ;;  %v6823_v49 = vld [vmem:[#allocation2 + $0x20] sm:$0x88] }
 0x4ae   : > { %7624 = vmatpush1.bf16.msra.mxu0 %v15598_v34 }
 0x4af   : > { %5834 = vmatmul.mubr.bf16.gmra.mrb[56].mxu1 %v18080_v21  ;;  %7625 = vmatprep.subr.bf16.mxu0 %v15603_v23 }
 0x4b0   : > { %5843 = vmatprep.mubr.bf16.mxu1 %v18090_v55  ;;  %6224 = vmatpush1.bf16.msra.mxu1 %v15586_v3  ;;  %v15606_v3 = vld [vmem:[%s20152_s5 + $0x324] ss:$8 sps:$4 sm:$0xff]  }
 0x4b1   : > { %6225 = vmatprep.subr.bf16.mxu1 %v15591_v6  ;;  %v15609_v6 = vld [vmem:[%s20152_s5 + $0x334] ss:$8 sps:$4 sm:$0xff]  }
 0x4b2   : > { %7626 = vmatpush1.bf16.msra.mxu0 %v15601_v38 }
 0x4b3   : > { %7627 = vmatprep.subr.bf16.mxu0 %v15606_v3 }
 0x4b4   : > { %6226 = vmatpush1.bf16.msra.mxu1 %v15589_v27  ;;  %v15607_v27 = vld [vmem:[%s20152_s5 + $0x330] ss:$8 sps:$4 sm:$0xff]  }
 0x4b5   : > { %6227 = vmatprep.subr.bf16.mxu1 %v15594_v35  ;;  %v15612_v35 = vld [vmem:[%s20152_s5 + $0x344] ss:$8 sps:$4 sm:$0xff]  }
 0x4b7   : > { %5844 = vmatmul.mubr.bf16.gmra.mrb[60].mxu1 %v18104_v25 }
 0x4b8   : > { %5853 = vmatprep.mubr.bf16.mxu1 %v18106_v59  ;;  %6228 = vmatpush1.bf16.msra.mxu1 %v15592_v47  ;;  %v15613_v47 = vld [vmem:[%s20152_s5 + $0x350] ss:$8 sps:$4 sm:$0xff]  }
 0x4b9   : > { %6229 = vmatprep.subr.bf16.mxu1 %v15597_v22  ;;  %v15618_v22 = vld [vmem:[%s20152_s5 + $0x364] ss:$8 sps:$4 sm:$0xff]  }
 0x4bc   : > { %6230 = vmatpush1.bf16.msra.mxu1 %v15595_v52  ;;  %v15619_v52 = vld [vmem:[%s20152_s5 + $0x370] ss:$8 sps:$4 sm:$0xff]  }
 0x4bf   : > { %5854 = vmatmul.mubr.bf16.gmra.mrb[64].mxu1 %v18114_v61 }
 0x4c0   : > { %5863 = vmatprep.mubr.bf16.mxu1 %v18116_v28 }
 0x4c7   : > { %5864 = vmatmul.mubr.bf16.gmra.mrb[68].mxu1 %v18124_v13 }
 0x4c8   : > { %5873 = vmatprep.mubr.bf16.mxu1 %v18126_v19 }
 0x4cf   : > { %5874 = vmatmul.mubr.bf16.gmra.mrb[72].mxu1 %v18134_v14 }
 0x4d0   : > { %5883 = vmatprep.mubr.bf16.mxu1 %v18136_v4 }
 0x4d7   : > { %5884 = vmatmul.mubr.bf16.gmra.mrb[76].mxu1 %v18144_v9 }
 0x4d8   : > { %5893 = vmatprep.mubr.bf16.mxu1 %v18146_v41 }
 0x4df   : > { %5894 = vmatmul.mubr.bf16.gmra.mrb[80].mxu1 %v18154_v1 }
 0x4e0   : > { %5903 = vmatprep.mubr.bf16.mxu1 %v18156_v53 }
 0x4e7   : > { %5904 = vmatmul.mubr.bf16.gmra.mrb[84].mxu1 %v18164_v33 }
 0x4e8   : > { %5913 = vmatprep.mubr.bf16.mxu1 %v18166_v12 }
 0x4ef   : > { %5914 = vmatmul.mubr.bf16.gmra.mrb[88].mxu1 %v18170_v46 }
 0x4f0   : > { %5923 = vmatprep.mubr.bf16.mxu1 %v18299_v63 }
 0x4f7   : > { %5924 = vmatmul.mubr.bf16.gmra.mrb[92].mxu1 %v18305_v7 }
 0x4f8   : > { %6231 = vmatprep.mubr.bf16.mxu1 %v17958_v36  ;;  %v15604_v36 = vld [vmem:[%s20152_s5 + $0x320] ss:$8 sps:$4 sm:$0xff]  }
 0x4f9   : > { %7628 = vmatpush1.bf16.msra.mxu0 %v15604_v36 }
 0x4fa   : > { %7629 = vmatprep.subr.bf16.mxu0 %v15609_v6  ;;  %v6897_v6 = vshrl.u32 %v6823_v49, 16 }
 0x4fd   : > { %7630 = vmatpush1.bf16.msra.mxu0 %v15607_v27 }
 0x4fe   : > { %7631 = vmatprep.subr.bf16.mxu0 %v15612_v35 }
 0x4ff   : > { %6232 = vmatmul.mubr.bf16.vlgmr.msra.gmra.mrb[32].mxu1 %v17970_v24  ;;  %v15610_v24 = vld [vmem:[%s20152_s5 + $0x340] ss:$8 sps:$4 sm:$0xff]  }
 0x500   : > { %6241 = vmatprep.mubr.bf16.mxu1 %v17980_v10  ;;  %v15615_v10 = vld [vmem:[%s20152_s5 + $0x354] ss:$8 sps:$4 sm:$0xff]  }
 0x501   : > { %7632 = vmatpush1.bf16.msra.mxu0 %v15610_v24 }
 0x502   : > { %7633 = vmatprep.subr.bf16.mxu0 %v15615_v10 }
 0x505   : > { %7634 = vmatpush1.bf16.msra.mxu0 %v15613_v47 }
 0x506   : > { %7635 = vmatprep.subr.bf16.mxu0 %v15618_v22 }
 0x507   : > { %6242 = vmatmul.mubr.bf16.gmra.mrb[36].mxu1 %v17992_v32  ;;  %v15616_v32 = vld [vmem:[%s20152_s5 + $0x360] ss:$8 sps:$4 sm:$0xff]  }
 0x508   : > { %6251 = vmatprep.mubr.bf16.mxu1 %v18002_v30  ;;  %v15621_v30 = vld [vmem:[%s20152_s5 + $0x374] ss:$8 sps:$4 sm:$0xff]  }
 0x509   : > { %7636 = vmatpush1.bf16.msra.mxu0 %v15616_v32 }
 0x50a   : > { %7637 = vmatprep.subr.bf16.mxu0 %v15621_v30 }
 0x50d   : > { %7638 = vmatpush1.bf16.msra.mxu0 %v15619_v52 }
 0x50e   : > { %7639 = vmatprep.subr.bf16.mxu0 %v15624_v60 }
 0x50f   : > { %6252 = vmatmul.mubr.bf16.gmra.mrb[40].mxu1 %v18017_v20  ;;  %v15622_v20 = vld [vmem:[%s20152_s5 + $0x380] ss:$8 sps:$4 sm:$0xff]  }
 0x510   : > { %6261 = vmatprep.mubr.bf16.mxu1 %v18024_v44  ;;  %v15627_v44 = vld [vmem:[%s20152_s5 + $0x394] ss:$8 sps:$4 sm:$0xff]  }
 0x511   : > { %7640 = vmatpush1.bf16.msra.mxu0 %v15622_v20 }
 0x512   : > { %7641 = vmatprep.subr.bf16.mxu0 %v15627_v44 }
 0x515   : > { %7642 = vmatpush1.bf16.msra.mxu0 %v15625_v58 }
 0x517   : > { %6262 = vmatmul.mubr.bf16.gmra.mrb[44].mxu1 %v18039_v17  ;;  %v16046_v17 = vld [vmem:[#allocation2] sm:$0xff] }
 0x518   : > { %6271 = vmatprep.mubr.bf16.mxu1 %v18046_v0  ;;  %v4939_v0 = vshrl.u32 %v16046_v17, 16 }
 0x51f   : > { %6272 = vmatmul.mubr.bf16.gmra.mrb[48].mxu1 %v18058_v16  ;;  %v4942_v16 = vshll.u32 %v16046_v17, 16 }
 0x520   : > { %6281 = vmatprep.mubr.bf16.mxu1 %v18068_v8  ;;  %v15628_v8 = vld [vmem:[%s20152_s5 + $0x3a0] ss:$8 sps:$4 sm:$0xff]  }
 0x527   : > { %6282 = vmatmul.mubr.bf16.gmra.mrb[52].mxu1 %v18080_v21  ;;  %v15630_v21 = vld [vmem:[%s20152_s5 + $0x3a4] ss:$8 sps:$4 sm:$0xff]  }
 0x528   : > { %6291 = vmatprep.mubr.bf16.mxu1 %v18090_v55  ;;  %v4941_v55 = vrot.slane %v4939_v0, 4  ;;  %7643 = vmatprep.subr.bf16.mxu0 %v15630_v21  ;;  %v13303_v0 = vrot.slane %v6897_v6, 11 }
 0x529   : > { %7644 = vmatpush1.bf16.msra.mxu0 %v15628_v8 }
 0x52f   : > { %6292 = vmatmul.mubr.bf16.gmra.mrb[56].mxu1 %v18104_v25  ;;  %v4944_v25 = vrot.slane %v4942_v16, 5 }
 0x530   : > { %6301 = vmatprep.mubr.bf16.mxu1 %v18106_v59  ;;  %v15633_v59 = vld [vmem:[%s20152_s5 + $0x3b4] ss:$8 sps:$4 sm:$0xff]  }
 0x531   : > { %7645 = vmatprep.subr.bf16.mxu0 %v15633_v59 }
 0x537   : > { %6302 = vmatmul.mubr.bf16.gmra.mrb[60].mxu1 %v18114_v61  ;;  %v4526_v61 = vld [vmem:[#allocation2 + $0x238] sm:$0x11] }
 0x538   : > { %6311 = vmatprep.mubr.bf16.mxu1 %v18116_v28  ;;  %v15631_v28 = vld [vmem:[%s20152_s5 + $0x3b0] ss:$8 sps:$4 sm:$0xff]  }
 0x539   : > { %7646 = vmatpush1.bf16.msra.mxu0 %v15631_v28 }
 0x53f   : > { %6312 = vmatmul.mubr.bf16.gmra.mrb[64].mxu1 %v18124_v13  ;;  %v4945_v13 = vor.u32 %v4944_v25, %v4941_v55 }
 0x540   : > { %6321 = vmatprep.mubr.bf16.mxu1 %v18126_v19  ;;  %v4958_v19 = vshll.u32 %v4526_v61, 16 }
 0x547   : > { %6322 = vmatmul.mubr.bf16.gmra.mrb[68].mxu1 %v18134_v14  ;;  %v15634_v14 = vld [vmem:[%s20152_s5 + $0x3c0] ss:$8 sps:$4 sm:$0xff]  }
 0x548   : > { %6331 = vmatprep.mubr.bf16.mxu1 %v18136_v4  ;;  %v15636_v4 = vld [vmem:[%s20152_s5 + $0x3c4] ss:$8 sps:$4 sm:$0xff]  }
 0x549   : > { %7647 = vmatprep.subr.bf16.mxu0 %v15636_v4 }
 0x54a   : > { %7648 = vmatpush1.bf16.msra.mxu0 %v15634_v14 }
 0x54f   : > { %6332 = vmatmul.mubr.bf16.gmra.mrb[72].mxu1 %v18144_v9  ;;  %v4946_v9 = vrot.slane %v4945_v13, 4 }
 0x550   : > { %6341 = vmatprep.mubr.bf16.mxu1 %v18146_v41  ;;  %v4960_v41 = vrot.slane %v4958_v19, 5 }
 0x557   : > { %6342 = vmatmul.mubr.bf16.gmra.mrb[76].mxu1 %v18154_v1  ;;  %v15639_v1 = vld [vmem:[%s20152_s5 + $0x3d4] ss:$8 sps:$4 sm:$0xff]  }
 0x558   : > { %6351 = vmatprep.mubr.bf16.mxu1 %v18156_v53  ;;  %v15637_v53 = vld [vmem:[%s20152_s5 + $0x3d0] ss:$8 sps:$4 sm:$0xff]   ;;  %7649 = vmatprep.subr.bf16.mxu0 %v15639_v1 }
 0x559   : > { %7650 = vmatpush1.bf16.msra.mxu0 %v15637_v53 }
 0x55a   : > { %7651 = vmatprep.subr.bf16.mxu0 %v15642_v51 }
 0x55f   : > { %6352 = vmatmul.mubr.bf16.gmra.mrb[80].mxu1 %v18164_v33  ;;  %v4951_v33 = vsel %vm17918_vm12, %v4946_v9, %v4944_v25  ;;  %v6826_v25 = vld [vmem:[#allocation2 + $0x40] sm:$0x88] }
 0x560   : > { %6361 = vmatprep.mubr.bf16.mxu1 %v18166_v12  ;;  %v4961_v12 = vsel %vm17918_vm12, %v4946_v9, %v4960_v41  ;;  %v6919_v9 = vshrl.u32 %v6826_v25, 16 }
 0x561   : > { %v13237_v62 = vcombine.high %v4951_v33, %v4961_v12  ;;  %v13236_v5 = vcombine.low %v4951_v33, %v4961_v12 }
 0x567   : > { %6362 = vmatmul.mubr.bf16.gmra.mrb[84].mxu1 %v18170_v46  ;;  %v15640_v46 = vld [vmem:[%s20152_s5 + $0x3e0] ss:$8 sps:$4 sm:$0xff]  }
 0x568   : > { %6371 = vmatprep.mubr.bf16.mxu1 %v18299_v63  ;;  %7652 = vmatpush1.bf16.msra.mxu0 %v15640_v46 }
 0x569   : > { %7653 = vmatprep.subr.bf16.mxu0 %v15645_v26 }
 0x56c   : > { %7654 = vmatpush1.bf16.msra.mxu0 %v15643_v57 }
 0x56d   : > { %7984 = vmatprep.subr.bf16.mxu0 %v15648_v50 }
 0x56f   : > { %6372 = vmatmul.mubr.bf16.gmra.mrb[88].mxu1 %v18305_v7 }
 0x570   : > { %6381 = vmatprep.mubr.bf16.mxu1 %v13237_v62  ;;  %v6829_v62 = vld [vmem:[#allocation2 + $0x60] sm:$0x88] }
 0x577   : > { %6382 = vmatmul.mubr.bf16.gmra.mrb[92].mxu1 %v13236_v5  ;;  %v15646_v5 = vld [vmem:[%s20152_s5] ss:$8 sps:$4 sm:$0xff]  }
 0x5d2   : > { %v6233_v42 = vpop.f32.mrb[32].mxu1 }
 0x5d3   : > { %v6468_v56 = vadd.f32 %v18445_v39, %v6233_v42  ;;  %v6235_v2 = vpop.f32.mrb[33].mxu1 }
 0x5d4   : > { %v6469_v15 = vadd.f32 %v18448_v29, %v6235_v2  ;;  %v6237_v48 = vpop.f32.mrb[34].mxu1 }
 0x5d5   : > { %v6532_v40 = vmax.f32 %v6468_v56, 0.0  ;;  %v6470_v63 = vadd.f32 %v18445_v39, %v6237_v48  ;;  %v6239_v43 = vpop.f32.mrb[35].mxu1  ;;  %v15651_v48 = vld [vmem:[%s20152_s5 + $0x14] ss:$8 sps:$4 sm:$0xff]  }
 0x5d6   : > { %v6533_v45 = vmax.f32 %v6469_v15, 0.0  ;;  %v6471_v7 = vadd.f32 %v18448_v29, %v6239_v43  ;;  %v13304_v43 = vrot.slane %v6919_v9, 11  ;;  %v15657_v9 = vld [vmem:[%s20152_s5 + $0x34] ss:$8 sps:$4 sm:$0xff]  }
 0x5d7   : > { %v6534_v34 = vmax.f32 %v6470_v63, 0.0 }
 0x5d8   : > { %v14008_v23 = vpack.c.bf16 %v6533_v45, %v6532_v40  ;;  %v6535_v38 = vmax.f32 %v6471_v7, 0.0 }
 0x5d9   : > { %v18466_v19 = vpack.c.bf16 %v6534_v34, %v6532_v40 }
 0x5da   : > { %6788 = vst [vmem:[#allocation2 + $0x28] sm:$0xff] %v14008_v23  ;;  %v14009_v3 = vpack.c.bf16 %v6535_v38, %v6534_v34  ;;  %v6243_v36 = vpop.f32.mrb[36].mxu1  ;;  %v6902_v27 = vshrl.u32 %v14008_v23, 16  ;;  %v6905_v20 = vshll.u32 %v14008_v23, 16  ;;  %v18462_v44 = vpack.c.bf16 %v6535_v38, %v6533_v45 }
 0x5db   : > { %v18455_v35 = vadd.f32 %v18445_v39, %v6243_v36  ;;  %v6245_v24 = vpop.f32.mrb[37].mxu1  ;;  %v6941_v45 = vshrl.u32 %v6829_v62, 16  ;;  %v15649_v36 = vld [vmem:[%s20152_s5 + $0x10] ss:$8 sps:$4 sm:$0xff]  }
 0x5dc   : > { %6789 = vst [vmem:[#allocation2 + $0x30] sm:$0xff] %v14009_v3  ;;  %v18458_v10 = vadd.f32 %v18448_v29, %v6245_v24  ;;  %v6247_v47 = vpop.f32.mrb[38].mxu1  ;;  %v6904_v22 = vrot.slane %v6902_v27, 7  ;;  %v6911_v32 = vshrl.u32 %v14009_v3, 16  ;;  %v6914_v55 = vshll.u32 %v14009_v3, 16 }
 0x5dd   : > { %v6536_v30 = vmax.f32 %v18455_v35, 0.0  ;;  %v6474_v52 = vadd.f32 %v18445_v39, %v6247_v47  ;;  %v6249_v60 = vpop.f32.mrb[39].mxu1  ;;  %v15654_v35 = vld [vmem:[%s20152_s5 + $0x24] ss:$8 sps:$4 sm:$0xff]  }
 0x5de   : > { %v6537_v58 = vmax.f32 %v18458_v10, 0.0  ;;  %v6475_v17 = vadd.f32 %v18448_v29, %v6249_v60  ;;  %v6907_v8 = vor.u32 %v6905_v20, %v6904_v22  ;;  %v6913_v21 = vrot.slane %v6911_v32, 7  ;;  %v6832_v60 = vld [vmem:[#allocation2 + $0x80] sm:$0x88] }
 0x5df   : > { %v6538_v16 = vmax.f32 %v6474_v52, 0.0  ;;  %v6909_v28 = vrot.slane %v6904_v22, 4  ;;  %v13305_v32 = vrot.slane %v6941_v45, 11 }
 0x5e0   : > { %v14010_v59 = vpack.c.bf16 %v6537_v58, %v6536_v30  ;;  %v6539_v61 = vmax.f32 %v6475_v17, 0.0  ;;  %v6916_v13 = vor.u32 %v6914_v55, %v6913_v21  ;;  %v6908_v33 = vsel %vm16431_vm9, %v13303_v0, %v6907_v8 }
 0x5e1   : > { %v18502_v10 = vpack.c.bf16 %v6538_v16, %v6536_v30 }
 0x5e2   : > { %6790 = vst [vmem:[#allocation2 + $0x48] sm:$0xff] %v14010_v59  ;;  %v14011_v14 = vpack.c.bf16 %v6539_v61, %v6538_v16  ;;  %v6253_v4 = vpop.f32.mrb[40].mxu1  ;;  %v6924_v41 = vshrl.u32 %v14010_v59, 16  ;;  %v6917_v12 = vsel %vm16431_vm9, %v6909_v28, %v6916_v13  ;;  %v6927_v2 = vshll.u32 %v14010_v59, 16  ;;  %v15652_v59 = vld [vmem:[%s20152_s5 + $0x20] ss:$8 sps:$4 sm:$0xff]  }
 0x5e3   : > { %v18469_v1 = vadd.f32 %v18445_v39, %v6253_v4  ;;  %v6255_v53 = vpop.f32.mrb[41].mxu1  ;;  %v18478_v26 = vcombine.low %v6908_v33, %v6917_v12  ;;  %v18480_v57 = vcombine.high %v6908_v33, %v6917_v12  ;;  %v18500_v24 = vpack.c.bf16 %v6539_v61, %v6537_v58 }
 0x5e4   : > { %6791 = vst [vmem:[#allocation2 + $0x50] sm:$0xff] %v14011_v14  ;;  %v18476_v46 = vadd.f32 %v18448_v29, %v6255_v53  ;;  %v6257_v51 = vpop.f32.mrb[42].mxu1  ;;  %v6926_v50 = vrot.slane %v6924_v41, 7  ;;  %v6933_v15 = vshrl.u32 %v14011_v14, 16  ;;  %v6936_v23 = vshll.u32 %v14011_v14, 16 }
 0x5e5   : > { %v6540_v54 = vmax.f32 %v18469_v1, 0.0  ;;  %v6478_v42 = vadd.f32 %v18445_v39, %v6257_v51  ;;  %v6259_v56 = vpop.f32.mrb[43].mxu1  ;;  %7655 = vmatprep.mubr.bf16.mxu0 %v18480_v57  ;;  %v6963_v4 = vshrl.u32 %v6832_v60, 16 }
 0x5e6   : > { %v6541_v40 = vmax.f32 %v18476_v46, 0.0  ;;  %v6479_v63 = vadd.f32 %v18448_v29, %v6259_v56  ;;  %7656 = vmatmul.mubr.bf16.vlgmr.msra.gmra.mrb[32].mxu0 %v18478_v26  ;;  %v6929_v34 = vor.u32 %v6927_v2, %v6926_v50  ;;  %v6935_v49 = vrot.slane %v6933_v15, 7  ;;  %v15660_v15 = vld [vmem:[%s20152_s5 + $0x44] ss:$8 sps:$4 sm:$0xff]  }
 0x5e7   : > { %v6542_v7 = vmax.f32 %v6478_v42, 0.0  ;;  %7985 = vmatpush1.bf16.msra.mxu0 %v15646_v5  ;;  %v6931_v6 = vrot.slane %v6926_v50, 4  ;;  %v15655_v42 = vld [vmem:[%s20152_s5 + $0x30] ss:$8 sps:$4 sm:$0xff]  }
 0x5e8   : > { %v14012_v38 = vpack.c.bf16 %v6541_v40, %v6540_v54  ;;  %v6543_v3 = vmax.f32 %v6479_v63, 0.0  ;;  %v6938_v27 = vor.u32 %v6936_v23, %v6935_v49  ;;  %7986 = vmatprep.subr.bf16.mxu0 %v15651_v48  ;;  %v6930_v0 = vsel %vm16431_vm9, %v13304_v43, %v6929_v34  ;;  %v6835_v43 = vld [vmem:[#allocation2 + $0xa0] sm:$0x88] }
 0x5e9   : > { %v18532_v51 = vpack.c.bf16 %v6542_v7, %v6540_v54  ;;  %v13306_v63 = vrot.slane %v6963_v4, 11  ;;  %v6985_v60 = vshrl.u32 %v6835_v43, 16  ;;  %v15664_v43 = vld [vmem:[%s20152_s5 + $0x60] ss:$8 sps:$4 sm:$0xff]  }
 0x5ea   : > { %6792 = vst [vmem:[#allocation2 + $0x68] sm:$0xff] %v14012_v38  ;;  %v14013_v47 = vpack.c.bf16 %v6543_v3, %v6542_v7  ;;  %v6263_v22 = vpop.f32.mrb[44].mxu1  ;;  %v6946_v52 = vshrl.u32 %v14012_v38, 16  ;;  %v6939_v8 = vsel %vm16431_vm9, %v6931_v6, %v6938_v27  ;;  %v6949_v58 = vshll.u32 %v14012_v38, 16 }
 0x5eb   : > { %v18505_v20 = vadd.f32 %v18445_v39, %v6263_v22  ;;  %v6265_v17 = vpop.f32.mrb[45].mxu1  ;;  %v18514_v21 = vcombine.high %v6930_v0, %v6939_v8  ;;  %v18516_v55 = vcombine.low %v6930_v0, %v6939_v8  ;;  %7987 = vmatpush1.bf16.msra.mxu0 %v15649_v36  ;;  %v18530_v46 = vpack.c.bf16 %v6543_v3, %v6541_v40 }
 0x5ec   : > { %6793 = vst [vmem:[#allocation2 + $0x70] sm:$0xff] %v14013_v47  ;;  %v18512_v30 = vadd.f32 %v18448_v29, %v6265_v17  ;;  %v6267_v16 = vpop.f32.mrb[46].mxu1  ;;  %v6948_v25 = vrot.slane %v6946_v52, 7  ;;  %v6955_v14 = vshrl.u32 %v14013_v47, 16  ;;  %7988 = vmatprep.subr.bf16.mxu0 %v15654_v35  ;;  %v6958_v33 = vshll.u32 %v14013_v47, 16  ;;  %20365 = vst [vmem:[#allocation21_spill] sm:$0xff] %v18532_v51 }
 0x5ed   : > { %v6544_v61 = vmax.f32 %v18505_v20, 0.0  ;;  %v6482_v28 = vadd.f32 %v18445_v39, %v6267_v16  ;;  %v6269_v13 = vpop.f32.mrb[47].mxu1  ;;  %7665 = vmatprep.mubr.bf16.mxu0 %v18514_v21  ;;  %v15658_v35 = vld [vmem:[%s20152_s5 + $0x40] ss:$8 sps:$4 sm:$0xff]   ;;  %v15663_v20 = vld [vmem:[%s20152_s5 + $0x54] ss:$8 sps:$4 sm:$0xff]  }
 0x5ee   : > { %v6545_v41 = vmax.f32 %v18512_v30, 0.0  ;;  %v6483_v1 = vadd.f32 %v18448_v29, %v6269_v13  ;;  %v6951_v53 = vor.u32 %v6949_v58, %v6948_v25  ;;  %7666 = vmatmul.mubr.bf16.gmra.mrb[36].mxu0 %v18516_v55  ;;  %v6957_v62 = vrot.slane %v6955_v14, 7  ;;  %v15661_v14 = vld [vmem:[%s20152_s5 + $0x50] ss:$8 sps:$4 sm:$0xff]  }
 0x5ef   : > { %v6546_v12 = vmax.f32 %v6482_v28, 0.0  ;;  %7989 = vmatpush1.bf16.msra.mxu0 %v15652_v59  ;;  %v6953_v56 = vrot.slane %v6948_v25, 4 }
 0x5f0   : > { %v14014_v5 = vpack.c.bf16 %v6545_v41, %v6544_v61  ;;  %v6547_v50 = vmax.f32 %v6483_v1, 0.0  ;;  %v6960_v2 = vor.u32 %v6958_v33, %v6957_v62  ;;  %7990 = vmatprep.subr.bf16.mxu0 %v15657_v9  ;;  %v6952_v34 = vsel %vm16431_vm9, %v13305_v32, %v6951_v53  ;;  %v15666_v1 = vld [vmem:[%s20152_s5 + $0x64] ss:$8 sps:$4 sm:$0xff]  }
 0x5f1   : > { %v18568_v59 = vpack.c.bf16 %v6546_v12, %v6544_v61  ;;  %v13307_v33 = vrot.slane %v6985_v60, 11 }
 0x5f2   : > { %6794 = vst [vmem:[#allocation2 + $0x88] sm:$0xff] %v14014_v5  ;;  %v14015_v48 = vpack.c.bf16 %v6547_v50, %v6546_v12  ;;  %v6273_v40 = vpop.f32.mrb[48].mxu1  ;;  %v6968_v54 = vshrl.u32 %v14014_v5, 16  ;;  %v6961_v49 = vsel %vm16431_vm9, %v6953_v56, %v6960_v2  ;;  %v6971_v23 = vshll.u32 %v14014_v5, 16  ;;  %v6838_v12 = vld [vmem:[#allocation2 + $0xc0] sm:$0x88] }
 0x5f3   : > { %v18541_v45 = vadd.f32 %v18445_v39, %v6273_v40  ;;  %v6275_v7 = vpop.f32.mrb[49].mxu1  ;;  %v18550_v36 = vcombine.high %v6952_v34, %v6961_v49  ;;  %v18552_v6 = vcombine.low %v6952_v34, %v6961_v49  ;;  %7991 = vmatpush1.bf16.msra.mxu0 %v15655_v42  ;;  %v18566_v25 = vpack.c.bf16 %v6547_v50, %v6545_v41 }
 0x5f4   : > { %6795 = vst [vmem:[#allocation2 + $0x90] sm:$0xff] %v14015_v48  ;;  %v18548_v38 = vadd.f32 %v18448_v29, %v6275_v7  ;;  %v6277_v3 = vpop.f32.mrb[50].mxu1  ;;  %v6970_v27 = vrot.slane %v6968_v54, 7  ;;  %v6977_v52 = vshrl.u32 %v14015_v48, 16  ;;  %7992 = vmatprep.subr.bf16.mxu0 %v15660_v15  ;;  %v6980_v58 = vshll.u32 %v14015_v48, 16  ;;  %20367 = vst [vmem:[#allocation31_spill] sm:$0xff] %v18568_v59 }
 0x5f5   : > { %v6548_v47 = vmax.f32 %v18541_v45, 0.0  ;;  %v6486_v22 = vadd.f32 %v18445_v39, %v6277_v3  ;;  %v6279_v32 = vpop.f32.mrb[51].mxu1  ;;  %7675 = vmatprep.mubr.bf16.mxu0 %v18550_v36  ;;  %20366 = vst [vmem:[#allocation27_spill] sm:$0xff] %v18566_v25  ;;  %v7007_v49 = vshrl.u32 %v6838_v12, 16  ;;  %v6820_v25 = vld [vmem:[#allocation2] sm:$0x88] }
 0x5f6   : > { %v6549_v17 = vmax.f32 %v18548_v38, 0.0  ;;  %v6487_v0 = vadd.f32 %v18448_v29, %v6279_v32  ;;  %v6973_v8 = vor.u32 %v6971_v23, %v6970_v27  ;;  %7676 = vmatmul.mubr.bf16.gmra.mrb[40].mxu0 %v18552_v6  ;;  %v6979_v16 = vrot.slane %v6977_v52, 7  ;;  %v15669_v23 = vld [vmem:[%s20152_s5 + $0x74] ss:$8 sps:$4 sm:$0xff]  }
 0x5f7   : > { %v6550_v30 = vmax.f32 %v6486_v22, 0.0  ;;  %7993 = vmatpush1.bf16.msra.mxu0 %v15658_v35  ;;  %v6975_v4 = vrot.slane %v6970_v27, 4  ;;  %v6875_v51 = vshrl.u32 %v6820_v25, 16 }
 0x5f8   : > { %v14016_v28 = vpack.c.bf16 %v6549_v17, %v6548_v47  ;;  %v6551_v13 = vmax.f32 %v6487_v0, 0.0  ;;  %v6982_v9 = vor.u32 %v6980_v58, %v6979_v16  ;;  %7994 = vmatprep.subr.bf16.mxu0 %v15663_v20  ;;  %v6974_v50 = vsel %vm16431_vm9, %v13306_v63, %v6973_v8  ;;  %v15667_v8 = vld [vmem:[%s20152_s5 + $0x70] ss:$8 sps:$4 sm:$0xff]  }
 0x5f9   : > { %v18604_v60 = vpack.c.bf16 %v6550_v30, %v6548_v47 }
 0x5fa   : > { %6796 = vst [vmem:[#allocation2 + $0xa8] sm:$0xff] %v14016_v28  ;;  %v14017_v53 = vpack.c.bf16 %v6551_v13, %v6550_v30  ;;  %v6283_v41 = vpop.f32.mrb[52].mxu1  ;;  %v6990_v61 = vshrl.u32 %v14016_v28, 16  ;;  %v6983_v42 = vsel %vm16431_vm9, %v6975_v4, %v6982_v9  ;;  %v6993_v56 = vshll.u32 %v14016_v28, 16  ;;  %v15672_v28 = vld [vmem:[%s20152_s5 + $0x84] ss:$8 sps:$4 sm:$0xff]  }
 0x5fb   : > { %v18577_v62 = vadd.f32 %v18445_v39, %v6283_v41  ;;  %v6285_v5 = vpop.f32.mrb[53].mxu1  ;;  %v18586_v48 = vcombine.high %v6974_v50, %v6983_v42  ;;  %v18588_v40 = vcombine.low %v6974_v50, %v6983_v42  ;;  %7995 = vmatpush1.bf16.msra.mxu0 %v15661_v14  ;;  %v18602_v52 = vpack.c.bf16 %v6551_v13, %v6549_v17  ;;  %v6841_v30 = vld [vmem:[#allocation2 + $0xe0] sm:$0x88] }
 0x5fc   : > { %6797 = vst [vmem:[#allocation2 + $0xb0] sm:$0xff] %v14017_v53  ;;  %v18584_v2 = vadd.f32 %v18448_v29, %v6285_v5  ;;  %v6287_v15 = vpop.f32.mrb[54].mxu1  ;;  %v6992_v54 = vrot.slane %v6990_v61, 7  ;;  %v6999_v34 = vshrl.u32 %v14017_v53, 16  ;;  %7996 = vmatprep.subr.bf16.mxu0 %v15666_v1  ;;  %v7002_v35 = vshll.u32 %v14017_v53, 16  ;;  %20369 = vst [vmem:[#allocation30_spill] sm:$0xff] %v18604_v60 }
 0x5fd   : > { %v6552_v63 = vmax.f32 %v18577_v62, 0.0  ;;  %v6490_v45 = vadd.f32 %v18445_v39, %v6287_v15  ;;  %v6289_v7 = vpop.f32.mrb[55].mxu1  ;;  %7685 = vmatprep.mubr.bf16.mxu0 %v18586_v48  ;;  %20368 = vst [vmem:[#allocation26_spill] sm:$0xff] %v18602_v52  ;;  %v13308_v13 = vrot.slane %v7007_v49, 11  ;;  %v15670_v42 = vld [vmem:[%s20152_s5 + $0x80] ss:$8 sps:$4 sm:$0xff]  }
 0x5fe   : > { %v6553_v38 = vmax.f32 %v18584_v2, 0.0  ;;  %v6491_v3 = vadd.f32 %v18448_v29, %v6289_v7  ;;  %v6995_v27 = vor.u32 %v6993_v56, %v6992_v54  ;;  %7686 = vmatmul.mubr.bf16.gmra.mrb[44].mxu0 %v18588_v40  ;;  %v7001_v32 = vrot.slane %v6999_v34, 7  ;;  %v6865_v52 = vld [vmem:[#allocation2 + $0x1e0] sm:$0x88] }
 0x5ff   : > { %v6554_v22 = vmax.f32 %v6490_v45, 0.0  ;;  %7997 = vmatpush1.bf16.msra.mxu0 %v15664_v43  ;;  %v6997_v58 = vrot.slane %v6992_v54, 4  ;;  %v7029_v54 = vshrl.u32 %v6841_v30, 16  ;;  %v15675_v43 = vld [vmem:[%s20152_s5 + $0x94] ss:$8 sps:$4 sm:$0xff]  }
 0x600   : > { %v14018_v20 = vpack.c.bf16 %v6553_v38, %v6552_v63  ;;  %v6555_v0 = vmax.f32 %v6491_v3, 0.0  ;;  %v7004_v16 = vor.u32 %v7002_v35, %v7001_v32  ;;  %7998 = vmatprep.subr.bf16.mxu0 %v15669_v23  ;;  %v6996_v1 = vsel %vm16431_vm9, %v13307_v33, %v6995_v27 }
 0x601   : > { %v18640_v35 = vpack.c.bf16 %v6554_v22, %v6552_v63 }
 0x602   : > { %6798 = vst [vmem:[#allocation2 + $0xc8] sm:$0xff] %v14018_v20  ;;  %v14019_v14 = vpack.c.bf16 %v6555_v0, %v6554_v22  ;;  %v6293_v17 = vpop.f32.mrb[56].mxu1  ;;  %v7012_v47 = vshrl.u32 %v14018_v20, 16  ;;  %v7005_v53 = vsel %vm16431_vm9, %v6997_v58, %v7004_v16  ;;  %v7015_v41 = vshll.u32 %v14018_v20, 16  ;;  %v6844_v22 = vld [vmem:[#allocation2 + $0x100] sm:$0x88] }
 0x603   : > { %v18613_v4 = vadd.f32 %v18445_v39, %v6293_v17  ;;  %v6295_v9 = vpop.f32.mrb[57].mxu1  ;;  %v18622_v62 = vcombine.high %v6996_v1, %v7005_v53  ;;  %v18624_v5 = vcombine.low %v6996_v1, %v7005_v53  ;;  %7999 = vmatpush1.bf16.msra.mxu0 %v15667_v8  ;;  %v18638_v27 = vpack.c.bf16 %v6555_v0, %v6553_v38  ;;  %v15673_v8 = vld [vmem:[%s20152_s5 + $0x90] ss:$8 sps:$4 sm:$0xff]  }
 0x604   : > { %6799 = vst [vmem:[#allocation2 + $0xd0] sm:$0xff] %v14019_v14  ;;  %v18620_v61 = vadd.f32 %v18448_v29, %v6295_v9  ;;  %v6297_v12 = vpop.f32.mrb[58].mxu1  ;;  %v7014_v50 = vrot.slane %v7012_v47, 7  ;;  %v7021_v15 = vshrl.u32 %v14019_v14, 16  ;;  %8000 = vmatprep.subr.bf16.mxu0 %v15672_v28  ;;  %v7024_v49 = vshll.u32 %v14019_v14, 16  ;;  %20371 = vst [vmem:[#allocation15_spill] sm:$0xff] %v18640_v35 }
 0x605   : > { %v6556_v33 = vmax.f32 %v18613_v4, 0.0  ;;  %v6494_v56 = vadd.f32 %v18445_v39, %v6297_v12  ;;  %v6299_v2 = vpop.f32.mrb[59].mxu1  ;;  %7695 = vmatprep.mubr.bf16.mxu0 %v18622_v62  ;;  %20370 = vst [vmem:[#allocation13_spill] sm:$0xff] %v18638_v27  ;;  %v15678_v28 = vld [vmem:[%s20152_s5 + $0xa4] ss:$8 sps:$4 sm:$0xff]   ;;  %v13309_v0 = vrot.slane %v7029_v54, 11 }
 0x606   : > { %v6557_v45 = vmax.f32 %v18620_v61, 0.0  ;;  %v6495_v7 = vadd.f32 %v18448_v29, %v6299_v2  ;;  %v7017_v34 = vor.u32 %v7015_v41, %v7014_v50  ;;  %7696 = vmatmul.mubr.bf16.gmra.mrb[48].mxu0 %v18624_v5  ;;  %v7023_v3 = vrot.slane %v7021_v15, 7  ;;  %v15681_v54 = vld [vmem:[%s20152_s5 + $0xb4] ss:$8 sps:$4 sm:$0xff]   ;;  %v6862_v27 = vld [vmem:[#allocation2 + $0x1c0] sm:$0x88] }
 0x607   : > { %v6558_v23 = vmax.f32 %v6494_v56, 0.0  ;;  %8001 = vmatpush1.bf16.msra.mxu0 %v15670_v42  ;;  %v7019_v58 = vrot.slane %v7014_v50, 4  ;;  %v15676_v50 = vld [vmem:[%s20152_s5 + $0xa0] ss:$8 sps:$4 sm:$0xff]   ;;  %v7051_v15 = vshrl.u32 %v6844_v22, 16 }
 0x608   : > { %v14020_v32 = vpack.c.bf16 %v6557_v45, %v6556_v33  ;;  %v6559_v20 = vmax.f32 %v6495_v7, 0.0  ;;  %v7026_v16 = vor.u32 %v7024_v49, %v7023_v3  ;;  %8002 = vmatprep.subr.bf16.mxu0 %v15675_v43  ;;  %v7018_v30 = vsel %vm16431_vm9, %v13308_v13, %v7017_v34 }
 0x60a   : > { %6800 = vst [vmem:[#allocation2 + $0xe8] sm:$0xff] %v14020_v32  ;;  %v14021_v14 = vpack.c.bf16 %v6559_v20, %v6558_v23  ;;  %v6303_v38 = vpop.f32.mrb[60].mxu1  ;;  %v7034_v63 = vshrl.u32 %v14020_v32, 16  ;;  %v7027_v4 = vsel %vm16431_vm9, %v7019_v58, %v7026_v16  ;;  %v7037_v9 = vshll.u32 %v14020_v32, 16 }
 0x60b   : > { %v18649_v17 = vadd.f32 %v18445_v39, %v6303_v38  ;;  %v6305_v47 = vpop.f32.mrb[61].mxu1  ;;  %v18658_v41 = vcombine.high %v7018_v30, %v7027_v4  ;;  %v18660_v61 = vcombine.low %v7018_v30, %v7027_v4  ;;  %8003 = vmatpush1.bf16.msra.mxu0 %v15673_v8  ;;  %v18674_v8 = vpack.c.bf16 %v6559_v20, %v6557_v45  ;;  %v15679_v38 = vld [vmem:[%s20152_s5 + $0xb0] ss:$8 sps:$4 sm:$0xff]  }
 0x60c   : > { %6801 = vst [vmem:[#allocation2 + $0xf0] sm:$0xff] %v14021_v14  ;;  %v18656_v1 = vadd.f32 %v18448_v29, %v6305_v47  ;;  %v6307_v53 = vpop.f32.mrb[62].mxu1  ;;  %v7036_v12 = vrot.slane %v7034_v63, 7  ;;  %v7043_v2 = vshrl.u32 %v14021_v14, 16  ;;  %8004 = vmatprep.subr.bf16.mxu0 %v15678_v28  ;;  %v7046_v49 = vshll.u32 %v14021_v14, 16 }
 0x60d   : > { %v6560_v13 = vmax.f32 %v18649_v17, 0.0  ;;  %v6498_v42 = vadd.f32 %v18445_v39, %v6307_v53  ;;  %v6309_v56 = vpop.f32.mrb[63].mxu1  ;;  %7705 = vmatprep.mubr.bf16.mxu0 %v18658_v41  ;;  %20372 = vst [vmem:[#allocation10_spill] sm:$0xff] %v18674_v8  ;;  %v18676_v58 = vpack.c.bf16 %v6558_v23, %v6556_v33  ;;  %v15684_v14 = vld [vmem:[%s20152_s5 + $0xc4] ss:$8 sps:$4 sm:$0xff]   ;;  %v13310_v20 = vrot.slane %v7051_v15, 11 }
 0x60e   : > { %v6561_v43 = vmax.f32 %v18656_v1, 0.0  ;;  %v6499_v7 = vadd.f32 %v18448_v29, %v6309_v56  ;;  %v7039_v34 = vor.u32 %v7037_v9, %v7036_v12  ;;  %7706 = vmatmul.mubr.bf16.gmra.mrb[52].mxu0 %v18660_v61  ;;  %v7045_v32 = vrot.slane %v7043_v2, 7  ;;  %v6847_v23 = vld [vmem:[#allocation2 + $0x120] sm:$0x88] }
 0x60f   : > { %v6562_v3 = vmax.f32 %v6498_v42, 0.0  ;;  %20373 = vst [vmem:[#allocation14_spill] sm:$0xff] %v18676_v58  ;;  %8005 = vmatpush1.bf16.msra.mxu0 %v15676_v50  ;;  %v7041_v63 = vrot.slane %v7036_v12, 4  ;;  %v15682_v2 = vld [vmem:[%s20152_s5 + $0xc0] ss:$8 sps:$4 sm:$0xff]  }
 0x610   : > { %v14022_v16 = vpack.c.bf16 %v6561_v43, %v6560_v13  ;;  %v6563_v28 = vmax.f32 %v6499_v7, 0.0  ;;  %v7048_v22 = vor.u32 %v7046_v49, %v7045_v32  ;;  %8006 = vmatprep.subr.bf16.mxu0 %v15681_v54  ;;  %v7040_v4 = vsel %vm16431_vm9, %v13309_v0, %v7039_v34  ;;  %v15687_v49 = vld [vmem:[%s20152_s5 + $0xd4] ss:$8 sps:$4 sm:$0xff]   ;;  %v6859_v8 = vld [vmem:[#allocation2 + $0x1a0] sm:$0x88] }
 0x611   : > { %v7073_v34 = vshrl.u32 %v6847_v23, 16  ;;  %v18712_v23 = vpack.c.bf16 %v6562_v3, %v6560_v13 }
 0x612   : > { %6802 = vst [vmem:[#allocation2 + $0x108] sm:$0xff] %v14022_v16  ;;  %v14023_v17 = vpack.c.bf16 %v6563_v28, %v6562_v3  ;;  %v6313_v45 = vpop.f32.mrb[64].mxu1  ;;  %v7056_v33 = vshrl.u32 %v14022_v16, 16  ;;  %v7049_v9 = vsel %vm16431_vm9, %v7041_v63, %v7048_v22  ;;  %v7059_v1 = vshll.u32 %v14022_v16, 16  ;;  %v6850_v3 = vld [vmem:[#allocation2 + $0x140] sm:$0x88] }
 0x613   : > { %v18685_v47 = vadd.f32 %v18445_v39, %v6313_v45  ;;  %v6315_v30 = vpop.f32.mrb[65].mxu1  ;;  %v18694_v50 = vcombine.high %v7040_v4, %v7049_v9  ;;  %v18696_v42 = vcombine.low %v7040_v4, %v7049_v9  ;;  %8007 = vmatpush1.bf16.msra.mxu0 %v15679_v38  ;;  %20375 = vst [vmem:[#allocation25_spill] sm:$0xff] %v18712_v23 }
 0x614   : > { %6803 = vst [vmem:[#allocation2 + $0x110] sm:$0xff] %v14023_v17  ;;  %v18692_v53 = vadd.f32 %v18448_v29, %v6315_v30  ;;  %v6317_v12 = vpop.f32.mrb[66].mxu1  ;;  %v7058_v56 = vrot.slane %v7056_v33, 7  ;;  %v7065_v7 = vshrl.u32 %v14023_v17, 16  ;;  %8008 = vmatprep.subr.bf16.mxu0 %v15684_v14  ;;  %v7068_v63 = vshll.u32 %v14023_v17, 16 }
 0x615   : > { %v6564_v0 = vmax.f32 %v18685_v47, 0.0  ;;  %v6502_v15 = vadd.f32 %v18445_v39, %v6317_v12  ;;  %v6319_v54 = vpop.f32.mrb[67].mxu1  ;;  %7715 = vmatprep.mubr.bf16.mxu0 %v18694_v50  ;;  %v18710_v33 = vpack.c.bf16 %v6563_v28, %v6561_v43  ;;  %v15685_v30 = vld [vmem:[%s20152_s5 + $0xd0] ss:$8 sps:$4 sm:$0xff]   ;;  %v15690_v17 = vld [vmem:[%s20152_s5 + $0xe4] ss:$8 sps:$4 sm:$0xff]  }
 0x616   : > { %v6565_v32 = vmax.f32 %v18692_v53, 0.0  ;;  %v6503_v16 = vadd.f32 %v18448_v29, %v6319_v54  ;;  %v7061_v38 = vor.u32 %v7059_v1, %v7058_v56  ;;  %7716 = vmatmul.mubr.bf16.gmra.mrb[56].mxu0 %v18696_v42  ;;  %v7067_v45 = vrot.slane %v7065_v7, 7 }
 0x617   : > { %v6566_v22 = vmax.f32 %v6502_v15, 0.0  ;;  %20374 = vst [vmem:[#allocation23_spill] sm:$0xff] %v18710_v33  ;;  %8009 = vmatpush1.bf16.msra.mxu0 %v15682_v2  ;;  %v7063_v4 = vrot.slane %v7058_v56, 4  ;;  %v13311_v28 = vrot.slane %v7073_v34, 11  ;;  %v6856_v33 = vld [vmem:[#allocation2 + $0x180] sm:$0x88] }
 0x618   : > { %v14024_v14 = vpack.c.bf16 %v6565_v32, %v6564_v0  ;;  %v6567_v47 = vmax.f32 %v6503_v16, 0.0  ;;  %v7070_v9 = vor.u32 %v7068_v63, %v7067_v45  ;;  %8010 = vmatprep.subr.bf16.mxu0 %v15687_v49  ;;  %v7062_v2 = vsel %vm16431_vm9, %v13310_v20, %v7061_v38  ;;  %v15688_v63 = vld [vmem:[%s20152_s5 + $0xe0] ss:$8 sps:$4 sm:$0xff]  }
 0x61a   : > { %6804 = vst [vmem:[#allocation2 + $0x128] sm:$0xff] %v14024_v14  ;;  %v14025_v1 = vpack.c.bf16 %v6567_v47, %v6566_v22  ;;  %v6323_v43 = vpop.f32.mrb[68].mxu1  ;;  %v7078_v13 = vshrl.u32 %v14024_v14, 16  ;;  %v7071_v56 = vsel %vm16431_vm9, %v7063_v4, %v7070_v9  ;;  %v7081_v15 = vshll.u32 %v14024_v14, 16  ;;  %v15693_v9 = vld [vmem:[%s20152_s5 + $0xf4] ss:$8 sps:$4 sm:$0xff]  }
 0x61b   : > { %v18721_v53 = vadd.f32 %v18445_v39, %v6323_v43  ;;  %v6325_v12 = vpop.f32.mrb[69].mxu1  ;;  %v18730_v49 = vcombine.high %v7062_v2, %v7071_v56  ;;  %v18732_v34 = vcombine.low %v7062_v2, %v7071_v56  ;;  %8011 = vmatpush1.bf16.msra.mxu0 %v15685_v30  ;;  %v7095_v4 = vshrl.u32 %v6850_v3, 16 }
 0x61c   : > { %6805 = vst [vmem:[#allocation2 + $0x130] sm:$0xff] %v14025_v1  ;;  %v18728_v54 = vadd.f32 %v18448_v29, %v6325_v12  ;;  %v6327_v7 = vpop.f32.mrb[70].mxu1  ;;  %v7080_v16 = vrot.slane %v7078_v13, 7  ;;  %v7087_v14 = vshrl.u32 %v14025_v1, 16  ;;  %8012 = vmatprep.subr.bf16.mxu0 %v15690_v17  ;;  %v7090_v12 = vshll.u32 %v14025_v1, 16 }
 0x61d   : > { %v6568_v20 = vmax.f32 %v18721_v53, 0.0  ;;  %v6506_v38 = vadd.f32 %v18445_v39, %v6327_v7  ;;  %v6329_v45 = vpop.f32.mrb[71].mxu1  ;;  %7725 = vmatprep.mubr.bf16.mxu0 %v18730_v49  ;;  %v18746_v56 = vpack.c.bf16 %v6567_v47, %v6565_v32  ;;  %v18748_v3 = vpack.c.bf16 %v6566_v22, %v6564_v0  ;;  %v15696_v1 = vld [vmem:[%s20152_s5 + $0x604] ss:$8 sps:$4 sm:$0xff]  }
 0x61e   : > { %v6569_v43 = vmax.f32 %v18728_v54, 0.0  ;;  %v6507_v30 = vadd.f32 %v18448_v29, %v6329_v45  ;;  %v7083_v13 = vor.u32 %v7081_v15, %v7080_v16  ;;  %7726 = vmatmul.mubr.bf16.gmra.mrb[60].mxu0 %v18732_v34  ;;  %v7089_v53 = vrot.slane %v7087_v14, 7  ;;  %v15691_v54 = vld [vmem:[%s20152_s5 + $0xf0] ss:$8 sps:$4 sm:$0xff]   ;;  %v6853_v22 = vld [vmem:[#allocation2 + $0x160] sm:$0x88] }
 0x61f   : > { %v6570_v2 = vmax.f32 %v6506_v38, 0.0  ;;  %20376 = vst [vmem:[#allocation22_spill] sm:$0xff] %v18746_v56  ;;  %20377 = vst [vmem:[#allocation24_spill] sm:$0xff] %v18748_v3  ;;  %8013 = vmatpush1.bf16.msra.mxu0 %v15688_v63  ;;  %v7085_v45 = vrot.slane %v7080_v16, 4  ;;  %v13312_v47 = vrot.slane %v7095_v4, 11 }
 0x620   : > { %v14026_v17 = vpack.c.bf16 %v6569_v43, %v6568_v20  ;;  %v6571_v7 = vmax.f32 %v6507_v30, 0.0  ;;  %v7092_v11 = vor.u32 %v7090_v12, %v7089_v53  ;;  %8014 = vmatprep.subr.bf16.mxu0 %v15693_v9  ;;  %v7084_v14 = vsel %vm16431_vm9, %v13311_v28, %v7083_v13 }
 0x621   : > { %v7117_v13 = vshrl.u32 %v6853_v22, 16 }
 0x622   : > { %6806 = vst [vmem:[#allocation2 + $0x148] sm:$0xff] %v14026_v17  ;;  %v14027_v15 = vpack.c.bf16 %v6571_v7, %v6570_v2  ;;  %v6333_v32 = vpop.f32.mrb[72].mxu1  ;;  %v7100_v0 = vshrl.u32 %v14026_v17, 16  ;;  %v7093_v16 = vsel %vm16431_vm9, %v7085_v45, %v7092_v11  ;;  %v7103_v9 = vshll.u32 %v14026_v17, 16 }
 0x623   : > { %v18757_v38 = vadd.f32 %v18445_v39, %v6333_v32  ;;  %v6335_v63 = vpop.f32.mrb[73].mxu1  ;;  %v18764_v53 = vcombine.high %v7084_v14, %v7093_v16  ;;  %v18766_v4 = vcombine.low %v7084_v14, %v7093_v16  ;;  %8015 = vmatpush1.bf16.msra.mxu0 %v15691_v54  ;;  %v18773_v54 = vpack.c.bf16 %v6571_v7, %v6569_v43 }
 0x624   : > { %6807 = vst [vmem:[#allocation2 + $0x150] sm:$0xff] %v14027_v15  ;;  %v6509_v30 = vadd.f32 %v18448_v29, %v6335_v63  ;;  %v6337_v12 = vpop.f32.mrb[74].mxu1  ;;  %v7102_v18 = vrot.slane %v7100_v0, 7  ;;  %v7109_v28 = vshrl.u32 %v14027_v15, 16  ;;  %8378 = vmatprep.subr.bf16.mxu0 %v15696_v1  ;;  %v7112_v63 = vshll.u32 %v14027_v15, 16 }
 0x625   : > { %v6572_v32 = vmax.f32 %v18757_v38, 0.0  ;;  %v6510_v31 = vadd.f32 %v18445_v39, %v6337_v12  ;;  %v6339_v3 = vpop.f32.mrb[75].mxu1  ;;  %7735 = vmatprep.mubr.bf16.mxu0 %v18764_v53  ;;  %20378 = vst [vmem:[#allocation3_spill] sm:$0xff] %v18773_v54  ;;  %v18775_v38 = vpack.c.bf16 %v6570_v2, %v6568_v20 }
 0x626   : > { %v6573_v11 = vmax.f32 %v6509_v30, 0.0  ;;  %v6511_v17 = vadd.f32 %v18448_v29, %v6339_v3  ;;  %v7105_v45 = vor.u32 %v7103_v9, %v7102_v18  ;;  %7736 = vmatmul.mubr.bf16.gmra.mrb[64].mxu0 %v18766_v4  ;;  %v7111_v0 = vrot.slane %v7109_v28, 7 }
 0x627   : > { %v6574_v56 = vmax.f32 %v6510_v31, 0.0  ;;  %20379 = vst [vmem:[#allocation7_spill] sm:$0xff] %v18775_v38  ;;  %v7107_v12 = vrot.slane %v7102_v18, 4  ;;  %v13313_v3 = vrot.slane %v7117_v13, 11  ;;  %v7139_v38 = vshrl.u32 %v6856_v33, 16 }
 0x628   : > { %v14028_v14 = vpack.c.bf16 %v6573_v11, %v6572_v32  ;;  %v6575_v16 = vmax.f32 %v6511_v17, 0.0  ;;  %v7114_v22 = vor.u32 %v7112_v63, %v7111_v0  ;;  %v7106_v9 = vsel %vm16431_vm9, %v13312_v47, %v7105_v45 }
 0x62a   : > { %6808 = vst [vmem:[#allocation2 + $0x168] sm:$0xff] %v14028_v14  ;;  %v14029_v1 = vpack.c.bf16 %v6575_v16, %v6574_v56  ;;  %v6343_v30 = vpop.f32.mrb[76].mxu1  ;;  %v7122_v23 = vshrl.u32 %v14028_v14, 16  ;;  %v7115_v20 = vsel %vm16431_vm9, %v7107_v12, %v7114_v22  ;;  %v7125_v43 = vshll.u32 %v14028_v14, 16 }
 0x62b   : > { %v6512_v15 = vadd.f32 %v18445_v39, %v6343_v30  ;;  %v6345_v31 = vpop.f32.mrb[77].mxu1  ;;  %v18783_v7 = vcombine.high %v7106_v9, %v7115_v20  ;;  %v18785_v28 = vcombine.low %v7106_v9, %v7115_v20  ;;  %v18791_v9 = vpack.c.bf16 %v6575_v16, %v6573_v11 }
 0x62c   : > { %6809 = vst [vmem:[#allocation2 + $0x170] sm:$0xff] %v14029_v1  ;;  %v6513_v18 = vadd.f32 %v18448_v29, %v6345_v31  ;;  %v6347_v2 = vpop.f32.mrb[78].mxu1  ;;  %v7124_v13 = vrot.slane %v7122_v23, 7  ;;  %v7131_v30 = vshrl.u32 %v14029_v1, 16  ;;  %v7134_v12 = vshll.u32 %v14029_v1, 16 }
 0x62d   : > { %v6576_v17 = vmax.f32 %v6512_v15, 0.0  ;;  %v6514_v63 = vadd.f32 %v18445_v39, %v6347_v2  ;;  %v6349_v0 = vpop.f32.mrb[79].mxu1  ;;  %7745 = vmatprep.mubr.bf16.mxu0 %v18783_v7  ;;  %20380 = vst [vmem:[#allocation6_spill] sm:$0xff] %v18791_v9  ;;  %v18793_v23 = vpack.c.bf16 %v6574_v56, %v6572_v32 }
 0x62e   : > { %v6577_v47 = vmax.f32 %v6513_v18, 0.0  ;;  %v6515_v45 = vadd.f32 %v18448_v29, %v6349_v0  ;;  %v7127_v14 = vor.u32 %v7125_v43, %v7124_v13  ;;  %7746 = vmatmul.mubr.bf16.gmra.mrb[68].mxu0 %v18785_v28  ;;  %v7133_v31 = vrot.slane %v7131_v30, 7 }
 0x62f   : > { %v6578_v22 = vmax.f32 %v6514_v63, 0.0  ;;  %20381 = vst [vmem:[#allocation8_spill] sm:$0xff] %v18793_v23  ;;  %v7129_v2 = vrot.slane %v7124_v13, 4  ;;  %v13314_v0 = vrot.slane %v7139_v38, 11  ;;  %v7161_v23 = vshrl.u32 %v6859_v8, 16 }
 0x630   : > { %v14030_v15 = vpack.c.bf16 %v6577_v47, %v6576_v17  ;;  %v6579_v20 = vmax.f32 %v6515_v45, 0.0  ;;  %v7136_v54 = vor.u32 %v7134_v12, %v7133_v31  ;;  %v7128_v63 = vsel %vm16431_vm9, %v13313_v3, %v7127_v14 }
 0x632   : > { %6810 = vst [vmem:[#allocation2 + $0x188] sm:$0xff] %v14030_v15  ;;  %v14031_v33 = vpack.c.bf16 %v6579_v20, %v6578_v22  ;;  %v6353_v18 = vpop.f32.mrb[80].mxu1  ;;  %v7144_v58 = vshrl.u32 %v14030_v15, 16  ;;  %v7137_v56 = vsel %vm16431_vm9, %v7129_v2, %v7136_v54  ;;  %v7147_v32 = vshll.u32 %v14030_v15, 16 }
 0x633   : > { %v6516_v1 = vadd.f32 %v18445_v39, %v6353_v18  ;;  %v6355_v43 = vpop.f32.mrb[81].mxu1  ;;  %v18801_v13 = vcombine.high %v7128_v63, %v7137_v56  ;;  %v18803_v30 = vcombine.low %v7128_v63, %v7137_v56  ;;  %v18809_v63 = vpack.c.bf16 %v6579_v20, %v6577_v47 }
 0x634   : > { %6811 = vst [vmem:[#allocation2 + $0x190] sm:$0xff] %v14031_v33  ;;  %v6517_v11 = vadd.f32 %v18448_v29, %v6355_v43  ;;  %v6357_v16 = vpop.f32.mrb[82].mxu1  ;;  %v7146_v38 = vrot.slane %v7144_v58, 7  ;;  %v7153_v18 = vshrl.u32 %v14031_v33, 16  ;;  %v7156_v15 = vshll.u32 %v14031_v33, 16 }
 0x635   : > { %v6580_v45 = vmax.f32 %v6516_v1, 0.0  ;;  %v6518_v12 = vadd.f32 %v18445_v39, %v6357_v16  ;;  %v6359_v31 = vpop.f32.mrb[83].mxu1  ;;  %7755 = vmatprep.mubr.bf16.mxu0 %v18801_v13  ;;  %20382 = vst [vmem:[#allocation9_spill] sm:$0xff] %v18809_v63  ;;  %v18811_v58 = vpack.c.bf16 %v6578_v22, %v6576_v17 }
 0x636   : > { %v6581_v3 = vmax.f32 %v6517_v11, 0.0  ;;  %v6519_v14 = vadd.f32 %v18448_v29, %v6359_v31  ;;  %v7149_v54 = vor.u32 %v7147_v32, %v7146_v38  ;;  %7756 = vmatmul.mubr.bf16.gmra.mrb[72].mxu0 %v18803_v30  ;;  %v7155_v43 = vrot.slane %v7153_v18, 7 }
 0x637   : > { %v6582_v2 = vmax.f32 %v6518_v12, 0.0  ;;  %20383 = vst [vmem:[#allocation11_spill] sm:$0xff] %v18811_v58  ;;  %v7151_v16 = vrot.slane %v7146_v38, 4  ;;  %v13315_v31 = vrot.slane %v7161_v23, 11  ;;  %v7183_v58 = vshrl.u32 %v6862_v27, 16 }
 0x638   : > { %v14032_v1 = vpack.c.bf16 %v6581_v3, %v6580_v45  ;;  %v6583_v56 = vmax.f32 %v6519_v14, 0.0  ;;  %v7158_v9 = vor.u32 %v7156_v15, %v7155_v43  ;;  %v7150_v12 = vsel %vm16431_vm9, %v13314_v0, %v7149_v54 }
 0x63a   : > { %6812 = vst [vmem:[#allocation2 + $0x1a8] sm:$0xff] %v14032_v1  ;;  %v14033_v8 = vpack.c.bf16 %v6583_v56, %v6582_v2  ;;  %v6363_v11 = vpop.f32.mrb[84].mxu1  ;;  %v7166_v35 = vshrl.u32 %v14032_v1, 16  ;;  %v7159_v17 = vsel %vm16431_vm9, %v7151_v16, %v7158_v9  ;;  %v7169_v47 = vshll.u32 %v14032_v1, 16 }
 0x63b   : > { %v6520_v33 = vadd.f32 %v18445_v39, %v6363_v11  ;;  %v6365_v32 = vpop.f32.mrb[85].mxu1  ;;  %v18819_v38 = vcombine.high %v7150_v12, %v7159_v17  ;;  %v18821_v18 = vcombine.low %v7150_v12, %v7159_v17  ;;  %v18827_v12 = vpack.c.bf16 %v6583_v56, %v6581_v3 }
 0x63c   : > { %6813 = vst [vmem:[#allocation2 + $0x1b0] sm:$0xff] %v14033_v8  ;;  %v6521_v22 = vadd.f32 %v18448_v29, %v6365_v32  ;;  %v6367_v20 = vpop.f32.mrb[86].mxu1  ;;  %v7168_v23 = vrot.slane %v7166_v35, 7  ;;  %v7175_v11 = vshrl.u32 %v14033_v8, 16  ;;  %v7178_v1 = vshll.u32 %v14033_v8, 16 }
 0x63d   : > { %v6584_v14 = vmax.f32 %v6520_v33, 0.0  ;;  %v6522_v15 = vadd.f32 %v18445_v39, %v6367_v20  ;;  %v6369_v43 = vpop.f32.mrb[87].mxu1  ;;  %7765 = vmatprep.mubr.bf16.mxu0 %v18819_v38  ;;  %20384 = vst [vmem:[#allocation12_spill] sm:$0xff] %v18827_v12  ;;  %v18829_v35 = vpack.c.bf16 %v6582_v2, %v6580_v45 }
 0x63e   : > { %v6585_v0 = vmax.f32 %v6521_v22, 0.0  ;;  %v6523_v54 = vadd.f32 %v18448_v29, %v6369_v43  ;;  %v7171_v9 = vor.u32 %v7169_v47, %v7168_v23  ;;  %7766 = vmatmul.mubr.bf16.gmra.mrb[76].mxu0 %v18821_v18  ;;  %v7177_v32 = vrot.slane %v7175_v11, 7 }
 0x63f   : > { %v6586_v16 = vmax.f32 %v6522_v15, 0.0  ;;  %20385 = vst [vmem:[#allocation16_spill] sm:$0xff] %v18829_v35  ;;  %v7173_v20 = vrot.slane %v7168_v23, 4  ;;  %v13316_v43 = vrot.slane %v7183_v58, 11 }
 0x640   : > { %v14034_v33 = vpack.c.bf16 %v6585_v0, %v6584_v14  ;;  %v6587_v17 = vmax.f32 %v6523_v54, 0.0  ;;  %v7180_v63 = vor.u32 %v7178_v1, %v7177_v32  ;;  %v7172_v3 = vsel %vm16431_vm9, %v13315_v31, %v7171_v9 }
 0x641   : > { %v7205_v31 = vshrl.u32 %v6865_v52, 16 }
 0x642   : > { %6814 = vst [vmem:[#allocation2 + $0x1c8] sm:$0xff] %v14034_v33  ;;  %v14035_v27 = vpack.c.bf16 %v6587_v17, %v6586_v16  ;;  %v6373_v22 = vpop.f32.mrb[88].mxu1  ;;  %v7188_v60 = vshrl.u32 %v14034_v33, 16  ;;  %v7181_v45 = vsel %vm16431_vm9, %v7173_v20, %v7180_v63  ;;  %v7191_v2 = vshll.u32 %v14034_v33, 16 }
 0x643   : > { %v18832_v8 = vadd.f32 %v18445_v39, %v6373_v22  ;;  %v6375_v47 = vpop.f32.mrb[89].mxu1  ;;  %v18839_v15 = vcombine.high %v7172_v3, %v7181_v45  ;;  %v18841_v58 = vcombine.low %v7172_v3, %v7181_v45  ;;  %v18848_v45 = vpack.c.bf16 %v6587_v17, %v6585_v0 }
 0x644   : > { %6815 = vst [vmem:[#allocation2 + $0x1d0] sm:$0xff] %v14035_v27  ;;  %v6525_v56 = vadd.f32 %v18448_v29, %v6375_v47  ;;  %v6377_v23 = vpop.f32.mrb[90].mxu1  ;;  %v7190_v11 = vrot.slane %v7188_v60, 7  ;;  %v7197_v22 = vshrl.u32 %v14035_v27, 16  ;;  %v7200_v20 = vshll.u32 %v14035_v27, 16 }
 0x645   : > { %v6588_v54 = vmax.f32 %v18832_v8, 0.0  ;;  %v6526_v1 = vadd.f32 %v18445_v39, %v6377_v23  ;;  %v6379_v32 = vpop.f32.mrb[91].mxu1  ;;  %7775 = vmatprep.mubr.bf16.mxu0 %v18839_v15  ;;  %20386 = vst [vmem:[#allocation17_spill] sm:$0xff] %v18848_v45  ;;  %v18850_v60 = vpack.c.bf16 %v6586_v16, %v6584_v14 }
 0x646   : > { %v6589_v9 = vmax.f32 %v6525_v56, 0.0  ;;  %v6527_v63 = vadd.f32 %v18448_v29, %v6379_v32  ;;  %v7193_v33 = vor.u32 %v7191_v2, %v7190_v11  ;;  %7776 = vmatmul.mubr.bf16.gmra.mrb[80].mxu0 %v18841_v58  ;;  %v7199_v3 = vrot.slane %v7197_v22, 7  ;;  %v18852_v2 = vld [vmem:[#allocation2] sm:$0xff] }
 0x647   : > { %v6590_v47 = vmax.f32 %v6526_v1, 0.0  ;;  %20387 = vst [vmem:[#allocation19_spill] sm:$0xff] %v18850_v60  ;;  %v7195_v35 = vrot.slane %v7190_v11, 4  ;;  %v13317_v32 = vrot.slane %v7205_v31, 11  ;;  %v6880_v27 = vshrl.u32 %v18852_v2, 16 }
 0x648   : > { %v14036_v8 = vpack.c.bf16 %v6589_v9, %v6588_v54  ;;  %v6591_v23 = vmax.f32 %v6527_v63, 0.0  ;;  %v7202_v12 = vor.u32 %v7200_v20, %v7199_v3  ;;  %v7194_v14 = vsel %vm16431_vm9, %v13316_v43, %v7193_v33 }
 0x64a   : > { %6816 = vst [vmem:[#allocation2 + $0x1e8] sm:$0xff] %v14036_v8  ;;  %v14037_v52 = vpack.c.bf16 %v6591_v23, %v6590_v47  ;;  %v6383_v56 = vpop.f32.mrb[92].mxu1  ;;  %v7210_v59 = vshrl.u32 %v14036_v8, 16  ;;  %v7203_v16 = vsel %vm16431_vm9, %v7195_v35, %v7202_v12  ;;  %v7213_v17 = vshll.u32 %v14036_v8, 16 }
 0x64b   : > { %v6528_v1 = vadd.f32 %v18445_v39, %v6383_v56  ;;  %v6385_v0 = vpop.f32.mrb[93].mxu1  ;;  %v18861_v31 = vcombine.high %v7194_v14, %v7203_v16  ;;  %v18863_v63 = vcombine.low %v7194_v14, %v7203_v16  ;;  %v6868_v14 = vld [vmem:[#allocation2 + $0x200] sm:$0x88]  ;;  %v18869_v16 = vpack.c.bf16 %v6591_v23, %v6589_v9 }
 0x64c   : > { %6817 = vst [vmem:[#allocation2 + $0x1f0] sm:$0xff] %v14037_v52  ;;  %v6529_v11 = vadd.f32 %v18448_v29, %v6385_v0  ;;  %v6387_v22 = vpop.f32.mrb[94].mxu1  ;;  %v7212_v20 = vrot.slane %v7210_v59, 7  ;;  %v7219_v45 = vshrl.u32 %v14037_v52, 16  ;;  %v7222_v35 = vshll.u32 %v14037_v52, 16 }
 0x64d   : > { %v6592_v3 = vmax.f32 %v6528_v1, 0.0  ;;  %v6530_v56 = vadd.f32 %v18445_v39, %v6387_v22  ;;  %v6389_v60 = vpop.f32.mrb[95].mxu1  ;;  %7785 = vmatprep.mubr.bf16.mxu0 %v18861_v31  ;;  %v18871_v59 = vpack.c.bf16 %v6590_v47, %v6588_v54  ;;  %v13302_v54 = vrot.slane %v6875_v51, 11 }
 0x64e   : > { %v6593_v43 = vmax.f32 %v6529_v11, 0.0  ;;  %v6531_v33 = vadd.f32 %v18448_v29, %v6389_v60  ;;  %v7215_v12 = vor.u32 %v7213_v17, %v7212_v20  ;;  %7786 = vmatmul.mubr.bf16.gmra.mrb[84].mxu0 %v18863_v63  ;;  %v7221_v0 = vrot.slane %v7219_v45, 7 }
 0x64f   : > { %v6594_v8 = vmax.f32 %v6530_v56, 0.0  ;;  %v7217_v22 = vrot.slane %v7212_v20, 4  ;;  %v6882_v11 = vrot.slane %v6880_v27, 7  ;;  %v6883_v29 = vshll.u32 %v18852_v2, 16 }
 0x650   : > { %v14038_v39 = vpack.c.bf16 %v6593_v43, %v6592_v3  ;;  %v6595_v1 = vmax.f32 %v6531_v33, 0.0  ;;  %v7224_v25 = vor.u32 %v7222_v35, %v7221_v0  ;;  %v7227_v17 = vshrl.u32 %v6868_v14, 16 }
 0x651   : > { %v7216_v56 = vsel %vm16431_vm9, %v13317_v32, %v7215_v12  ;;  %v18882_v33 = vor.u32 %v6883_v29, %v6882_v11  ;;  %v6887_v35 = vrot.slane %v6882_v11, 4  ;;  %v18886_v14 = vpack.c.bf16 %v6594_v8, %v6592_v3 }
 0x652   : > { %6818 = vst [vmem:[#allocation2 + $0x208] sm:$0xff] %v14038_v39  ;;  %v14039_v60 = vpack.c.bf16 %v6595_v1, %v6594_v8  ;;  %v7232_v52 = vshrl.u32 %v14038_v39, 16  ;;  %v7225_v9 = vsel %vm16431_vm9, %v7217_v22, %v7224_v25  ;;  %v7235_v45 = vshll.u32 %v14038_v39, 16 }
 0x653   : > { %v18878_v47 = vcombine.high %v7216_v56, %v7225_v9  ;;  %v18880_v23 = vcombine.low %v7216_v56, %v7225_v9  ;;  %v18884_v0 = vpack.c.bf16 %v6595_v1, %v6593_v43  ;;  %v13318_v32 = vrot.slane %v7227_v17, 11  ;;  %v15699_v56 = vld [vmem:[%s20152_s5 + $0x614] ss:$8 sps:$4 sm:$0xff]   ;;  %v15697_v9 = vld [vmem:[%s20152_s5 + $0x610] ss:$8 sps:$4 sm:$0xff]  }
 0x654   : > { %6819 = vst [vmem:[#allocation2 + $0x210] sm:$0xff] %v14039_v60  ;;  %v7234_v27 = vrot.slane %v7232_v52, 7  ;;  %v7241_v20 = vshrl.u32 %v14039_v60, 16  ;;  %v7244_v51 = vshll.u32 %v14039_v60, 16  ;;  %v6886_v29 = vsel %vm16431_vm9, %v13302_v54, %v18882_v33  ;;  %v15694_v52 = vld [vmem:[%s20152_s5 + $0x600] ss:$8 sps:$4 sm:$0xff]  }
 0x655   : > { %7795 = vmatprep.mubr.bf16.mxu0 %v18878_v47  ;;  %v18896_v43 = vsel %vm16431_vm9, %v6887_v35, %v18882_v33  ;;  %v15700_v54 = vld [vmem:[%s20152_s5 + $0x620] ss:$8 sps:$4 sm:$0xff]  }
 0x656   : > { %v7237_v12 = vor.u32 %v7235_v45, %v7234_v27  ;;  %v7243_v39 = vrot.slane %v7241_v20, 7  ;;  %7796 = vmatmul.mubr.bf16.gmra.mrb[88].mxu0 %v18880_v23  ;;  %v7239_v22 = vrot.slane %v7234_v27, 4  ;;  %v13417_v60 = vcombine.high %v6886_v29, %v18896_v43  ;;  %v15702_v45 = vld [vmem:[%s20152_s5 + $0x624] ss:$8 sps:$4 sm:$0xff]   ;;  %v15705_v27 = vld [vmem:[%s20152_s5 + $0x634] ss:$8 sps:$4 sm:$0xff]  }
 0x657   : > { %v13416_v17 = vcombine.low %v6886_v29, %v18896_v43  ;;  %v15708_v20 = vld [vmem:[%s20152_s5 + $0x644] ss:$8 sps:$4 sm:$0xff]   ;;  %v15706_v35 = vld [vmem:[%s20152_s5 + $0x640] ss:$8 sps:$4 sm:$0xff]  }
 0x658   : > { %v7246_v25 = vor.u32 %v7244_v51, %v7243_v39  ;;  %v7238_v3 = vsel %vm16431_vm9, %v13318_v32, %v7237_v12  ;;  %v15709_v32 = vld [vmem:[%s20152_s5 + $0x650] ss:$8 sps:$4 sm:$0xff]   ;;  %v15714_v12 = vld [vmem:[%s20152_s5 + $0x664] ss:$8 sps:$4 sm:$0xff]   ;;  %v15712_v39 = vld [vmem:[%s20152_s5 + $0x660] ss:$8 sps:$4 sm:$0xff]  }
 0x659   : > { %v15717_v51 = vld [vmem:[%s20152_s5 + $0x674] ss:$8 sps:$4 sm:$0xff]   ;;  %v15718_v29 = vld [vmem:[%s20152_s5 + $0x680] ss:$8 sps:$4 sm:$0xff]  }
 0x65a   : > { %v7247_v8 = vsel %vm16431_vm9, %v7239_v22, %v7246_v25  ;;  %v15715_v22 = vld [vmem:[%s20152_s5 + $0x670] ss:$8 sps:$4 sm:$0xff]   ;;  %v15720_v25 = vld [vmem:[%s20152_s5 + $0x684] ss:$8 sps:$4 sm:$0xff]  }
 0x65b   : > { %v18902_v1 = vcombine.high %v7238_v3, %v7247_v8  ;;  %v18904_v11 = vcombine.low %v7238_v3, %v7247_v8  ;;  %v15723_v3 = vld [vmem:[%s20152_s5 + $0x694] ss:$8 sps:$4 sm:$0xff]   ;;  %v15721_v8 = vld [vmem:[%s20152_s5 + $0x690] ss:$8 sps:$4 sm:$0xff]  }
 0x65d   : > { %7805 = vmatprep.mubr.bf16.mxu0 %v18902_v1 }
 0x65e   : > { %7806 = vmatmul.mubr.bf16.gmra.mrb[92].mxu0 %v18904_v11 }
 0x65f   : > { %8016 = vmatprep.mubr.bf16.mxu0 %v13417_v60  ;;  %v15726_v60 = vld [vmem:[%s20152_s5 + $0x6a4] ss:$8 sps:$4 sm:$0xff]  }
 0x666   : > { %8017 = vmatmul.mubr.bf16.vlgmr.msra.gmra.mrb[32].mxu0 %v13416_v17  ;;  %v15724_v17 = vld [vmem:[%s20152_s5 + $0x6a0] ss:$8 sps:$4 sm:$0xff]  }
 0x667   : > { %8379 = vmatpush1.bf16.msra.mxu0 %v15694_v52  ;;  %8026 = vmatprep.mubr.bf16.mxu0 %v18480_v57  ;;  %v15703_v57 = vld [vmem:[%s20152_s5 + $0x630] ss:$8 sps:$4 sm:$0xff]   ;;  %v15729_v52 = vld [vmem:[%s20152_s5 + $0x6b4] ss:$8 sps:$4 sm:$0xff]  }
 0x668   : > { %8380 = vmatprep.subr.bf16.mxu0 %v15699_v56  ;;  %v15727_v56 = vld [vmem:[%s20152_s5 + $0x6b0] ss:$8 sps:$4 sm:$0xff]  }
 0x66b   : > { %8381 = vmatpush1.bf16.msra.mxu0 %v15697_v9  ;;  %v15732_v9 = vld [vmem:[%s20152_s5 + $0x6c4] ss:$8 sps:$4 sm:$0xff]  }
 0x66c   : > { %8382 = vmatprep.subr.bf16.mxu0 %v15702_v45  ;;  %v15730_v45 = vld [vmem:[%s20152_s5 + $0x6c0] ss:$8 sps:$4 sm:$0xff]  }
 0x66e   : > { %8027 = vmatmul.mubr.bf16.gmra.mrb[36].mxu0 %v18478_v26  ;;  %v15711_v26 = vld [vmem:[%s20152_s5 + $0x654] ss:$8 sps:$4 sm:$0xff]  }
 0x66f   : > { %8036 = vmatprep.mubr.bf16.mxu0 %v18514_v21  ;;  %8383 = vmatpush1.bf16.msra.mxu0 %v15700_v54  ;;  %v15735_v54 = vld [vmem:[%s20152_s5 + $0x6d4] ss:$8 sps:$4 sm:$0xff]  }
 0x670   : > { %8384 = vmatprep.subr.bf16.mxu0 %v15705_v27  ;;  %v15733_v27 = vld [vmem:[%s20152_s5 + $0x6d0] ss:$8 sps:$4 sm:$0xff]  }
 0x673   : > { %8385 = vmatpush1.bf16.msra.mxu0 %v15703_v57  ;;  %v15738_v57 = vld [vmem:[%s20152_s5 + $0x6e4] ss:$8 sps:$4 sm:$0xff]  }
 0x674   : > { %8386 = vmatprep.subr.bf16.mxu0 %v15708_v20  ;;  %v15736_v20 = vld [vmem:[%s20152_s5 + $0x6e0] ss:$8 sps:$4 sm:$0xff]  }
 0x676   : > { %8037 = vmatmul.mubr.bf16.gmra.mrb[40].mxu0 %v18516_v55 }
 0x677   : > { %8046 = vmatprep.mubr.bf16.mxu0 %v18550_v36  ;;  %8387 = vmatpush1.bf16.msra.mxu0 %v15706_v35  ;;  %v15741_v35 = vld [vmem:[%s20152_s5 + $0x6f4] ss:$8 sps:$4 sm:$0xff]  }
 0x678   : > { %8388 = vmatprep.subr.bf16.mxu0 %v15711_v26  ;;  %v15739_v26 = vld [vmem:[%s20152_s5 + $0x6f0] ss:$8 sps:$4 sm:$0xff]  }
 0x67b   : > { %8389 = vmatpush1.bf16.msra.mxu0 %v15709_v32  ;;  %v15744_v32 = vld [vmem:[%s20152_s5 + $0x104] ss:$8 sps:$4 sm:$0xff]  }
 0x67c   : > { %8390 = vmatprep.subr.bf16.mxu0 %v15714_v12  ;;  %v15742_v12 = vld [vmem:[%s20152_s5 + $0x100] ss:$8 sps:$4 sm:$0xff]  }
 0x67e   : > { %8047 = vmatmul.mubr.bf16.gmra.mrb[44].mxu0 %v18552_v6 }
 0x67f   : > { %8056 = vmatprep.mubr.bf16.mxu0 %v18586_v48  ;;  %8391 = vmatpush1.bf16.msra.mxu0 %v15712_v39  ;;  %v15747_v39 = vld [vmem:[%s20152_s5 + $0x114] ss:$8 sps:$4 sm:$0xff]  }
 0x680   : > { %8392 = vmatprep.subr.bf16.mxu0 %v15717_v51  ;;  %v15745_v51 = vld [vmem:[%s20152_s5 + $0x110] ss:$8 sps:$4 sm:$0xff]  }
 0x683   : > { %8393 = vmatpush1.bf16.msra.mxu0 %v15715_v22  ;;  %v15748_v22 = vld [vmem:[%s20152_s5 + $0x120] ss:$8 sps:$4 sm:$0xff]  }
 0x684   : > { %8394 = vmatprep.subr.bf16.mxu0 %v15720_v25  ;;  %v15756_v25 = vld [vmem:[%s20152_s5 + $0x144] ss:$8 sps:$4 sm:$0xff]  }
 0x686   : > { %8057 = vmatmul.mubr.bf16.gmra.mrb[48].mxu0 %v18588_v40 }
 0x687   : > { %8066 = vmatprep.mubr.bf16.mxu0 %v18622_v62  ;;  %8395 = vmatpush1.bf16.msra.mxu0 %v15718_v29  ;;  %v15754_v29 = vld [vmem:[%s20152_s5 + $0x140] ss:$8 sps:$4 sm:$0xff]  }
 0x688   : > { %8396 = vmatprep.subr.bf16.mxu0 %v15723_v3  ;;  %v15762_v3 = vld [vmem:[%s20152_s5 + $0x164] ss:$8 sps:$4 sm:$0xff]  }
 0x68b   : > { %8397 = vmatpush1.bf16.msra.mxu0 %v15721_v8  ;;  %v15760_v8 = vld [vmem:[%s20152_s5 + $0x160] ss:$8 sps:$4 sm:$0xff]  }
 0x68c   : > { %8398 = vmatprep.subr.bf16.mxu0 %v15726_v60  ;;  %v15768_v60 = vld [vmem:[%s20152_s5 + $0x184] ss:$8 sps:$4 sm:$0xff]  }
 0x68e   : > { %8067 = vmatmul.mubr.bf16.gmra.mrb[52].mxu0 %v18624_v5 }
 0x68f   : > { %8076 = vmatprep.mubr.bf16.mxu0 %v18658_v41  ;;  %8399 = vmatpush1.bf16.msra.mxu0 %v15724_v17  ;;  %v15766_v17 = vld [vmem:[%s20152_s5 + $0x180] ss:$8 sps:$4 sm:$0xff]  }
 0x690   : > { %8400 = vmatprep.subr.bf16.mxu0 %v15729_v52  ;;  %v15774_v52 = vld [vmem:[%s20152_s5 + $0x1a4] ss:$8 sps:$4 sm:$0xff]  }
 0x693   : > { %8401 = vmatpush1.bf16.msra.mxu0 %v15727_v56  ;;  %v15772_v56 = vld [vmem:[%s20152_s5 + $0x1a0] ss:$8 sps:$4 sm:$0xff]  }
 0x694   : > { %8402 = vmatprep.subr.bf16.mxu0 %v15732_v9  ;;  %v15780_v9 = vld [vmem:[%s20152_s5 + $0x1c4] ss:$8 sps:$4 sm:$0xff]  }
 0x696   : > { %8077 = vmatmul.mubr.bf16.gmra.mrb[56].mxu0 %v18660_v61 }
 0x697   : > { %8086 = vmatprep.mubr.bf16.mxu0 %v18694_v50  ;;  %8403 = vmatpush1.bf16.msra.mxu0 %v15730_v45  ;;  %v15778_v45 = vld [vmem:[%s20152_s5 + $0x1c0] ss:$8 sps:$4 sm:$0xff]  }
 0x698   : > { %8404 = vmatprep.subr.bf16.mxu0 %v15735_v54  ;;  %v15786_v54 = vld [vmem:[%s20152_s5 + $0x1e4] ss:$8 sps:$4 sm:$0xff]  }
 0x69b   : > { %8405 = vmatpush1.bf16.msra.mxu0 %v15733_v27  ;;  %v15784_v27 = vld [vmem:[%s20152_s5 + $0x1e0] ss:$8 sps:$4 sm:$0xff]  }
 0x69c   : > { %8406 = vmatprep.subr.bf16.mxu0 %v15738_v57  ;;  %v15792_v57 = vld [vmem:[%s20152_s5 + $0x404] ss:$8 sps:$4 sm:$0xff]  }
 0x69e   : > { %8087 = vmatmul.mubr.bf16.gmra.mrb[60].mxu0 %v18696_v42 }
 0x69f   : > { %8096 = vmatprep.mubr.bf16.mxu0 %v18730_v49  ;;  %8407 = vmatpush1.bf16.msra.mxu0 %v15736_v20  ;;  %v15810_v20 = vld [vmem:[%s20152_s5 + $0x464] ss:$8 sps:$4 sm:$0xff]  }
 0x6a0   : > { %8408 = vmatprep.subr.bf16.mxu0 %v15741_v35  ;;  %v15808_v35 = vld [vmem:[%s20152_s5 + $0x460] ss:$8 sps:$4 sm:$0xff]  }
 0x6a3   : > { %8409 = vmatpush1.bf16.msra.mxu0 %v15739_v26  ;;  %v15813_v26 = vld [vmem:[%s20152_s5 + $0x474] ss:$8 sps:$4 sm:$0xff]  }
 0x6a4   : > { %8988 = vmatprep.subr.bf16.mxu0 %v15744_v32  ;;  %v20388_v32 = vld [vmem:[#allocation21_spill] sm:$0xff] }
 0x6a6   : > { %8097 = vmatmul.mubr.bf16.gmra.mrb[64].mxu0 %v18732_v34 }
 0x6a7   : > { %8106 = vmatprep.mubr.bf16.mxu0 %v18764_v53 }
 0x6ae   : > { %8107 = vmatmul.mubr.bf16.gmra.mrb[68].mxu0 %v18766_v4 }
 0x6af   : > { %8116 = vmatprep.mubr.bf16.mxu0 %v18783_v7 }
 0x6b6   : > { %8117 = vmatmul.mubr.bf16.gmra.mrb[72].mxu0 %v18785_v28 }
 0x6b7   : > { %8126 = vmatprep.mubr.bf16.mxu0 %v18801_v13 }
 0x6be   : > { %8127 = vmatmul.mubr.bf16.gmra.mrb[76].mxu0 %v18803_v30 }
 0x6bf   : > { %8136 = vmatprep.mubr.bf16.mxu0 %v18819_v38 }
 0x6c6   : > { %8137 = vmatmul.mubr.bf16.gmra.mrb[80].mxu0 %v18821_v18 }
 0x6c7   : > { %8146 = vmatprep.mubr.bf16.mxu0 %v18839_v15 }
 0x6ce   : > { %8147 = vmatmul.mubr.bf16.gmra.mrb[84].mxu0 %v18841_v58 }
 0x6cf   : > { %8156 = vmatprep.mubr.bf16.mxu0 %v18861_v31 }
 0x6d6   : > { %8157 = vmatmul.mubr.bf16.gmra.mrb[88].mxu0 %v18863_v63 }
 0x6d7   : > { %8166 = vmatprep.mubr.bf16.mxu0 %v18878_v47 }
 0x6de   : > { %8167 = vmatmul.mubr.bf16.gmra.mrb[92].mxu0 %v18880_v23 }
 0x6df   : > { %8410 = vmatprep.mubr.bf16.mxu0 %v18514_v21  ;;  %v15750_v21 = vld [vmem:[%s20152_s5 + $0x124] ss:$8 sps:$4 sm:$0xff]  }
 0x6e6   : > { %8411 = vmatmul.mubr.bf16.vlgmr.msra.gmra.mrb[32].mxu0 %v18516_v55  ;;  %v15753_v55 = vld [vmem:[%s20152_s5 + $0x134] ss:$8 sps:$4 sm:$0xff]  }
 0x6e7   : > { %8989 = vmatpush1.bf16.msra.mxu0 %v15742_v12  ;;  %8420 = vmatprep.mubr.bf16.mxu0 %v18550_v36  ;;  %v15751_v36 = vld [vmem:[%s20152_s5 + $0x130] ss:$8 sps:$4 sm:$0xff]   ;;  %v20389_v12 = vld [vmem:[#allocation27_spill] sm:$0xff] }
 0x6e8   : > { %8990 = vmatprep.subr.bf16.mxu0 %v15747_v39  ;;  %v15811_v39 = vld [vmem:[%s20152_s5 + $0x470] ss:$8 sps:$4 sm:$0xff]  }
 0x6eb   : > { %8991 = vmatpush1.bf16.msra.mxu0 %v15745_v51  ;;  %v15816_v51 = vld [vmem:[%s20152_s5 + $0x484] ss:$8 sps:$4 sm:$0xff]  }
 0x6ec   : > { %8992 = vmatprep.subr.bf16.mxu0 %v15750_v21  ;;  %v15814_v21 = vld [vmem:[%s20152_s5 + $0x480] ss:$8 sps:$4 sm:$0xff]  }
 0x6ee   : > { %8421 = vmatmul.mubr.bf16.gmra.mrb[36].mxu0 %v18552_v6  ;;  %v15759_v6 = vld [vmem:[%s20152_s5 + $0x154] ss:$8 sps:$4 sm:$0xff]  }
 0x6ef   : > { %8430 = vmatprep.mubr.bf16.mxu0 %v18586_v48  ;;  %8993 = vmatpush1.bf16.msra.mxu0 %v15748_v22  ;;  %v15757_v48 = vld [vmem:[%s20152_s5 + $0x150] ss:$8 sps:$4 sm:$0xff]   ;;  %v15819_v22 = vld [vmem:[%s20152_s5 + $0x494] ss:$8 sps:$4 sm:$0xff]  }
 0x6f0   : > { %8994 = vmatprep.subr.bf16.mxu0 %v15753_v55  ;;  %v20390_v55 = vld [vmem:[#allocation31_spill] sm:$0xff] }
 0x6f3   : > { %8995 = vmatpush1.bf16.msra.mxu0 %v15751_v36  ;;  %v20391_v36 = vld [vmem:[#allocation26_spill] sm:$0xff] }
 0x6f4   : > { %8996 = vmatprep.subr.bf16.mxu0 %v15756_v25  ;;  %v15817_v25 = vld [vmem:[%s20152_s5 + $0x490] ss:$8 sps:$4 sm:$0xff]  }
 0x6f6   : > { %8431 = vmatmul.mubr.bf16.gmra.mrb[40].mxu0 %v18588_v40  ;;  %v15765_v40 = vld [vmem:[%s20152_s5 + $0x174] ss:$8 sps:$4 sm:$0xff]  }
 0x6f7   : > { %8440 = vmatprep.mubr.bf16.mxu0 %v18622_v62  ;;  %8997 = vmatpush1.bf16.msra.mxu0 %v15754_v29  ;;  %v15763_v62 = vld [vmem:[%s20152_s5 + $0x170] ss:$8 sps:$4 sm:$0xff]   ;;  %v15822_v29 = vld [vmem:[%s20152_s5 + $0x4a4] ss:$8 sps:$4 sm:$0xff]  }
 0x6f8   : > { %8998 = vmatprep.subr.bf16.mxu0 %v15759_v6  ;;  %v15820_v6 = vld [vmem:[%s20152_s5 + $0x4a0] ss:$8 sps:$4 sm:$0xff]  }
 0x6fb   : > { %8999 = vmatpush1.bf16.msra.mxu0 %v15757_v48  ;;  %v15825_v48 = vld [vmem:[%s20152_s5 + $0x4b4] ss:$8 sps:$4 sm:$0xff]  }
 0x6fc   : > { %9000 = vmatprep.subr.bf16.mxu0 %v15762_v3  ;;  %v20392_v3 = vld [vmem:[#allocation30_spill] sm:$0xff] }
 0x6fe   : > { %8441 = vmatmul.mubr.bf16.gmra.mrb[44].mxu0 %v18624_v5  ;;  %v15771_v5 = vld [vmem:[%s20152_s5 + $0x194] ss:$8 sps:$4 sm:$0xff]  }
 0x6ff   : > { %8450 = vmatprep.mubr.bf16.mxu0 %v18658_v41  ;;  %9001 = vmatpush1.bf16.msra.mxu0 %v15760_v8  ;;  %v15769_v41 = vld [vmem:[%s20152_s5 + $0x190] ss:$8 sps:$4 sm:$0xff]  }
 0x700   : > { %9002 = vmatprep.subr.bf16.mxu0 %v15765_v40  ;;  %v20393_v8 = vld [vmem:[#allocation13_spill] sm:$0xff] }
 0x701   : > { %v15823_v40 = vld [vmem:[%s20152_s5 + $0x4b0] ss:$8 sps:$4 sm:$0xff]  }
 0x703   : > { %9003 = vmatpush1.bf16.msra.mxu0 %v15763_v62  ;;  %v15828_v62 = vld [vmem:[%s20152_s5 + $0x4c4] ss:$8 sps:$4 sm:$0xff]  }
 0x704   : > { %9004 = vmatprep.subr.bf16.mxu0 %v15768_v60  ;;  %v15826_v60 = vld [vmem:[%s20152_s5 + $0x4c0] ss:$8 sps:$4 sm:$0xff]  }
 0x706   : > { %8451 = vmatmul.mubr.bf16.gmra.mrb[48].mxu0 %v18660_v61  ;;  %v15777_v61 = vld [vmem:[%s20152_s5 + $0x1b4] ss:$8 sps:$4 sm:$0xff]  }
 0x707   : > { %8460 = vmatprep.mubr.bf16.mxu0 %v18694_v50  ;;  %9005 = vmatpush1.bf16.msra.mxu0 %v15766_v17  ;;  %v15775_v50 = vld [vmem:[%s20152_s5 + $0x1b0] ss:$8 sps:$4 sm:$0xff]   ;;  %v15831_v17 = vld [vmem:[%s20152_s5 + $0x4d4] ss:$8 sps:$4 sm:$0xff]  }
 0x708   : > { %9006 = vmatprep.subr.bf16.mxu0 %v15771_v5  ;;  %v20394_v5 = vld [vmem:[#allocation15_spill] sm:$0xff] }
 0x70b   : > { %9007 = vmatpush1.bf16.msra.mxu0 %v15769_v41  ;;  %v20395_v41 = vld [vmem:[#allocation10_spill] sm:$0xff] }
 0x70c   : > { %9008 = vmatprep.subr.bf16.mxu0 %v15774_v52  ;;  %v15829_v52 = vld [vmem:[%s20152_s5 + $0x4d0] ss:$8 sps:$4 sm:$0xff]  }
 0x70e   : > { %8461 = vmatmul.mubr.bf16.gmra.mrb[52].mxu0 %v18696_v42  ;;  %v15783_v42 = vld [vmem:[%s20152_s5 + $0x1d4] ss:$8 sps:$4 sm:$0xff]  }
 0x70f   : > { %8470 = vmatprep.mubr.bf16.mxu0 %v18730_v49  ;;  %9009 = vmatpush1.bf16.msra.mxu0 %v15772_v56  ;;  %v15781_v49 = vld [vmem:[%s20152_s5 + $0x1d0] ss:$8 sps:$4 sm:$0xff]   ;;  %v15834_v56 = vld [vmem:[%s20152_s5 + $0x4e4] ss:$8 sps:$4 sm:$0xff]  }
 0x710   : > { %9010 = vmatprep.subr.bf16.mxu0 %v15777_v61  ;;  %v15832_v61 = vld [vmem:[%s20152_s5 + $0x4e0] ss:$8 sps:$4 sm:$0xff]  }
 0x713   : > { %9011 = vmatpush1.bf16.msra.mxu0 %v15775_v50  ;;  %v15837_v50 = vld [vmem:[%s20152_s5 + $0x4f4] ss:$8 sps:$4 sm:$0xff]  }
 0x714   : > { %9012 = vmatprep.subr.bf16.mxu0 %v15780_v9  ;;  %v20396_v9 = vld [vmem:[#allocation14_spill] sm:$0xff] }
 0x716   : > { %8471 = vmatmul.mubr.bf16.gmra.mrb[56].mxu0 %v18732_v34  ;;  %v15789_v34 = vld [vmem:[%s20152_s5 + $0x1f4] ss:$8 sps:$4 sm:$0xff]  }
 0x717   : > { %8480 = vmatprep.mubr.bf16.mxu0 %v18764_v53  ;;  %9013 = vmatpush1.bf16.msra.mxu0 %v15778_v45  ;;  %v15787_v53 = vld [vmem:[%s20152_s5 + $0x1f0] ss:$8 sps:$4 sm:$0xff]   ;;  %v20397_v45 = vld [vmem:[#allocation23_spill] sm:$0xff] }
 0x718   : > { %9014 = vmatprep.subr.bf16.mxu0 %v15783_v42  ;;  %v15835_v42 = vld [vmem:[%s20152_s5 + $0x4f0] ss:$8 sps:$4 sm:$0xff]  }
 0x71b   : > { %9015 = vmatpush1.bf16.msra.mxu0 %v15781_v49  ;;  %v15840_v49 = vld [vmem:[%s20152_s5 + $0x704] ss:$8 sps:$4 sm:$0xff]  }
 0x71c   : > { %9016 = vmatprep.subr.bf16.mxu0 %v15786_v54  ;;  %v20398_v54 = vld [vmem:[#allocation25_spill] sm:$0xff] }
 0x71e   : > { %8481 = vmatmul.mubr.bf16.gmra.mrb[60].mxu0 %v18766_v4  ;;  %v6871_v4 = vld [vmem:[#allocation2 + $0x220] sm:$0x88] }
 0x71f   : > { %8490 = vmatprep.mubr.bf16.mxu0 %v18783_v7  ;;  %9017 = vmatpush1.bf16.msra.mxu0 %v15784_v27  ;;  %v7249_v7 = vshrl.u32 %v6871_v4, 16  ;;  %v20399_v27 = vld [vmem:[#allocation22_spill] sm:$0xff] }
 0x720   : > { %9018 = vmatprep.subr.bf16.mxu0 %v15789_v34  ;;  %v20400_v34 = vld [vmem:[#allocation24_spill] sm:$0xff]  ;;  %v20403_v4 = vld [vmem:[#allocation6_spill] sm:$0xff] }
 0x723   : > { %9019 = vmatpush1.bf16.msra.mxu0 %v15787_v53  ;;  %v20401_v53 = vld [vmem:[#allocation3_spill] sm:$0xff] }
 0x724   : > { %9448 = vmatprep.subr.bf16.mxu0 %v15792_v57  ;;  %v20402_v57 = vld [vmem:[#allocation7_spill] sm:$0xff] }
 0x726   : > { %8491 = vmatmul.mubr.bf16.gmra.mrb[64].mxu0 %v18785_v28  ;;  %v13319_v28 = vrot.slane %v7249_v7, 11  ;;  %v20404_v7 = vld [vmem:[#allocation8_spill] sm:$0xff] }
 0x727   : > { %8500 = vmatprep.mubr.bf16.mxu0 %v18801_v13 }
 0x728   : > { %v7260_v13 = vsel %vm16431_vm9, %v13319_v28, %v18882_v33  ;;  %v15804_v33 = vld [vmem:[%s20152_s5 + $0x444] ss:$8 sps:$4 sm:$0xff]   ;;  %v20405_v28 = vld [vmem:[#allocation9_spill] sm:$0xff] }
 0x72e   : > { %8501 = vmatmul.mubr.bf16.gmra.mrb[68].mxu0 %v18803_v30  ;;  %v13483_v30 = vcombine.high %v7260_v13, %v18896_v43 }
 0x72f   : > { %8510 = vmatprep.mubr.bf16.mxu0 %v18819_v38  ;;  %v13482_v38 = vcombine.low %v7260_v13, %v18896_v43  ;;  %v15802_v43 = vld [vmem:[%s20152_s5 + $0x440] ss:$8 sps:$4 sm:$0xff]  }
 0x730   : > { %v20406_v13 = vld [vmem:[#allocation11_spill] sm:$0xff] }
 0x736   : > { %8511 = vmatmul.mubr.bf16.gmra.mrb[72].mxu0 %v18821_v18  ;;  %v19169_v18 = vcombine.high %v18852_v2, %v18852_v2 }
 0x737   : > { %8520 = vmatprep.mubr.bf16.mxu0 %v18839_v15  ;;  %v19174_v15 = vcombine.low %v18852_v2, %v18852_v2  ;;  %v15798_v2 = vld [vmem:[%s20152_s5 + $0x424] ss:$8 sps:$4 sm:$0xff]  }
 0x73e   : > { %8521 = vmatmul.mubr.bf16.gmra.mrb[76].mxu0 %v18841_v58  ;;  %v15795_v58 = vld [vmem:[%s20152_s5 + $0x414] ss:$8 sps:$4 sm:$0xff]  }
 0x73f   : > { %8530 = vmatprep.mubr.bf16.mxu0 %v18861_v31  ;;  %v15793_v31 = vld [vmem:[%s20152_s5 + $0x410] ss:$8 sps:$4 sm:$0xff]  }
 0x746   : > { %8531 = vmatmul.mubr.bf16.gmra.mrb[80].mxu0 %v18863_v63  ;;  %v15796_v63 = vld [vmem:[%s20152_s5 + $0x420] ss:$8 sps:$4 sm:$0xff]  }
 0x747   : > { %8540 = vmatprep.mubr.bf16.mxu0 %v18878_v47  ;;  %v15801_v47 = vld [vmem:[%s20152_s5 + $0x434] ss:$8 sps:$4 sm:$0xff]  }
 0x74e   : > { %8541 = vmatmul.mubr.bf16.gmra.mrb[84].mxu0 %v18880_v23  ;;  %v15799_v23 = vld [vmem:[%s20152_s5 + $0x430] ss:$8 sps:$4 sm:$0xff]  }
 0x74f   : > { %8550 = vmatprep.mubr.bf16.mxu0 %v18902_v1  ;;  %v15807_v1 = vld [vmem:[%s20152_s5 + $0x454] ss:$8 sps:$4 sm:$0xff]  }
 0x756   : > { %8551 = vmatmul.mubr.bf16.gmra.mrb[88].mxu0 %v18904_v11  ;;  %v15805_v11 = vld [vmem:[%s20152_s5 + $0x450] ss:$8 sps:$4 sm:$0xff]  }
 0x757   : > { %8560 = vmatprep.mubr.bf16.mxu0 %v13483_v30  ;;  %v20407_v30 = vld [vmem:[#allocation12_spill] sm:$0xff] }
 0x75e   : > { %8561 = vmatmul.mubr.bf16.gmra.mrb[92].mxu0 %v13482_v38  ;;  %v20408_v38 = vld [vmem:[#allocation16_spill] sm:$0xff] }
 0x75f   : > { %9020 = vmatprep.mubr.bf16.mxu0 %v19169_v18 }
 0x766   : > { %9021 = vmatmul.mubr.bf16.vlgmr.msra.gmra.mrb[32].mxu0 %v19174_v15 }
 0x767   : > { %9449 = vmatpush1.bf16.msra.mxu0 %v15790_v37  ;;  %9030 = vmatprep.mubr.bf16.mxu0 %v18462_v44  ;;  %v20409_v37 = vld [vmem:[#allocation17_spill] sm:$0xff] }
 0x768   : > { %9450 = vmatprep.subr.bf16.mxu0 %v15795_v58  ;;  %v20410_v58 = vld [vmem:[#allocation19_spill] sm:$0xff] }
 0x76b   : > { %9451 = vmatpush1.bf16.msra.mxu0 %v15793_v31  ;;  %v15838_v31 = vld [vmem:[%s20152_s5 + $0x700] ss:$8 sps:$4 sm:$0xff]  }
 0x76c   : > { %9452 = vmatprep.subr.bf16.mxu0 %v15798_v2  ;;  %v15843_v2 = vld [vmem:[%s20152_s5 + $0x714] ss:$8 sps:$4 sm:$0xff]  }
 0x76e   : > { %9031 = vmatmul.mubr.bf16.gmra.mrb[36].mxu0 %v18466_v19 }
 0x76f   : > { %9040 = vmatprep.mubr.bf16.mxu0 %v18500_v24  ;;  %9453 = vmatpush1.bf16.msra.mxu0 %v15796_v63  ;;  %v15841_v63 = vld [vmem:[%s20152_s5 + $0x710] ss:$8 sps:$4 sm:$0xff]  }
 0x770   : > { %9454 = vmatprep.subr.bf16.mxu0 %v15801_v47  ;;  %v15844_v47 = vld [vmem:[%s20152_s5 + $0x720] ss:$8 sps:$4 sm:$0xff]  }
 0x773   : > { %9455 = vmatpush1.bf16.msra.mxu0 %v15799_v23  ;;  %v15847_v23 = vld [vmem:[%s20152_s5 + $0x730] ss:$8 sps:$4 sm:$0xff]  }
 0x774   : > { %9456 = vmatprep.subr.bf16.mxu0 %v15804_v33  ;;  %v15852_v33 = vld [vmem:[%s20152_s5 + $0x744] ss:$8 sps:$4 sm:$0xff]  }
 0x776   : > { %9041 = vmatmul.mubr.bf16.gmra.mrb[40].mxu0 %v18502_v10 }
 0x777   : > { %9050 = vmatprep.mubr.bf16.mxu0 %v18530_v46  ;;  %9457 = vmatpush1.bf16.msra.mxu0 %v15802_v43  ;;  %v15850_v43 = vld [vmem:[%s20152_s5 + $0x740] ss:$8 sps:$4 sm:$0xff]  }
 0x778   : > { %9458 = vmatprep.subr.bf16.mxu0 %v15807_v1  ;;  %v15855_v1 = vld [vmem:[%s20152_s5 + $0x754] ss:$8 sps:$4 sm:$0xff]  }
 0x77b   : > { %9459 = vmatpush1.bf16.msra.mxu0 %v15805_v11  ;;  %v15853_v11 = vld [vmem:[%s20152_s5 + $0x750] ss:$8 sps:$4 sm:$0xff]  }
 0x77c   : > { %9460 = vmatprep.subr.bf16.mxu0 %v15810_v20  ;;  %v15858_v20 = vld [vmem:[%s20152_s5 + $0x764] ss:$8 sps:$4 sm:$0xff]  }
 0x77e   : > { %9051 = vmatmul.mubr.bf16.gmra.mrb[44].mxu0 %v20388_v32 }
 0x77f   : > { %9060 = vmatprep.mubr.bf16.mxu0 %v20389_v12  ;;  %9461 = vmatpush1.bf16.msra.mxu0 %v15808_v35  ;;  %v15856_v35 = vld [vmem:[%s20152_s5 + $0x760] ss:$8 sps:$4 sm:$0xff]  }
 0x780   : > { %9462 = vmatprep.subr.bf16.mxu0 %v15813_v26  ;;  %v15861_v26 = vld [vmem:[%s20152_s5 + $0x774] ss:$8 sps:$4 sm:$0xff]  }
 0x783   : > { %9463 = vmatpush1.bf16.msra.mxu0 %v15811_v39  ;;  %v15859_v39 = vld [vmem:[%s20152_s5 + $0x770] ss:$8 sps:$4 sm:$0xff]  }
 0x784   : > { %9464 = vmatprep.subr.bf16.mxu0 %v15816_v51  ;;  %v15864_v51 = vld [vmem:[%s20152_s5 + $0x784] ss:$8 sps:$4 sm:$0xff]  }
 0x786   : > { %9061 = vmatmul.mubr.bf16.gmra.mrb[48].mxu0 %v20390_v55 }
 0x787   : > { %9070 = vmatprep.mubr.bf16.mxu0 %v20391_v36  ;;  %9465 = vmatpush1.bf16.msra.mxu0 %v15814_v21  ;;  %v15862_v21 = vld [vmem:[%s20152_s5 + $0x780] ss:$8 sps:$4 sm:$0xff]  }
 0x788   : > { %9466 = vmatprep.subr.bf16.mxu0 %v15819_v22  ;;  %v15867_v22 = vld [vmem:[%s20152_s5 + $0x794] ss:$8 sps:$4 sm:$0xff]  }
 0x78b   : > { %9467 = vmatpush1.bf16.msra.mxu0 %v15817_v25  ;;  %v15865_v25 = vld [vmem:[%s20152_s5 + $0x790] ss:$8 sps:$4 sm:$0xff]  }
 0x78c   : > { %9468 = vmatprep.subr.bf16.mxu0 %v15822_v29  ;;  %v15870_v29 = vld [vmem:[%s20152_s5 + $0x7a4] ss:$8 sps:$4 sm:$0xff]  }
 0x78e   : > { %9071 = vmatmul.mubr.bf16.gmra.mrb[52].mxu0 %v20392_v3 }
 0x78f   : > { %9080 = vmatprep.mubr.bf16.mxu0 %v20393_v8  ;;  %9469 = vmatpush1.bf16.msra.mxu0 %v15820_v6  ;;  %v15868_v6 = vld [vmem:[%s20152_s5 + $0x7a0] ss:$8 sps:$4 sm:$0xff]  }
 0x790   : > { %9470 = vmatprep.subr.bf16.mxu0 %v15825_v48  ;;  %v15873_v48 = vld [vmem:[%s20152_s5 + $0x7b4] ss:$8 sps:$4 sm:$0xff]  }
 0x793   : > { %9471 = vmatpush1.bf16.msra.mxu0 %v15823_v40  ;;  %v15871_v40 = vld [vmem:[%s20152_s5 + $0x7b0] ss:$8 sps:$4 sm:$0xff]  }
 0x794   : > { %9472 = vmatprep.subr.bf16.mxu0 %v15828_v62  ;;  %v15876_v62 = vld [vmem:[%s20152_s5 + $0x7c4] ss:$8 sps:$4 sm:$0xff]  }
 0x796   : > { %9081 = vmatmul.mubr.bf16.gmra.mrb[56].mxu0 %v20394_v5 }
 0x797   : > { %9090 = vmatprep.mubr.bf16.mxu0 %v20395_v41  ;;  %9473 = vmatpush1.bf16.msra.mxu0 %v15826_v60  ;;  %v15874_v60 = vld [vmem:[%s20152_s5 + $0x7c0] ss:$8 sps:$4 sm:$0xff]  }
 0x798   : > { %9474 = vmatprep.subr.bf16.mxu0 %v15831_v17  ;;  %v15879_v17 = vld [vmem:[%s20152_s5 + $0x7d4] ss:$8 sps:$4 sm:$0xff]  }
 0x79b   : > { %9475 = vmatpush1.bf16.msra.mxu0 %v15829_v52  ;;  %v15877_v52 = vld [vmem:[%s20152_s5 + $0x7d0] ss:$8 sps:$4 sm:$0xff]  }
 0x79c   : > { %9476 = vmatprep.subr.bf16.mxu0 %v15834_v56  ;;  %v15882_v56 = vld [vmem:[%s20152_s5 + $0x7e4] ss:$8 sps:$4 sm:$0xff]  }
 0x79e   : > { %9091 = vmatmul.mubr.bf16.gmra.mrb[60].mxu0 %v20396_v9 }
 0x79f   : > { %9100 = vmatprep.mubr.bf16.mxu0 %v20397_v45  ;;  %9477 = vmatpush1.bf16.msra.mxu0 %v15832_v61  ;;  %v15880_v61 = vld [vmem:[%s20152_s5 + $0x7e0] ss:$8 sps:$4 sm:$0xff]  }
 0x7a0   : > { %9478 = vmatprep.subr.bf16.mxu0 %v15837_v50  ;;  %v15885_v50 = vld [vmem:[%s20152_s5 + $0x7f4] ss:$8 sps:$4 sm:$0xff]  }
 0x7a3   : > { %9479 = vmatpush1.bf16.msra.mxu0 %v15835_v42  ;;  %v15883_v42 = vld [vmem:[%s20152_s5 + $0x7f0] ss:$8 sps:$4 sm:$0xff]  }
 0x7a4   : > { %9908 = vmatprep.subr.bf16.mxu0 %v15840_v49  ;;  %v15888_v49 = vld [vmem:[%s20152_s5 + $0x204] ss:$8 sps:$4 sm:$0xff]  }
 0x7a6   : > { %9101 = vmatmul.mubr.bf16.gmra.mrb[64].mxu0 %v20398_v54 }
 0x7a7   : > { %9110 = vmatprep.mubr.bf16.mxu0 %v20399_v27 }
 0x7ae   : > { %9111 = vmatmul.mubr.bf16.gmra.mrb[68].mxu0 %v20400_v34 }
 0x7af   : > { %9120 = vmatprep.mubr.bf16.mxu0 %v20401_v53 }
 0x7b6   : > { %9121 = vmatmul.mubr.bf16.gmra.mrb[72].mxu0 %v20402_v57 }
 0x7b7   : > { %9130 = vmatprep.mubr.bf16.mxu0 %v20403_v4 }
 0x7be   : > { %9131 = vmatmul.mubr.bf16.gmra.mrb[76].mxu0 %v20404_v7 }
 0x7bf   : > { %9140 = vmatprep.mubr.bf16.mxu0 %v20405_v28 }
 0x7c6   : > { %9141 = vmatmul.mubr.bf16.gmra.mrb[80].mxu0 %v20406_v13 }
 0x7c7   : > { %9150 = vmatprep.mubr.bf16.mxu0 %v20407_v30 }
 0x7ce   : > { %9151 = vmatmul.mubr.bf16.gmra.mrb[84].mxu0 %v20408_v38 }
 0x7cf   : > { %9160 = vmatprep.mubr.bf16.mxu0 %v20409_v37 }
 0x7d6   : > { %9161 = vmatmul.mubr.bf16.gmra.mrb[88].mxu0 %v20410_v58 }
 0x7d7   : > { %9170 = vmatprep.mubr.bf16.mxu0 %v18869_v16 }
 0x7de   : > { %9171 = vmatmul.mubr.bf16.gmra.mrb[92].mxu0 %v18871_v59 }
 0x7df   : > { %9480 = vmatprep.mubr.bf16.mxu0 %v18462_v44  ;;  %v15846_v44 = vld [vmem:[%s20152_s5 + $0x724] ss:$8 sps:$4 sm:$0xff]  }
 0x7e6   : > { %9481 = vmatmul.mubr.bf16.vlgmr.msra.gmra.mrb[32].mxu0 %v18466_v19  ;;  %v15849_v19 = vld [vmem:[%s20152_s5 + $0x734] ss:$8 sps:$4 sm:$0xff]  }
 0x7e7   : > { %9909 = vmatpush1.bf16.msra.mxu0 %v15838_v31  ;;  %9490 = vmatprep.mubr.bf16.mxu0 %v18500_v24  ;;  %v15886_v31 = vld [vmem:[%s20152_s5 + $0x200] ss:$8 sps:$4 sm:$0xff]  }
 0x7e8   : > { %9910 = vmatprep.subr.bf16.mxu0 %v15843_v2  ;;  %v15891_v2 = vld [vmem:[%s20152_s5 + $0x214] ss:$8 sps:$4 sm:$0xff]  }
 0x7eb   : > { %9911 = vmatpush1.bf16.msra.mxu0 %v15841_v63  ;;  %v15889_v63 = vld [vmem:[%s20152_s5 + $0x210] ss:$8 sps:$4 sm:$0xff]  }
 0x7ec   : > { %9912 = vmatprep.subr.bf16.mxu0 %v15846_v44  ;;  %v15892_v44 = vld [vmem:[%s20152_s5 + $0x220] ss:$8 sps:$4 sm:$0xff]  }
 0x7ee   : > { %9491 = vmatmul.mubr.bf16.gmra.mrb[36].mxu0 %v18502_v10 }
 0x7ef   : > { %9500 = vmatprep.mubr.bf16.mxu0 %v18530_v46  ;;  %9913 = vmatpush1.bf16.msra.mxu0 %v15844_v47  ;;  %v15900_v47 = vld [vmem:[%s20152_s5 + $0x244] ss:$8 sps:$4 sm:$0xff]  }
 0x7f0   : > { %9914 = vmatprep.subr.bf16.mxu0 %v15849_v19  ;;  %v15898_v19 = vld [vmem:[%s20152_s5 + $0x240] ss:$8 sps:$4 sm:$0xff]  }
 0x7f3   : > { %9915 = vmatpush1.bf16.msra.mxu0 %v15847_v23  ;;  %v15906_v23 = vld [vmem:[%s20152_s5 + $0x264] ss:$8 sps:$4 sm:$0xff]  }
 0x7f4   : > { %9916 = vmatprep.subr.bf16.mxu0 %v15852_v33  ;;  %v15904_v33 = vld [vmem:[%s20152_s5 + $0x260] ss:$8 sps:$4 sm:$0xff]  }
 0x7f6   : > { %9501 = vmatmul.mubr.bf16.gmra.mrb[40].mxu0 %v20388_v32 }
 0x7f7   : > { %9510 = vmatprep.mubr.bf16.mxu0 %v20389_v12  ;;  %9917 = vmatpush1.bf16.msra.mxu0 %v15850_v43  ;;  %v15912_v43 = vld [vmem:[%s20152_s5 + $0x284] ss:$8 sps:$4 sm:$0xff]  }
 0x7f8   : > { %9918 = vmatprep.subr.bf16.mxu0 %v15855_v1  ;;  %v15910_v1 = vld [vmem:[%s20152_s5 + $0x280] ss:$8 sps:$4 sm:$0xff]  }
 0x7fb   : > { %9919 = vmatpush1.bf16.msra.mxu0 %v15853_v11  ;;  %v15918_v11 = vld [vmem:[%s20152_s5 + $0x2a4] ss:$8 sps:$4 sm:$0xff]  }
 0x7fc   : > { %9920 = vmatprep.subr.bf16.mxu0 %v15858_v20  ;;  %v15916_v20 = vld [vmem:[%s20152_s5 + $0x2a0] ss:$8 sps:$4 sm:$0xff]  }
 0x7fe   : > { %9511 = vmatmul.mubr.bf16.gmra.mrb[44].mxu0 %v20390_v55 }
 0x7ff   : > { %9520 = vmatprep.mubr.bf16.mxu0 %v20391_v36  ;;  %9921 = vmatpush1.bf16.msra.mxu0 %v15856_v35  ;;  %v15924_v35 = vld [vmem:[%s20152_s5 + $0x2c4] ss:$8 sps:$4 sm:$0xff]  }
 0x800   : > { %9922 = vmatprep.subr.bf16.mxu0 %v15861_v26  ;;  %v15922_v26 = vld [vmem:[%s20152_s5 + $0x2c0] ss:$8 sps:$4 sm:$0xff]  }
 0x803   : > { %9923 = vmatpush1.bf16.msra.mxu0 %v15859_v39  ;;  %v15930_v39 = vld [vmem:[%s20152_s5 + $0x2e4] ss:$8 sps:$4 sm:$0xff]  }
 0x804   : > { %9924 = vmatprep.subr.bf16.mxu0 %v15864_v51  ;;  %v15928_v51 = vld [vmem:[%s20152_s5 + $0x2e0] ss:$8 sps:$4 sm:$0xff]  }
 0x806   : > { %9521 = vmatmul.mubr.bf16.gmra.mrb[48].mxu0 %v20392_v3 }
 0x807   : > { %9530 = vmatprep.mubr.bf16.mxu0 %v20393_v8  ;;  %9925 = vmatpush1.bf16.msra.mxu0 %v15862_v21  ;;  %v15936_v21 = vld [vmem:[%s20152_s5 + $0x504] ss:$8 sps:$4 sm:$0xff]  }
 0x808   : > { %9926 = vmatprep.subr.bf16.mxu0 %v15867_v22 }
 0x80b   : > { %9927 = vmatpush1.bf16.msra.mxu0 %v15865_v25 }
 0x80c   : > { %9928 = vmatprep.subr.bf16.mxu0 %v15870_v29 }
 0x80e   : > { %9531 = vmatmul.mubr.bf16.gmra.mrb[52].mxu0 %v20394_v5 }
 0x80f   : > { %9540 = vmatprep.mubr.bf16.mxu0 %v20395_v41  ;;  %9929 = vmatpush1.bf16.msra.mxu0 %v15868_v6 }
 0x810   : > { %9930 = vmatprep.subr.bf16.mxu0 %v15873_v48 }
 0x813   : > { %9931 = vmatpush1.bf16.msra.mxu0 %v15871_v40 }
 0x814   : > { %9932 = vmatprep.subr.bf16.mxu0 %v15876_v62  ;;  %v10170_v62 = vld [vmem:[#allocation2 + $0x38] sm:$0x11] }
 0x816   : > { %9541 = vmatmul.mubr.bf16.gmra.mrb[56].mxu0 %v20396_v9 }
 0x817   : > { %9550 = vmatprep.mubr.bf16.mxu0 %v20397_v45  ;;  %9933 = vmatpush1.bf16.msra.mxu0 %v15874_v60  ;;  %v12363_v60 = vld [vmem:[%s20154_s7 + $0x10] sm:$0xff] }
 0x818   : > { %9934 = vmatprep.subr.bf16.mxu0 %v15879_v17 }
 0x81b   : > { %9935 = vmatpush1.bf16.msra.mxu0 %v15877_v52 }
 0x81c   : > { %9936 = vmatprep.subr.bf16.mxu0 %v15882_v56 }
 0x81e   : > { %9551 = vmatmul.mubr.bf16.gmra.mrb[60].mxu0 %v20398_v54 }
 0x81f   : > { %9560 = vmatprep.mubr.bf16.mxu0 %v20399_v27  ;;  %9937 = vmatpush1.bf16.msra.mxu0 %v15880_v61 }
 0x820   : > { %9938 = vmatprep.subr.bf16.mxu0 %v15885_v50  ;;  %v10263_v50 = vshll.u32 %v10170_v62, 16 }
 0x823   : > { %9939 = vmatpush1.bf16.msra.mxu0 %v15883_v42  ;;  %v10171_v42 = vld [vmem:[#allocation2 + $0x48] sm:$0xff] }
 0x824   : > { %10972 = vmatprep.subr.bf16.mxu0 %v15888_v49 }
 0x826   : > { %9561 = vmatmul.mubr.bf16.gmra.mrb[64].mxu0 %v20400_v34 }
 0x827   : > { %9570 = vmatprep.mubr.bf16.mxu0 %v20401_v53 }
 0x82e   : > { %9571 = vmatmul.mubr.bf16.gmra.mrb[68].mxu0 %v20402_v57 }
 0x82f   : > { %9580 = vmatprep.mubr.bf16.mxu0 %v20403_v4 }
 0x836   : > { %9581 = vmatmul.mubr.bf16.gmra.mrb[72].mxu0 %v20404_v7 }
 0x837   : > { %9590 = vmatprep.mubr.bf16.mxu0 %v20405_v28 }
 0x83e   : > { %9591 = vmatmul.mubr.bf16.gmra.mrb[76].mxu0 %v20406_v13 }
 0x83f   : > { %9600 = vmatprep.mubr.bf16.mxu0 %v20407_v30 }
 0x846   : > { %9601 = vmatmul.mubr.bf16.gmra.mrb[80].mxu0 %v20408_v38 }
 0x847   : > { %9610 = vmatprep.mubr.bf16.mxu0 %v20409_v37 }
 0x84e   : > { %9611 = vmatmul.mubr.bf16.gmra.mrb[84].mxu0 %v20410_v58 }
 0x84f   : > { %9620 = vmatprep.mubr.bf16.mxu0 %v18869_v16 }
 0x856   : > { %9621 = vmatmul.mubr.bf16.gmra.mrb[88].mxu0 %v18871_v59 }
 0x857   : > { %9630 = vmatprep.mubr.bf16.mxu0 %v18884_v0 }
 0x85e   : > { %9631 = vmatmul.mubr.bf16.gmra.mrb[92].mxu0 %v18886_v14 }
 0x85f   : > { %9940 = vmatprep.mubr.bf16.mxu0 %v18500_v24  ;;  %v15894_v24 = vld [vmem:[%s20152_s5 + $0x224] ss:$8 sps:$4 sm:$0xff]  }
 0x866   : > { %9941 = vmatmul.mubr.bf16.vlgmr.msra.gmra.mrb[32].mxu0 %v18502_v10  ;;  %v15897_v10 = vld [vmem:[%s20152_s5 + $0x234] ss:$8 sps:$4 sm:$0xff]  }
 0x867   : > { %10973 = vmatpush1.bf16.msra.mxu0 %v15886_v31  ;;  %9950 = vmatprep.mubr.bf16.mxu0 %v18530_v46  ;;  %v15895_v46 = vld [vmem:[%s20152_s5 + $0x230] ss:$8 sps:$4 sm:$0xff]  }
 0x868   : > { %10974 = vmatprep.subr.bf16.mxu0 %v15891_v2 }
 0x86b   : > { %10975 = vmatpush1.bf16.msra.mxu0 %v15889_v63 }
 0x86c   : > { %10976 = vmatprep.subr.bf16.mxu0 %v15894_v24  ;;  %v10271_v24 = vshll.u32 %v10171_v42, 16 }
 0x86e   : > { %9951 = vmatmul.mubr.bf16.gmra.mrb[36].mxu0 %v20388_v32  ;;  %v15903_v32 = vld [vmem:[%s20152_s5 + $0x254] ss:$8 sps:$4 sm:$0xff]  }
 0x86f   : > { %9960 = vmatprep.mubr.bf16.mxu0 %v20389_v12  ;;  %10977 = vmatpush1.bf16.msra.mxu0 %v15892_v44  ;;  %v15901_v12 = vld [vmem:[%s20152_s5 + $0x250] ss:$8 sps:$4 sm:$0xff]  }
 0x870   : > { %10978 = vmatprep.subr.bf16.mxu0 %v15897_v10  ;;  %v10173_v10 = vld [vmem:[#allocation2 + $0x58] sm:$0x11] }
 0x873   : > { %10979 = vmatpush1.bf16.msra.mxu0 %v15895_v46 }
 0x874   : > { %10980 = vmatprep.subr.bf16.mxu0 %v15900_v47 }
 0x876   : > { %9961 = vmatmul.mubr.bf16.gmra.mrb[40].mxu0 %v20390_v55  ;;  %v15909_v55 = vld [vmem:[%s20152_s5 + $0x274] ss:$8 sps:$4 sm:$0xff]  }
 0x877   : > { %9970 = vmatprep.mubr.bf16.mxu0 %v20391_v36  ;;  %10981 = vmatpush1.bf16.msra.mxu0 %v15898_v19  ;;  %v15907_v36 = vld [vmem:[%s20152_s5 + $0x270] ss:$8 sps:$4 sm:$0xff]  }
 0x878   : > { %10982 = vmatprep.subr.bf16.mxu0 %v15903_v32  ;;  %v10175_v19 = vld [vmem:[#allocation2 + $0x70] sm:$0xff] }
 0x87b   : > { %10983 = vmatpush1.bf16.msra.mxu0 %v15901_v12 }
 0x87c   : > { %10984 = vmatprep.subr.bf16.mxu0 %v15906_v23  ;;  %v10273_v23 = vrot.slane %v10271_v24, 5 }
 0x87e   : > { %9971 = vmatmul.mubr.bf16.gmra.mrb[44].mxu0 %v20392_v3  ;;  %v15915_v3 = vld [vmem:[%s20152_s5 + $0x294] ss:$8 sps:$4 sm:$0xff]  }
 0x87f   : > { %9980 = vmatprep.mubr.bf16.mxu0 %v20393_v8  ;;  %10985 = vmatpush1.bf16.msra.mxu0 %v15904_v33  ;;  %v15913_v8 = vld [vmem:[%s20152_s5 + $0x290] ss:$8 sps:$4 sm:$0xff]  }
 0x880   : > { %10986 = vmatprep.subr.bf16.mxu0 %v15909_v55  ;;  %v10287_v55 = vshll.u32 %v10173_v10, 16 }
 0x883   : > { %10987 = vmatpush1.bf16.msra.mxu0 %v15907_v36  ;;  %v10174_v36 = vld [vmem:[#allocation2 + $0x68] sm:$0xff] }
 0x884   : > { %10988 = vmatprep.subr.bf16.mxu0 %v15912_v43 }
 0x886   : > { %9981 = vmatmul.mubr.bf16.gmra.mrb[48].mxu0 %v20394_v5  ;;  %v15921_v5 = vld [vmem:[%s20152_s5 + $0x2b4] ss:$8 sps:$4 sm:$0xff]  }
 0x887   : > { %9990 = vmatprep.mubr.bf16.mxu0 %v20395_v41  ;;  %10989 = vmatpush1.bf16.msra.mxu0 %v15910_v1  ;;  %v15919_v41 = vld [vmem:[%s20152_s5 + $0x2b0] ss:$8 sps:$4 sm:$0xff]  }
 0x888   : > { %10990 = vmatprep.subr.bf16.mxu0 %v15915_v3  ;;  %v10301_v3 = vshll.u32 %v10175_v19, 16 }
 0x88b   : > { %10991 = vmatpush1.bf16.msra.mxu0 %v15913_v8  ;;  %v10305_v8 = vshrl.u32 %v10175_v19, 16 }
 0x88c   : > { %10992 = vmatprep.subr.bf16.mxu0 %v15918_v11 }
 0x88e   : > { %9991 = vmatmul.mubr.bf16.gmra.mrb[52].mxu0 %v20396_v9  ;;  %v15927_v9 = vld [vmem:[%s20152_s5 + $0x2d4] ss:$8 sps:$4 sm:$0xff]  }
 0x88f   : > { %10000 = vmatprep.mubr.bf16.mxu0 %v20397_v45  ;;  %10993 = vmatpush1.bf16.msra.mxu0 %v15916_v20  ;;  %v15925_v45 = vld [vmem:[%s20152_s5 + $0x2d0] ss:$8 sps:$4 sm:$0xff]   ;;  %v15939_v20 = vld [vmem:[%s20152_s5 + $0x514] ss:$8 sps:$4 sm:$0xff]  }
 0x890   : > { %10994 = vmatprep.subr.bf16.mxu0 %v15921_v5 }
 0x893   : > { %10995 = vmatpush1.bf16.msra.mxu0 %v15919_v41  ;;  %v10292_v41 = vshrl.u32 %v10174_v36, 16 }
 0x894   : > { %10996 = vmatprep.subr.bf16.mxu0 %v15924_v35  ;;  %v10295_v35 = vshll.u32 %v10174_v36, 16 }
 0x896   : > { %10001 = vmatmul.mubr.bf16.gmra.mrb[56].mxu0 %v20398_v54  ;;  %v15933_v54 = vld [vmem:[%s20152_s5 + $0x2f4] ss:$8 sps:$4 sm:$0xff]  }
 0x897   : > { %10010 = vmatprep.mubr.bf16.mxu0 %v20399_v27  ;;  %10997 = vmatpush1.bf16.msra.mxu0 %v15922_v26  ;;  %v15931_v27 = vld [vmem:[%s20152_s5 + $0x2f0] ss:$8 sps:$4 sm:$0xff]  }
 0x898   : > { %10998 = vmatprep.subr.bf16.mxu0 %v15927_v9 }
 0x89b   : > { %10999 = vmatpush1.bf16.msra.mxu0 %v15925_v45  ;;  %v10289_v45 = vrot.slane %v10287_v55, 5 }
 0x89c   : > { %11000 = vmatprep.subr.bf16.mxu0 %v15930_v39  ;;  %v10176_v39 = vld [vmem:[#allocation2 + $0x78] sm:$0x11] }
 0x89e   : > { %10011 = vmatmul.mubr.bf16.gmra.mrb[60].mxu0 %v20400_v34  ;;  %v16048_v34 = vld [vmem:[#allocation2] sm:$0xff] }
 0x89f   : > { %10020 = vmatprep.mubr.bf16.mxu0 %v20401_v53  ;;  %11001 = vmatpush1.bf16.msra.mxu0 %v15928_v51  ;;  %v10220_v53 = vshrl.u32 %v16048_v34, 16  ;;  %v10303_v51 = vrot.slane %v10301_v3, 5  ;;  %v10182_v3 = vld [vmem:[#allocation2 + $0xb8] sm:$0x11] }
 0x8a0   : > { %11002 = vmatprep.subr.bf16.mxu0 %v15933_v54  ;;  %v10307_v54 = vrot.slane %v10305_v8, 4  ;;  %v15949_v8 = vld [vmem:[%s20152_s5 + $0x550] ss:$8 sps:$4 sm:$0xff]  }
 0x8a3   : > { %11003 = vmatpush1.bf16.msra.mxu0 %v15931_v27  ;;  %v15937_v27 = vld [vmem:[%s20152_s5 + $0x510] ss:$8 sps:$4 sm:$0xff]  }
 0x8a4   : > { %11430 = vmatprep.subr.bf16.mxu0 %v15936_v21  ;;  %v10178_v21 = vld [vmem:[#allocation2 + $0x90] sm:$0xff] }
 0x8a6   : > { %10021 = vmatmul.mubr.bf16.gmra.mrb[64].mxu0 %v20402_v57  ;;  %v10223_v57 = vshll.u32 %v16048_v34, 16 }
 0x8a7   : > { %10030 = vmatprep.mubr.bf16.mxu0 %v20403_v4  ;;  %v10222_v4 = vrot.slane %v10220_v53, 4  ;;  %v15942_v53 = vld [vmem:[%s20152_s5 + $0x524] ss:$8 sps:$4 sm:$0xff]  }
 0x8a8   : > { %v10225_v22 = vrot.slane %v10223_v57, 5  ;;  %v10294_v57 = vrot.slane %v10292_v41, 4  ;;  %v15954_v41 = vld [vmem:[%s20152_s5 + $0x564] ss:$8 sps:$4 sm:$0xff]  }
 0x8ae   : > { %10031 = vmatmul.mubr.bf16.gmra.mrb[68].mxu0 %v20404_v7  ;;  %v10167_v7 = vld [vmem:[#allocation2 + $0x18] sm:$0x11] }
 0x8af   : > { %10040 = vmatprep.mubr.bf16.mxu0 %v20405_v28  ;;  %v10169_v28 = vld [vmem:[#allocation2 + $0x30] sm:$0xff] }
 0x8b0   : > { %v10253_v25 = vshll.u32 %v10169_v28, 16 }
 0x8b2   : > { %v10255_v48 = vrot.slane %v10253_v25, 5 }
 0x8b6   : > { %10041 = vmatmul.mubr.bf16.gmra.mrb[72].mxu0 %v20406_v13  ;;  %v10226_v13 = vor.u32 %v10225_v22, %v10222_v4  ;;  %v10297_v4 = vrot.slane %v10295_v35, 5 }
 0x8b7   : > { %10050 = vmatprep.mubr.bf16.mxu0 %v20407_v30  ;;  %v10239_v30 = vshll.u32 %v10167_v7, 16  ;;  %v10177_v7 = vld [vmem:[#allocation2 + $0x88] sm:$0xff] }
 0x8b9   : > { %v10241_v6 = vrot.slane %v10239_v30, 5  ;;  %v10325_v30 = vshll.u32 %v10178_v21, 16 }
 0x8be   : > { %10051 = vmatmul.mubr.bf16.gmra.mrb[76].mxu0 %v20408_v38  ;;  %v10168_v38 = vld [vmem:[#allocation2 + $0x28] sm:$0xff] }
 0x8bf   : > { %10060 = vmatprep.mubr.bf16.mxu0 %v20409_v37  ;;  %v10257_v37 = vshrl.u32 %v10169_v28, 16  ;;  %v10244_v29 = vshrl.u32 %v10168_v38, 16 }
 0x8c1   : > { %v10259_v40 = vrot.slane %v10257_v37, 4  ;;  %v10246_v52 = vrot.slane %v10244_v29, 4  ;;  %v15940_v37 = vld [vmem:[%s20152_s5 + $0x520] ss:$8 sps:$4 sm:$0xff]  }
 0x8c3   : > { %v10260_v61 = vor.u32 %v10259_v40, %v10255_v48 }
 0x8c5   : > { %v10261_v44 = vrot.slane %v10260_v61, 4  ;;  %v10179_v61 = vld [vmem:[#allocation2 + $0x98] sm:$0x11] }
 0x8c6   : > { %10061 = vmatmul.mubr.bf16.gmra.mrb[80].mxu0 %v20410_v58  ;;  %v10227_v58 = vrot.slane %v10226_v13, 4  ;;  %v10308_v13 = vor.u32 %v10307_v54, %v10303_v51 }
 0x8c7   : > { %10070 = vmatprep.mubr.bf16.mxu0 %v18869_v16  ;;  %v10247_v16 = vshll.u32 %v10168_v38, 16  ;;  %v10329_v38 = vshrl.u32 %v10178_v21, 16  ;;  %v15952_v21 = vld [vmem:[%s20152_s5 + $0x560] ss:$8 sps:$4 sm:$0xff]  }
 0x8c8   : > { %v10242_v17 = vsel %vm17918_vm12, %v10227_v58, %v10241_v6  ;;  %v15945_v6 = vld [vmem:[%s20152_s5 + $0x534] ss:$8 sps:$4 sm:$0xff]   ;;  %v10309_v62 = vrot.slane %v10308_v13, 4 }
 0x8c9   : > { %v10249_v56 = vrot.slane %v10247_v16, 5  ;;  %v10316_v16 = vshrl.u32 %v10177_v7, 16 }
 0x8cb   : > { %v10250_v63 = vor.u32 %v10249_v56, %v10246_v52  ;;  %v10181_v52 = vld [vmem:[#allocation2 + $0xb0] sm:$0xff] }
 0x8cc   : > { %v15943_v56 = vld [vmem:[%s20152_s5 + $0x530] ss:$8 sps:$4 sm:$0xff]  }
 0x8cd   : > { %v10251_v32 = vrot.slane %v10250_v63, 4  ;;  %v10349_v63 = vshll.u32 %v10181_v52, 16 }
 0x8ce   : > { %10071 = vmatmul.mubr.bf16.gmra.mrb[84].mxu0 %v18871_v59  ;;  %v10172_v59 = vld [vmem:[#allocation2 + $0x50] sm:$0xff] }
 0x8cf   : > { %10080 = vmatprep.mubr.bf16.mxu0 %v18884_v0  ;;  %v10232_v0 = vsel %vm17918_vm12, %v10227_v58, %v10225_v22  ;;  %v10277_v49 = vshll.u32 %v10172_v59, 16  ;;  %v10281_v31 = vshrl.u32 %v10172_v59, 16  ;;  %v10256_v11 = vsel %vm17918_vm12, %v10251_v32, %v10255_v48 }
 0x8d0   : > { %v13777_v2 = vcombine.high %v10232_v0, %v10242_v17  ;;  %v13776_v43 = vcombine.low %v10232_v0, %v10242_v17  ;;  %v10311_v22 = vshll.u32 %v10176_v39, 16  ;;  %v10298_v58 = vor.u32 %v10297_v4, %v10294_v57 }
 0x8d1   : > { %v10279_v46 = vrot.slane %v10277_v49, 5  ;;  %v10283_v47 = vrot.slane %v10281_v31, 4  ;;  %v10319_v48 = vshll.u32 %v10177_v7, 16  ;;  %v10327_v0 = vrot.slane %v10325_v30, 5  ;;  %v15948_v31 = vld [vmem:[%s20152_s5 + $0x544] ss:$8 sps:$4 sm:$0xff]  }
 0x8d2   : > { %v10313_v59 = vrot.slane %v10311_v22, 5  ;;  %v10331_v17 = vrot.slane %v10329_v38, 4  ;;  %v10351_v55 = vrot.slane %v10349_v63, 5  ;;  %v15957_v22 = vld [vmem:[%s20152_s5 + $0x574] ss:$8 sps:$4 sm:$0xff]  }
 0x8d3   : > { %v10284_v1 = vor.u32 %v10283_v47, %v10279_v46  ;;  %v10321_v49 = vrot.slane %v10319_v48, 5 }
 0x8d4   : > { %v10314_v24 = vsel %vm17918_vm12, %v10309_v62, %v10313_v59  ;;  %v15960_v62 = vld [vmem:[%s20152_s5 + $0x584] ss:$8 sps:$4 sm:$0xff]  }
 0x8d5   : > { %v10285_v9 = vrot.slane %v10284_v1, 4 }
 0x8d6   : > { %10081 = vmatmul.mubr.bf16.gmra.mrb[88].mxu0 %v18886_v14  ;;  %v10268_v14 = vshrl.u32 %v10171_v42, 16  ;;  %v10318_v42 = vrot.slane %v10316_v16, 4 }
 0x8d7   : > { %10090 = vmatprep.mubr.bf16.mxu0 %v19169_v18  ;;  %v10265_v18 = vrot.slane %v10263_v50, 5  ;;  %v10290_v28 = vsel %vm17918_vm12, %v10285_v9, %v10289_v45  ;;  %v10299_v50 = vrot.slane %v10298_v58, 4  ;;  %v10359_v9 = vshll.u32 %v10182_v3, 16  ;;  %v10183_v45 = vld [vmem:[#allocation2 + $0xc8] sm:$0xff]  ;;  %v15955_v58 = vld [vmem:[%s20152_s5 + $0x570] ss:$8 sps:$4 sm:$0xff]  }
 0x8d8   : > { %v10270_v12 = vrot.slane %v10268_v14, 4  ;;  %v10353_v14 = vshrl.u32 %v10181_v52, 16  ;;  %v10322_v19 = vor.u32 %v10321_v49, %v10318_v42  ;;  %v10364_v57 = vshrl.u32 %v10183_v45, 16  ;;  %v15958_v42 = vld [vmem:[%s20152_s5 + $0x580] ss:$8 sps:$4 sm:$0xff]  }
 0x8d9   : > { %v10266_v33 = vsel %vm17918_vm12, %v10261_v44, %v10265_v18  ;;  %v10332_v44 = vor.u32 %v10331_v17, %v10327_v0  ;;  %v10335_v18 = vshll.u32 %v10179_v61, 16  ;;  %v10304_v47 = vsel %vm17918_vm12, %v10299_v50, %v10303_v51  ;;  %v10189_v3 = vld [vmem:[#allocation2 + $0x108] sm:$0xff] }
 0x8da   : > { %v10274_v5 = vor.u32 %v10273_v23, %v10270_v12  ;;  %v19573_v26 = vcombine.high %v10256_v11, %v10266_v33  ;;  %v19584_v25 = vcombine.low %v10256_v11, %v10266_v33  ;;  %v15951_v23 = vld [vmem:[%s20152_s5 + $0x554] ss:$8 sps:$4 sm:$0xff]   ;;  %v19616_v33 = vcombine.high %v10304_v47, %v10314_v24 }
 0x8db   : > { %v10355_v36 = vrot.slane %v10353_v14, 4  ;;  %v10337_v1 = vrot.slane %v10335_v18, 5  ;;  %v10323_v11 = vrot.slane %v10322_v19, 4  ;;  %v10367_v4 = vshll.u32 %v10183_v45, 16  ;;  %v15963_v14 = vld [vmem:[%s20152_s5 + $0x594] ss:$8 sps:$4 sm:$0xff]  }
 0x8dc   : > { %v10275_v34 = vrot.slane %v10274_v5, 4  ;;  %v10361_v13 = vrot.slane %v10359_v9, 5  ;;  %v10366_v16 = vrot.slane %v10364_v57, 4  ;;  %v10412_v45 = vshrl.u32 %v10189_v3, 16 }
 0x8dd   : > { %v10356_v35 = vor.u32 %v10355_v36, %v10351_v55  ;;  %v10369_v48 = vrot.slane %v10367_v4, 5 }
 0x8de   : > { %10091 = vmatmul.mubr.bf16.gmra.mrb[92].mxu0 %v19174_v15  ;;  %v15934_v15 = vld [vmem:[%s20152_s5 + $0x500] ss:$8 sps:$4 sm:$0xff]   ;;  %v10280_v29 = vsel %vm17918_vm12, %v10275_v34, %v10279_v46  ;;  %v10328_v34 = vsel %vm17918_vm12, %v10323_v11, %v10327_v0 }
 0x8df   : > { %11004 = vmatprep.mubr.bf16.mxu0 %v13777_v2  ;;  %v19594_v40 = vcombine.high %v10280_v29, %v10290_v28  ;;  %v10180_v2 = vld [vmem:[#allocation2 + $0xa8] sm:$0xff]  ;;  %v19606_v10 = vcombine.low %v10280_v29, %v10290_v28  ;;  %v10357_v28 = vrot.slane %v10356_v35, 4  ;;  %v10187_v29 = vld [vmem:[#allocation2 + $0xf0] sm:$0xff] }
 0x8e0   : > { %v15946_v46 = vld [vmem:[%s20152_s5 + $0x540] ss:$8 sps:$4 sm:$0xff]   ;;  %v10340_v32 = vshrl.u32 %v10180_v2, 16  ;;  %v10343_v12 = vshll.u32 %v10180_v2, 16  ;;  %v10401_v61 = vshrl.u32 %v10187_v29, 16 }
 0x8e1   : > { %v10362_v59 = vsel %vm17918_vm12, %v10357_v28, %v10361_v13  ;;  %v10186_v0 = vld [vmem:[#allocation2 + $0xe8] sm:$0xff]  ;;  %v15967_v28 = vld [vmem:[%s20152_s5 + $0x5b0] ss:$8 sps:$4 sm:$0xff]  }
 0x8e2   : > { %v10345_v5 = vrot.slane %v10343_v12, 5  ;;  %v10388_v2 = vshrl.u32 %v10186_v0, 16  ;;  %v10391_v63 = vshll.u32 %v10186_v0, 16  ;;  %v10403_v19 = vrot.slane %v10401_v61, 4  ;;  %v15961_v12 = vld [vmem:[%s20152_s5 + $0x590] ss:$8 sps:$4 sm:$0xff]  }
 0x8e3   : > { %v15970_v0 = vld [vmem:[%s20152_s5 + $0x5c0] ss:$8 sps:$4 sm:$0xff]  }
 0x8e4   : > { %v10393_v36 = vrot.slane %v10391_v63, 5  ;;  %v10194_v63 = vld [vmem:[#allocation2 + $0x138] sm:$0x11] }
 0x8e6   : > { %11005 = vmatmul.mubr.bf16.vlgmr.msra.gmra.mrb[32].mxu0 %v13776_v43  ;;  %v10333_v43 = vrot.slane %v10332_v44, 4 }
 0x8e7   : > { %11431 = vmatpush1.bf16.msra.mxu0 %v15934_v15  ;;  %11014 = vmatprep.mubr.bf16.mxu0 %v19573_v26  ;;  %v10184_v15 = vld [vmem:[#allocation2 + $0xd0] sm:$0xff] }
 0x8e8   : > { %11432 = vmatprep.subr.bf16.mxu0 %v15939_v20  ;;  %v10342_v20 = vrot.slane %v10340_v32, 4  ;;  %v10338_v39 = vsel %vm17918_vm12, %v10333_v43, %v10337_v1  ;;  %v10373_v51 = vshll.u32 %v10184_v15, 16  ;;  %v10377_v54 = vshrl.u32 %v10184_v15, 16  ;;  %v10190_v32 = vld [vmem:[#allocation2 + $0x110] sm:$0xff]  ;;  %v15966_v43 = vld [vmem:[%s20152_s5 + $0x5a4] ss:$8 sps:$4 sm:$0xff]  }
 0x8e9   : > { %v19638_v7 = vcombine.high %v10328_v34, %v10338_v39  ;;  %v19650_v50 = vcombine.low %v10328_v34, %v10338_v39  ;;  %v10421_v11 = vshll.u32 %v10190_v32, 16  ;;  %v10415_v39 = vshll.u32 %v10189_v3, 16 }
 0x8ea   : > { %v10375_v30 = vrot.slane %v10373_v51, 5  ;;  %v10379_v38 = vrot.slane %v10377_v54, 4  ;;  %v15969_v51 = vld [vmem:[%s20152_s5 + $0x5b4] ss:$8 sps:$4 sm:$0xff]  }
 0x8eb   : > { %11433 = vmatpush1.bf16.msra.mxu0 %v15937_v27  ;;  %v19628_v27 = vcombine.low %v10304_v47, %v10314_v24  ;;  %v10423_v57 = vrot.slane %v10421_v11, 5 }
 0x8ec   : > { %11434 = vmatprep.subr.bf16.mxu0 %v15942_v53  ;;  %v10346_v53 = vor.u32 %v10345_v5, %v10342_v20  ;;  %v10380_v17 = vor.u32 %v10379_v38, %v10375_v30  ;;  %v10425_v20 = vshrl.u32 %v10190_v32, 16  ;;  %v10417_v38 = vrot.slane %v10415_v39, 5 }
 0x8ee   : > { %11015 = vmatmul.mubr.bf16.gmra.mrb[36].mxu0 %v19584_v25  ;;  %v10381_v44 = vrot.slane %v10380_v17, 4  ;;  %v10427_v4 = vrot.slane %v10425_v20, 4 }
 0x8ef   : > { %11024 = vmatprep.mubr.bf16.mxu0 %v19594_v40  ;;  %11435 = vmatpush1.bf16.msra.mxu0 %v15940_v37  ;;  %v10185_v37 = vld [vmem:[#allocation2 + $0xd8] sm:$0x11] }
 0x8f0   : > { %11436 = vmatprep.subr.bf16.mxu0 %v15945_v6  ;;  %v10347_v6 = vrot.slane %v10346_v53, 4  ;;  %v10383_v52 = vshll.u32 %v10185_v37, 16  ;;  %v10191_v53 = vld [vmem:[#allocation2 + $0x118] sm:$0x11]  ;;  %v15972_v37 = vld [vmem:[%s20152_s5 + $0x5c4] ss:$8 sps:$4 sm:$0xff]  }
 0x8f2   : > { %v10352_v49 = vsel %vm17918_vm12, %v10347_v6, %v10351_v55  ;;  %v10385_v18 = vrot.slane %v10383_v52, 5  ;;  %v10390_v55 = vrot.slane %v10388_v2, 4 }
 0x8f3   : > { %11437 = vmatpush1.bf16.msra.mxu0 %v15943_v56  ;;  %v10397_v56 = vshll.u32 %v10187_v29, 16  ;;  %v19660_v24 = vcombine.high %v10352_v49, %v10362_v59  ;;  %v19672_v5 = vcombine.low %v10352_v49, %v10362_v59  ;;  %v10431_v29 = vshll.u32 %v10191_v53, 16 }
 0x8f4   : > { %11438 = vmatprep.subr.bf16.mxu0 %v15948_v31  ;;  %v10370_v31 = vor.u32 %v10369_v48, %v10366_v16  ;;  %v10394_v9 = vor.u32 %v10393_v36, %v10390_v55  ;;  %v10428_v16 = vor.u32 %v10427_v4, %v10423_v57  ;;  %v10195_v55 = vld [vmem:[#allocation2 + $0x148] sm:$0xff]  ;;  %v15979_v4 = vld [vmem:[%s20152_s5 + $0x5f0] ss:$8 sps:$4 sm:$0xff]  }
 0x8f5   : > { %v10399_v47 = vrot.slane %v10397_v56, 5  ;;  %v10433_v2 = vrot.slane %v10431_v29, 5 }
 0x8f6   : > { %11025 = vmatmul.mubr.bf16.gmra.mrb[40].mxu0 %v19606_v10  ;;  %v10395_v13 = vrot.slane %v10394_v9, 4  ;;  %v15981_v9 = vld [vmem:[%s20152_s5 + $0x5f4] ss:$8 sps:$4 sm:$0xff]  }
 0x8f7   : > { %11034 = vmatprep.mubr.bf16.mxu0 %v19616_v33  ;;  %11439 = vmatpush1.bf16.msra.mxu0 %v15946_v46  ;;  %v10188_v46 = vld [vmem:[#allocation2 + $0xf8] sm:$0x11]  ;;  %v10404_v15 = vor.u32 %v10403_v19, %v10399_v47 }
 0x8f8   : > { %11440 = vmatprep.subr.bf16.mxu0 %v15951_v23  ;;  %v10371_v23 = vrot.slane %v10370_v31, 4  ;;  %v10407_v1 = vshll.u32 %v10188_v46, 16  ;;  %v10400_v17 = vsel %vm17918_vm12, %v10395_v13, %v10399_v47  ;;  %v10429_v31 = vrot.slane %v10428_v16, 4  ;;  %v15973_v46 = vld [vmem:[%s20152_s5 + $0x5d0] ss:$8 sps:$4 sm:$0xff]  }
 0x8fa   : > { %v10376_v35 = vsel %vm17918_vm12, %v10371_v23, %v10375_v30  ;;  %v10409_v34 = vrot.slane %v10407_v1, 5  ;;  %v10414_v30 = vrot.slane %v10412_v45, 4  ;;  %v10455_v23 = vshll.u32 %v10194_v63, 16 }
 0x8fb   : > { %11441 = vmatpush1.bf16.msra.mxu0 %v15949_v8  ;;  %v10386_v8 = vsel %vm17918_vm12, %v10381_v44, %v10385_v18  ;;  %v10196_v18 = vld [vmem:[#allocation2 + $0x150] sm:$0xff]  ;;  %v10434_v36 = vsel %vm17918_vm12, %v10429_v31, %v10433_v2  ;;  %v10200_v31 = vld [vmem:[#allocation2 + $0x178] sm:$0x11] }
 0x8fc   : > { %11442 = vmatprep.subr.bf16.mxu0 %v15954_v41  ;;  %v15964_v41 = vld [vmem:[%s20152_s5 + $0x5a0] ss:$8 sps:$4 sm:$0xff]   ;;  %v19682_v54 = vcombine.high %v10376_v35, %v10386_v8  ;;  %v19694_v59 = vcombine.low %v10376_v35, %v10386_v8  ;;  %v10418_v52 = vor.u32 %v10417_v38, %v10414_v30  ;;  %v10469_v1 = vshll.u32 %v10196_v18, 16  ;;  %v15984_v30 = vld [vmem:[%s20152_s5 + $0x804] ss:$8 sps:$4 sm:$0xff]  }
 0x8fd   : > { %v10473_v3 = vshrl.u32 %v10196_v18, 16  ;;  %v10463_v35 = vshll.u32 %v10195_v55, 16 }
 0x8fe   : > { %11035 = vmatmul.mubr.bf16.gmra.mrb[44].mxu0 %v19628_v27  ;;  %v10419_v47 = vrot.slane %v10418_v52, 4 }
 0x8ff   : > { %11044 = vmatprep.mubr.bf16.mxu0 %v19638_v7  ;;  %11443 = vmatpush1.bf16.msra.mxu0 %v15952_v21  ;;  %v10405_v21 = vrot.slane %v10404_v15, 4  ;;  %v15976_v15 = vld [vmem:[%s20152_s5 + $0x5e0] ss:$8 sps:$4 sm:$0xff]   ;;  %v10475_v53 = vrot.slane %v10473_v3, 4  ;;  %v10465_v13 = vrot.slane %v10463_v35, 5 }
 0x900   : > { %11444 = vmatprep.subr.bf16.mxu0 %v15957_v22  ;;  %v10193_v22 = vld [vmem:[#allocation2 + $0x130] sm:$0xff]  ;;  %v10424_v11 = vsel %vm17918_vm12, %v10419_v47, %v10423_v57  ;;  %v10203_v35 = vld [vmem:[#allocation2 + $0x198] sm:$0x11] }
 0x901   : > { %v10410_v6 = vsel %vm17918_vm12, %v10405_v21, %v10409_v34  ;;  %v10445_v48 = vshll.u32 %v10193_v22, 16  ;;  %v19726_v45 = vcombine.high %v10424_v11, %v10434_v36  ;;  %v10197_v21 = vld [vmem:[#allocation2 + $0x158] sm:$0x11]  ;;  %v10471_v34 = vrot.slane %v10469_v1, 5  ;;  %v10199_v57 = vld [vmem:[#allocation2 + $0x170] sm:$0xff] }
 0x902   : > { %v19704_v49 = vcombine.high %v10400_v17, %v10410_v6  ;;  %v19716_v8 = vcombine.low %v10400_v17, %v10410_v6  ;;  %v10479_v38 = vshll.u32 %v10197_v21, 16  ;;  %v10493_v6 = vshll.u32 %v10199_v57, 16 }
 0x903   : > { %11445 = vmatpush1.bf16.msra.mxu0 %v15955_v58  ;;  %v10192_v58 = vld [vmem:[#allocation2 + $0x128] sm:$0xff]  ;;  %v10497_v16 = vshrl.u32 %v10199_v57, 16 }
 0x904   : > { %11446 = vmatprep.subr.bf16.mxu0 %v15960_v62  ;;  %v10449_v62 = vshrl.u32 %v10193_v22, 16  ;;  %v10436_v56 = vshrl.u32 %v10192_v58, 16  ;;  %v10439_v61 = vshll.u32 %v10192_v58, 16  ;;  %v10476_v58 = vor.u32 %v10475_v53, %v10471_v34 }
 0x905   : > { %v10495_v2 = vrot.slane %v10493_v6, 5  ;;  %v10499_v63 = vrot.slane %v10497_v16, 4 }
 0x906   : > { %11045 = vmatmul.mubr.bf16.gmra.mrb[48].mxu0 %v19650_v50  ;;  %v10451_v44 = vrot.slane %v10449_v62, 4  ;;  %v10438_v19 = vrot.slane %v10436_v56, 4  ;;  %v10441_v32 = vrot.slane %v10439_v61, 5  ;;  %v10477_v61 = vrot.slane %v10476_v58, 4 }
 0x907   : > { %11054 = vmatprep.mubr.bf16.mxu0 %v19660_v24  ;;  %11447 = vmatpush1.bf16.msra.mxu0 %v15958_v42  ;;  %v15975_v42 = vld [vmem:[%s20152_s5 + $0x5d4] ss:$8 sps:$4 sm:$0xff]  }
 0x908   : > { %11448 = vmatprep.subr.bf16.mxu0 %v15963_v14  ;;  %v10447_v14 = vrot.slane %v10445_v48, 5  ;;  %v10442_v20 = vor.u32 %v10441_v32, %v10438_v19  ;;  %v19738_v48 = vcombine.low %v10424_v11, %v10434_v36  ;;  %v10201_v19 = vld [vmem:[#allocation2 + $0x188] sm:$0xff] }
 0x909   : > { %v10508_v3 = vshrl.u32 %v10201_v19, 16 }
 0x90a   : > { %v10443_v22 = vrot.slane %v10442_v20, 4 }
 0x90b   : > { %11449 = vmatpush1.bf16.msra.mxu0 %v15961_v12  ;;  %v15978_v12 = vld [vmem:[%s20152_s5 + $0x5e4] ss:$8 sps:$4 sm:$0xff]   ;;  %v10510_v53 = vrot.slane %v10508_v3, 4 }
 0x90c   : > { %11450 = vmatprep.subr.bf16.mxu0 %v15966_v43  ;;  %v10452_v43 = vor.u32 %v10451_v44, %v10447_v14  ;;  %v10448_v62 = vsel %vm17918_vm12, %v10443_v22, %v10447_v14  ;;  %v10202_v44 = vld [vmem:[#allocation2 + $0x190] sm:$0xff]  ;;  %v10503_v14 = vshll.u32 %v10200_v31, 16 }
 0x90e   : > { %11055 = vmatmul.mubr.bf16.gmra.mrb[52].mxu0 %v19672_v5  ;;  %v10453_v39 = vrot.slane %v10452_v43, 4 }
 0x90f   : > { %11064 = vmatprep.mubr.bf16.mxu0 %v19682_v54  ;;  %11451 = vmatpush1.bf16.msra.mxu0 %v15964_v41  ;;  %v10460_v41 = vshrl.u32 %v10195_v55, 16  ;;  %v10521_v55 = vshrl.u32 %v10202_v44, 16 }
 0x910   : > { %11452 = vmatprep.subr.bf16.mxu0 %v15969_v51  ;;  %v10457_v51 = vrot.slane %v10455_v23, 5  ;;  %v10517_v23 = vshll.u32 %v10202_v44, 16 }
 0x912   : > { %v10458_v29 = vsel %vm17918_vm12, %v10453_v39, %v10457_v51  ;;  %v10523_v39 = vrot.slane %v10521_v55, 4  ;;  %v10205_v51 = vld [vmem:[#allocation2 + $0x1b0] sm:$0xff] }
 0x913   : > { %11453 = vmatpush1.bf16.msra.mxu0 %v15967_v28  ;;  %v10462_v28 = vrot.slane %v10460_v41, 4  ;;  %v19742_v56 = vcombine.high %v10448_v62, %v10458_v29  ;;  %v19748_v36 = vcombine.low %v10448_v62, %v10458_v29  ;;  %v10505_v41 = vrot.slane %v10503_v14, 5 }
 0x914   : > { %11454 = vmatprep.subr.bf16.mxu0 %v15972_v37  ;;  %v10198_v37 = vld [vmem:[#allocation2 + $0x168] sm:$0xff] }
 0x915   : > { %v10484_v17 = vshrl.u32 %v10198_v37, 16  ;;  %v10487_v52 = vshll.u32 %v10198_v37, 16 }
 0x916   : > { %11065 = vmatmul.mubr.bf16.gmra.mrb[56].mxu0 %v19694_v59 }
 0x917   : > { %11074 = vmatprep.mubr.bf16.mxu0 %v19704_v49  ;;  %11455 = vmatpush1.bf16.msra.mxu0 %v15970_v0  ;;  %v10466_v0 = vor.u32 %v10465_v13, %v10462_v28  ;;  %v10489_v47 = vrot.slane %v10487_v52, 5  ;;  %v10541_v13 = vshll.u32 %v10205_v51, 16 }
 0x918   : > { %11456 = vmatprep.subr.bf16.mxu0 %v15975_v42  ;;  %v10481_v42 = vrot.slane %v10479_v38, 5 }
 0x919   : > { %v10467_v18 = vrot.slane %v10466_v0, 4  ;;  %v10543_v52 = vrot.slane %v10541_v13, 5 }
 0x91a   : > { %v10482_v32 = vsel %vm17918_vm12, %v10477_v61, %v10481_v42  ;;  %v10208_v42 = vld [vmem:[#allocation2 + $0x1d0] sm:$0xff] }
 0x91b   : > { %11457 = vmatpush1.bf16.msra.mxu0 %v15973_v46  ;;  %v10486_v46 = vrot.slane %v10484_v17, 4  ;;  %v10472_v43 = vsel %vm17918_vm12, %v10467_v18, %v10471_v34  ;;  %v10204_v34 = vld [vmem:[#allocation2 + $0x1a8] sm:$0xff]  ;;  %v10206_v17 = vld [vmem:[#allocation2 + $0x1b8] sm:$0x11]  ;;  %v10565_v14 = vshll.u32 %v10208_v42, 16 }
 0x91c   : > { %11458 = vmatprep.subr.bf16.mxu0 %v15978_v12  ;;  %v10500_v12 = vor.u32 %v10499_v63, %v10495_v2  ;;  %v19752_v11 = vcombine.high %v10472_v43, %v10482_v32  ;;  %v19758_v38 = vcombine.low %v10472_v43, %v10482_v32  ;;  %v10532_v58 = vshrl.u32 %v10204_v34, 16 }
 0x91d   : > { %v10490_v1 = vor.u32 %v10489_v47, %v10486_v46  ;;  %v10535_v6 = vshll.u32 %v10204_v34, 16  ;;  %v10551_v18 = vshll.u32 %v10206_v17, 16 }
 0x91e   : > { %11075 = vmatmul.mubr.bf16.gmra.mrb[60].mxu0 %v19716_v8  ;;  %v10501_v20 = vrot.slane %v10500_v12, 4  ;;  %v10534_v63 = vrot.slane %v10532_v58, 4 }
 0x91f   : > { %11084 = vmatprep.mubr.bf16.mxu0 %v19726_v45  ;;  %11459 = vmatpush1.bf16.msra.mxu0 %v15976_v15  ;;  %v10511_v15 = vshll.u32 %v10201_v19, 16  ;;  %v10491_v21 = vrot.slane %v10490_v1, 4  ;;  %v10537_v44 = vrot.slane %v10535_v6, 5  ;;  %v10569_v19 = vshrl.u32 %v10208_v42, 16  ;;  %v10212_v42 = vld [vmem:[#allocation2 + $0x1f8] sm:$0x11] }
 0x920   : > { %11460 = vmatprep.subr.bf16.mxu0 %v15981_v9  ;;  %v10519_v9 = vrot.slane %v10517_v23, 5  ;;  %v10506_v22 = vsel %vm17918_vm12, %v10501_v20, %v10505_v41  ;;  %v10209_v20 = vld [vmem:[#allocation2 + $0x1d8] sm:$0x11]  ;;  %v10567_v41 = vrot.slane %v10565_v14, 5 }
 0x921   : > { %v10513_v57 = vrot.slane %v10511_v15, 5  ;;  %v10496_v37 = vsel %vm17918_vm12, %v10491_v21, %v10495_v2  ;;  %v10207_v2 = vld [vmem:[#allocation2 + $0x1c8] sm:$0xff]  ;;  %v10538_v23 = vor.u32 %v10537_v44, %v10534_v63  ;;  %v10553_v15 = vrot.slane %v10551_v18, 5 }
 0x922   : > { %v10524_v28 = vor.u32 %v10523_v39, %v10519_v9  ;;  %v19762_v16 = vcombine.high %v10496_v37, %v10506_v22  ;;  %v19768_v32 = vcombine.low %v10496_v37, %v10506_v22  ;;  %v10556_v55 = vshrl.u32 %v10207_v2, 16  ;;  %v10211_v39 = vld [vmem:[#allocation2 + $0x1f0] sm:$0xff] }
 0x923   : > { %11461 = vmatpush1.bf16.msra.mxu0 %v15979_v4  ;;  %v10527_v4 = vshll.u32 %v10203_v35, 16  ;;  %v10514_v29 = vor.u32 %v10513_v57, %v10510_v53  ;;  %v10559_v43 = vshll.u32 %v10207_v2, 16  ;;  %v10571_v35 = vrot.slane %v10569_v19, 4 }
 0x924   : > { %11888 = vmatprep.subr.bf16.mxu0 %v15984_v30  ;;  %v10545_v30 = vshrl.u32 %v10205_v51, 16  ;;  %v10525_v62 = vrot.slane %v10524_v28, 4  ;;  %v10539_v51 = vrot.slane %v10538_v23, 4  ;;  %v10558_v21 = vrot.slane %v10556_v55, 4 }
 0x925   : > { %v10529_v0 = vrot.slane %v10527_v4, 5  ;;  %v10515_v31 = vrot.slane %v10514_v29, 4  ;;  %v10561_v53 = vrot.slane %v10559_v43, 5  ;;  %v10575_v57 = vshll.u32 %v10209_v20, 16 }
 0x926   : > { %11085 = vmatmul.mubr.bf16.gmra.mrb[64].mxu0 %v19738_v48  ;;  %v10547_v61 = vrot.slane %v10545_v30, 4  ;;  %v10572_v34 = vor.u32 %v10571_v35, %v10567_v41  ;;  %v10589_v22 = vshll.u32 %v10211_v39, 16  ;;  %v10593_v28 = vshrl.u32 %v10211_v39, 16  ;;  %v15982_v35 = vld [vmem:[%s20152_s5 + $0x800] ss:$8 sps:$4 sm:$0xff]  }
 0x927   : > { %11094 = vmatprep.mubr.bf16.mxu0 %v19742_v56  ;;  %v10530_v46 = vsel %vm17918_vm12, %v10525_v62, %v10529_v0  ;;  %v10520_v12 = vsel %vm17918_vm12, %v10515_v31, %v10519_v9  ;;  %v10210_v9 = vld [vmem:[#allocation2 + $0x1e8] sm:$0xff]  ;;  %v10544_v30 = vsel %vm17918_vm12, %v10539_v51, %v10543_v52  ;;  %v10562_v37 = vor.u32 %v10561_v53, %v10558_v21  ;;  %v15987_v39 = vld [vmem:[%s20152_s5 + $0x814] ss:$8 sps:$4 sm:$0xff]   ;;  %v15985_v51 = vld [vmem:[%s20152_s5 + $0x810] ss:$8 sps:$4 sm:$0xff]  }
 0x928   : > { %v10548_v47 = vor.u32 %v10547_v61, %v10543_v52  ;;  %v19772_v1 = vcombine.high %v10520_v12, %v10530_v46  ;;  %v19778_v13 = vcombine.low %v10520_v12, %v10530_v46  ;;  %v10580_v29 = vshrl.u32 %v10210_v9, 16  ;;  %v15988_v21 = vld [vmem:[%s20152_s5 + $0x820] ss:$8 sps:$4 sm:$0xff]   ;;  %v15991_v53 = vld [vmem:[%s20152_s5 + $0x830] ss:$8 sps:$4 sm:$0xff]  }
 0x929   : > { %v10583_v58 = vshll.u32 %v10210_v9, 16  ;;  %v10573_v62 = vrot.slane %v10572_v34, 4  ;;  %v10577_v0 = vrot.slane %v10575_v57, 5  ;;  %v10591_v17 = vrot.slane %v10589_v22, 5  ;;  %v15996_v57 = vld [vmem:[%s20152_s5 + $0x844] ss:$8 sps:$4 sm:$0xff]  }
 0x92a   : > { %v10549_v3 = vrot.slane %v10548_v47, 4  ;;  %v10595_v61 = vrot.slane %v10593_v28, 4  ;;  %v10563_v31 = vrot.slane %v10562_v37, 4  ;;  %v10582_v63 = vrot.slane %v10580_v29, 4  ;;  %v15994_v9 = vld [vmem:[%s20152_s5 + $0x840] ss:$8 sps:$4 sm:$0xff]  }
 0x92b   : > { %v10585_v44 = vrot.slane %v10583_v58, 5  ;;  %v10578_v52 = vsel %vm17918_vm12, %v10573_v62, %v10577_v0  ;;  %v10599_v2 = vshll.u32 %v10212_v42, 16  ;;  %v15997_v34 = vld [vmem:[%s20152_s5 + $0x850] ss:$8 sps:$4 sm:$0xff]   ;;  %v16002_v22 = vld [vmem:[%s20152_s5 + $0x864] ss:$8 sps:$4 sm:$0xff]  }
 0x92c   : > { %v10554_v4 = vsel %vm17918_vm12, %v10549_v3, %v10553_v15  ;;  %v10596_v18 = vor.u32 %v10595_v61, %v10591_v17  ;;  %v10568_v47 = vsel %vm17918_vm12, %v10563_v31, %v10567_v41  ;;  %v16000_v28 = vld [vmem:[%s20152_s5 + $0x860] ss:$8 sps:$4 sm:$0xff]   ;;  %v16003_v37 = vld [vmem:[%s20152_s5 + $0x870] ss:$8 sps:$4 sm:$0xff]   ;;  %v16008_v29 = vld [vmem:[%s20152_s5 + $0x884] ss:$8 sps:$4 sm:$0xff]  }
 0x92d   : > { %v19782_v6 = vcombine.high %v10544_v30, %v10554_v4  ;;  %v19788_v46 = vcombine.low %v10544_v30, %v10554_v4  ;;  %v10586_v14 = vor.u32 %v10585_v44, %v10582_v63  ;;  %v19792_v19 = vcombine.high %v10568_v47, %v10578_v52  ;;  %v15999_v4 = vld [vmem:[%s20152_s5 + $0x854] ss:$8 sps:$4 sm:$0xff]   ;;  %v16006_v58 = vld [vmem:[%s20152_s5 + $0x880] ss:$8 sps:$4 sm:$0xff]   ;;  %v16009_v0 = vld [vmem:[%s20152_s5 + $0x890] ss:$8 sps:$4 sm:$0xff]  }
 0x92e   : > { %11095 = vmatmul.mubr.bf16.gmra.mrb[68].mxu0 %v19748_v36  ;;  %v10597_v12 = vrot.slane %v10596_v18, 4  ;;  %v10601_v23 = vrot.slane %v10599_v2, 5  ;;  %v19798_v3 = vcombine.low %v10568_v47, %v10578_v52  ;;  %v16005_v30 = vld [vmem:[%s20152_s5 + $0x874] ss:$8 sps:$4 sm:$0xff]   ;;  %v16012_v61 = vld [vmem:[%s20152_s5 + $0x8a0] ss:$8 sps:$4 sm:$0xff]  }
 0x92f   : > { %11104 = vmatprep.mubr.bf16.mxu0 %v19752_v11  ;;  %v10587_v55 = vrot.slane %v10586_v14, 4  ;;  %v16011_v62 = vld [vmem:[%s20152_s5 + $0x894] ss:$8 sps:$4 sm:$0xff]   ;;  %v16015_v31 = vld [vmem:[%s20152_s5 + $0x8b0] ss:$8 sps:$4 sm:$0xff]  }
 0x930   : > { %v10602_v43 = vsel %vm17918_vm12, %v10597_v12, %v10601_v23  ;;  %v16017_v42 = vld [vmem:[%s20152_s5 + $0x8b4] ss:$8 sps:$4 sm:$0xff]   ;;  %v16020_v63 = vld [vmem:[%s20152_s5 + $0x8c4] ss:$8 sps:$4 sm:$0xff]   ;;  %v16018_v44 = vld [vmem:[%s20152_s5 + $0x8c0] ss:$8 sps:$4 sm:$0xff]  }
 0x931   : > { %v10592_v15 = vsel %vm17918_vm12, %v10587_v55, %v10591_v17  ;;  %v16014_v17 = vld [vmem:[%s20152_s5 + $0x8a4] ss:$8 sps:$4 sm:$0xff]   ;;  %v16023_v52 = vld [vmem:[%s20152_s5 + $0x8d4] ss:$8 sps:$4 sm:$0xff]   ;;  %v16021_v18 = vld [vmem:[%s20152_s5 + $0x8d0] ss:$8 sps:$4 sm:$0xff]  }
 0x932   : > { %v19802_v20 = vcombine.high %v10592_v15, %v10602_v43  ;;  %v19806_v41 = vcombine.low %v10592_v15, %v10602_v43  ;;  %v16026_v2 = vld [vmem:[%s20152_s5 + $0x8e4] ss:$8 sps:$4 sm:$0xff]   ;;  %v16024_v47 = vld [vmem:[%s20152_s5 + $0x8e0] ss:$8 sps:$4 sm:$0xff]   ;;  %v16029_v14 = vld [vmem:[%s20152_s5 + $0x8f4] ss:$8 sps:$4 sm:$0xff]  }
 0x933   : > { %v16027_v12 = vld [vmem:[%s20152_s5 + $0x8f0] ss:$8 sps:$4 sm:$0xff]   ;;  %v10213_v55 = vld [vmem:[#allocation2 + $0x208] sm:$0xff] }
 0x934   : > { %v10214_v23 = vld [vmem:[#allocation2 + $0x210] sm:$0xff] }
 0x935   : > { %v10613_v43 = vshll.u32 %v10214_v23, 16  ;;  %v10617_v15 = vshrl.u32 %v10214_v23, 16 }
 0x936   : > { %11105 = vmatmul.mubr.bf16.gmra.mrb[72].mxu0 %v19758_v38 }
 0x937   : > { %11114 = vmatprep.mubr.bf16.mxu0 %v19762_v16 }
 0x93e   : > { %11115 = vmatmul.mubr.bf16.gmra.mrb[76].mxu0 %v19768_v32 }
 0x93f   : > { %11124 = vmatprep.mubr.bf16.mxu0 %v19772_v1 }
 0x946   : > { %11125 = vmatmul.mubr.bf16.gmra.mrb[80].mxu0 %v19778_v13 }
 0x947   : > { %11134 = vmatprep.mubr.bf16.mxu0 %v19782_v6 }
 0x94e   : > { %11135 = vmatmul.mubr.bf16.gmra.mrb[84].mxu0 %v19788_v46 }
 0x94f   : > { %11144 = vmatprep.mubr.bf16.mxu0 %v19792_v19 }
 0x956   : > { %11145 = vmatmul.mubr.bf16.gmra.mrb[88].mxu0 %v19798_v3 }
 0x957   : > { %11154 = vmatprep.mubr.bf16.mxu0 %v19802_v20 }
 0x95e   : > { %11155 = vmatmul.mubr.bf16.gmra.mrb[92].mxu0 %v19806_v41 }
 0x95f   : > { %11462 = vmatprep.mubr.bf16.mxu0 %v19573_v26  ;;  %v15990_v26 = vld [vmem:[%s20152_s5 + $0x824] ss:$8 sps:$4 sm:$0xff]  }
 0x966   : > { %11463 = vmatmul.mubr.bf16.vlgmr.msra.gmra.mrb[32].mxu0 %v19584_v25  ;;  %v15993_v25 = vld [vmem:[%s20152_s5 + $0x834] ss:$8 sps:$4 sm:$0xff]  }
 0x967   : > { %11889 = vmatpush1.bf16.msra.mxu0 %v15982_v35  ;;  %11472 = vmatprep.mubr.bf16.mxu0 %v19594_v40  ;;  %v10604_v35 = vshrl.u32 %v10213_v55, 16 }
 0x968   : > { %11890 = vmatprep.subr.bf16.mxu0 %v15987_v39  ;;  %v10607_v39 = vshll.u32 %v10213_v55, 16  ;;  %v12387_v55 = vld [vmem:[%s20154_s7 + $0xd0] sm:$0xff] }
 0x96b   : > { %11891 = vmatpush1.bf16.msra.mxu0 %v15985_v51  ;;  %v10615_v51 = vrot.slane %v10613_v43, 5  ;;  %v12388_v43 = vld [vmem:[%s20154_s7 + $0xd8] sm:$0xff] }
 0x96c   : > { %11892 = vmatprep.subr.bf16.mxu0 %v15990_v26  ;;  %v10619_v26 = vrot.slane %v10617_v15, 4  ;;  %v14095_v15 = vpack.c.bf16 %v12388_v43, %v12387_v55 }
 0x96e   : > { %11473 = vmatmul.mubr.bf16.gmra.mrb[36].mxu0 %v19606_v10 }
 0x96f   : > { %11482 = vmatprep.mubr.bf16.mxu0 %v19616_v33  ;;  %11893 = vmatpush1.bf16.msra.mxu0 %v15988_v21  ;;  %v10215_v21 = vld [vmem:[#allocation2 + $0x218] sm:$0x11] }
 0x970   : > { %11894 = vmatprep.subr.bf16.mxu0 %v15993_v25  ;;  %v10606_v25 = vrot.slane %v10604_v35, 4  ;;  %v12371_v35 = vld [vmem:[%s20154_s7 + $0x50] sm:$0xff] }
 0x973   : > { %11895 = vmatpush1.bf16.msra.mxu0 %v15991_v53  ;;  %v10609_v53 = vrot.slane %v10607_v39, 5  ;;  %v12372_v39 = vld [vmem:[%s20154_s7 + $0x58] sm:$0xff] }
 0x974   : > { %11896 = vmatprep.subr.bf16.mxu0 %v15996_v57  ;;  %v10620_v57 = vor.u32 %v10619_v26, %v10615_v51  ;;  %v12389_v26 = vld [vmem:[%s20154_s7 + $0xe0] sm:$0xff] }
 0x976   : > { %11483 = vmatmul.mubr.bf16.gmra.mrb[40].mxu0 %v19628_v27 }
 0x977   : > { %11492 = vmatprep.mubr.bf16.mxu0 %v19638_v7  ;;  %11897 = vmatpush1.bf16.msra.mxu0 %v15994_v9  ;;  %v10623_v9 = vshll.u32 %v10215_v21, 16  ;;  %v12390_v21 = vld [vmem:[%s20154_s7 + $0xe8] sm:$0xff] }
 0x978   : > { %11898 = vmatprep.subr.bf16.mxu0 %v15999_v4  ;;  %v10610_v4 = vor.u32 %v10609_v53, %v10606_v25  ;;  %v14099_v25 = vpack.c.bf16 %v12390_v21, %v12389_v26  ;;  %v12373_v53 = vld [vmem:[%s20154_s7 + $0x60] sm:$0xff] }
 0x97b   : > { %11899 = vmatpush1.bf16.msra.mxu0 %v15997_v34  ;;  %v10621_v34 = vrot.slane %v10620_v57, 4  ;;  %v12374_v57 = vld [vmem:[%s20154_s7 + $0x68] sm:$0xff] }
 0x97c   : > { %11900 = vmatprep.subr.bf16.mxu0 %v16002_v22  ;;  %v10625_v22 = vrot.slane %v10623_v9, 5  ;;  %v14101_v9 = vpack.c.bf16 %v12374_v57, %v12373_v53 }
 0x97e   : > { %11493 = vmatmul.mubr.bf16.gmra.mrb[44].mxu0 %v19650_v50 }
 0x97f   : > { %11502 = vmatprep.mubr.bf16.mxu0 %v19660_v24  ;;  %11901 = vmatpush1.bf16.msra.mxu0 %v16000_v28  ;;  %v10611_v28 = vrot.slane %v10610_v4, 4  ;;  %v12145_v4 = vld [vmem:[%s20153_s6] sm:$0x3] }
 0x980   : > { %11902 = vmatprep.subr.bf16.mxu0 %v16005_v30  ;;  %v10626_v30 = vsel %vm17918_vm12, %v10621_v34, %v10625_v22  ;;  %v20412_v34 = vld [vmem:[#allocation4_spill] sm:$0xff] }
 0x981   : > { %v20056_v22 = vrot.slane %v12145_v4, %v20412_v34 }
 0x983   : > { %11903 = vmatpush1.bf16.msra.mxu0 %v16003_v37  ;;  %v10616_v37 = vsel %vm17918_vm12, %v10611_v28, %v10615_v51  ;;  %v14097_v51 = vpack.c.bf16 %v12372_v39, %v12371_v35  ;;  %v20413_v28 = vld [vmem:[#allocation5_spill] sm:$0xff] }
 0x984   : > { %11904 = vmatprep.subr.bf16.mxu0 %v16008_v29  ;;  %v13873_v29 = vcombine.high %v10616_v37, %v10626_v30 }
 0x986   : > { %11503 = vmatmul.mubr.bf16.gmra.mrb[48].mxu0 %v19672_v5 }
 0x987   : > { %11512 = vmatprep.mubr.bf16.mxu0 %v19682_v54  ;;  %11905 = vmatpush1.bf16.msra.mxu0 %v16006_v58  ;;  %v13872_v58 = vcombine.low %v10616_v37, %v10626_v30  ;;  %v20059_v30 = vrot.slane %v12145_v4, %v20413_v28 }
 0x988   : > { %11906 = vmatprep.subr.bf16.mxu0 %v16011_v62  ;;  %v12365_v62 = vld [vmem:[%s20154_s7 + $0x20] sm:$0xff] }
 0x98b   : > { %11907 = vmatpush1.bf16.msra.mxu0 %v16009_v0  ;;  %v12366_v0 = vld [vmem:[%s20154_s7 + $0x28] sm:$0xff] }
 0x98c   : > { %11908 = vmatprep.subr.bf16.mxu0 %v16014_v17  ;;  %v14085_v17 = vpack.c.bf16 %v12366_v0, %v12365_v62  ;;  %v12376_v62 = vld [vmem:[%s20154_s7 + $0x78] sm:$0xff] }
 0x98e   : > { %11513 = vmatmul.mubr.bf16.gmra.mrb[52].mxu0 %v19694_v59 }
 0x98f   : > { %11522 = vmatprep.mubr.bf16.mxu0 %v19704_v49  ;;  %11909 = vmatpush1.bf16.msra.mxu0 %v16012_v61  ;;  %v12383_v61 = vld [vmem:[%s20154_s7 + $0xb0] sm:$0xff] }
 0x990   : > { %11910 = vmatprep.subr.bf16.mxu0 %v16017_v42  ;;  %v12384_v42 = vld [vmem:[%s20154_s7 + $0xb8] sm:$0xff] }
 0x993   : > { %11911 = vmatpush1.bf16.msra.mxu0 %v16015_v31  ;;  %v14087_v31 = vpack.c.bf16 %v12384_v42, %v12383_v61 }
 0x994   : > { %11912 = vmatprep.subr.bf16.mxu0 %v16020_v63  ;;  %v12367_v63 = vld [vmem:[%s20154_s7 + $0x30] sm:$0xff] }
 0x996   : > { %11523 = vmatmul.mubr.bf16.gmra.mrb[56].mxu0 %v19716_v8 }
 0x997   : > { %11532 = vmatprep.mubr.bf16.mxu0 %v19726_v45  ;;  %11913 = vmatpush1.bf16.msra.mxu0 %v16018_v44  ;;  %v12368_v44 = vld [vmem:[%s20154_s7 + $0x38] sm:$0xff] }
 0x998   : > { %11914 = vmatprep.subr.bf16.mxu0 %v16023_v52  ;;  %v14089_v52 = vpack.c.bf16 %v12368_v44, %v12367_v63 }
 0x99b   : > { %11915 = vmatpush1.bf16.msra.mxu0 %v16021_v18  ;;  %v12385_v18 = vld [vmem:[%s20154_s7 + $0xc0] sm:$0xff] }
 0x99c   : > { %11916 = vmatprep.subr.bf16.mxu0 %v16026_v2  ;;  %v12386_v2 = vld [vmem:[%s20154_s7 + $0xc8] sm:$0xff] }
 0x99e   : > { %11533 = vmatmul.mubr.bf16.gmra.mrb[60].mxu0 %v19738_v48 }
 0x99f   : > { %11542 = vmatprep.mubr.bf16.mxu0 %v19742_v56  ;;  %11917 = vmatpush1.bf16.msra.mxu0 %v16024_v47  ;;  %v14091_v47 = vpack.c.bf16 %v12386_v2, %v12385_v18 }
 0x9a0   : > { %11918 = vmatprep.subr.bf16.mxu0 %v16029_v14  ;;  %v12369_v14 = vld [vmem:[%s20154_s7 + $0x40] sm:$0xff] }
 0x9a3   : > { %11919 = vmatpush1.bf16.msra.mxu0 %v16027_v12  ;;  %v12370_v12 = vld [vmem:[%s20154_s7 + $0x48] sm:$0xff] }
 0x9a4   : > { %v14093_v23 = vpack.c.bf16 %v12370_v12, %v12369_v14 }
 0x9a6   : > { %11543 = vmatmul.mubr.bf16.gmra.mrb[64].mxu0 %v19748_v36 }
 0x9a7   : > { %11552 = vmatprep.mubr.bf16.mxu0 %v19752_v11 }
 0x9ae   : > { %11553 = vmatmul.mubr.bf16.gmra.mrb[68].mxu0 %v19758_v38 }
 0x9af   : > { %11562 = vmatprep.mubr.bf16.mxu0 %v19762_v16 }
 0x9b6   : > { %11563 = vmatmul.mubr.bf16.gmra.mrb[72].mxu0 %v19768_v32 }
 0x9b7   : > { %11572 = vmatprep.mubr.bf16.mxu0 %v19772_v1 }
 0x9be   : > { %11573 = vmatmul.mubr.bf16.gmra.mrb[76].mxu0 %v19778_v13 }
 0x9bf   : > { %11582 = vmatprep.mubr.bf16.mxu0 %v19782_v6 }
 0x9c6   : > { %11583 = vmatmul.mubr.bf16.gmra.mrb[80].mxu0 %v19788_v46 }
 0x9c7   : > { %11592 = vmatprep.mubr.bf16.mxu0 %v19792_v19 }
 0x9ce   : > { %11593 = vmatmul.mubr.bf16.gmra.mrb[84].mxu0 %v19798_v3 }
 0x9cf   : > { %11602 = vmatprep.mubr.bf16.mxu0 %v19802_v20 }
 0x9d6   : > { %11603 = vmatmul.mubr.bf16.gmra.mrb[88].mxu0 %v19806_v41 }
 0x9d7   : > { %11612 = vmatprep.mubr.bf16.mxu0 %v13873_v29 }
 0x9de   : > { %11613 = vmatmul.mubr.bf16.gmra.mrb[92].mxu0 %v13872_v58 }
 0x9df   : > { %11920 = vmatprep.mubr.bf16.mxu0 %v19594_v40  ;;  %v16049_v40 = vld [vmem:[#allocation2] sm:$0xff] }
 0x9e6   : > { %11921 = vmatmul.mubr.bf16.vlgmr.msra.gmra.mrb[32].mxu0 %v19606_v10  ;;  %v10628_v10 = vshrl.u32 %v16049_v40, 16 }
 0x9e7   : > { %11930 = vmatprep.mubr.bf16.mxu0 %v19616_v33  ;;  %v10631_v33 = vshll.u32 %v16049_v40, 16 }
 0x9ee   : > { %11931 = vmatmul.mubr.bf16.gmra.mrb[36].mxu0 %v19628_v27  ;;  %v10630_v27 = vrot.slane %v10628_v10, 4 }
 0x9ef   : > { %11940 = vmatprep.mubr.bf16.mxu0 %v19638_v7  ;;  %v10633_v7 = vrot.slane %v10631_v33, 5 }
 0x9f6   : > { %11941 = vmatmul.mubr.bf16.gmra.mrb[40].mxu0 %v19650_v50  ;;  %v10218_v50 = vld [vmem:[#allocation2 + $0x238] sm:$0x11] }
 0x9f7   : > { %11950 = vmatprep.mubr.bf16.mxu0 %v19660_v24  ;;  %v10634_v24 = vor.u32 %v10633_v7, %v10630_v27 }
 0x9fe   : > { %11951 = vmatmul.mubr.bf16.gmra.mrb[44].mxu0 %v19672_v5  ;;  %v10647_v5 = vshll.u32 %v10218_v50, 16 }
 0x9ff   : > { %11960 = vmatprep.mubr.bf16.mxu0 %v19682_v54  ;;  %v10635_v54 = vrot.slane %v10634_v24, 4 }
 0xa06   : > { %11961 = vmatmul.mubr.bf16.gmra.mrb[48].mxu0 %v19694_v59  ;;  %v10649_v59 = vrot.slane %v10647_v5, 5 }
 0xa07   : > { %11970 = vmatprep.mubr.bf16.mxu0 %v19704_v49  ;;  %v12377_v49 = vld [vmem:[%s20154_s7 + $0x80] sm:$0xff] }
 0xa0e   : > { %11971 = vmatmul.mubr.bf16.gmra.mrb[52].mxu0 %v19716_v8  ;;  %v12378_v8 = vld [vmem:[%s20154_s7 + $0x88] sm:$0xff] }
 0xa0f   : > { %11980 = vmatprep.mubr.bf16.mxu0 %v19726_v45  ;;  %v14075_v45 = vpack.c.bf16 %v12378_v8, %v12377_v49 }
 0xa11   : > { %14076 = vmatprep.subr.bf16.mxu1 %v14075_v45 }
 0xa16   : > { %11981 = vmatmul.mubr.bf16.gmra.mrb[56].mxu0 %v19738_v48  ;;  %v12361_v48 = vld [vmem:[%s20154_s7] sm:$0xff] }
 0xa17   : > { %11990 = vmatprep.mubr.bf16.mxu0 %v19742_v56  ;;  %v12362_v56 = vld [vmem:[%s20154_s7 + $0x8] sm:$0xff] }
 0xa1e   : > { %11991 = vmatmul.mubr.bf16.gmra.mrb[60].mxu0 %v19748_v36  ;;  %v10640_v36 = vsel %vm17918_vm12, %v10635_v54, %v10633_v7 }
 0xa1f   : > { %12000 = vmatprep.mubr.bf16.mxu0 %v19752_v11  ;;  %v10650_v11 = vsel %vm17918_vm12, %v10635_v54, %v10649_v59 }
 0xa26   : > { %12001 = vmatmul.mubr.bf16.gmra.mrb[64].mxu0 %v19758_v38  ;;  %v14077_v38 = vpack.c.bf16 %v12362_v56, %v12361_v48 }
 0xa27   : > { %12010 = vmatprep.mubr.bf16.mxu0 %v19762_v16  ;;  %v13939_v16 = vcombine.high %v10640_v36, %v10650_v11 }
 0xa28   : > { %14078 = vmatpush3.bf16.msra.mxu1 %v14077_v38 }
 0xa2e   : > { %12011 = vmatmul.mubr.bf16.gmra.mrb[68].mxu0 %v19768_v32  ;;  %v13938_v32 = vcombine.low %v10640_v36, %v10650_v11 }
 0xa2f   : > { %12020 = vmatprep.mubr.bf16.mxu0 %v19772_v1  ;;  %v12379_v1 = vld [vmem:[%s20154_s7 + $0x90] sm:$0xff] }
 0xa36   : > { %12021 = vmatmul.mubr.bf16.gmra.mrb[72].mxu0 %v19778_v13  ;;  %v12380_v13 = vld [vmem:[%s20154_s7 + $0x98] sm:$0xff] }
 0xa37   : > { %12030 = vmatprep.mubr.bf16.mxu0 %v19782_v6  ;;  %v14079_v6 = vpack.c.bf16 %v12380_v13, %v12379_v1 }
 0xa39   : > { %14080 = vmatprep.subr.bf16.mxu1 %v14079_v6 }
 0xa3e   : > { %12031 = vmatmul.mubr.bf16.gmra.mrb[76].mxu0 %v19788_v46  ;;  %v12364_v46 = vld [vmem:[%s20154_s7 + $0x18] sm:$0xff] }
 0xa3f   : > { %12040 = vmatprep.mubr.bf16.mxu0 %v19792_v19  ;;  %v14081_v19 = vpack.c.bf16 %v12364_v46, %v12363_v60  ;;  %v12391_v60 = vld [vmem:[%s20154_s7 + $0xf0] sm:$0xff]  ;;  %v12392_v46 = vld [vmem:[%s20154_s7 + $0xf8] sm:$0xff] }
 0xa41   : > { %14082 = vmatpush3.bf16.msra.mxu1 %v14081_v19  ;;  %v12375_v19 = vld [vmem:[%s20154_s7 + $0x70] sm:$0xff] }
 0xa46   : > { %12041 = vmatmul.mubr.bf16.gmra.mrb[80].mxu0 %v19798_v3  ;;  %v12381_v3 = vld [vmem:[%s20154_s7 + $0xa0] sm:$0xff] }
 0xa47   : > { %12050 = vmatprep.mubr.bf16.mxu0 %v19802_v20  ;;  %v12382_v20 = vld [vmem:[%s20154_s7 + $0xa8] sm:$0xff] }
 0xa4e   : > { %12051 = vmatmul.mubr.bf16.gmra.mrb[84].mxu0 %v19806_v41  ;;  %v14083_v41 = vpack.c.bf16 %v12382_v20, %v12381_v3 }
 0xa4f   : > { %12060 = vmatprep.mubr.bf16.mxu0 %v13873_v29 }
 0xa50   : > { %14084 = vmatprep.subr.bf16.mxu1 %v14083_v41  ;;  %v14103_v41 = vpack.c.bf16 %v12392_v46, %v12391_v60 }
 0xa51   : > { %14086 = vmatpush3.bf16.msra.mxu1 %v14085_v17  ;;  %v14105_v17 = vpack.c.bf16 %v12376_v62, %v12375_v19 }
 0xa52   : > { %14088 = vmatprep.subr.bf16.mxu1 %v14087_v31 }
 0xa55   : > { %14090 = vmatpush3.bf16.msra.mxu1 %v14089_v52 }
 0xa56   : > { %12061 = vmatmul.mubr.bf16.gmra.mrb[88].mxu0 %v13872_v58  ;;  %14092 = vmatprep.subr.bf16.mxu1 %v14091_v47 }
 0xa57   : > { %12070 = vmatprep.mubr.bf16.mxu0 %v13939_v16 }
 0xa59   : > { %14094 = vmatpush3.bf16.msra.mxu1 %v14093_v23 }
 0xa5a   : > { %14096 = vmatprep.subr.bf16.mxu1 %v14095_v15 }
 0xa5d   : > { %14098 = vmatpush3.bf16.msra.mxu1 %v14097_v51 }
 0xa5e   : > { %12071 = vmatmul.mubr.bf16.gmra.mrb[92].mxu0 %v13938_v32  ;;  %14100 = vmatprep.subr.bf16.mxu1 %v14099_v25 }
 0xa61   : > { %14102 = vmatpush3.bf16.msra.mxu1 %v14101_v9 }
 0xa62   : > { %14104 = vmatprep.subr.bf16.mxu1 %v14103_v41 }
 0xa65   : > { %14106 = vmatpush3.bf16.msra.mxu1 %v14105_v17 }
 0xab9   : > { %v11922_v37 = vpop.f32.mrb[32].mxu0 }
 0xaba   : > { %v12157_v29 = vadd.f32 %v20056_v22, %v11922_v37  ;;  %v11924_v58 = vpop.f32.mrb[33].mxu0 }
 0xabb   : > { %v12158_v40 = vadd.f32 %v20059_v30, %v11924_v58  ;;  %v11926_v10 = vpop.f32.mrb[34].mxu0 }
 0xabc   : > { %v12159_v33 = vadd.f32 %v20056_v22, %v11926_v10  ;;  %v11928_v27 = vpop.f32.mrb[35].mxu0  ;;  %v12221_v50 = vmax.f32 %v12157_v29, 0.0 }
 0xabd   : > { %v12160_v7 = vadd.f32 %v20059_v30, %v11928_v27  ;;  %v12222_v5 = vmax.f32 %v12158_v40, 0.0 }
 0xabe   : > { %v12223_v24 = vmax.f32 %v12159_v33, 0.0 }
 0xabf   : > { %v12224_v54 = vmax.f32 %v12160_v7, 0.0 }
 0xac0   : > { %v12285_v59 = vadd.f32 %v12223_v24, %v12221_v50 }
 0xac1   : > { %v12322_v49 = vadd.f32 %v12224_v54, %v12222_v5  ;;  %v11932_v8 = vpop.f32.mrb[36].mxu0 }
 0xac2   : > { %v12161_v45 = vadd.f32 %v20056_v22, %v11932_v8  ;;  %v11934_v48 = vpop.f32.mrb[37].mxu0 }
 0xac3   : > { %v12162_v56 = vadd.f32 %v20059_v30, %v11934_v48  ;;  %v11936_v36 = vpop.f32.mrb[38].mxu0 }
 0xac4   : > { %v12225_v11 = vmax.f32 %v12161_v45, 0.0  ;;  %v12163_v38 = vadd.f32 %v20056_v22, %v11936_v36  ;;  %v11938_v16 = vpop.f32.mrb[39].mxu0 }
 0xac5   : > { %v12226_v32 = vmax.f32 %v12162_v56, 0.0  ;;  %v12164_v1 = vadd.f32 %v20059_v30, %v11938_v16 }
 0xac6   : > { %v12286_v13 = vadd.f32 %v12285_v59, %v12225_v11  ;;  %v12227_v6 = vmax.f32 %v12163_v38, 0.0 }
 0xac7   : > { %v12323_v3 = vadd.f32 %v12322_v49, %v12226_v32  ;;  %v12228_v20 = vmax.f32 %v12164_v1, 0.0 }
 0xac8   : > { %v12287_v0 = vadd.f32 %v12286_v13, %v12227_v6 }
 0xac9   : > { %v12324_v61 = vadd.f32 %v12323_v3, %v12228_v20  ;;  %v11942_v42 = vpop.f32.mrb[40].mxu0 }
 0xaca   : > { %v12165_v31 = vadd.f32 %v20056_v22, %v11942_v42  ;;  %v11944_v63 = vpop.f32.mrb[41].mxu0 }
 0xacb   : > { %v12166_v44 = vadd.f32 %v20059_v30, %v11944_v63  ;;  %v11946_v52 = vpop.f32.mrb[42].mxu0 }
 0xacc   : > { %v12229_v18 = vmax.f32 %v12165_v31, 0.0  ;;  %v12167_v2 = vadd.f32 %v20056_v22, %v11946_v52  ;;  %v11948_v47 = vpop.f32.mrb[43].mxu0 }
 0xacd   : > { %v12230_v14 = vmax.f32 %v12166_v44, 0.0  ;;  %v12168_v12 = vadd.f32 %v20059_v30, %v11948_v47 }
 0xace   : > { %v12288_v23 = vadd.f32 %v12287_v0, %v12229_v18  ;;  %v12231_v55 = vmax.f32 %v12167_v2, 0.0 }
 0xacf   : > { %v12325_v43 = vadd.f32 %v12324_v61, %v12230_v14  ;;  %v12232_v15 = vmax.f32 %v12168_v12, 0.0 }
 0xad0   : > { %v12289_v35 = vadd.f32 %v12288_v23, %v12231_v55 }
 0xad1   : > { %v12326_v39 = vadd.f32 %v12325_v43, %v12232_v15  ;;  %v11952_v51 = vpop.f32.mrb[44].mxu0 }
 0xad2   : > { %v12169_v26 = vadd.f32 %v20056_v22, %v11952_v51  ;;  %v11954_v21 = vpop.f32.mrb[45].mxu0 }
 0xad3   : > { %v12170_v25 = vadd.f32 %v20059_v30, %v11954_v21  ;;  %v11956_v53 = vpop.f32.mrb[46].mxu0 }
 0xad4   : > { %v12233_v57 = vmax.f32 %v12169_v26, 0.0  ;;  %v12171_v9 = vadd.f32 %v20056_v22, %v11956_v53  ;;  %v11958_v4 = vpop.f32.mrb[47].mxu0 }
 0xad5   : > { %v12234_v34 = vmax.f32 %v12170_v25, 0.0  ;;  %v12172_v28 = vadd.f32 %v20059_v30, %v11958_v4 }
 0xad6   : > { %v12290_v37 = vadd.f32 %v12289_v35, %v12233_v57  ;;  %v12235_v29 = vmax.f32 %v12171_v9, 0.0 }
 0xad7   : > { %v12327_v58 = vadd.f32 %v12326_v39, %v12234_v34  ;;  %v12236_v40 = vmax.f32 %v12172_v28, 0.0 }
 0xad8   : > { %v12291_v10 = vadd.f32 %v12290_v37, %v12235_v29 }
 0xad9   : > { %v12328_v33 = vadd.f32 %v12327_v58, %v12236_v40  ;;  %v11962_v27 = vpop.f32.mrb[48].mxu0 }
 0xada   : > { %v12173_v7 = vadd.f32 %v20056_v22, %v11962_v27  ;;  %v11964_v50 = vpop.f32.mrb[49].mxu0 }
 0xadb   : > { %v12174_v24 = vadd.f32 %v20059_v30, %v11964_v50  ;;  %v11966_v5 = vpop.f32.mrb[50].mxu0 }
 0xadc   : > { %v12237_v54 = vmax.f32 %v12173_v7, 0.0  ;;  %v12175_v59 = vadd.f32 %v20056_v22, %v11966_v5  ;;  %v11968_v49 = vpop.f32.mrb[51].mxu0 }
 0xadd   : > { %v12238_v8 = vmax.f32 %v12174_v24, 0.0  ;;  %v12176_v45 = vadd.f32 %v20059_v30, %v11968_v49 }
 0xade   : > { %v12292_v48 = vadd.f32 %v12291_v10, %v12237_v54  ;;  %v12239_v56 = vmax.f32 %v12175_v59, 0.0 }
 0xadf   : > { %v12329_v36 = vadd.f32 %v12328_v33, %v12238_v8  ;;  %v12240_v11 = vmax.f32 %v12176_v45, 0.0 }
 0xae0   : > { %v12293_v38 = vadd.f32 %v12292_v48, %v12239_v56 }
 0xae1   : > { %v12330_v16 = vadd.f32 %v12329_v36, %v12240_v11  ;;  %v11972_v32 = vpop.f32.mrb[52].mxu0 }
 0xae2   : > { %v12177_v1 = vadd.f32 %v20056_v22, %v11972_v32  ;;  %v11974_v13 = vpop.f32.mrb[53].mxu0 }
 0xae3   : > { %v12178_v6 = vadd.f32 %v20059_v30, %v11974_v13  ;;  %v11976_v60 = vpop.f32.mrb[54].mxu0 }
 0xae4   : > { %v12241_v46 = vmax.f32 %v12177_v1, 0.0  ;;  %v12179_v19 = vadd.f32 %v20056_v22, %v11976_v60  ;;  %v11978_v3 = vpop.f32.mrb[55].mxu0 }
 0xae5   : > { %v12242_v20 = vmax.f32 %v12178_v6, 0.0  ;;  %v12180_v41 = vadd.f32 %v20059_v30, %v11978_v3 }
 0xae6   : > { %v12294_v62 = vadd.f32 %v12293_v38, %v12241_v46  ;;  %v12243_v0 = vmax.f32 %v12179_v19, 0.0 }
 0xae7   : > { %v12331_v17 = vadd.f32 %v12330_v16, %v12242_v20  ;;  %v12244_v61 = vmax.f32 %v12180_v41, 0.0 }
 0xae8   : > { %v12295_v42 = vadd.f32 %v12294_v62, %v12243_v0 }
 0xae9   : > { %v12332_v31 = vadd.f32 %v12331_v17, %v12244_v61  ;;  %v11982_v63 = vpop.f32.mrb[56].mxu0 }
 0xaea   : > { %v12181_v44 = vadd.f32 %v20056_v22, %v11982_v63  ;;  %v11984_v52 = vpop.f32.mrb[57].mxu0 }
 0xaeb   : > { %v12182_v18 = vadd.f32 %v20059_v30, %v11984_v52  ;;  %v11986_v2 = vpop.f32.mrb[58].mxu0 }
 0xaec   : > { %v12245_v47 = vmax.f32 %v12181_v44, 0.0  ;;  %v12183_v14 = vadd.f32 %v20056_v22, %v11986_v2  ;;  %v11988_v12 = vpop.f32.mrb[59].mxu0 }
 0xaed   : > { %v12246_v23 = vmax.f32 %v12182_v18, 0.0  ;;  %v12184_v55 = vadd.f32 %v20059_v30, %v11988_v12 }
 0xaee   : > { %v12296_v43 = vadd.f32 %v12295_v42, %v12245_v47  ;;  %v12247_v15 = vmax.f32 %v12183_v14, 0.0 }
 0xaef   : > { %v12333_v35 = vadd.f32 %v12332_v31, %v12246_v23  ;;  %v12248_v39 = vmax.f32 %v12184_v55, 0.0 }
 0xaf0   : > { %v12297_v51 = vadd.f32 %v12296_v43, %v12247_v15 }
 0xaf1   : > { %v12334_v26 = vadd.f32 %v12333_v35, %v12248_v39  ;;  %v11992_v21 = vpop.f32.mrb[60].mxu0 }
 0xaf2   : > { %v12185_v25 = vadd.f32 %v20056_v22, %v11992_v21  ;;  %v11994_v53 = vpop.f32.mrb[61].mxu0 }
 0xaf3   : > { %v12186_v57 = vadd.f32 %v20059_v30, %v11994_v53  ;;  %v11996_v9 = vpop.f32.mrb[62].mxu0 }
 0xaf4   : > { %v12249_v4 = vmax.f32 %v12185_v25, 0.0  ;;  %v12187_v34 = vadd.f32 %v20056_v22, %v11996_v9  ;;  %v11998_v28 = vpop.f32.mrb[63].mxu0 }
 0xaf5   : > { %v12250_v37 = vmax.f32 %v12186_v57, 0.0  ;;  %v12188_v29 = vadd.f32 %v20059_v30, %v11998_v28 }
 0xaf6   : > { %v12298_v58 = vadd.f32 %v12297_v51, %v12249_v4  ;;  %v12251_v40 = vmax.f32 %v12187_v34, 0.0 }
 0xaf7   : > { %v12335_v10 = vadd.f32 %v12334_v26, %v12250_v37  ;;  %v12252_v33 = vmax.f32 %v12188_v29, 0.0 }
 0xaf8   : > { %v12299_v27 = vadd.f32 %v12298_v58, %v12251_v40 }
 0xaf9   : > { %v12336_v7 = vadd.f32 %v12335_v10, %v12252_v33  ;;  %v12002_v50 = vpop.f32.mrb[64].mxu0 }
 0xafa   : > { %v12189_v24 = vadd.f32 %v20056_v22, %v12002_v50  ;;  %v12004_v5 = vpop.f32.mrb[65].mxu0 }
 0xafb   : > { %v12190_v54 = vadd.f32 %v20059_v30, %v12004_v5  ;;  %v12006_v59 = vpop.f32.mrb[66].mxu0 }
 0xafc   : > { %v12253_v49 = vmax.f32 %v12189_v24, 0.0  ;;  %v12191_v8 = vadd.f32 %v20056_v22, %v12006_v59  ;;  %v12008_v45 = vpop.f32.mrb[67].mxu0 }
 0xafd   : > { %v12254_v48 = vmax.f32 %v12190_v54, 0.0  ;;  %v12192_v56 = vadd.f32 %v20059_v30, %v12008_v45 }
 0xafe   : > { %v12300_v36 = vadd.f32 %v12299_v27, %v12253_v49  ;;  %v12255_v11 = vmax.f32 %v12191_v8, 0.0 }
 0xaff   : > { %v12337_v38 = vadd.f32 %v12336_v7, %v12254_v48  ;;  %v12256_v16 = vmax.f32 %v12192_v56, 0.0 }
 0xb00   : > { %v12301_v32 = vadd.f32 %v12300_v36, %v12255_v11 }
 0xb01   : > { %v12338_v1 = vadd.f32 %v12337_v38, %v12256_v16  ;;  %v12012_v13 = vpop.f32.mrb[68].mxu0 }
 0xb02   : > { %v12193_v6 = vadd.f32 %v20056_v22, %v12012_v13  ;;  %v12014_v60 = vpop.f32.mrb[69].mxu0 }
 0xb03   : > { %v12194_v46 = vadd.f32 %v20059_v30, %v12014_v60  ;;  %v12016_v19 = vpop.f32.mrb[70].mxu0 }
 0xb04   : > { %v12257_v3 = vmax.f32 %v12193_v6, 0.0  ;;  %v12195_v20 = vadd.f32 %v20056_v22, %v12016_v19  ;;  %v12018_v41 = vpop.f32.mrb[71].mxu0 }
 0xb05   : > { %v12258_v62 = vmax.f32 %v12194_v46, 0.0  ;;  %v12196_v0 = vadd.f32 %v20059_v30, %v12018_v41 }
 0xb06   : > { %v12302_v17 = vadd.f32 %v12301_v32, %v12257_v3  ;;  %v12259_v61 = vmax.f32 %v12195_v20, 0.0 }
 0xb07   : > { %v12339_v42 = vadd.f32 %v12338_v1, %v12258_v62  ;;  %v12260_v31 = vmax.f32 %v12196_v0, 0.0 }
 0xb08   : > { %v12303_v63 = vadd.f32 %v12302_v17, %v12259_v61 }
 0xb09   : > { %v12340_v44 = vadd.f32 %v12339_v42, %v12260_v31  ;;  %v12022_v52 = vpop.f32.mrb[72].mxu0 }
 0xb0a   : > { %v12197_v18 = vadd.f32 %v20056_v22, %v12022_v52  ;;  %v12024_v2 = vpop.f32.mrb[73].mxu0 }
 0xb0b   : > { %v12198_v47 = vadd.f32 %v20059_v30, %v12024_v2  ;;  %v12026_v14 = vpop.f32.mrb[74].mxu0 }
 0xb0c   : > { %v12261_v12 = vmax.f32 %v12197_v18, 0.0  ;;  %v12199_v23 = vadd.f32 %v20056_v22, %v12026_v14  ;;  %v12028_v55 = vpop.f32.mrb[75].mxu0 }
 0xb0d   : > { %v12262_v43 = vmax.f32 %v12198_v47, 0.0  ;;  %v12200_v15 = vadd.f32 %v20059_v30, %v12028_v55 }
 0xb0e   : > { %v12304_v35 = vadd.f32 %v12303_v63, %v12261_v12  ;;  %v12263_v39 = vmax.f32 %v12199_v23, 0.0 }
 0xb0f   : > { %v12341_v51 = vadd.f32 %v12340_v44, %v12262_v43  ;;  %v12264_v26 = vmax.f32 %v12200_v15, 0.0 }
 0xb10   : > { %v12305_v21 = vadd.f32 %v12304_v35, %v12263_v39 }
 0xb11   : > { %v12342_v25 = vadd.f32 %v12341_v51, %v12264_v26  ;;  %v12032_v53 = vpop.f32.mrb[76].mxu0 }
 0xb12   : > { %v12201_v57 = vadd.f32 %v20056_v22, %v12032_v53  ;;  %v12034_v9 = vpop.f32.mrb[77].mxu0 }
 0xb13   : > { %v12202_v4 = vadd.f32 %v20059_v30, %v12034_v9  ;;  %v12036_v34 = vpop.f32.mrb[78].mxu0 }
 0xb14   : > { %v12265_v28 = vmax.f32 %v12201_v57, 0.0  ;;  %v12203_v37 = vadd.f32 %v20056_v22, %v12036_v34  ;;  %v12038_v29 = vpop.f32.mrb[79].mxu0 }
 0xb15   : > { %v12266_v58 = vmax.f32 %v12202_v4, 0.0  ;;  %v12204_v40 = vadd.f32 %v20059_v30, %v12038_v29 }
 0xb16   : > { %v12306_v10 = vadd.f32 %v12305_v21, %v12265_v28  ;;  %v12267_v33 = vmax.f32 %v12203_v37, 0.0 }
 0xb17   : > { %v12343_v27 = vadd.f32 %v12342_v25, %v12266_v58  ;;  %v12268_v7 = vmax.f32 %v12204_v40, 0.0 }
 0xb18   : > { %v12307_v50 = vadd.f32 %v12306_v10, %v12267_v33 }
 0xb19   : > { %v12344_v24 = vadd.f32 %v12343_v27, %v12268_v7  ;;  %v12042_v5 = vpop.f32.mrb[80].mxu0 }
 0xb1a   : > { %v12205_v54 = vadd.f32 %v20056_v22, %v12042_v5  ;;  %v12044_v59 = vpop.f32.mrb[81].mxu0 }
 0xb1b   : > { %v12206_v49 = vadd.f32 %v20059_v30, %v12044_v59  ;;  %v12046_v8 = vpop.f32.mrb[82].mxu0 }
 0xb1c   : > { %v12269_v45 = vmax.f32 %v12205_v54, 0.0  ;;  %v12207_v48 = vadd.f32 %v20056_v22, %v12046_v8  ;;  %v12048_v56 = vpop.f32.mrb[83].mxu0 }
 0xb1d   : > { %v12270_v36 = vmax.f32 %v12206_v49, 0.0  ;;  %v12208_v11 = vadd.f32 %v20059_v30, %v12048_v56 }
 0xb1e   : > { %v12308_v38 = vadd.f32 %v12307_v50, %v12269_v45  ;;  %v12271_v16 = vmax.f32 %v12207_v48, 0.0 }
 0xb1f   : > { %v12345_v32 = vadd.f32 %v12344_v24, %v12270_v36  ;;  %v12272_v1 = vmax.f32 %v12208_v11, 0.0 }
 0xb20   : > { %v12309_v13 = vadd.f32 %v12308_v38, %v12271_v16 }
 0xb21   : > { %v12346_v6 = vadd.f32 %v12345_v32, %v12272_v1  ;;  %v12052_v60 = vpop.f32.mrb[84].mxu0 }
 0xb22   : > { %v12209_v46 = vadd.f32 %v20056_v22, %v12052_v60  ;;  %v12054_v19 = vpop.f32.mrb[85].mxu0 }
 0xb23   : > { %v12210_v3 = vadd.f32 %v20059_v30, %v12054_v19  ;;  %v12056_v20 = vpop.f32.mrb[86].mxu0 }
 0xb24   : > { %v12273_v41 = vmax.f32 %v12209_v46, 0.0  ;;  %v12211_v62 = vadd.f32 %v20056_v22, %v12056_v20  ;;  %v12058_v0 = vpop.f32.mrb[87].mxu0 }
 0xb25   : > { %v12274_v17 = vmax.f32 %v12210_v3, 0.0  ;;  %v12212_v61 = vadd.f32 %v20059_v30, %v12058_v0 }
 0xb26   : > { %v12310_v42 = vadd.f32 %v12309_v13, %v12273_v41  ;;  %v12275_v31 = vmax.f32 %v12211_v62, 0.0 }
 0xb27   : > { %v12347_v63 = vadd.f32 %v12346_v6, %v12274_v17  ;;  %v12276_v44 = vmax.f32 %v12212_v61, 0.0  ;;  %v13972_v6 = vld [vmem:[%s20155_s8] ss:$0 sm:$0xff] }
 0xb28   : > { %v12311_v52 = vadd.f32 %v12310_v42, %v12275_v31 }
 0xb29   : > { %v12348_v18 = vadd.f32 %v12347_v63, %v12276_v44  ;;  %v12062_v2 = vpop.f32.mrb[88].mxu0 }
 0xb2a   : > { %v12213_v47 = vadd.f32 %v20056_v22, %v12062_v2  ;;  %v12064_v14 = vpop.f32.mrb[89].mxu0 }
 0xb2b   : > { %v12214_v12 = vadd.f32 %v20059_v30, %v12064_v14  ;;  %v12066_v23 = vpop.f32.mrb[90].mxu0 }
 0xb2c   : > { %v12277_v55 = vmax.f32 %v12213_v47, 0.0  ;;  %v12215_v43 = vadd.f32 %v20056_v22, %v12066_v23  ;;  %v12068_v15 = vpop.f32.mrb[91].mxu0 }
 0xb2d   : > { %v12278_v35 = vmax.f32 %v12214_v12, 0.0  ;;  %v12216_v39 = vadd.f32 %v20059_v30, %v12068_v15 }
 0xb2e   : > { %v12312_v51 = vadd.f32 %v12311_v52, %v12277_v55  ;;  %v12279_v26 = vmax.f32 %v12215_v43, 0.0 }
 0xb2f   : > { %v12349_v21 = vadd.f32 %v12348_v18, %v12278_v35  ;;  %v12280_v25 = vmax.f32 %v12216_v39, 0.0 }
 0xb30   : > { %v12313_v53 = vadd.f32 %v12312_v51, %v12279_v26 }
 0xb31   : > { %v12350_v57 = vadd.f32 %v12349_v21, %v12280_v25  ;;  %v12072_v9 = vpop.f32.mrb[92].mxu0 }
 0xb32   : > { %v12217_v4 = vadd.f32 %v20056_v22, %v12072_v9  ;;  %v12074_v34 = vpop.f32.mrb[93].mxu0 }
 0xb33   : > { %v12218_v28 = vadd.f32 %v20059_v30, %v12074_v34  ;;  %v12076_v37 = vpop.f32.mrb[94].mxu0 }
 0xb34   : > { %v12281_v29 = vmax.f32 %v12217_v4, 0.0  ;;  %v12219_v58 = vadd.f32 %v20056_v22, %v12076_v37  ;;  %v12078_v40 = vpop.f32.mrb[95].mxu0 }
 0xb35   : > { %v12282_v10 = vmax.f32 %v12218_v28, 0.0  ;;  %v12220_v33 = vadd.f32 %v20059_v30, %v12078_v40 }
 0xb36   : > { %v12314_v27 = vadd.f32 %v12313_v53, %v12281_v29  ;;  %v12283_v7 = vmax.f32 %v12219_v58, 0.0 }
 0xb37   : > { %v12351_v50 = vadd.f32 %v12350_v57, %v12282_v10  ;;  %v12284_v24 = vmax.f32 %v12220_v33, 0.0 }
 0xb38   : > { %v12315_v5 = vadd.f32 %v12314_v27, %v12283_v7 }
 0xb39   : > { %v12352_v54 = vadd.f32 %v12351_v50, %v12284_v24 }
 0xb3a   : > { %v12316_v59 = vrot.slane %v12315_v5, 4 }
 0xb3b   : > { %v12353_v49 = vrot.slane %v12352_v54, 4 }
 0xb3c   : > { %v12317_v8 = vadd.f32 %v12316_v59, %v12315_v5 }
 0xb3d   : > { %v12354_v45 = vadd.f32 %v12353_v49, %v12352_v54 }
 0xb3e   : > { %v12318_v48 = vrot.slane %v12317_v8, 2 }
 0xb3f   : > { %v12355_v56 = vrot.slane %v12354_v45, 2 }
 0xb40   : > { %v12319_v36 = vadd.f32 %v12318_v48, %v12317_v8 }
 0xb41   : > { %v12356_v11 = vadd.f32 %v12355_v56, %v12354_v45 }
 0xb42   : > { %v12320_v22 = vrot.slane %v12319_v36, 1 }
 0xb43   : > { %v12357_v38 = vrot.slane %v12356_v11, 1 }
 0xb44   : > { %v12321_v16 = vadd.f32 %v12320_v22, %v12319_v36 }
 0xb45   : > { %v12358_v32 = vadd.f32 %v12357_v38, %v12356_v11 }
 0xb46   : > { %v12359_v1 = vmul.f32 0.00390625, %v12321_v16 }
 0xb47   : > { %v12360_v30 = vmul.f32 0.00390625, %v12358_v32 }
 0xb49   : > { %12464 = vmatprep.mubr.f32.mxu1 %v12360_v30 }
 0xb4a   : > { %12465 = vmatmul.mubr.f32.vlgmr.msra.gmra.mrb[96].mxu1 %v12359_v1 }
 0xc1d   : > { %v14072_v13 = vpop.f32.mrb[96].mxu1 }
 0xc1e   : > { %v14073_v60 = vpop.f32.mrb[97].mxu1 }
 0xc1f   : > { %v14074_v46 = vadd.f32 %v14073_v60, %v14072_v13 }
 0xc21   : > { %v12467_v19 = vadd.f32 %v14074_v46, %v13972_v6 }
 0xc23   : > { %12470 = vst [vmem:[%s330_s17] sm:$0xff] %v12467_v19 }
 0xc24 PF: > { %s19_s30 = sadd.s32 1, %s16106_s30  }
 0xc25   : > { %p16_p4 = scmp.ge.s32.totalorder %s19_s30, 4  }
 0xc27   :  { %18 = sbr.rel (!%p16_p4) target bundleno = 1 (0x1), region = 103 }

</bundles_post_ra>
